<compile_context>
chip_gen: v5e
topology: v5e:2x2
jax: 0.10.0
libtpu: 0.0.40
codegen_flags: <defaults>
</compile_context>

<pallas_src>
import functools

import jax
import jax.numpy as jnp
import numpy as np
from jax.experimental import pallas as pl
from jax.experimental.pallas import tpu as pltpu

CP = 128      # intermediate / output channel padding -> lane-dense 128-wide vregs
EPS = 1e-5    # BatchNorm eps (PyTorch default)


def _round_up(v, m):
    return ((v + m - 1) // m) * m


def _cin_pad(c_in):
    """HBM channel padding for the kernel input: small multiple of 8, not 128."""
    return min(CP, max(8, _round_up(c_in, 8)))


def _pick_tile_rows(H, W):
    """Row-tile height: big enough to amortize the ~0.35us/step pipeline
    overhead (target M = TH*W >= ~512), bounded so the stage-2 im2col scratch
    (TH*W*9*CP bf16) stays ~<= 6 MiB, and by (rounded-up) H."""
    th = max(8, _round_up(-(-512 // W), 8))
    vmem_cap = max(8, ((6 << 20) // (W * 9 * CP * 2)) // 8 * 8)
    th = min(th, vmem_cap, 64)
    return min(th, _round_up(H, 8))


def _double_conv_kernel(xp_ref, w1_ref, b1_ref, w2_ref, b2_ref, o_ref,
                        p1_ref, y1p_ref, p2_ref, *, H, W, TH, CIN_P):
    """Fused (conv3x3 => BN => ReLU) * 2 for one (image, row-tile) grid step.

    xp_ref  : (1, Hp+4, W+2, CIN_P) bf16  zero-padded input (2-row / 1-col halo)
    w1_ref  : (K1P, CP)             bf16  stage-1 weight, K order (dy, dx, c_in),
                                          K padded to 128-multiple with zeros
    b1_ref  : (1, CP)               f32   folded conv1+BN1 bias
    w2_ref  : (9*CP, CP)            bf16  stage-2 weight, K order (dy, dx, c_in)
    b2_ref  : (1, CP)               f32   folded conv2+BN2 bias
    o_ref   : (1, TH, W, CP)        bf16  output row tile (lane-dense store)
    p1_ref  : ((TH+2)*W, K1P)       bf16  reused stage-1 im2col scratch
    y1p_ref : (TH+2, W+2, CP)       bf16  stage-1 activation + 1-col zero halo
    p2_ref  : (TH*W, 9*CP)          bf16  reused stage-2 im2col scratch
    """
    cp = o_ref.shape[-1]
    k1 = 9 * CIN_P
    k1p = p1_ref.shape[-1]
    t = pl.program_id(1)
    r0 = pl.multiple_of(t * TH, TH)          # first output row of this tile

    # ---- stage 1: conv1+BN1+ReLU for rows [r0-1, r0+TH]  (TH+2 rows, 1-row halo)
    # im2col into a reused VMEM scratch -> ONE aligned-K MXU matmul.
    for dy in range(3):
        for dx in range(3):
            k = (dy * 3 + dx) * CIN_P
            tap = xp_ref[0, pl.ds(r0 + dy, TH + 2), dx:dx + W, :]
            p1_ref[:, k:k + CIN_P] = tap.reshape((TH + 2) * W, CIN_P)
    if k1p > k1:  # zero the K padding (static branch); padded weight rows are 0
        p1_ref[:, k1:] = jnp.zeros(((TH + 2) * W, k1p - k1), jnp.bfloat16)

    acc1 = jnp.dot(p1_ref[...], w1_ref[...], preferred_element_type=jnp.float32)
    y1 = jnp.maximum(acc1 + b1_ref[...], 0.0).reshape(TH + 2, W, cp)

    # Halo rows outside the image act as conv2's zero padding -> force to 0
    # (also masks the tail rows when H is not a multiple of TH).
    g = r0 - 1 + jax.lax.broadcasted_iota(jnp.int32, (TH + 2, 1, 1), 0)
    y1 = jnp.where((g >= 0) & (g < H), y1, 0.0).astype(jnp.bfloat16)

    # Stage-1 activation never leaves VMEM: park it (plus a 1-col zero halo).
    zc = jnp.zeros((TH + 2, 1, cp), jnp.bfloat16)
    y1p_ref[:, 1:W + 1, :] = y1
    y1p_ref[:, 0:1, :] = zc
    y1p_ref[:, W + 1:W + 2, :] = zc

    # ---- stage 2: conv2+BN2+ReLU for the TH output rows, ONE K=9*CP matmul
    for dy in range(3):
        for dx in range(3):
            k = (dy * 3 + dx) * cp
            p2_ref[:, k:k + cp] = (
                y1p_ref[dy:dy + TH, dx:dx + W, :].reshape(TH * W, cp))

    acc2 = jnp.dot(p2_ref[...], w2_ref[...], preferred_element_type=jnp.float32)
    y2 = jnp.maximum(acc2 + b2_ref[...], 0.0)
    o_ref[...] = y2.reshape(1, TH, W, cp).astype(o_ref.dtype)


def _prep_stage(w_oihw, conv_b, gamma, beta, mean, var, cin_p, eps=EPS):
    """Fold eval-mode BN into conv weight/bias, pad channels, reshape to the
    (K = 9*cin_p, padded to 128-multiple) x CP matmul layout, cast to bf16."""
    out_ch, in_ch = w_oihw.shape[0], w_oihw.shape[1]
    assert in_ch <= cin_p <= CP and out_ch <= CP, \
        "TODO(synk): channel tiling for >128 channels"
    scale = gamma / jnp.sqrt(var + eps)                       # (out_ch,)
    bias = beta + (conv_b - mean) * scale                     # (out_ch,)
    w_hwio = jnp.transpose(w_oihw, (2, 3, 1, 0)) * scale      # (3,3,in,out)
    w_full = jnp.zeros((3, 3, cin_p, CP), jnp.float32)
    w_full = w_full.at[:, :, :in_ch, :out_ch].set(w_hwio)
    k = 9 * cin_p
    kp = _round_up(k, 128)
    w_k = jnp.zeros((kp, CP), jnp.float32).at[:k].set(w_full.reshape(k, CP))
    b_pad = jnp.zeros((1, CP), jnp.float32).at[0, :out_ch].set(bias)
    return w_k.astype(jnp.bfloat16), b_pad


def prepare_params(raw_params):
    """Host-side (one-time) parameter preparation for both stages."""
    s1, s2 = raw_params
    in_ch = s1[0].shape[1]
    return [_prep_stage(*s1, cin_p=_cin_pad(in_ch)),
            _prep_stage(*s2, cin_p=CP)]


def double_conv_forward_nhwc(x_nhwc, kernel_params):
    """Core forward: NHWC in, NHWC bf16 out with CP-padded channels.

    Returns (N, Hp, W, CP) bf16 where Hp = round_up(H, TH); rows >= H and
    channels >= out_ch are padding for the consumer to ignore.
    """
    (w1, b1), (w2, b2) = kernel_params
    N, H, W, c_in = x_nhwc.shape
    cin_p = _cin_pad(c_in)
    k1p = w1.shape[0]
    assert k1p == _round_up(9 * cin_p, 128) and w2.shape[0] == 9 * CP

    TH = _pick_tile_rows(H, W)
    T = pl.cdiv(H, TH)
    Hp = T * TH

    # Single fused pad: 2-row / 1-col spatial halo (+ row round-up) and the
    # small channel pad; no 128-channel blow-up of the HBM input.
    xp = jnp.pad(x_nhwc, ((0, 0), (2, 2 + Hp - H), (1, 1), (0, cin_p - c_in))
                 ).astype(jnp.bfloat16)

    kernel = functools.partial(_double_conv_kernel, H=H, W=W, TH=TH,
                               CIN_P=cin_p)
    flops = 2 * N * Hp * W * (k1p + 9 * CP) * CP
    bytes_accessed = (xp.size * 2 + (w1.size + w2.size) * 2
                      + (b1.size + b2.size) * 4 + N * Hp * W * CP * 2)

    return pl.pallas_call(
        kernel,
        out_shape=jax.ShapeDtypeStruct((N, Hp, W, CP), jnp.bfloat16),
        grid=(N, T),
        in_specs=[
            pl.BlockSpec((1, Hp + 4, W + 2, cin_p), lambda n, t: (n, 0, 0, 0)),
            pl.BlockSpec((k1p, CP), lambda n, t: (0, 0)),
            pl.BlockSpec((1, CP), lambda n, t: (0, 0)),
            pl.BlockSpec((9 * CP, CP), lambda n, t: (0, 0)),
            pl.BlockSpec((1, CP), lambda n, t: (0, 0)),
        ],
        out_specs=pl.BlockSpec((1, TH, W, CP), lambda n, t: (n, t, 0, 0)),
        scratch_shapes=[
            pltpu.VMEM(((TH + 2) * W, k1p), jnp.bfloat16),   # stage-1 im2col
            pltpu.VMEM((TH + 2, W + 2, CP), jnp.bfloat16),   # stage-1 act + halo
            pltpu.VMEM((TH * W, 9 * CP), jnp.bfloat16),      # stage-2 im2col
        ],
        compiler_params=pltpu.CompilerParams(
            dimension_semantics=("parallel", "parallel"),
            vmem_limit_bytes=32 * 1024 * 1024),
        cost_estimate=pl.CostEstimate(flops=int(flops), transcendentals=0,
                                      bytes_accessed=int(bytes_accessed)),
    )(xp, w1, b1, w2, b2)


def double_conv_forward(x_nchw, kernel_params, out_ch):
    """PyTorch-layout (NCHW f32) compat wrapper used for the parity test.

    In production keep activations NHWC / CP-padded across the network and
    drop these transposes / slices (they are pure layout plumbing).
    """
    N, c_in, H, W = x_nchw.shape
    x = jnp.transpose(x_nchw, (0, 2, 3, 1))                       # NCHW -> NHWC
    out = double_conv_forward_nhwc(x, kernel_params)              # (N,Hp,W,CP) bf16
    out = out[:, :H, :, :out_ch].astype(jnp.float32)
    return jnp.transpose(out, (0, 3, 1, 2))                       # NHWC -> NCHW


def make_raw_params(key, in_ch, out_ch):
    """Deterministic synthetic parameters mirroring the PyTorch module shapes."""
    ks = jax.random.split(key, 12)
    raw = []
    c_prev = in_ch
    for i in range(2):
        w = 0.1 * jax.random.normal(ks[6 * i + 0], (out_ch, c_prev, 3, 3), jnp.float32)
        b = 0.05 * jax.random.normal(ks[6 * i + 1], (out_ch,), jnp.float32)
        gamma = 1.0 + 0.1 * jax.random.normal(ks[6 * i + 2], (out_ch,), jnp.float32)
        beta = 0.1 * jax.random.normal(ks[6 * i + 3], (out_ch,), jnp.float32)
        mean = 0.1 * jax.random.normal(ks[6 * i + 4], (out_ch,), jnp.float32)
        var = 1.0 + 0.1 * jnp.abs(jax.random.normal(ks[6 * i + 5], (out_ch,), jnp.float32))
        raw.append((w, b, gamma, beta, mean, var))
        c_prev = out_ch
    return raw


def _reference_forward(x_nchw, raw_params, eps=EPS):
    """Pure-JAX f32 reference (lax conv + explicit eval-mode BN + ReLU)."""
    x = jnp.transpose(x_nchw, (0, 2, 3, 1))
    for (w_oihw, b, gamma, beta, mean, var) in raw_params:
        w_hwio = jnp.transpose(w_oihw, (2, 3, 1, 0))
        y = jax.lax.conv_general_dilated(
            x, w_hwio, window_strides=(1, 1), padding="SAME",
            dimension_numbers=("NHWC", "HWIO", "NHWC"),
            precision=jax.lax.Precision.HIGHEST)
        y = y + b
        y = (y - mean) * (gamma / jnp.sqrt(var + eps)) + beta
        x = jnp.maximum(y, 0.0)
    return jnp.transpose(x, (0, 3, 1, 2))


if __name__ == "__main__":
    key = jax.random.PRNGKey(0)
    k_x1, k_p1, k_x2, k_p2 = jax.random.split(key, 4)

    # Case 1: first-layer-style block (c_in << 128), H a multiple of the tile.
    N, in_ch, out_ch, H, W = 2, 4, 8, 16, 16
    x = jax.random.normal(k_x1, (N, in_ch, H, W), jnp.float32)    # NCHW like PyTorch
    raw = make_raw_params(k_p1, in_ch, out_ch)
    params = prepare_params(raw)
    fwd = jax.jit(functools.partial(double_conv_forward, out_ch=out_ch))
    out = jax.block_until_ready(fwd(x, params))
    ref = jax.block_until_ready(_reference_forward(x, raw))
    assert out.shape == (N, out_ch, H, W)
    # bf16 matmul inputs / bf16 intermediate+output vs f32 reference -> loose tol.
    np.testing.assert_allclose(np.asarray(out), np.asarray(ref),
                               rtol=4e-2, atol=4e-2)

    # Case 2: H not a multiple of the row tile (exercises the cdiv / tail-mask path).
    N2, in2, out2, H2, W2 = 1, 3, 5, 12, 16
    x2 = jax.random.normal(k_x2, (N2, in2, H2, W2), jnp.float32)
    raw2 = make_raw_params(k_p2, in2, out2)
    params2 = prepare_params(raw2)
    fwd2 = jax.jit(functools.partial(double_conv_forward, out_ch=out2))
    out2_arr = jax.block_until_ready(fwd2(x2, params2))
    ref2 = jax.block_until_ready(_reference_forward(x2, raw2))
    assert out2_arr.shape == (N2, out2, H2, W2)
    np.testing.assert_allclose(np.asarray(out2_arr), np.asarray(ref2),
                               rtol=4e-2, atol=4e-2)

    print("KERNEL_OK")
</pallas_src>

<mosaic_0001>
module attributes {stable_mosaic.version = 11 : i64} {
  func.func @_double_conv_kernel(%arg0: i32, %arg1: i32, %arg2: memref<1x20x18x8xbf16, #tpu.memory_space<vmem>>, %arg3: memref<128x128xbf16, #tpu.memory_space<vmem>>, %arg4: memref<1x128xf32, #tpu.memory_space<vmem>>, %arg5: memref<1152x128xbf16, #tpu.memory_space<vmem>>, %arg6: memref<1x128xf32, #tpu.memory_space<vmem>>, %arg7: memref<1x16x16x128xbf16, #tpu.memory_space<vmem>>, %arg8: memref<288x128xbf16, #tpu.memory_space<vmem>>, %arg9: memref<18x18x128xbf16, #tpu.memory_space<vmem>>, %arg10: memref<256x1152xbf16, #tpu.memory_space<vmem>>) attributes {dimension_semantics = [#tpu.dimension_semantics<parallel>, #tpu.dimension_semantics<parallel>], iteration_bounds = array<i64: 2, 1>, scalar_prefetch = 0 : i64, scratch_operands = 3 : i64, tpu.core_type = #tpu.core_type<tc>, window_params = [{transform_indices = @transform_0, window_bounds = array<i64: 1, 20, 18, 8>}, {pipeline_mode = #tpu.pipeline_mode<synchronous>, transform_indices = @transform_1, window_bounds = array<i64: 128, 128>}, {pipeline_mode = #tpu.pipeline_mode<synchronous>, transform_indices = @transform_2, window_bounds = array<i64: 1, 128>}, {pipeline_mode = #tpu.pipeline_mode<synchronous>, transform_indices = @transform_3, window_bounds = array<i64: 1152, 128>}, {pipeline_mode = #tpu.pipeline_mode<synchronous>, transform_indices = @transform_4, window_bounds = array<i64: 1, 128>}, {transform_indices = @transform_5, window_bounds = array<i64: 1, 16, 16, 128>}]} {
    %c16_i32 = arith.constant 16 : i32
    %0 = arith.muli %arg1, %c16_i32 : i32
    %1 = tpu.assume_multiple %0, 16 : i32
    %c0_i32 = arith.constant 0 : i32
    %2 = arith.addi %1, %c0_i32 : i32
    %c0 = arith.constant 0 : index
    %3 = arith.index_cast %2 : i32 to index
    %c0_0 = arith.constant 0 : index
    %c0_1 = arith.constant 0 : index
    %4 = vector.load %arg2[%c0, %3, %c0_0, %c0_1] : memref<1x20x18x8xbf16, #tpu.memory_space<vmem>>, vector<1x18x16x8xbf16>
    %5 = vector.shape_cast %4 : vector<1x18x16x8xbf16> to vector<18x16x8xbf16>
    %6 = vector.shape_cast %5 : vector<18x16x8xbf16> to vector<288x8xbf16>
    %c0_2 = arith.constant 0 : index
    %c0_3 = arith.constant 0 : index
    %7 = vector.load %arg8[%c0_2, %c0_3] : memref<288x128xbf16, #tpu.memory_space<vmem>>, vector<288x8xbf16>
    tpu.vector_store %arg8[%c0_2, %c0_3], %6 {strides = array<i32>} : memref<288x128xbf16, #tpu.memory_space<vmem>>, vector<288x8xbf16>,
    %c0_i32_4 = arith.constant 0 : i32
    %8 = arith.addi %1, %c0_i32_4 : i32
    %c0_5 = arith.constant 0 : index
    %9 = arith.index_cast %8 : i32 to index
    %c1 = arith.constant 1 : index
    %c0_6 = arith.constant 0 : index
    %10 = vector.load %arg2[%c0_5, %9, %c1, %c0_6] : memref<1x20x18x8xbf16, #tpu.memory_space<vmem>>, vector<1x18x16x8xbf16>
    %11 = vector.shape_cast %10 : vector<1x18x16x8xbf16> to vector<18x16x8xbf16>
    %12 = vector.shape_cast %11 : vector<18x16x8xbf16> to vector<288x8xbf16>
    %c0_7 = arith.constant 0 : index
    %c8 = arith.constant 8 : index
    %13 = vector.load %arg8[%c0_7, %c8] : memref<288x128xbf16, #tpu.memory_space<vmem>>, vector<288x8xbf16>
    tpu.vector_store %arg8[%c0_7, %c8], %12 {strides = array<i32>} : memref<288x128xbf16, #tpu.memory_space<vmem>>, vector<288x8xbf16>,
    %c0_i32_8 = arith.constant 0 : i32
    %14 = arith.addi %1, %c0_i32_8 : i32
    %c0_9 = arith.constant 0 : index
    %15 = arith.index_cast %14 : i32 to index
    %c2 = arith.constant 2 : index
    %c0_10 = arith.constant 0 : index
    %16 = vector.load %arg2[%c0_9, %15, %c2, %c0_10] : memref<1x20x18x8xbf16, #tpu.memory_space<vmem>>, vector<1x18x16x8xbf16>
    %17 = vector.shape_cast %16 : vector<1x18x16x8xbf16> to vector<18x16x8xbf16>
    %18 = vector.shape_cast %17 : vector<18x16x8xbf16> to vector<288x8xbf16>
    %c0_11 = arith.constant 0 : index
    %c16 = arith.constant 16 : index
    %19 = vector.load %arg8[%c0_11, %c16] : memref<288x128xbf16, #tpu.memory_space<vmem>>, vector<288x8xbf16>
    tpu.vector_store %arg8[%c0_11, %c16], %18 {strides = array<i32>} : memref<288x128xbf16, #tpu.memory_space<vmem>>, vector<288x8xbf16>,
    %c1_i32 = arith.constant 1 : i32
    %20 = arith.addi %1, %c1_i32 : i32
    %c0_12 = arith.constant 0 : index
    %21 = arith.index_cast %20 : i32 to index
    %c0_13 = arith.constant 0 : index
    %c0_14 = arith.constant 0 : index
    %22 = vector.load %arg2[%c0_12, %21, %c0_13, %c0_14] : memref<1x20x18x8xbf16, #tpu.memory_space<vmem>>, vector<1x18x16x8xbf16>
    %23 = vector.shape_cast %22 : vector<1x18x16x8xbf16> to vector<18x16x8xbf16>
    %24 = vector.shape_cast %23 : vector<18x16x8xbf16> to vector<288x8xbf16>
    %c0_15 = arith.constant 0 : index
    %c24 = arith.constant 24 : index
    %25 = vector.load %arg8[%c0_15, %c24] : memref<288x128xbf16, #tpu.memory_space<vmem>>, vector<288x8xbf16>
    tpu.vector_store %arg8[%c0_15, %c24], %24 {strides = array<i32>} : memref<288x128xbf16, #tpu.memory_space<vmem>>, vector<288x8xbf16>,
    %c1_i32_16 = arith.constant 1 : i32
    %26 = arith.addi %1, %c1_i32_16 : i32
    %c0_17 = arith.constant 0 : index
    %27 = arith.index_cast %26 : i32 to index
    %c1_18 = arith.constant 1 : index
    %c0_19 = arith.constant 0 : index
    %28 = vector.load %arg2[%c0_17, %27, %c1_18, %c0_19] : memref<1x20x18x8xbf16, #tpu.memory_space<vmem>>, vector<1x18x16x8xbf16>
    %29 = vector.shape_cast %28 : vector<1x18x16x8xbf16> to vector<18x16x8xbf16>
    %30 = vector.shape_cast %29 : vector<18x16x8xbf16> to vector<288x8xbf16>
    %c0_20 = arith.constant 0 : index
    %c32 = arith.constant 32 : index
    %31 = vector.load %arg8[%c0_20, %c32] : memref<288x128xbf16, #tpu.memory_space<vmem>>, vector<288x8xbf16>
    tpu.vector_store %arg8[%c0_20, %c32], %30 {strides = array<i32>} : memref<288x128xbf16, #tpu.memory_space<vmem>>, vector<288x8xbf16>,
    %c1_i32_21 = arith.constant 1 : i32
    %32 = arith.addi %1, %c1_i32_21 : i32
    %c0_22 = arith.constant 0 : index
    %33 = arith.index_cast %32 : i32 to index
    %c2_23 = arith.constant 2 : index
    %c0_24 = arith.constant 0 : index
    %34 = vector.load %arg2[%c0_22, %33, %c2_23, %c0_24] : memref<1x20x18x8xbf16, #tpu.memory_space<vmem>>, vector<1x18x16x8xbf16>
    %35 = vector.shape_cast %34 : vector<1x18x16x8xbf16> to vector<18x16x8xbf16>
    %36 = vector.shape_cast %35 : vector<18x16x8xbf16> to vector<288x8xbf16>
    %c0_25 = arith.constant 0 : index
    %c40 = arith.constant 40 : index
    %37 = vector.load %arg8[%c0_25, %c40] : memref<288x128xbf16, #tpu.memory_space<vmem>>, vector<288x8xbf16>
    tpu.vector_store %arg8[%c0_25, %c40], %36 {strides = array<i32>} : memref<288x128xbf16, #tpu.memory_space<vmem>>, vector<288x8xbf16>,
    %c2_i32 = arith.constant 2 : i32
    %38 = arith.addi %1, %c2_i32 : i32
    %c0_26 = arith.constant 0 : index
    %39 = arith.index_cast %38 : i32 to index
    %c0_27 = arith.constant 0 : index
    %c0_28 = arith.constant 0 : index
    %40 = vector.load %arg2[%c0_26, %39, %c0_27, %c0_28] : memref<1x20x18x8xbf16, #tpu.memory_space<vmem>>, vector<1x18x16x8xbf16>
    %41 = vector.shape_cast %40 : vector<1x18x16x8xbf16> to vector<18x16x8xbf16>
    %42 = vector.shape_cast %41 : vector<18x16x8xbf16> to vector<288x8xbf16>
    %c0_29 = arith.constant 0 : index
    %c48 = arith.constant 48 : index
    %43 = vector.load %arg8[%c0_29, %c48] : memref<288x128xbf16, #tpu.memory_space<vmem>>, vector<288x8xbf16>
    tpu.vector_store %arg8[%c0_29, %c48], %42 {strides = array<i32>} : memref<288x128xbf16, #tpu.memory_space<vmem>>, vector<288x8xbf16>,
    %c2_i32_30 = arith.constant 2 : i32
    %44 = arith.addi %1, %c2_i32_30 : i32
    %c0_31 = arith.constant 0 : index
    %45 = arith.index_cast %44 : i32 to index
    %c1_32 = arith.constant 1 : index
    %c0_33 = arith.constant 0 : index
    %46 = vector.load %arg2[%c0_31, %45, %c1_32, %c0_33] : memref<1x20x18x8xbf16, #tpu.memory_space<vmem>>, vector<1x18x16x8xbf16>
    %47 = vector.shape_cast %46 : vector<1x18x16x8xbf16> to vector<18x16x8xbf16>
    %48 = vector.shape_cast %47 : vector<18x16x8xbf16> to vector<288x8xbf16>
    %c0_34 = arith.constant 0 : index
    %c56 = arith.constant 56 : index
    %49 = vector.load %arg8[%c0_34, %c56] : memref<288x128xbf16, #tpu.memory_space<vmem>>, vector<288x8xbf16>
    tpu.vector_store %arg8[%c0_34, %c56], %48 {strides = array<i32>} : memref<288x128xbf16, #tpu.memory_space<vmem>>, vector<288x8xbf16>,
    %c2_i32_35 = arith.constant 2 : i32
    %50 = arith.addi %1, %c2_i32_35 : i32
    %c0_36 = arith.constant 0 : index
    %51 = arith.index_cast %50 : i32 to index
    %c2_37 = arith.constant 2 : index
    %c0_38 = arith.constant 0 : index
    %52 = vector.load %arg2[%c0_36, %51, %c2_37, %c0_38] : memref<1x20x18x8xbf16, #tpu.memory_space<vmem>>, vector<1x18x16x8xbf16>
    %53 = vector.shape_cast %52 : vector<1x18x16x8xbf16> to vector<18x16x8xbf16>
    %54 = vector.shape_cast %53 : vector<18x16x8xbf16> to vector<288x8xbf16>
    %c0_39 = arith.constant 0 : index
    %c64 = arith.constant 64 : index
    %55 = vector.load %arg8[%c0_39, %c64] : memref<288x128xbf16, #tpu.memory_space<vmem>>, vector<288x8xbf16>
    tpu.vector_store %arg8[%c0_39, %c64], %54 {strides = array<i32>} : memref<288x128xbf16, #tpu.memory_space<vmem>>, vector<288x8xbf16>,
    %cst = arith.constant 0.000000e+00 : bf16
    %56 = vector.broadcast %cst : bf16 to vector<288x56xbf16>
    %c0_40 = arith.constant 0 : index
    %c72 = arith.constant 72 : index
    %57 = vector.load %arg8[%c0_40, %c72] : memref<288x128xbf16, #tpu.memory_space<vmem>>, vector<288x56xbf16>
    tpu.vector_store %arg8[%c0_40, %c72], %56 {strides = array<i32>} : memref<288x128xbf16, #tpu.memory_space<vmem>>, vector<288x56xbf16>,
    %c0_41 = arith.constant 0 : index
    %c0_42 = arith.constant 0 : index
    %58 = vector.load %arg8[%c0_41, %c0_42] : memref<288x128xbf16, #tpu.memory_space<vmem>>, vector<288x128xbf16>
    %c0_43 = arith.constant 0 : index
    %c0_44 = arith.constant 0 : index
    %59 = vector.load %arg3[%c0_43, %c0_44] : memref<128x128xbf16, #tpu.memory_space<vmem>>, vector<128x128xbf16>
    %cst_45 = arith.constant dense<0.000000e+00> : vector<288x128xf32>
    %60 = tpu.matmul %58, %59, %cst_45 {dimension_numbers = #tpu.dot_dimension_numbers<[1], [0], [0], [1], [0, 0, 1, 1], [], []>} : vector<288x128xbf16>, vector<128x128xbf16>, vector<288x128xf32> -> vector<288x128xf32>
    %c0_46 = arith.constant 0 : index
    %c0_47 = arith.constant 0 : index
    %61 = vector.load %arg4[%c0_46, %c0_47] : memref<1x128xf32, #tpu.memory_space<vmem>>, vector<1x128xf32>
    %62 = vector.broadcast %61 : vector<1x128xf32> to vector<288x128xf32>
    %63 = arith.addf %60, %62 : vector<288x128xf32>
    %cst_48 = arith.constant 0.000000e+00 : f32
    %64 = vector.broadcast %cst_48 : f32 to vector<288x128xf32>
    %65 = arith.maximumf %63, %64 : vector<288x128xf32>
    %66 = vector.shape_cast %65 : vector<288x128xf32> to vector<18x16x128xf32>
    %c1_i32_49 = arith.constant 1 : i32
    %67 = arith.subi %1, %c1_i32_49 : i32
    %68 = tpu.iota {dimensions = array<i32: 0>} : vector<18x1x1xi32>
    %69 = vector.broadcast %67 : i32 to vector<18x1x1xi32>
    %70 = arith.addi %69, %68 : vector<18x1x1xi32>
    %c0_i32_50 = arith.constant 0 : i32
    %71 = vector.broadcast %c0_i32_50 : i32 to vector<18x1x1xi32>
    %72 = arith.cmpi sge, %70, %71 : vector<18x1x1xi32>
    %c16_i32_51 = arith.constant 16 : i32
    %73 = vector.broadcast %c16_i32_51 : i32 to vector<18x1x1xi32>
    %74 = arith.cmpi slt, %70, %73 : vector<18x1x1xi32>
    %75 = arith.andi %72, %74 : vector<18x1x1xi1>
    %cst_52 = arith.constant 0.000000e+00 : f32
    %76 = vector.shape_cast %75 : vector<18x1x1xi1> to vector<18x1x1xi1>
    %77 = vector.broadcast %76 : vector<18x1x1xi1> to vector<18x16x128xi1>
    %78 = vector.broadcast %cst_52 : f32 to vector<18x16x128xf32>
    %79 = arith.select %77, %66, %78 : vector<18x16x128xi1>, vector<18x16x128xf32>
    %80 = arith.truncf %79 : vector<18x16x128xf32> to vector<18x16x128xbf16>
    %cst_53 = arith.constant 0.000000e+00 : bf16
    %81 = vector.broadcast %cst_53 : bf16 to vector<18x1x128xbf16>
    %c0_54 = arith.constant 0 : index
    %c1_55 = arith.constant 1 : index
    %c0_56 = arith.constant 0 : index
    %82 = vector.load %arg9[%c0_54, %c1_55, %c0_56] : memref<18x18x128xbf16, #tpu.memory_space<vmem>>, vector<18x16x128xbf16>
    tpu.vector_store %arg9[%c0_54, %c1_55, %c0_56], %80 {strides = array<i32>} : memref<18x18x128xbf16, #tpu.memory_space<vmem>>, vector<18x16x128xbf16>,
    %c0_57 = arith.constant 0 : index
    %c0_58 = arith.constant 0 : index
    %c0_59 = arith.constant 0 : index
    %83 = vector.load %arg9[%c0_57, %c0_58, %c0_59] : memref<18x18x128xbf16, #tpu.memory_space<vmem>>, vector<18x1x128xbf16>
    tpu.vector_store %arg9[%c0_57, %c0_58, %c0_59], %81 {strides = array<i32>} : memref<18x18x128xbf16, #tpu.memory_space<vmem>>, vector<18x1x128xbf16>,
    %c0_60 = arith.constant 0 : index
    %c17 = arith.constant 17 : index
    %c0_61 = arith.constant 0 : index
    %84 = vector.load %arg9[%c0_60, %c17, %c0_61] : memref<18x18x128xbf16, #tpu.memory_space<vmem>>, vector<18x1x128xbf16>
    tpu.vector_store %arg9[%c0_60, %c17, %c0_61], %81 {strides = array<i32>} : memref<18x18x128xbf16, #tpu.memory_space<vmem>>, vector<18x1x128xbf16>,
    %c0_62 = arith.constant 0 : index
    %c0_63 = arith.constant 0 : index
    %c0_64 = arith.constant 0 : index
    %85 = vector.load %arg9[%c0_62, %c0_63, %c0_64] : memref<18x18x128xbf16, #tpu.memory_space<vmem>>, vector<16x16x128xbf16>
    %86 = vector.shape_cast %85 : vector<16x16x128xbf16> to vector<256x128xbf16>
    %c0_65 = arith.constant 0 : index
    %c0_66 = arith.constant 0 : index
    %87 = vector.load %arg10[%c0_65, %c0_66] : memref<256x1152xbf16, #tpu.memory_space<vmem>>, vector<256x128xbf16>
    tpu.vector_store %arg10[%c0_65, %c0_66], %86 {strides = array<i32>} : memref<256x1152xbf16, #tpu.memory_space<vmem>>, vector<256x128xbf16>,
    %c0_67 = arith.constant 0 : index
    %c1_68 = arith.constant 1 : index
    %c0_69 = arith.constant 0 : index
    %88 = vector.load %arg9[%c0_67, %c1_68, %c0_69] : memref<18x18x128xbf16, #tpu.memory_space<vmem>>, vector<16x16x128xbf16>
    %89 = vector.shape_cast %88 : vector<16x16x128xbf16> to vector<256x128xbf16>
    %c0_70 = arith.constant 0 : index
    %c128 = arith.constant 128 : index
    %90 = vector.load %arg10[%c0_70, %c128] : memref<256x1152xbf16, #tpu.memory_space<vmem>>, vector<256x128xbf16>
    tpu.vector_store %arg10[%c0_70, %c128], %89 {strides = array<i32>} : memref<256x1152xbf16, #tpu.memory_space<vmem>>, vector<256x128xbf16>,
    %c0_71 = arith.constant 0 : index
    %c2_72 = arith.constant 2 : index
    %c0_73 = arith.constant 0 : index
    %91 = vector.load %arg9[%c0_71, %c2_72, %c0_73] : memref<18x18x128xbf16, #tpu.memory_space<vmem>>, vector<16x16x128xbf16>
    %92 = vector.shape_cast %91 : vector<16x16x128xbf16> to vector<256x128xbf16>
    %c0_74 = arith.constant 0 : index
    %c256 = arith.constant 256 : index
    %93 = vector.load %arg10[%c0_74, %c256] : memref<256x1152xbf16, #tpu.memory_space<vmem>>, vector<256x128xbf16>
    tpu.vector_store %arg10[%c0_74, %c256], %92 {strides = array<i32>} : memref<256x1152xbf16, #tpu.memory_space<vmem>>, vector<256x128xbf16>,
    %c1_75 = arith.constant 1 : index
    %c0_76 = arith.constant 0 : index
    %c0_77 = arith.constant 0 : index
    %94 = vector.load %arg9[%c1_75, %c0_76, %c0_77] : memref<18x18x128xbf16, #tpu.memory_space<vmem>>, vector<16x16x128xbf16>
    %95 = vector.shape_cast %94 : vector<16x16x128xbf16> to vector<256x128xbf16>
    %c0_78 = arith.constant 0 : index
    %c384 = arith.constant 384 : index
    %96 = vector.load %arg10[%c0_78, %c384] : memref<256x1152xbf16, #tpu.memory_space<vmem>>, vector<256x128xbf16>
    tpu.vector_store %arg10[%c0_78, %c384], %95 {strides = array<i32>} : memref<256x1152xbf16, #tpu.memory_space<vmem>>, vector<256x128xbf16>,
    %c1_79 = arith.constant 1 : index
    %c1_80 = arith.constant 1 : index
    %c0_81 = arith.constant 0 : index
    %97 = vector.load %arg9[%c1_79, %c1_80, %c0_81] : memref<18x18x128xbf16, #tpu.memory_space<vmem>>, vector<16x16x128xbf16>
    %98 = vector.shape_cast %97 : vector<16x16x128xbf16> to vector<256x128xbf16>
    %c0_82 = arith.constant 0 : index
    %c512 = arith.constant 512 : index
    %99 = vector.load %arg10[%c0_82, %c512] : memref<256x1152xbf16, #tpu.memory_space<vmem>>, vector<256x128xbf16>
    tpu.vector_store %arg10[%c0_82, %c512], %98 {strides = array<i32>} : memref<256x1152xbf16, #tpu.memory_space<vmem>>, vector<256x128xbf16>,
    %c1_83 = arith.constant 1 : index
    %c2_84 = arith.constant 2 : index
    %c0_85 = arith.constant 0 : index
    %100 = vector.load %arg9[%c1_83, %c2_84, %c0_85] : memref<18x18x128xbf16, #tpu.memory_space<vmem>>, vector<16x16x128xbf16>
    %101 = vector.shape_cast %100 : vector<16x16x128xbf16> to vector<256x128xbf16>
    %c0_86 = arith.constant 0 : index
    %c640 = arith.constant 640 : index
    %102 = vector.load %arg10[%c0_86, %c640] : memref<256x1152xbf16, #tpu.memory_space<vmem>>, vector<256x128xbf16>
    tpu.vector_store %arg10[%c0_86, %c640], %101 {strides = array<i32>} : memref<256x1152xbf16, #tpu.memory_space<vmem>>, vector<256x128xbf16>,
    %c2_87 = arith.constant 2 : index
    %c0_88 = arith.constant 0 : index
    %c0_89 = arith.constant 0 : index
    %103 = vector.load %arg9[%c2_87, %c0_88, %c0_89] : memref<18x18x128xbf16, #tpu.memory_space<vmem>>, vector<16x16x128xbf16>
    %104 = vector.shape_cast %103 : vector<16x16x128xbf16> to vector<256x128xbf16>
    %c0_90 = arith.constant 0 : index
    %c768 = arith.constant 768 : index
    %105 = vector.load %arg10[%c0_90, %c768] : memref<256x1152xbf16, #tpu.memory_space<vmem>>, vector<256x128xbf16>
    tpu.vector_store %arg10[%c0_90, %c768], %104 {strides = array<i32>} : memref<256x1152xbf16, #tpu.memory_space<vmem>>, vector<256x128xbf16>,
    %c2_91 = arith.constant 2 : index
    %c1_92 = arith.constant 1 : index
    %c0_93 = arith.constant 0 : index
    %106 = vector.load %arg9[%c2_91, %c1_92, %c0_93] : memref<18x18x128xbf16, #tpu.memory_space<vmem>>, vector<16x16x128xbf16>
    %107 = vector.shape_cast %106 : vector<16x16x128xbf16> to vector<256x128xbf16>
    %c0_94 = arith.constant 0 : index
    %c896 = arith.constant 896 : index
    %108 = vector.load %arg10[%c0_94, %c896] : memref<256x1152xbf16, #tpu.memory_space<vmem>>, vector<256x128xbf16>
    tpu.vector_store %arg10[%c0_94, %c896], %107 {strides = array<i32>} : memref<256x1152xbf16, #tpu.memory_space<vmem>>, vector<256x128xbf16>,
    %c2_95 = arith.constant 2 : index
    %c2_96 = arith.constant 2 : index
    %c0_97 = arith.constant 0 : index
    %109 = vector.load %arg9[%c2_95, %c2_96, %c0_97] : memref<18x18x128xbf16, #tpu.memory_space<vmem>>, vector<16x16x128xbf16>
    %110 = vector.shape_cast %109 : vector<16x16x128xbf16> to vector<256x128xbf16>
    %c0_98 = arith.constant 0 : index
    %c1024 = arith.constant 1024 : index
    %111 = vector.load %arg10[%c0_98, %c1024] : memref<256x1152xbf16, #tpu.memory_space<vmem>>, vector<256x128xbf16>
    tpu.vector_store %arg10[%c0_98, %c1024], %110 {strides = array<i32>} : memref<256x1152xbf16, #tpu.memory_space<vmem>>, vector<256x128xbf16>,
    %c0_99 = arith.constant 0 : index
    %c0_100 = arith.constant 0 : index
    %112 = vector.load %arg10[%c0_99, %c0_100] : memref<256x1152xbf16, #tpu.memory_space<vmem>>, vector<256x1152xbf16>
    %c0_101 = arith.constant 0 : index
    %c0_102 = arith.constant 0 : index
    %113 = vector.load %arg5[%c0_101, %c0_102] : memref<1152x128xbf16, #tpu.memory_space<vmem>>, vector<1152x128xbf16>
    %cst_103 = arith.constant dense<0.000000e+00> : vector<256x128xf32>
    %114 = tpu.matmul %112, %113, %cst_103 {dimension_numbers = #tpu.dot_dimension_numbers<[1], [0], [0], [1], [0, 0, 1, 1], [], []>} : vector<256x1152xbf16>, vector<1152x128xbf16>, vector<256x128xf32> -> vector<256x128xf32>
    %c0_104 = arith.constant 0 : index
    %c0_105 = arith.constant 0 : index
    %115 = vector.load %arg6[%c0_104, %c0_105] : memref<1x128xf32, #tpu.memory_space<vmem>>, vector<1x128xf32>
    %116 = vector.broadcast %115 : vector<1x128xf32> to vector<256x128xf32>
    %117 = arith.addf %114, %116 : vector<256x128xf32>
    %cst_106 = arith.constant 0.000000e+00 : f32
    %118 = vector.broadcast %cst_106 : f32 to vector<256x128xf32>
    %119 = arith.maximumf %117, %118 : vector<256x128xf32>
    %120 = vector.shape_cast %119 : vector<256x128xf32> to vector<1x16x16x128xf32>
    %121 = arith.truncf %120 : vector<1x16x16x128xf32> to vector<1x16x16x128xbf16>
    %c0_107 = arith.constant 0 : index
    %c0_108 = arith.constant 0 : index
    %c0_109 = arith.constant 0 : index
    %c0_110 = arith.constant 0 : index
    %122 = vector.load %arg7[%c0_107, %c0_108, %c0_109, %c0_110] : memref<1x16x16x128xbf16, #tpu.memory_space<vmem>>, vector<1x16x16x128xbf16>
    tpu.vector_store %arg7[%c0_107, %c0_108, %c0_109, %c0_110], %121 {strides = array<i32>} : memref<1x16x16x128xbf16, #tpu.memory_space<vmem>>, vector<1x16x16x128xbf16>,
    return
  }
  func.func @transform_0(%arg0: i32, %arg1: i32) -> (i32, i32, i32, i32) {
    %c0_i32 = arith.constant 0 : i32
    %c0_i32_0 = arith.constant 0 : i32
    %c0_i32_1 = arith.constant 0 : i32
    %c0_i32_2 = arith.constant 0 : i32
    return %arg0, %c0_i32, %c0_i32_0, %c0_i32_1 : i32, i32, i32, i32
  }
  func.func @transform_1(%arg0: i32, %arg1: i32) -> (i32, i32) {
    %c0_i32 = arith.constant 0 : i32
    %c0_i32_0 = arith.constant 0 : i32
    %c0_i32_1 = arith.constant 0 : i32
    return %c0_i32, %c0_i32_0 : i32, i32
  }
  func.func @transform_2(%arg0: i32, %arg1: i32) -> (i32, i32) {
    %c0_i32 = arith.constant 0 : i32
    %c0_i32_0 = arith.constant 0 : i32
    %c0_i32_1 = arith.constant 0 : i32
    return %c0_i32, %c0_i32_0 : i32, i32
  }
  func.func @transform_3(%arg0: i32, %arg1: i32) -> (i32, i32) {
    %c0_i32 = arith.constant 0 : i32
    %c0_i32_0 = arith.constant 0 : i32
    %c0_i32_1 = arith.constant 0 : i32
    return %c0_i32, %c0_i32_0 : i32, i32
  }
  func.func @transform_4(%arg0: i32, %arg1: i32) -> (i32, i32) {
    %c0_i32 = arith.constant 0 : i32
    %c0_i32_0 = arith.constant 0 : i32
    %c0_i32_1 = arith.constant 0 : i32
    return %c0_i32, %c0_i32_0 : i32, i32
  }
  func.func @transform_5(%arg0: i32, %arg1: i32) -> (i32, i32, i32, i32) {
    %c0_i32 = arith.constant 0 : i32
    %c0_i32_0 = arith.constant 0 : i32
    %c0_i32_1 = arith.constant 0 : i32
    return %arg0, %arg1, %c0_i32, %c0_i32_0 : i32, i32, i32, i32
  }
}

</mosaic_0001>

<bundles_post_ra>
// kernel: double_conv_forward.1
= control target key start
LH: loop header
LB: loop body
LE: loop exit
PB: predicated region body
PF: predicated region fallthrough
CT: control target
= control target key end

     0   :  { %s11769_s18 = smov 0   ;;  %s11771_s19 = smov 0   ;;  %s15538_s0 = inlined_call_operand.vmem [shape: bf16[2,20,18,8], index: 0, kind: input, shape index: {}]   ;;  %s15539_s1 = inlined_call_operand.vmem [shape: bf16[128,128], index: 1, kind: input, shape index: {}]   ;;  %s15540_s2 = inlined_call_operand.vmem [shape: f32[1,128], index: 2, kind: input, shape index: {}]   ;;  %s15541_s3 = inlined_call_operand.vmem [shape: bf16[1152,128], index: 3, kind: input, shape index: {}]   ;;  %s15542_s4 = inlined_call_operand.vmem [shape: f32[1,128], index: 4, kind: input, shape index: {}]   ;;  %s15543_s5 = inlined_call_operand.vmem [shape: bf16[2,16,16,128], index: 5, kind: output, shape index: {}]  }
   0x1   :  { %s11773_s20 = smov 0  }
   0x2 LB: > { %s27_s21 = sadd.s32 1, %s11724_s19  ;;  %p9946_p0 = scmp.ge.s32.totalorder %s11728_s20, 1  ;;  %s11728_s20 = sphi %s11773_s20, %s15_s20   ;;  %s11724_s19 = sphi %s11771_s19, %s15721_s19   ;;  %s11720_s18 = sphi %s11769_s18, %s15720_s18  }
   0x3   : > { %p29_p1 = scmp.ge.s32.totalorder %s27_s21, 2  ;;  %p201_p2 = scmp.lt.s32.totalorder %s11728_s20, 3 }
   0x5   : > { %s15723_s21 = smov (%p29_p1, %s27_s21), 0  ;;  %p202_p3 = pnand %p9946_p0, %p201_p2 }
   0x7   : > { %205 = sbr.rel (%p202_p3) target bundleno = 1680 (0x690), region = 40 }
   0xc   : > { %p234_p4 = scmp.lt.s32.totalorder %s11720_s18, 1  ;;  %vm1070_vm0 = vcmask 1042432   ;;  %vm1071_vm1 = vcmask 1046532   ;;  %vm382_vm3 = vsmask.f32 3328  ;;  %s11730_s26 = smov 16  }
   0xd   : > { %vm11795_vm2 = vmor %vm1070_vm0, %vm1071_vm1  ;;  %vm383_vm4 = vsmask.f32 7440  ;;  %s11731_s27 = smov 24   ;;  %s11732_s28 = smov 8   ;;  %vm291_vm6 = vcmask 60416   ;;  %vm925_vm7 = vcmask 126016  }
   0xe   : > { %s15725_s18 = smov (!%p234_p4, %s11720_s18), 1  ;;  %vm11812_vm5 = vmor %vm382_vm3, %vm383_vm4  ;;  %s11733_s29 = smov 32   ;;  %vm1307_vm8 = vcmask 191616   ;;  %vm1528_vm9 = vcmask 257216   ;;  %vm2159_vm10 = vcmask 322816   ;;  %vm15547_vm11 = vcmask 388416  }
   0xf   : > { %s11664_s22 = smul.u32 240, %s15725_s18  ;;  %s11734_s30 = smov 40   ;;  %vm15544_vm12 = vcmask 454016   ;;  %vm15546_vm13 = vcmask 519616   ;;  %vm3769_vm14 = vcmask 585216   ;;  %vm3806_vm15 = vcmask 1044032  }
  0x10   : > { %s11735_s6 = smov 48   ;;  %s11736_s7 = smov 56   ;;  %vm4734_vm0 = vcmask 1043456   ;;  %vm15545_vm1 = vsmask.f32 7938 }
  0x11   : > { %s11793_s25 = scalar_lea.vmem %s15538_s0, %s11664_s22  ;;  %s11737_s8 = smov 64   ;;  %vm13042_vm3 = vmand %vm4734_vm0, %vm15545_vm1  ;;  %vm4371_vm4 = vsmask.f32 256  ;;  %vm4741_vm0 = vcmask 1040384  }
  0x12   : > { %v962_v1 = vld [vmem:[%s11793_s25] sm:$0xe]  ;;  %v963_v2 = vld [vmem:[%s11793_s25 + $0x4] sm:$0xf]  ;;  %v964_v11 = vld [vmem:[%s11793_s25 + $0x8] sm:$0x1] }
  0x13   : > { %v328_v3 = vld [vmem:[%s11793_s25] sm:$0xf]  ;;  %v9950_v4 = vrot.slane %v962_v1, 9  ;;  %v1075_v5 = vrot.slane %v963_v2, 5  ;;  %v329_v6 = vld [vmem:[%s11793_s25 + $0x4] sm:$0xf] }
  0x14   : > { %v386_v7 = vshrl.u32 %v328_v3, 16  ;;  %v389_v8 = vshll.u32 %v328_v3, 16  ;;  %v395_v9 = vshll.u32 %v329_v6, 16  ;;  %v399_v10 = vshrl.u32 %v329_v6, 16  ;;  %v330_v15 = vld [vmem:[%s11793_s25 + $0x8] sm:$0x1] }
  0x15   : > { %v1076_v12 = vsel %vm11795_vm2, %v9950_v4, %v1075_v5  ;;  %v10005_v16 = vld [vmem:[%s11793_s25 + $0x10] sm:$0xf]  ;;  %v1077_v19 = vrot.slane %v1075_v5, 4  ;;  %v1078_v21 = vrot.slane %v964_v11, 5  ;;  %v10004_v24 = vld [vmem:[%s11793_s25 + $0xc] sm:$0xf] }
  0x16   : > { %v388_v13 = vrot.slane %v386_v7, 4  ;;  %v391_v14 = vrot.slane %v389_v8, 5  ;;  %1199 = vrot.lane.b32.xlu1 %v1076_v12, %s11730_s26  ;;  %v397_v17 = vrot.slane %v395_v9, 5  ;;  %v401_v18 = vrot.slane %v399_v10, 4  ;;  %v10006_v28 = vld [vmem:[%s11793_s25 + $0x14] sm:$0x1] }
  0x17   : > { %v1629_v22 = vshll.u32 %v10005_v16, 16  ;;  %v1633_v23 = vshrl.u32 %v10005_v16, 16  ;;  %v405_v27 = vshll.u32 %v330_v15, 16  ;;  %v1620_v32 = vshrl.u32 %v10004_v24, 16  ;;  %v9968_v34 = vld [vmem:[%s11793_s25 + $0xc] sm:$0xf] }
  0x18   : > { %v392_v20 = vor.u32 %v391_v14, %v388_v13  ;;  %v402_v26 = vor.u32 %v401_v18, %v397_v17  ;;  %v1623_v33 = vshll.u32 %v10004_v24, 16  ;;  %v1079_v36 = vsel %vm11795_vm2, %v1077_v19, %v1078_v21  ;;  %1420 = vrot.lane.b32.xlu2 %v9968_v34, %s11731_s27  ;;  %v10167_v45 = vld [vmem:[%s11793_s25 + $0x1c] sm:$0xf]  ;;  %v9969_v46 = vld [vmem:[%s11793_s25 + $0x10] sm:$0xf]  ;;  %s11310_s11 = sshll.u32 %s15725_s18, 7 }
  0x19   : > { %v1631_v30 = vrot.slane %v1629_v22, 5  ;;  %v1635_v31 = vrot.slane %v1633_v23, 4  ;;  %v1639_v38 = vshll.u32 %v10006_v28, 16  ;;  %v407_v40 = vrot.slane %v405_v27, 5  ;;  %v10058_v49 = vld [vmem:[%s11793_s25 + $0xc] sm:$0xe] }
  0x1a   : > { %v393_v29 = vrot.slane %v392_v20, 4  ;;  %v403_v39 = vrot.slane %v402_v26, 4  ;;  %v1622_v41 = vrot.slane %v1620_v32, 4  ;;  %v1625_v42 = vrot.slane %v1623_v33, 5  ;;  %v10059_v51 = vld [vmem:[%s11793_s25 + $0x10] sm:$0xf] }
  0x1b   : > { %v1636_v37 = vor.u32 %v1635_v31, %v1631_v30  ;;  %v1641_v44 = vrot.slane %v1639_v38, 5  ;;  %v2860_v52 = vshll.u32 %v10167_v45, 16  ;;  %v2864_v53 = vshrl.u32 %v10167_v45, 16  ;;  %v10166_v57 = vld [vmem:[%s11793_s25 + $0x18] sm:$0xf] }
  0x1c   : > { %v398_v35 = vsel %vm11812_vm5, %v393_v29, %v397_v17  ;;  %v408_v47 = vsel %vm11812_vm5, %v403_v39, %v407_v40  ;;  %v1626_v48 = vor.u32 %v1625_v42, %v1622_v41  ;;  %v10112_v54 = vrot.slane %v10058_v49, 9  ;;  %v10168_v60 = vld [vmem:[%s11793_s25 + $0x20] sm:$0x1]  ;;  %v331_v61 = vld [vmem:[%s11793_s25 + $0xc] sm:$0xf] }
  0x1d   : > { %817 = vrot.lane.b32.xlu0 %v398_v35, %s11732_s28  ;;  %v1637_v43 = vrot.slane %v1636_v37, 4  ;;  %v2306_v56 = vrot.slane %v10059_v51, 5  ;;  %v2862_v58 = vrot.slane %v2860_v52, 5  ;;  %v2866_v59 = vrot.slane %v2864_v53, 4  ;;  %v10060_v3 = vld [vmem:[%s11793_s25 + $0x14] sm:$0x1] }
  0x1e   : > { %1201 = vrot.lane.b32.xlu1 %v1079_v36, %s11730_s26  ;;  %v1627_v55 = vrot.slane %v1626_v48, 4  ;;  %v2851_v1 = vshrl.u32 %v10166_v57, 16  ;;  %v2854_v2 = vshll.u32 %v10166_v57, 16  ;;  %v10130_v4 = vld [vmem:[%s11793_s25 + $0x18] sm:$0xf]  ;;  %v2870_v6 = vshll.u32 %v10168_v60, 16 }
  0x1f   : > { %v1642_v50 = vsel %vm11812_vm5, %v1637_v43, %v1641_v44  ;;  %v2307_v62 = vsel %vm11795_vm2, %v10112_v54, %v2306_v56  ;;  %v2867_v5 = vor.u32 %v2866_v59, %v2862_v58  ;;  %v410_v7 = vshrl.u32 %v331_v61, 16  ;;  %v332_v15 = vld [vmem:[%s11793_s25 + $0x10] sm:$0xf]  ;;  %v10131_v18 = vld [vmem:[%s11793_s25 + $0x1c] sm:$0xf] }
  0x20   : > { %1422 = vrot.lane.b32.xlu2 %v9969_v46, %s11731_s27  ;;  %v1632_v63 = vsel %vm11812_vm5, %v1627_v55, %v1631_v30  ;;  %v413_v8 = vshll.u32 %v331_v61, 16  ;;  %v2308_v9 = vrot.slane %v2306_v56, 4  ;;  %v2309_v10 = vrot.slane %v10060_v3, 5  ;;  %v10220_v21 = vld [vmem:[%s11793_s25 + $0x18] sm:$0xe] }
  0x21   : > { %v2853_v11 = vrot.slane %v2851_v1, 4  ;;  %v2856_v12 = vrot.slane %v2854_v2, 5  ;;  %v2868_v13 = vrot.slane %v2867_v5, 4  ;;  %v2872_v14 = vrot.slane %v2870_v6, 5  ;;  %v10221_v27 = vld [vmem:[%s11793_s25 + $0x1c] sm:$0xf] }
  0x22   : > { %v412_v16 = vrot.slane %v410_v7, 4  ;;  %v415_v17 = vrot.slane %v413_v8, 5  ;;  %v2310_v19 = vsel %vm11795_vm2, %v2308_v9, %v2309_v10  ;;  %v419_v22 = vshll.u32 %v332_v15, 16  ;;  %v333_v34 = vld [vmem:[%s11793_s25 + $0x14] sm:$0x1] }
  0x23   : > { %v2857_v20 = vor.u32 %v2856_v12, %v2853_v11  ;;  %v423_v23 = vshrl.u32 %v332_v15, 16  ;;  %v2873_v24 = vsel %vm11812_vm5, %v2868_v13, %v2872_v14  ;;  %v10274_v28 = vrot.slane %v10220_v21, 9  ;;  %v966_v35 = vld [vmem:[%s11793_s25 + $0x10] sm:$0xf]  ;;  %v10007_v36 = vld [vmem:[%s11793_s25 + $0x18] sm:$0xf] }
  0x24   : > { %v416_v26 = vor.u32 %v415_v17, %v412_v16  ;;  %v421_v30 = vrot.slane %v419_v22, 5  ;;  %v3537_v31 = vrot.slane %v10221_v27, 5  ;;  %v429_v39 = vshll.u32 %v333_v34, 16  ;;  %v10222_v41 = vld [vmem:[%s11793_s25 + $0x20] sm:$0x1] }
  0x25   : > { %819 = vrot.lane.b32.xlu0 %v408_v47, %s11732_s28  ;;  %v2858_v29 = vrot.slane %v2857_v20, 4  ;;  %v425_v32 = vrot.slane %v423_v23, 4  ;;  %v1082_v43 = vrot.slane %v966_v35, 5  ;;  %v1644_v44 = vshrl.u32 %v10007_v36, 16  ;;  %v967_v46 = vld [vmem:[%s11793_s25 + $0x14] sm:$0x1] }
  0x26   : > { %2053 = vrot.lane.b32.xlu1 %v1642_v50, %s11733_s29  ;;  %v417_v33 = vrot.slane %v416_v26, 4  ;;  %v3538_v37 = vsel %vm11795_vm2, %v10274_v28, %v3537_v31  ;;  %v1647_v45 = vshll.u32 %v10007_v36, 16  ;;  %v431_v48 = vrot.slane %v429_v39, 5  ;;  %v10008_v53 = vld [vmem:[%s11793_s25 + $0x1c] sm:$0xf] }
  0x27   : > { %v426_v38 = vor.u32 %v425_v32, %v421_v30  ;;  %v2863_v40 = vsel %vm11812_vm5, %v2858_v29, %v2862_v58  ;;  %v3539_v49 = vrot.slane %v3537_v31, 4  ;;  %v3540_v50 = vrot.slane %v10222_v41, 5  ;;  %v965_v58 = vld [vmem:[%s11793_s25 + $0xc] sm:$0xe]  ;;  %v10009_v5 = vld [vmem:[%s11793_s25 + $0x20] sm:$0x1] }
  0x28   : > { %2430 = vrot.lane.b32.xlu2 %v2307_v62, %s11734_s30  ;;  %v422_v42 = vsel %vm11812_vm5, %v417_v33, %v421_v30  ;;  %v1084_v51 = vrot.slane %v1082_v43, 4  ;;  %v1085_v52 = vrot.slane %v967_v46, 5  ;;  %v1646_v54 = vrot.slane %v1644_v44, 4  ;;  %v10169_v6 = vld [vmem:[%s11793_s25 + $0x24] sm:$0xf] }
  0x29   : > { %v427_v47 = vrot.slane %v426_v38, 4  ;;  %v1649_v55 = vrot.slane %v1647_v45, 5  ;;  %v3541_v57 = vsel %vm11795_vm2, %v3539_v49, %v3540_v50  ;;  %v1653_v59 = vshll.u32 %v10008_v53, 16  ;;  %v9970_v7 = vld [vmem:[%s11793_s25 + $0x18] sm:$0xf] }
  0x2a   : > { %v1657_v60 = vshrl.u32 %v10008_v53, 16  ;;  %v1086_v61 = vsel %vm11795_vm2, %v1084_v51, %v1085_v52  ;;  %v1663_v9 = vshll.u32 %v10009_v5, 16  ;;  %v2875_v13 = vshrl.u32 %v10169_v6, 16  ;;  %v10063_v15 = vld [vmem:[%s11793_s25 + $0x20] sm:$0x1] }
  0x2b   : > { %v432_v56 = vsel %vm11812_vm5, %v427_v47, %v431_v48  ;;  %v1650_v62 = vor.u32 %v1649_v55, %v1646_v54  ;;  %v1655_v1 = vrot.slane %v1653_v59, 5  ;;  %v2878_v14 = vshll.u32 %v10169_v6, 16  ;;  %v10170_v20 = vld [vmem:[%s11793_s25 + $0x28] sm:$0xf]  ;;  %v10061_v26 = vld [vmem:[%s11793_s25 + $0x18] sm:$0xe] }
  0x2c   : > { %v1659_v2 = vrot.slane %v1657_v60, 4  ;;  %v1665_v17 = vrot.slane %v1663_v9, 5  ;;  %v2877_v21 = vrot.slane %v2875_v13, 4  ;;  %v2884_v27 = vshll.u32 %v10170_v20, 16  ;;  %v10171_v35 = vld [vmem:[%s11793_s25 + $0x2c] sm:$0x1] }
  0x2d   : > { %2051 = vrot.lane.b32.xlu0 %v1632_v63, %s11733_s29  ;;  %v9951_v63 = vrot.slane %v965_v58, 9  ;;  %v1651_v3 = vrot.slane %v1650_v62, 4  ;;  %v2880_v22 = vrot.slane %v2878_v14, 5  ;;  %v2888_v28 = vshrl.u32 %v10170_v20, 16  ;;  %v10224_v36 = vld [vmem:[%s11793_s25 + $0x28] sm:$0xf] }
  0x2e   : > { %2651 = vrot.lane.b32.xlu1 %v10130_v4, %s11735_s6  ;;  %v10062_v4 = vld [vmem:[%s11793_s25 + $0x1c] sm:$0xf]  ;;  %v1660_v8 = vor.u32 %v1659_v2, %v1655_v1  ;;  %v10113_v31 = vrot.slane %v10061_v26, 9  ;;  %v2886_v32 = vrot.slane %v2884_v27, 5  ;;  %v2894_v39 = vshll.u32 %v10171_v35, 16 }
  0x2f   : > { %v1083_v10 = vsel %vm11795_vm2, %v9951_v63, %v1082_v43  ;;  %v1656_v11 = vsel %vm11812_vm5, %v1651_v3, %v1655_v1  ;;  %v2313_v12 = vrot.slane %v10062_v4, 5  ;;  %v2881_v30 = vor.u32 %v2880_v22, %v2877_v21  ;;  %v334_v43 = vld [vmem:[%s11793_s25 + $0x18] sm:$0xf]  ;;  %v10225_v44 = vld [vmem:[%s11793_s25 + $0x2c] sm:$0x1] }
  0x30   : > { %2653 = vrot.lane.b32.xlu2 %v10131_v18, %s11735_s6  ;;  %v1661_v16 = vrot.slane %v1660_v8, 4  ;;  %v2890_v33 = vrot.slane %v2888_v28, 4  ;;  %v2896_v46 = vrot.slane %v2894_v39, 5  ;;  %v434_v47 = vshrl.u32 %v334_v43, 16  ;;  %v335_v49 = vld [vmem:[%s11793_s25 + $0x1c] sm:$0xf] }
  0x31   : > { %v2315_v18 = vrot.slane %v2313_v12, 4  ;;  %v2882_v34 = vrot.slane %v2881_v30, 4  ;;  %v437_v48 = vshll.u32 %v334_v43, 16  ;;  %v3547_v53 = vrot.slane %v10225_v44, 5  ;;  %v10223_v59 = vld [vmem:[%s11793_s25 + $0x24] sm:$0xe] }
  0x32   : > { %v1666_v23 = vsel %vm11812_vm5, %v1661_v16, %v1665_v17  ;;  %v2891_v38 = vor.u32 %v2890_v33, %v2886_v32  ;;  %v436_v50 = vrot.slane %v434_v47, 4  ;;  %v447_v58 = vshrl.u32 %v335_v49, 16  ;;  %v969_v62 = vld [vmem:[%s11793_s25 + $0x1c] sm:$0xf]  ;;  %v336_v4 = vld [vmem:[%s11793_s25 + $0x20] sm:$0x1] }
  0x33   : > { %v2887_v41 = vsel %vm11812_vm5, %v2882_v34, %v2886_v32  ;;  %v439_v51 = vrot.slane %v437_v48, 5  ;;  %v10275_v1 = vrot.slane %v10223_v59, 9  ;;  %v1089_v6 = vrot.slane %v969_v62, 5  ;;  %v10010_v13 = vld [vmem:[%s11793_s25 + $0x24] sm:$0xf] }
  0x34   : > { %v2892_v45 = vrot.slane %v2891_v38, 4  ;;  %v449_v3 = vrot.slane %v447_v58, 4  ;;  %v1668_v16 = vshrl.u32 %v10010_v13, 16  ;;  %v1671_v20 = vshll.u32 %v10010_v13, 16  ;;  %v10011_v21 = vld [vmem:[%s11793_s25 + $0x28] sm:$0xf] }
  0x35   : > { %2432 = vrot.lane.b32.xlu0 %v2310_v19, %s11734_s30  ;;  %v2316_v19 = vrot.slane %v10063_v15, 5  ;;  %v440_v55 = vor.u32 %v439_v51, %v436_v50  ;;  %v1091_v14 = vrot.slane %v1089_v6, 4  ;;  %v1677_v27 = vshll.u32 %v10011_v21, 16  ;;  %v9973_v30 = vld [vmem:[%s11793_s25 + $0x28] sm:$0xf] }
  0x36   : > { %3284 = vrot.lane.b32.xlu1 %v2873_v24, %s11736_s7  ;;  %v9971_v24 = vld [vmem:[%s11793_s25 + $0x1c] sm:$0xf]  ;;  %v2897_v54 = vsel %vm11812_vm5, %v2892_v45, %v2896_v46  ;;  %v1670_v22 = vrot.slane %v1668_v16, 4  ;;  %v1681_v28 = vshrl.u32 %v10011_v21, 16  ;;  %v10065_v32 = vld [vmem:[%s11793_s25 + $0x28] sm:$0xf] }
  0x37   : > { %v2317_v29 = vsel %vm11795_vm2, %v2315_v18, %v2316_v19  ;;  %v441_v63 = vrot.slane %v440_v55, 4  ;;  %v255_v19 = vld [vmem:[%s11793_s25] sm:$0xf]  ;;  %v1679_v34 = vrot.slane %v1677_v27, 5  ;;  %v10012_v38 = vld [vmem:[%s11793_s25 + $0x2c] sm:$0x1] }
  0x38   : > { %3661 = vrot.lane.b32.xlu2 %v3538_v37, %s11737_s8  ;;  %v10132_v37 = vld [vmem:[%s11793_s25 + $0x24] sm:$0xf]  ;;  %292 = vst.msk [vmem:[#allocation2] sm:$0xf] %vm291_vm6, %v255_v19  ;;  %v1683_v35 = vrot.slane %v1681_v28, 4  ;;  %v1687_v44 = vshll.u32 %v10012_v38, 16 }
  0x39   : > { %v10066_v45 = vld [vmem:[%s11793_s25 + $0x2c] sm:$0x1]  ;;  %v10172_v47 = vld [vmem:[%s11793_s25 + $0x30] sm:$0xf]  ;;  %v10173_v55 = vld [vmem:[%s11793_s25 + $0x34] sm:$0xf] }
  0x3a   : > { %v1684_v43 = vor.u32 %v1683_v35, %v1679_v34  ;;  %v2899_v50 = vshrl.u32 %v10172_v47, 16  ;;  %v338_v58 = vld [vmem:[%s11793_s25 + $0x28] sm:$0xf]  ;;  %v2912_v62 = vshrl.u32 %v10173_v55, 16  ;;  %v10134_v16 = vld [vmem:[%s11793_s25 + $0x30] sm:$0xf] }
  0x3c   : > { %v1685_v51 = vrot.slane %v1684_v43, 4 }
  0x3d   : > { %3282 = vrot.lane.b32.xlu0 %v2863_v40, %s11736_s7  ;;  %v2314_v40 = vsel %vm11795_vm2, %v10113_v31, %v2313_v12  ;;  %v10064_v31 = vld [vmem:[%s11793_s25 + $0x24] sm:$0xe] }
  0x3e   : > { %821 = vrot.lane.b32.xlu1 %v422_v42, %s11732_s28  ;;  %v3544_v42 = vrot.slane %v10224_v36, 5  ;;  %v10114_v39 = vrot.slane %v10064_v31, 9 }
  0x40   : > { %823 = vrot.lane.b32.xlu2 %v432_v56, %s11732_s28  ;;  %v3546_v52 = vrot.slane %v3544_v42, 4  ;;  %v10133_v56 = vld [vmem:[%s11793_s25 + $0x28] sm:$0xf]  ;;  %v3545_v8 = vsel %vm11795_vm2, %v10275_v1, %v3544_v42  ;;  %v9972_v42 = vld [vmem:[%s11793_s25 + $0x24] sm:$0xf] }
  0x41   : > { %v10135_v1 = vld [vmem:[%s11793_s25 + $0x34] sm:$0xf] }
  0x42   : > { %v3548_v60 = vsel %vm11795_vm2, %v3546_v52, %v3547_v53  ;;  %v1689_v52 = vrot.slane %v1687_v44, 5 }
  0x45   : > { %3663 = vrot.lane.b32.xlu0 %v3541_v57, %s11737_s8  ;;  %v443_v57 = vshll.u32 %v335_v49, 16  ;;  %v2323_v49 = vrot.slane %v10066_v45, 5  ;;  %v971_v45 = vld [vmem:[%s11793_s25 + $0x24] sm:$0xe] }
  0x46   : > { %1205 = vrot.lane.b32.xlu1 %v1086_v61, %s11730_s26  ;;  %v968_v61 = vld [vmem:[%s11793_s25 + $0x18] sm:$0xe] }
  0x47   : > { %v445_v2 = vrot.slane %v443_v57, 5  ;;  %v9952_v5 = vrot.slane %v968_v61, 9  ;;  %v2908_v61 = vshll.u32 %v10173_v55, 16 }
  0x48   : > { %1424 = vrot.lane.b32.xlu2 %v9970_v7, %s11731_s27 }
  0x49   : > { %v446_v7 = vsel %vm11812_vm5, %v441_v63, %v445_v2  ;;  %v450_v9 = vor.u32 %v449_v3, %v445_v2  ;;  %v1090_v12 = vsel %vm11795_vm2, %v9952_v5, %v1089_v6  ;;  %v467_v2 = vshll.u32 %v338_v58, 16  ;;  %v10227_v5 = vld [vmem:[%s11793_s25 + $0x34] sm:$0xf] }
  0x4a   : > { %v471_v3 = vshrl.u32 %v338_v58, 16  ;;  %v3551_v13 = vrot.slane %v10227_v5, 5 }
  0x4b   : > { %v451_v17 = vrot.slane %v450_v9, 4 }
  0x4d   : > { %1203 = vrot.lane.b32.xlu0 %v1083_v10, %s11730_s26  ;;  %v453_v10 = vshll.u32 %v336_v4, 16  ;;  %v10226_v4 = vld [vmem:[%s11793_s25 + $0x30] sm:$0xe] }
  0x4e   : > { %2055 = vrot.lane.b32.xlu1 %v1656_v11, %s11733_s29  ;;  %v970_v11 = vld [vmem:[%s11793_s25 + $0x20] sm:$0x1] }
  0x4f   : > { %v1092_v15 = vrot.slane %v970_v11, 5  ;;  %v455_v18 = vrot.slane %v453_v10, 5  ;;  %v10174_v10 = vld [vmem:[%s11793_s25 + $0x38] sm:$0x1]  ;;  %v337_v11 = vld [vmem:[%s11793_s25 + $0x24] sm:$0xf] }
  0x50   : > { %2057 = vrot.lane.b32.xlu2 %v1666_v23, %s11733_s29  ;;  %v2918_v21 = vshll.u32 %v10174_v10, 16 }
  0x51   : > { %v1093_v23 = vsel %vm11795_vm2, %v1091_v14, %v1092_v15  ;;  %v456_v26 = vsel %vm11812_vm5, %v451_v17, %v455_v18  ;;  %v11988_v14 = vrot.slane %v467_v2, 5  ;;  %v473_v15 = vrot.slane %v471_v3, 4  ;;  %v339_v18 = vld [vmem:[%s11793_s25 + $0x2c] sm:$0x1] }
  0x52   : > { %v477_v28 = vshll.u32 %v339_v18, 16  ;;  %v973_v3 = vld [vmem:[%s11793_s25 + $0x2c] sm:$0x1] }
  0x53   : > { %v474_v27 = vor.u32 %v473_v15, %v11988_v14  ;;  %v10176_v15 = vld [vmem:[%s11793_s25 + $0x40] sm:$0xf] }
  0x55   : > { %1426 = vrot.lane.b32.xlu0 %v9971_v24, %s11731_s27  ;;  %v1673_v24 = vrot.slane %v1671_v20, 5  ;;  %v475_v38 = vrot.slane %v474_v27, 4 }
  0x56   : > { %2436 = vrot.lane.b32.xlu1 %v2317_v29, %s11734_s30 }
  0x57   : > { %v1674_v29 = vor.u32 %v1673_v24, %v1670_v22  ;;  %v458_v22 = vshrl.u32 %v337_v11, 16  ;;  %v10228_v24 = vld [vmem:[%s11793_s25 + $0x38] sm:$0x1] }
  0x58   : > { %2655 = vrot.lane.b32.xlu2 %v10132_v37, %s11735_s6  ;;  %v256_v37 = vld [vmem:[%s11793_s25 + $0x4] sm:$0xf] }
  0x59   : > { %v1675_v33 = vrot.slane %v1674_v29, 4  ;;  %293 = vst.msk [vmem:[#allocation2 + $0x4] sm:$0xf] %vm291_vm6, %v256_v37  ;;  %v3553_v29 = vrot.slane %v3551_v13, 4 }
  0x5d   : > { %2434 = vrot.lane.b32.xlu0 %v2314_v40, %s11734_s30  ;;  %v2320_v40 = vrot.slane %v10065_v32, 5  ;;  %v2920_v32 = vrot.slane %v2918_v21, 5  ;;  %v2936_v21 = vshrl.u32 %v10176_v15, 16 }
  0x5e   : > { %3286 = vrot.lane.b32.xlu1 %v2887_v41, %s11736_s7  ;;  %v1680_v41 = vsel %vm11812_vm5, %v1675_v33, %v1679_v34  ;;  %v460_v33 = vrot.slane %v458_v22, 4  ;;  %v10067_v22 = vld [vmem:[%s11793_s25 + $0x30] sm:$0xe] }
  0x5f   : > { %v2321_v46 = vsel %vm11795_vm2, %v10114_v39, %v2320_v40  ;;  %v2322_v48 = vrot.slane %v2320_v40, 4  ;;  %v479_v39 = vrot.slane %v477_v28, 5 }
  0x60   : > { %3288 = vrot.lane.b32.xlu2 %v2897_v54, %s11736_s7  ;;  %v2902_v54 = vshll.u32 %v10172_v47, 16  ;;  %v972_v47 = vld [vmem:[%s11793_s25 + $0x28] sm:$0xf] }
  0x61   : > { %v2324_v59 = vsel %vm11795_vm2, %v2322_v48, %v2323_v49  ;;  %v1096_v55 = vrot.slane %v972_v47, 5 }
  0x62   : > { %v2904_v57 = vrot.slane %v2902_v54, 5 }
  0x65   : > { %2657 = vrot.lane.b32.xlu0 %v10133_v56, %s11735_s6  ;;  %v2901_v56 = vrot.slane %v2899_v50, 4  ;;  %v9953_v50 = vrot.slane %v971_v45, 9  ;;  %v10136_v45 = vld [vmem:[%s11793_s25 + $0x3c] sm:$0xf] }
  0x66   : > { %3667 = vrot.lane.b32.xlu1 %v3548_v60, %s11737_s8  ;;  %v1690_v60 = vsel %vm11812_vm5, %v1685_v51, %v1689_v52 }
  0x67   : > { %v2905_v63 = vor.u32 %v2904_v57, %v2901_v56  ;;  %v10013_v56 = vld [vmem:[%s11793_s25 + $0x30] sm:$0xf] }
  0x68   : > { %825 = vrot.lane.b32.xlu2 %v446_v7, %s11732_s28  ;;  %v2910_v7 = vrot.slane %v2908_v61, 5  ;;  %v1097_v61 = vsel %vm11795_vm2, %v9953_v50, %v1096_v55  ;;  %v1695_v2 = vshll.u32 %v10013_v56, 16 }
  0x69   : > { %v2906_v6 = vrot.slane %v2905_v63, 4 }
  0x6a   : > { %v1697_v10 = vrot.slane %v1695_v2, 5 }
  0x6b   : > { %v2911_v19 = vsel %vm11812_vm5, %v2906_v6, %v2910_v7 }
  0x6d   : > { %3665 = vrot.lane.b32.xlu0 %v3545_v8, %s11737_s8  ;;  %v2914_v8 = vrot.slane %v2912_v62, 4  ;;  %v258_v62 = vld [vmem:[%s11793_s25 + $0x10] sm:$0xf] }
  0x6e   : > { %1207 = vrot.lane.b32.xlu1 %v1090_v12, %s11730_s26  ;;  %v10276_v12 = vrot.slane %v10226_v4, 9  ;;  %v9974_v4 = vld [vmem:[%s11793_s25 + $0x30] sm:$0xf]  ;;  %295 = vst.msk [vmem:[#allocation2 + $0xc] sm:$0xf] %vm291_vm6, %v258_v62 }
  0x6f   : > { %v2915_v20 = vor.u32 %v2914_v8, %v2910_v7  ;;  %v1099_v7 = vrot.slane %v973_v3, 5 }
  0x70   : > { %1209 = vrot.lane.b32.xlu2 %v1093_v23, %s11730_s26  ;;  %v461_v23 = vshll.u32 %v337_v11, 16 }
  0x71   : > { %v2916_v31 = vrot.slane %v2915_v20, 4  ;;  %v2932_v20 = vshll.u32 %v10176_v15, 16  ;;  %v342_v15 = vld [vmem:[%s11793_s25 + $0x38] sm:$0x1] }
  0x72   : > { %v11954_v36 = vpop.permute.xlu2 %1420  ;;  %v463_v34 = vrot.slane %v461_v23, 5 }
  0x73   : > { %v2921_v43 = vsel %vm11812_vm5, %v2916_v31, %v2920_v32  ;;  %v2938_v31 = vrot.slane %v2936_v21, 4  ;;  %v10175_v32 = vld [vmem:[%s11793_s25 + $0x3c] sm:$0xf] }
  0x74   : > { %v464_v44 = vor.u32 %v463_v34, %v460_v33  ;;  %v10177_v33 = vld [vmem:[%s11793_s25 + $0x44] sm:$0x1] }
  0x75   : > { %827 = vrot.lane.b32.xlu0 %v456_v26, %s11732_s28  ;;  %v3552_v26 = vsel %vm11795_vm2, %v10276_v12, %v3551_v13 }
  0x76   : > { %1430 = vrot.lane.b32.xlu1 %v9973_v30, %s11731_s27  ;;  %v3554_v30 = vrot.slane %v10228_v24, 5  ;;  %v465_v51 = vrot.slane %v464_v44, 4  ;;  %v10068_v24 = vld [vmem:[%s11793_s25 + $0x34] sm:$0xf]  ;;  %v2942_v44 = vshll.u32 %v10177_v33, 16 }
  0x78   : > { %2059 = vrot.lane.b32.xlu2 %v1680_v41, %s11733_s29  ;;  %v10014_v41 = vld [vmem:[%s11793_s25 + $0x34] sm:$0xf]  ;;  %v470_v63 = vsel %vm11812_vm5, %v465_v51, %v11988_v14 }
  0x79   : > { %v1701_v48 = vshll.u32 %v10014_v41, 16  ;;  %v1705_v49 = vshrl.u32 %v10014_v41, 16  ;;  %v2926_v41 = vshll.u32 %v10175_v32, 16 }
  0x7a   : > { %v11969_v53 = vpop.permute.xlu2 %1422 }
  0x7b   : > { %v12025_v57 = vrot.slane %v1701_v48, 5  ;;  %v1707_v58 = vrot.slane %v1705_v49, 4  ;;  %v2928_v50 = vrot.slane %v2926_v41, 5  ;;  %v10017_v41 = vld [vmem:[%s11793_s25 + $0x40] sm:$0xf] }
  0x7d   : > { %1428 = vrot.lane.b32.xlu0 %v9972_v42, %s11731_s27  ;;  %v3555_v42 = vsel %vm11795_vm2, %v3553_v29, %v3554_v30  ;;  %v1708_v5 = vor.u32 %v1707_v58, %v12025_v57  ;;  %v2327_v29 = vrot.slane %v10068_v24, 5  ;;  %v12063_v30 = vrot.slane %v2932_v20, 5  ;;  %v10231_v24 = vld [vmem:[%s11793_s25 + $0x44] sm:$0x1] }
  0x7e   : > { %2438 = vrot.lane.b32.xlu1 %v2321_v46, %s11734_s30  ;;  %v480_v46 = vsel %vm11812_vm5, %v475_v38, %v479_v39 }
  0x7f   : > { %v1709_v13 = vrot.slane %v1708_v5, 4  ;;  %v2329_v47 = vrot.slane %v2327_v29, 4  ;;  %v10230_v5 = vld [vmem:[%s11793_s25 + $0x40] sm:$0xf] }
  0x80   : > { %2440 = vrot.lane.b32.xlu2 %v2324_v59, %s11734_s30 }
  0x82   : > { %v11983_v9 = vpop.permute.xlu2 %2430 }
  0x85   : > { %2061 = vrot.lane.b32.xlu0 %v1690_v60, %s11733_s29  ;;  %v10015_v60 = vld [vmem:[%s11793_s25 + $0x38] sm:$0x1] }
  0x86   : > { %2661 = vrot.lane.b32.xlu1 %v10135_v1, %s11735_s6  ;;  %v1692_v1 = vshrl.u32 %v10013_v56, 16  ;;  %v1711_v6 = vshll.u32 %v10015_v60, 16  ;;  %v341_v56 = vld [vmem:[%s11793_s25 + $0x34] sm:$0xf]  ;;  %v10137_v60 = vld [vmem:[%s11793_s25 + $0x40] sm:$0xf] }
  0x87   : > { %v491_v2 = vshll.u32 %v341_v56, 16  ;;  %v495_v3 = vshrl.u32 %v341_v56, 16  ;;  %v10071_v56 = vld [vmem:[%s11793_s25 + $0x40] sm:$0xf] }
  0x88   : > { %v1200_v17 = vpop.permute.xlu1 %1199  ;;  %3290 = vrot.lane.b32.xlu2 %v2911_v19, %s11736_s7  ;;  %v1694_v8 = vrot.slane %v1692_v1, 4  ;;  %v1713_v14 = vrot.slane %v1711_v6, 5  ;;  %v10229_v1 = vld [vmem:[%s11793_s25 + $0x3c] sm:$0xe] }
  0x89   : > { %v10277_v6 = vrot.slane %v10229_v1, 9 }
  0x8a   : > { %v12000_v35 = vpop.permute.xlu2 %2653  ;;  %v1698_v19 = vor.u32 %v1697_v10, %v1694_v8  ;;  %v1714_v23 = vsel %vm11812_vm5, %v1709_v13, %v1713_v14  ;;  %v493_v10 = vrot.slane %v491_v2, 5  ;;  %v497_v13 = vrot.slane %v495_v3, 4 }
  0x8d   : > { %2659 = vrot.lane.b32.xlu0 %v10134_v16, %s11735_s6 }
  0x8e   : > { %3669 = vrot.lane.b32.xlu1 %v3552_v26, %s11737_s8  ;;  %v1699_v26 = vrot.slane %v1698_v19, 4  ;;  %v498_v19 = vor.u32 %v497_v13, %v493_v10 }
  0x8f   : > { %v818_v37 = vpop.permute.xlu0 %817 }
  0x90   : > { %926 = vst.msk [vmem:[#allocation2] sm:$0xf] %vm925_vm7, %v818_v37  ;;  %v1202_v40 = vpop.permute.xlu1 %1201  ;;  %3671 = vrot.lane.b32.xlu2 %v3555_v42, %s11737_s8  ;;  %v340_v37 = vld [vmem:[%s11793_s25 + $0x30] sm:$0xf]  ;;  %v1704_v39 = vsel %vm11812_vm5, %v1699_v26, %v12025_v57  ;;  %v10069_v42 = vld [vmem:[%s11793_s25 + $0x38] sm:$0x1] }
  0x91   : > { %1308 = vst.msk [vmem:[#allocation2] sm:$0xf] %vm1307_vm8, %v1200_v17  ;;  %v9975_v17 = vld [vmem:[%s11793_s25 + $0x34] sm:$0xf]  ;;  %v2330_v48 = vrot.slane %v10069_v42, 5 }
  0x92   : > { %1529 = vst.msk [vmem:[#allocation2] sm:$0xf] %vm1528_vm9, %v11954_v36  ;;  %v257_v36 = vld [vmem:[%s11793_s25 + $0xc] sm:$0xf]  ;;  %v12019_v52 = vpop.permute.xlu2 %3661 }
  0x93   : > { %294 = vst.msk [vmem:[#allocation2 + $0x8] sm:$0xf] %vm291_vm6, %v257_v36  ;;  %v2331_v62 = vsel %vm11795_vm2, %v2329_v47, %v2330_v48  ;;  %v1725_v47 = vshll.u32 %v10017_v41, 16  ;;  %v1729_v48 = vshrl.u32 %v10017_v41, 16 }
  0x95   : > { %3292 = vrot.lane.b32.xlu0 %v2921_v43, %s11736_s7  ;;  %v2939_v43 = vor.u32 %v2938_v31, %v12063_v30 }
  0x96   : > { %831 = vrot.lane.b32.xlu1 %v480_v46, %s11732_s28  ;;  %v485_v46 = vshll.u32 %v340_v37, 16 }
  0x97   : > { %v820_v54 = vpop.permute.xlu0 %819 }
  0x98   : > { %927 = vst.msk [vmem:[#allocation2 + $0x4] sm:$0xf] %vm925_vm7, %v820_v54  ;;  %v2054_v59 = vpop.permute.xlu1 %2053  ;;  %1211 = vrot.lane.b32.xlu2 %v1097_v61, %s11730_s26  ;;  %v2940_v54 = vrot.slane %v2939_v43, 4  ;;  %v487_v58 = vrot.slane %v485_v46, 5  ;;  %v11738_v61 = vmov 0  }
  0x99   : > { %1309 = vst.msk [vmem:[#allocation2 + $0x4] sm:$0xf] %vm1307_vm8, %v1202_v40  ;;  %v2923_v40 = vshrl.u32 %v10175_v32, 16  ;;  %v3561_v32 = vrot.slane %v10231_v24, 5  ;;  %v974_v46 = vld [vmem:[%s11793_s25 + $0x30] sm:$0xe] }
  0x9a   : > { %1530 = vst.msk [vmem:[#allocation2 + $0x4] sm:$0xf] %vm1528_vm9, %v11969_v53  ;;  %v1098_v53 = vrot.slane %v1096_v55, 4  ;;  %v824_v11 = vpop.permute.xlu2 %823  ;;  %v2944_v55 = vrot.slane %v2942_v44, 5  ;;  %v259_v44 = vld [vmem:[%s11793_s25 + $0x18] sm:$0xf] }
  0x9b   : > { %2161 = vst.msk [vmem:[#allocation2 + $0x4] sm:$0xf] %vm2159_vm10, %v2054_v59  ;;  %v2925_v49 = vrot.slane %v2923_v40, 4 }
  0x9c   : > { %929 = vst.msk [vmem:[#allocation2 + $0xc] sm:$0xf] %vm925_vm7, %v824_v11  ;;  %v1100_v18 = vsel %vm11795_vm2, %v1098_v53, %v1099_v7  ;;  %v3558_v11 = vrot.slane %v10230_v5, 5  ;;  %v10072_v5 = vld [vmem:[%s11793_s25 + $0x44] sm:$0x1] }
  0x9d   : > { %829 = vrot.lane.b32.xlu0 %v470_v63, %s11732_s28  ;;  %v2929_v63 = vor.u32 %v2928_v50, %v2925_v49  ;;  %296 = vst.msk [vmem:[#allocation2 + $0x10] sm:$0xf] %vm291_vm6, %v259_v44  ;;  %v9954_v49 = vrot.slane %v974_v46, 9  ;;  %v2337_v13 = vrot.slane %v10072_v5, 5 }
  0x9e   : > { %1432 = vrot.lane.b32.xlu1 %v9974_v4, %s11731_s27  ;;  %v2945_v4 = vsel %vm11812_vm5, %v2940_v54, %v2944_v55  ;;  %v1727_v55 = vrot.slane %v1725_v47, 5 }
  0x9f   : > { %v2052_v12 = vpop.permute.xlu0 %2051  ;;  %v2930_v53 = vrot.slane %v2929_v63, 4  ;;  %v9976_v63 = vld [vmem:[%s11793_s25 + $0x3c] sm:$0xf] }
  0xa0   : > { %2160 = vst.msk [vmem:[#allocation2] sm:$0xf] %vm2159_vm10, %v2052_v12  ;;  %v2652_v16 = vpop.permute.xlu1 %2651  ;;  %1434 = vrot.lane.b32.xlu2 %v9975_v17, %s11731_s27  ;;  %v10016_v12 = vld [vmem:[%s11793_s25 + $0x3c] sm:$0xf]  ;;  %v975_v17 = vld [vmem:[%s11793_s25 + $0x34] sm:$0xf] }
  0xa1   : > { %2539 = vst.msk [vmem:[#allocation2] sm:$0xf] %vm15547_vm11, %v11983_v9  ;;  %v10115_v9 = vrot.slane %v10067_v22, 9  ;;  %v2935_v20 = vsel %vm11812_vm5, %v2930_v53, %v12063_v30  ;;  %v1716_v21 = vshrl.u32 %v10016_v12, 16  ;;  %v1719_v22 = vshll.u32 %v10016_v12, 16 }
  0xa2   : > { %2760 = vst.msk [vmem:[#allocation2] sm:$0xf] %vm15544_vm12, %v2652_v16  ;;  %v12060_v27 = vpop.permute.xlu2 %1424  ;;  %v1103_v26 = vrot.slane %v975_v17, 5  ;;  %v3560_v30 = vrot.slane %v3558_v11, 4 }
  0xa3   : > { %v2328_v38 = vsel %vm11795_vm2, %v10115_v9, %v2327_v29  ;;  %v499_v29 = vrot.slane %v498_v19, 4  ;;  %v1718_v33 = vrot.slane %v1716_v21, 4  ;;  %v9977_v19 = vld [vmem:[%s11793_s25 + $0x40] sm:$0xf] }
  0xa4   : > { %v1104_v2 = vsel %vm11795_vm2, %v9954_v49, %v1103_v26 }
  0xa5   : > { %1213 = vrot.lane.b32.xlu0 %v1100_v18, %s11730_s26  ;;  %v3559_v18 = vsel %vm11795_vm2, %v10277_v6, %v3558_v11 }
  0xa6   : > { %2065 = vrot.lane.b32.xlu1 %v1714_v23, %s11733_s29  ;;  %v501_v23 = vshll.u32 %v342_v15, 16 }
  0xa7   : > { %v2433_v28 = vpop.permute.xlu0 %2432 }
  0xa8   : > { %2540 = vst.msk [vmem:[#allocation2 + $0x4] sm:$0xf] %vm15547_vm11, %v2433_v28  ;;  %v3285_v34 = vpop.permute.xlu1 %3284  ;;  %2442 = vrot.lane.b32.xlu2 %v2328_v38, %s11734_s30  ;;  %v976_v28 = vld [vmem:[%s11793_s25 + $0x38] sm:$0x1]  ;;  %v503_v31 = vrot.slane %v501_v23, 5 }
  0xa9   : > { %2761 = vst.msk [vmem:[#allocation2 + $0x4] sm:$0xf] %vm15544_vm12, %v12000_v35  ;;  %v482_v35 = vshrl.u32 %v340_v37, 16  ;;  %v1106_v40 = vrot.slane %v976_v28, 5 }
  0xaa   : > { %3392 = vst.msk [vmem:[#allocation2 + $0x4] sm:$0xf] %vm15546_vm13, %v3285_v34  ;;  %v12082_v36 = vpop.permute.xlu2 %2057  ;;  %v1721_v34 = vrot.slane %v1719_v22, 5  ;;  %v504_v43 = vsel %vm11812_vm5, %v499_v29, %v503_v31 }
  0xab   : > { %v484_v57 = vrot.slane %v482_v35, 4 }
  0xac   : > { %v1722_v35 = vor.u32 %v1721_v34, %v1718_v33  ;;  %v10233_v33 = vld [vmem:[%s11793_s25 + $0x4c] sm:$0xf]  ;;  %v10138_v34 = vld [vmem:[%s11793_s25 + $0x48] sm:$0xf] }
  0xad   : > { %2063 = vrot.lane.b32.xlu0 %v1704_v39, %s11733_s29  ;;  %v1105_v39 = vrot.slane %v1103_v26, 4 }
  0xae   : > { %2663 = vrot.lane.b32.xlu1 %v10136_v45, %s11735_s6  ;;  %v3562_v45 = vsel %vm11795_vm2, %v3560_v30, %v3561_v32  ;;  %v1723_v50 = vrot.slane %v1722_v35, 4  ;;  %v10180_v30 = vld [vmem:[%s11793_s25 + $0x50] sm:$0x1] }
  0xaf   : > { %v3283_v51 = vpop.permute.xlu0 %3282 }
  0xb0   : > { %3391 = vst.msk [vmem:[#allocation2] sm:$0xf] %vm15546_vm13, %v3283_v51  ;;  %v822_v59 = vpop.permute.xlu1 %821  ;;  %2665 = vrot.lane.b32.xlu2 %v10137_v60, %s11735_s6 }
  0xb1   : > { %3770 = vst.msk [vmem:[#allocation2] sm:$0xf] %vm3769_vm14, %v12019_v52  ;;  %v488_v52 = vor.u32 %v487_v58, %v484_v57  ;;  %v1731_v57 = vrot.slane %v1729_v48, 4  ;;  %v260_v58 = vld [vmem:[%s11793_s25 + $0x1c] sm:$0xf] }
  0xb2   : > { %3807 = vst.msk [vmem:[#allocation2] sm:$0xf] %vm3806_vm15, %v11738_v61  ;;  %v12101_v7 = vpop.permute.xlu2 %2655 }
  0xb3   : > { %928 = vst.msk [vmem:[#allocation2 + $0x8] sm:$0xf] %vm925_vm7, %v822_v59  ;;  %v489_v14 = vrot.slane %v488_v52, 4  ;;  %v10018_v59 = vld [vmem:[%s11793_s25 + $0x44] sm:$0x1]  ;;  %v1732_v1 = vor.u32 %v1731_v57, %v1727_v55  ;;  %v1728_v52 = vsel %vm11812_vm5, %v1723_v50, %v1727_v55 }
  0xb4   : > { %v1735_v3 = vshll.u32 %v10018_v59, 16  ;;  %297 = vst.msk [vmem:[#allocation2 + $0x14] sm:$0xf] %vm291_vm6, %v260_v58  ;;  %v10139_v58 = vld [vmem:[%s11793_s25 + $0x4c] sm:$0xf] }
  0xb5   : > { %2444 = vrot.lane.b32.xlu0 %v2331_v62, %s11734_s30  ;;  %v494_v9 = vsel %vm11812_vm5, %v489_v14, %v493_v10  ;;  %v10178_v62 = vld [vmem:[%s11793_s25 + $0x48] sm:$0xf]  ;;  %v1733_v53 = vrot.slane %v1732_v1, 4  ;;  %v10179_v14 = vld [vmem:[%s11793_s25 + $0x4c] sm:$0xf] }
  0xb6   : > { %3296 = vrot.lane.b32.xlu1 %v2945_v4, %s11736_s7  ;;  %v2334_v4 = vrot.slane %v10071_v56, 5  ;;  %v2947_v6 = vshrl.u32 %v10178_v62, 16  ;;  %v2956_v21 = vshll.u32 %v10179_v14, 16  ;;  %v2960_v22 = vshrl.u32 %v10179_v14, 16  ;;  %v977_v1 = vld [vmem:[%s11793_s25 + $0x3c] sm:$0xe] }
  0xb7   : > { %v3664_v8 = vpop.permute.xlu0 %3663 }
  0xb8   : > { %3771 = vst.msk [vmem:[#allocation2 + $0x4] sm:$0xf] %vm3769_vm14, %v3664_v8  ;;  %v1206_v16 = vpop.permute.xlu1 %1205  ;;  %3673 = vrot.lane.b32.xlu2 %v3559_v18, %s11737_s8  ;;  %v1737_v8 = vrot.slane %v1735_v3, 5  ;;  %v2336_v12 = vrot.slane %v2334_v4, 4  ;;  %v2949_v15 = vrot.slane %v2947_v6, 4  ;;  %v2958_v28 = vrot.slane %v2956_v21, 5 }
  0xb9   : > { %3808 = vst.msk [vmem:[#allocation2 + $0x4] sm:$0xf] %vm3806_vm15, %v11738_v61  ;;  %v2962_v29 = vrot.slane %v2960_v22, 4  ;;  %v262_v21 = vld [vmem:[%s11793_s25 + $0x28] sm:$0xf] }
  0xba   : > { %1311 = vst.msk [vmem:[#allocation2 + $0xc] sm:$0xf] %vm1307_vm8, %v1206_v16  ;;  %v12122_v37 = vpop.permute.xlu2 %3288  ;;  %v1738_v18 = vsel %vm11812_vm5, %v1733_v53, %v1737_v8  ;;  %v2338_v23 = vsel %vm11795_vm2, %v2336_v12, %v2337_v13  ;;  %v345_v53 = vld [vmem:[%s11793_s25 + $0x44] sm:$0x1]  ;;  %v9955_v8 = vrot.slane %v977_v1, 9 }
  0xbb   : > { %299 = vst.msk [vmem:[#allocation2 + $0x1c] sm:$0xf] %vm291_vm6, %v262_v21 }
  0xbd   : > { %3294 = vrot.lane.b32.xlu0 %v2935_v20, %s11736_s7  ;;  %v10070_v20 = vld [vmem:[%s11793_s25 + $0x3c] sm:$0xe] }
  0xbe   : > { %833 = vrot.lane.b32.xlu1 %v494_v9, %s11732_s28 }
  0xbf   : > { %v1204_v38 = vpop.permute.xlu0 %1203 }
  0xc0   : > { %1310 = vst.msk [vmem:[#allocation2 + $0x8] sm:$0xf] %vm1307_vm8, %v1204_v38  ;;  %v2056_v42 = vpop.permute.xlu1 %2055  ;;  %835 = vrot.lane.b32.xlu2 %v504_v43, %s11732_s28  ;;  %v2963_v38 = vor.u32 %v2962_v29, %v2958_v28  ;;  %v10234_v43 = vld [vmem:[%s11793_s25 + $0x50] sm:$0x1] }
  0xc1   : > { %1531 = vst.msk [vmem:[#allocation2 + $0x8] sm:$0xf] %vm1528_vm9, %v12060_v27  ;;  %v1107_v27 = vsel %vm11795_vm2, %v1105_v39, %v1106_v40  ;;  %v2966_v40 = vshll.u32 %v10180_v30, 16 }
  0xc2   : > { %2162 = vst.msk [vmem:[#allocation2 + $0x8] sm:$0xf] %vm2159_vm10, %v2056_v42  ;;  %v826_v51 = vpop.permute.xlu2 %825  ;;  %v3565_v42 = vrot.slane %v10233_v33, 5  ;;  %v2964_v44 = vrot.slane %v2963_v38, 4 }
  0xc3   : > { %930 = vst.msk [vmem:[#allocation2 + $0x10] sm:$0xf] %vm925_vm7, %v826_v51 }
  0xc4   : > { %v3567_v51 = vrot.slane %v3565_v42, 4 }
  0xc5   : > { %3675 = vrot.lane.b32.xlu0 %v3562_v45, %s11737_s8  ;;  %v2968_v45 = vrot.slane %v2966_v40, 5 }
  0xc6   : > { %1217 = vrot.lane.b32.xlu1 %v1107_v27, %s11730_s26  ;;  %v344_v27 = vld [vmem:[%s11793_s25 + $0x40] sm:$0xf] }
  0xc7   : > { %v1427_v54 = vpop.permute.xlu0 %1426  ;;  %v2969_v56 = vsel %vm11812_vm5, %v2964_v44, %v2968_v45  ;;  %v515_v59 = vshll.u32 %v344_v27, 16 }
  0xc8   : > { %1532 = vst.msk [vmem:[#allocation2 + $0xc] sm:$0xf] %vm1528_vm9, %v1427_v54  ;;  %v2437_v60 = vpop.permute.xlu1 %2436  ;;  %1436 = vrot.lane.b32.xlu2 %v9976_v63, %s11731_s27  ;;  %v3568_v54 = vrot.slane %v10234_v43, 5 }
  0xc9   : > { %2163 = vst.msk [vmem:[#allocation2 + $0xc] sm:$0xf] %vm2159_vm10, %v12082_v36  ;;  %v2950_v36 = vshll.u32 %v10178_v62, 16  ;;  %v10232_v62 = vld [vmem:[%s11793_s25 + $0x48] sm:$0xe] }
  0xca   : > { %2542 = vst.msk [vmem:[#allocation2 + $0xc] sm:$0xf] %vm15547_vm11, %v2437_v60  ;;  %v12160_v10 = vpop.permute.xlu2 %1209  ;;  %v519_v60 = vshrl.u32 %v344_v27, 16  ;;  %v3569_v63 = vsel %vm11795_vm2, %v3567_v51, %v3568_v54 }
  0xcb   : > { %v2952_v16 = vrot.slane %v2950_v36, 5 }
  0xcc   : > { %v521_v5 = vrot.slane %v519_v60, 4 }
  0xcd   : > { %1215 = vrot.lane.b32.xlu0 %v1104_v2, %s11730_s26  ;;  %v2953_v24 = vor.u32 %v2952_v16, %v2949_v15  ;;  %v978_v2 = vld [vmem:[%s11793_s25 + $0x40] sm:$0xf]  ;;  %v525_v16 = vshll.u32 %v345_v53, 16 }
  0xce   : > { %2067 = vrot.lane.b32.xlu1 %v1728_v52, %s11733_s29  ;;  %v517_v52 = vrot.slane %v515_v59, 5  ;;  %v10181_v59 = vld [vmem:[%s11793_s25 + $0x54] sm:$0xf] }
  0xcf   : > { %v2435_v11 = vpop.permute.xlu0 %2434  ;;  %v2954_v31 = vrot.slane %v2953_v24, 4 }
  0xd0   : > { %2541 = vst.msk [vmem:[#allocation2 + $0x8] sm:$0xf] %vm15547_vm11, %v2435_v11  ;;  %v3287_v17 = vpop.permute.xlu1 %3286  ;;  %2069 = vrot.lane.b32.xlu2 %v1738_v18, %s11733_s29  ;;  %v1110_v11 = vrot.slane %v978_v2, 5  ;;  %v522_v15 = vor.u32 %v521_v5, %v517_v52 }
  0xd1   : > { %2762 = vst.msk [vmem:[#allocation2 + $0x8] sm:$0xf] %vm15544_vm12, %v12101_v7  ;;  %v10116_v7 = vrot.slane %v10070_v20, 9  ;;  %v2959_v41 = vsel %vm11812_vm5, %v2954_v31, %v2958_v28  ;;  %v261_v28 = vld [vmem:[%s11793_s25 + $0x24] sm:$0xf] }
  0xd2   : > { %3393 = vst.msk [vmem:[#allocation2 + $0x8] sm:$0xf] %vm15546_vm13, %v3287_v17  ;;  %v12176_v9 = vpop.permute.xlu2 %2059  ;;  %v979_v17 = vld [vmem:[%s11793_s25 + $0x44] sm:$0x1]  ;;  %v1111_v18 = vsel %vm11795_vm2, %v9955_v8, %v1110_v11  ;;  %v523_v24 = vrot.slane %v522_v15, 4 }
  0xd3   : > { %v2335_v39 = vsel %vm11795_vm2, %v10116_v7, %v2334_v4  ;;  %v10278_v4 = vrot.slane %v10232_v62, 9  ;;  %v1113_v20 = vrot.slane %v979_v17, 5  ;;  %v527_v7 = vrot.slane %v525_v16, 5  ;;  %v10020_v31 = vld [vmem:[%s11793_s25 + $0x4c] sm:$0xf] }
  0xd4   : > { %298 = vst.msk [vmem:[#allocation2 + $0x18] sm:$0xf] %vm291_vm6, %v261_v28  ;;  %v1749_v40 = vshll.u32 %v10020_v31, 16  ;;  %v2971_v62 = vshrl.u32 %v10181_v59, 16  ;;  %v347_v8 = vld [vmem:[%s11793_s25 + $0x4c] sm:$0xf] }
  0xd5   : > { %1438 = vrot.lane.b32.xlu0 %v9977_v19, %s11731_s27  ;;  %v3566_v14 = vsel %vm11795_vm2, %v10278_v4, %v3565_v42  ;;  %v1112_v19 = vrot.slane %v1110_v11, 4  ;;  %v9979_v42 = vld [vmem:[%s11793_s25 + $0x4c] sm:$0xf]  ;;  %v539_v16 = vshll.u32 %v347_v8, 16  ;;  %v543_v17 = vshrl.u32 %v347_v8, 16 }
  0xd6   : > { %2448 = vrot.lane.b32.xlu1 %v2338_v23, %s11734_s30  ;;  %v1751_v44 = vrot.slane %v1749_v40, 5  ;;  %v2973_v5 = vrot.slane %v2971_v62, 4  ;;  %v10140_v28 = vld [vmem:[%s11793_s25 + $0x54] sm:$0xf] }
  0xd7   : > { %v2658_v26 = vpop.permute.xlu0 %2657  ;;  %v10022_v8 = vld [vmem:[%s11793_s25 + $0x54] sm:$0xf] }
  0xd8   : > { %2763 = vst.msk [vmem:[#allocation2 + $0xc] sm:$0xf] %vm15544_vm12, %v2658_v26  ;;  %v3668_v32 = vpop.permute.xlu1 %3667  ;;  %2667 = vrot.lane.b32.xlu2 %v10138_v34, %s11735_s6  ;;  %v1114_v34 = vsel %vm11795_vm2, %v1112_v19, %v1113_v20  ;;  %v10183_v20 = vld [vmem:[%s11793_s25 + $0x5c] sm:$0x1] }
  0xd9   : > { %3394 = vst.msk [vmem:[#allocation2 + $0xc] sm:$0xf] %vm15546_vm13, %v12122_v37  ;;  %v343_v37 = vld [vmem:[%s11793_s25 + $0x3c] sm:$0xf] }
  0xda   : > { %3773 = vst.msk [vmem:[#allocation2 + $0xc] sm:$0xf] %vm3769_vm14, %v3668_v32  ;;  %v506_v35 = vshrl.u32 %v343_v37, 16  ;;  %v509_v46 = vshll.u32 %v343_v37, 16  ;;  %v12196_v47 = vpop.permute.xlu2 %2440  ;;  %v10074_v37 = vld [vmem:[%s11793_s25 + $0x4c] sm:$0xf] }
  0xdb   : > { %3810 = vst.msk [vmem:[#allocation2 + $0xc] sm:$0xf] %vm3806_vm15, %v11738_v61 }
  0xdc   : > { %v508_v49 = vrot.slane %v506_v35, 4  ;;  %v511_v50 = vrot.slane %v509_v46, 5 }
  0xdd   : > { %2446 = vrot.lane.b32.xlu0 %v2335_v39, %s11734_s30  ;;  %v528_v39 = vsel %vm11812_vm5, %v523_v24, %v527_v7  ;;  %v346_v7 = vld [vmem:[%s11793_s25 + $0x48] sm:$0xf] }
  0xde   : > { %3298 = vrot.lane.b32.xlu1 %v2959_v41, %s11736_s7  ;;  %v512_v57 = vor.u32 %v511_v50, %v508_v49  ;;  %v1753_v41 = vshrl.u32 %v10020_v31, 16  ;;  %v2341_v49 = vrot.slane %v10074_v37, 5  ;;  %v9978_v50 = vld [vmem:[%s11793_s25 + $0x48] sm:$0xf] }
  0xdf   : > { %v3666_v48 = vpop.permute.xlu0 %3665 }
  0xe0   : > { %3772 = vst.msk [vmem:[#allocation2 + $0x8] sm:$0xf] %vm3769_vm14, %v3666_v48  ;;  %v1208_v55 = vpop.permute.xlu1 %1207  ;;  %3300 = vrot.lane.b32.xlu2 %v2969_v56, %s11736_s7  ;;  %v513_v3 = vrot.slane %v512_v57, 4  ;;  %v1755_v45 = vrot.slane %v1753_v41, 4  ;;  %v10021_v48 = vld [vmem:[%s11793_s25 + $0x50] sm:$0x1] }
  0xe1   : > { %3809 = vst.msk [vmem:[#allocation2 + $0x8] sm:$0xf] %vm3806_vm15, %v11738_v61  ;;  %v1759_v56 = vshll.u32 %v10021_v48, 16  ;;  %v10075_v57 = vld [vmem:[%s11793_s25 + $0x50] sm:$0x1]  ;;  %v530_v41 = vshrl.u32 %v346_v7, 16 }
  0xe2   : > { %1312 = vst.msk [vmem:[#allocation2 + $0x10] sm:$0xf] %vm1307_vm8, %v1208_v55  ;;  %v12214_v6 = vpop.permute.xlu2 %3290  ;;  %v518_v13 = vsel %vm11812_vm5, %v513_v3, %v517_v52  ;;  %v1756_v55 = vor.u32 %v1755_v45, %v1751_v44  ;;  %v2344_v60 = vrot.slane %v10075_v57, 5  ;;  %v10182_v52 = vld [vmem:[%s11793_s25 + $0x58] sm:$0xf] }
  0xe3   : > { %v1761_v2 = vrot.slane %v1759_v56, 5  ;;  %v2984_v15 = vshrl.u32 %v10182_v52, 16  ;;  %v10023_v57 = vld [vmem:[%s11793_s25 + $0x58] sm:$0xf] }
  0xe4   : > { %v1757_v1 = vrot.slane %v1756_v55, 4 }
  0xe5   : > { %2669 = vrot.lane.b32.xlu0 %v10139_v58, %s11735_s6 }
  0xe6   : > { %3679 = vrot.lane.b32.xlu1 %v3569_v63, %s11737_s8  ;;  %v2974_v63 = vshll.u32 %v10181_v59, 16 }
  0xe7   : > { %v828_v36 = vpop.permute.xlu0 %827 }
  0xe8   : > { %931 = vst.msk [vmem:[#allocation2 + $0x14] sm:$0xf] %vm925_vm7, %v828_v36  ;;  %v1431_v12 = vpop.permute.xlu1 %1430  ;;  %837 = vrot.lane.b32.xlu2 %v518_v13, %s11732_s28  ;;  %v2976_v36 = vrot.slane %v2974_v63, 5  ;;  %v1762_v13 = vsel %vm11812_vm5, %v1757_v1, %v1761_v2  ;;  %v981_v63 = vld [vmem:[%s11793_s25 + $0x4c] sm:$0xf]  ;;  %v1773_v1 = vshll.u32 %v10023_v57, 16 }
  0xe9   : > { %1313 = vst.msk [vmem:[#allocation2 + $0x14] sm:$0xf] %vm1307_vm8, %v12160_v10  ;;  %v10019_v10 = vld [vmem:[%s11793_s25 + $0x48] sm:$0xf]  ;;  %v1777_v2 = vshrl.u32 %v10023_v57, 16 }
  0xea   : > { %1534 = vst.msk [vmem:[#allocation2 + $0x14] sm:$0xf] %vm1528_vm9, %v1431_v12  ;;  %v1740_v22 = vshrl.u32 %v10019_v10, 16  ;;  %v1743_v23 = vshll.u32 %v10019_v10, 16  ;;  %v12233_v26 = vpop.permute.xlu2 %3671  ;;  %v2977_v12 = vor.u32 %v2976_v36, %v2973_v5  ;;  %v10236_v10 = vld [vmem:[%s11793_s25 + $0x58] sm:$0xf] }
  0xeb   : > { %v3572_v31 = vrot.slane %v10236_v10, 5  ;;  %v982_v10 = vld [vmem:[%s11793_s25 + $0x50] sm:$0x1] }
  0xec   : > { %v1742_v30 = vrot.slane %v1740_v22, 4  ;;  %v1745_v32 = vrot.slane %v1743_v23, 5  ;;  %v2978_v19 = vrot.slane %v2977_v12, 4  ;;  %v2986_v22 = vrot.slane %v2984_v15, 4 }
  0xed   : > { %3677 = vrot.lane.b32.xlu0 %v3566_v14, %s11737_s8  ;;  %v2980_v14 = vshll.u32 %v10182_v52, 16  ;;  %v1779_v12 = vrot.slane %v1777_v2, 4 }
  0xee   : > { %1219 = vrot.lane.b32.xlu1 %v1111_v18, %s11730_s26  ;;  %v1746_v38 = vor.u32 %v1745_v32, %v1742_v30  ;;  %v10235_v18 = vld [vmem:[%s11793_s25 + $0x54] sm:$0xe]  ;;  %v12297_v30 = vrot.slane %v539_v16, 5  ;;  %v545_v32 = vrot.slane %v543_v17, 4  ;;  %v1764_v17 = vshrl.u32 %v10022_v8, 16 }
  0xef   : > { %v1429_v29 = vpop.permute.xlu0 %1428  ;;  %v2982_v21 = vrot.slane %v2980_v14, 5  ;;  %v10024_v14 = vld [vmem:[%s11793_s25 + $0x5c] sm:$0x1] }
  0xf0   : > { %1533 = vst.msk [vmem:[#allocation2 + $0x10] sm:$0xf] %vm1528_vm9, %v1429_v29  ;;  %v2439_v33 = vpop.permute.xlu1 %2438  ;;  %1221 = vrot.lane.b32.xlu2 %v1114_v34, %s11730_s26  ;;  %v1747_v43 = vrot.slane %v1746_v38, 4  ;;  %v10279_v29 = vrot.slane %v10235_v18, 9  ;;  %v2990_v34 = vshll.u32 %v10183_v20, 16  ;;  %v1767_v18 = vshll.u32 %v10022_v8, 16 }
  0xf1   : > { %2164 = vst.msk [vmem:[#allocation2 + $0x10] sm:$0xf] %vm2159_vm10, %v12176_v9  ;;  %v10073_v9 = vld [vmem:[%s11793_s25 + $0x48] sm:$0xe]  ;;  %v348_v38 = vld [vmem:[%s11793_s25 + $0x50] sm:$0x1]  ;;  %v2987_v40 = vor.u32 %v2986_v22, %v2982_v21 }
  0xf2   : > { %2543 = vst.msk [vmem:[#allocation2 + $0x10] sm:$0xf] %vm15547_vm11, %v2439_v33  ;;  %v12253_v35 = vpop.permute.xlu2 %1211  ;;  %v10117_v27 = vrot.slane %v10073_v9, 9  ;;  %v1752_v54 = vsel %vm11812_vm5, %v1747_v43, %v1751_v44  ;;  %v10237_v9 = vld [vmem:[%s11793_s25 + $0x5c] sm:$0x1]  ;;  %v3573_v37 = vsel %vm11795_vm2, %v10279_v29, %v3572_v31  ;;  %v549_v43 = vshll.u32 %v348_v38, 16 }
  0xf3   : > { %v3574_v44 = vrot.slane %v3572_v31, 4  ;;  %v3575_v45 = vrot.slane %v10237_v9, 5  ;;  %v2992_v48 = vrot.slane %v2990_v34, 5  ;;  %v1783_v20 = vshll.u32 %v10024_v14, 16  ;;  %v9981_v34 = vld [vmem:[%s11793_s25 + $0x58] sm:$0xf] }
  0xf4   : > { %v2342_v58 = vsel %vm11795_vm2, %v10117_v27, %v2341_v49  ;;  %v532_v27 = vrot.slane %v530_v41, 4  ;;  %v551_v55 = vrot.slane %v549_v43, 5  ;;  %v1120_v22 = vrot.slane %v982_v10, 5 }
  0xf5   : > { %839 = vrot.lane.b32.xlu0 %v528_v39, %s11732_s28  ;;  %v2983_v39 = vsel %vm11812_vm5, %v2978_v19, %v2982_v21  ;;  %v9980_v19 = vld [vmem:[%s11793_s25 + $0x54] sm:$0xf] }
  0xf6   : > { %1442 = vrot.lane.b32.xlu1 %v9979_v42, %s11731_s27  ;;  %v533_v42 = vshll.u32 %v346_v7, 16  ;;  %v1769_v7 = vrot.slane %v1767_v18, 5 }
  0xf7   : > { %v2062_v46 = vpop.permute.xlu0 %2061 }
  0xf8   : > { %2165 = vst.msk [vmem:[#allocation2 + $0x14] sm:$0xf] %vm2159_vm10, %v2062_v46  ;;  %v2662_v51 = vpop.permute.xlu1 %2661  ;;  %2071 = vrot.lane.b32.xlu2 %v1752_v54, %s11733_s29  ;;  %v2988_v46 = vrot.slane %v2987_v40, 4 }
  0xf9   : > { %2544 = vst.msk [vmem:[#allocation2 + $0x14] sm:$0xf] %vm15547_vm11, %v12196_v47  ;;  %v2343_v47 = vrot.slane %v2341_v49, 4  ;;  %v535_v49 = vrot.slane %v533_v42, 5  ;;  %v10076_v42 = vld [vmem:[%s11793_s25 + $0x54] sm:$0xe] }
  0xfa   : > { %2765 = vst.msk [vmem:[#allocation2 + $0x14] sm:$0xf] %vm15544_vm12, %v2662_v51  ;;  %v12270_v3 = vpop.permute.xlu2 %1434  ;;  %v2993_v59 = vsel %vm11812_vm5, %v2988_v46, %v2992_v48 }
  0xfb   : > { %v2345_v11 = vsel %vm11795_vm2, %v2343_v47, %v2344_v60  ;;  %v536_v47 = vor.u32 %v535_v49, %v532_v27  ;;  %v980_v60 = vld [vmem:[%s11793_s25 + $0x48] sm:$0xe]  ;;  %v10184_v27 = vld [vmem:[%s11793_s25 + $0x60] sm:$0xf]  ;;  %v10186_v49 = vld [vmem:[%s11793_s25 + $0x68] sm:$0x1] }
  0xfc   : > { %v2995_v57 = vshrl.u32 %v10184_v27, 16 }
  0xfd   : > { %1440 = vrot.lane.b32.xlu0 %v9978_v50, %s11731_s27  ;;  %v537_v52 = vrot.slane %v536_v47, 4 }
  0xfe   : > { %2450 = vrot.lane.b32.xlu1 %v2342_v58, %s11734_s30  ;;  %v3576_v58 = vsel %vm11795_vm2, %v3574_v44, %v3575_v45 }
  0xff   : > { %v2660_v4 = vpop.permute.xlu0 %2659  ;;  %v542_v16 = vsel %vm11812_vm5, %v537_v52, %v12297_v30 }
 0x100   : > { %2764 = vst.msk [vmem:[#allocation2 + $0x10] sm:$0xf] %vm15544_vm12, %v2660_v4  ;;  %v3670_v53 = vpop.permute.xlu1 %3669  ;;  %2452 = vrot.lane.b32.xlu2 %v2345_v11, %s11734_s30  ;;  %v263_v4 = vld [vmem:[%s11793_s25 + $0x30] sm:$0xf]  ;;  %v12338_v11 = vrot.slane %v1773_v1, 5 }
 0x101   : > { %3395 = vst.msk [vmem:[#allocation2 + $0x10] sm:$0xf] %vm15546_vm13, %v12214_v6  ;;  %v10141_v6 = vld [vmem:[%s11793_s25 + $0x58] sm:$0xf] }
 0x102   : > { %3774 = vst.msk [vmem:[#allocation2 + $0x10] sm:$0xf] %vm3769_vm14, %v3670_v53  ;;  %v12291_v23 = vpop.permute.xlu2 %2442  ;;  %v1117_v53 = vrot.slane %v981_v63, 5 }
 0x103   : > { %3811 = vst.msk [vmem:[#allocation2 + $0x10] sm:$0xf] %vm3806_vm15, %v11738_v61 }
 0x104   : > { %300 = vst.msk [vmem:[#allocation2 + $0x20] sm:$0xf] %vm291_vm6, %v263_v4  ;;  %v1119_v21 = vrot.slane %v1117_v53, 4 }
 0x105   : > { %2073 = vrot.lane.b32.xlu0 %v1762_v13, %s11733_s29 }
 0x106   : > { %2673 = vrot.lane.b32.xlu1 %v10141_v6, %s11735_s6  ;;  %v264_v6 = vld [vmem:[%s11793_s25 + $0x34] sm:$0xf]  ;;  %v1121_v38 = vsel %vm11795_vm2, %v1119_v21, %v1120_v22 }
 0x107   : > { %v3293_v24 = vpop.permute.xlu0 %3292  ;;  %301 = vst.msk [vmem:[#allocation2 + $0x24] sm:$0xf] %vm291_vm6, %v264_v6 }
 0x108   : > { %3396 = vst.msk [vmem:[#allocation2 + $0x14] sm:$0xf] %vm15546_vm13, %v3293_v24  ;;  %v832_v33 = vpop.permute.xlu1 %831  ;;  %3302 = vrot.lane.b32.xlu2 %v2983_v39, %s11736_s7  ;;  %v1766_v24 = vrot.slane %v1764_v17, 4  ;;  %v10238_v17 = vld [vmem:[%s11793_s25 + $0x60] sm:$0xe] }
 0x109   : > { %3775 = vst.msk [vmem:[#allocation2 + $0x14] sm:$0xf] %vm3769_vm14, %v12233_v26  ;;  %v546_v26 = vor.u32 %v545_v32, %v12297_v30  ;;  %v1785_v30 = vrot.slane %v1783_v20, 5  ;;  %v10185_v32 = vld [vmem:[%s11793_s25 + $0x64] sm:$0xf]  ;;  %v10280_v20 = vrot.slane %v10238_v17, 9 }
 0x10a   : > { %3812 = vst.msk [vmem:[#allocation2 + $0x14] sm:$0xf] %vm3806_vm15, %v11738_v61  ;;  %v12313_v50 = vpop.permute.xlu2 %2665  ;;  %v1770_v39 = vor.u32 %v1769_v7, %v1766_v24  ;;  %v3004_v40 = vshll.u32 %v10185_v32, 16  ;;  %v3008_v41 = vshrl.u32 %v10185_v32, 16  ;;  %v351_v32 = vld [vmem:[%s11793_s25 + $0x5c] sm:$0x1] }
 0x10b   : > { %933 = vst.msk [vmem:[#allocation2 + $0x1c] sm:$0xf] %vm925_vm7, %v832_v33  ;;  %v547_v54 = vrot.slane %v546_v26, 4 }
 0x10c   : > { %v1771_v26 = vrot.slane %v1770_v39, 4  ;;  %v12375_v46 = vrot.slane %v3004_v40, 5  ;;  %v3010_v48 = vrot.slane %v3008_v41, 4 }
 0x10d   : > { %2671 = vrot.lane.b32.xlu0 %v10140_v28, %s11735_s6  ;;  %v552_v62 = vsel %vm11812_vm5, %v547_v54, %v551_v55  ;;  %v349_v54 = vld [vmem:[%s11793_s25 + $0x54] sm:$0xf] }
 0x10e   : > { %3681 = vrot.lane.b32.xlu1 %v3573_v37, %s11737_s8  ;;  %v10077_v37 = vld [vmem:[%s11793_s25 + $0x58] sm:$0xf]  ;;  %v3011_v47 = vor.u32 %v3010_v48, %v12375_v46  ;;  %v557_v63 = vshll.u32 %v349_v54, 16 }
 0x10f   : > { %v830_v51 = vpop.permute.xlu0 %829  ;;  %v2348_v45 = vrot.slane %v10077_v37, 5  ;;  %v10240_v37 = vld [vmem:[%s11793_s25 + $0x68] sm:$0x1] }
 0x110   : > { %932 = vst.msk [vmem:[#allocation2 + $0x18] sm:$0xf] %vm925_vm7, %v830_v51  ;;  %v1433_v56 = vpop.permute.xlu1 %1432  ;;  %3683 = vrot.lane.b32.xlu2 %v3576_v58, %s11737_s8  ;;  %v2998_v58 = vshll.u32 %v10184_v27, 16  ;;  %v3582_v27 = vrot.slane %v10240_v37, 5 }
 0x111   : > { %1314 = vst.msk [vmem:[#allocation2 + $0x18] sm:$0xf] %vm1307_vm8, %v12253_v35  ;;  %v9956_v35 = vrot.slane %v980_v60, 9  ;;  %v3014_v60 = vshll.u32 %v10186_v49, 16  ;;  %v2350_v1 = vrot.slane %v2348_v45, 4 }
 0x112   : > { %1535 = vst.msk [vmem:[#allocation2 + $0x18] sm:$0xf] %vm1528_vm9, %v1433_v56  ;;  %v12332_v5 = vpop.permute.xlu2 %3673  ;;  %v1776_v56 = vsel %vm11812_vm5, %v1771_v26, %v12338_v11  ;;  %v3000_v4 = vrot.slane %v2998_v58, 5  ;;  %v10026_v58 = vld [vmem:[%s11793_s25 + $0x64] sm:$0xf] }
 0x113   : > { %v1118_v15 = vsel %vm11795_vm2, %v9956_v35, %v1117_v53  ;;  %v2997_v35 = vrot.slane %v2995_v57, 4  ;;  %v3012_v53 = vrot.slane %v3011_v47, 4  ;;  %v3016_v8 = vrot.slane %v3014_v60, 5  ;;  %v265_v60 = vld [vmem:[%s11793_s25 + $0x3c] sm:$0xf] }
 0x114   : > { %302 = vst.msk [vmem:[#allocation2 + $0x28] sm:$0xf] %vm291_vm6, %v265_v60 }
 0x115   : > { %3304 = vrot.lane.b32.xlu0 %v2993_v59, %s11736_s7  ;;  %v10078_v59 = vld [vmem:[%s11793_s25 + $0x5c] sm:$0x1] }
 0x116   : > { %843 = vrot.lane.b32.xlu1 %v552_v62, %s11732_s28  ;;  %v10142_v62 = vld [vmem:[%s11793_s25 + $0x60] sm:$0xf]  ;;  %v2351_v2 = vrot.slane %v10078_v59, 5 }
 0x117   : > { %v1214_v36 = vpop.permute.xlu0 %1213 }
 0x118   : > { %1315 = vst.msk [vmem:[#allocation2 + $0x1c] sm:$0xf] %vm1307_vm8, %v1214_v36  ;;  %v2066_v13 = vpop.permute.xlu1 %2065  ;;  %1223 = vrot.lane.b32.xlu2 %v1118_v15, %s11730_s26  ;;  %v10143_v15 = vld [vmem:[%s11793_s25 + $0x64] sm:$0xf]  ;;  %v2352_v6 = vsel %vm11795_vm2, %v2350_v1, %v2351_v2  ;;  %v1797_v1 = vshll.u32 %v10026_v58, 16  ;;  %v1801_v2 = vshrl.u32 %v10026_v58, 16 }
 0x119   : > { %1536 = vst.msk [vmem:[#allocation2 + $0x1c] sm:$0xf] %vm1528_vm9, %v12270_v3  ;;  %v1780_v3 = vor.u32 %v1779_v12, %v12338_v11  ;;  %v350_v11 = vld [vmem:[%s11793_s25 + $0x58] sm:$0xf] }
 0x11a   : > { %2167 = vst.msk [vmem:[#allocation2 + $0x1c] sm:$0xf] %vm2159_vm10, %v2066_v13  ;;  %v836_v28 = vpop.permute.xlu2 %835  ;;  %v559_v13 = vrot.slane %v557_v63, 5  ;;  %v563_v18 = vshll.u32 %v350_v11, 16  ;;  %v567_v10 = vshrl.u32 %v350_v11, 16 }
 0x11b   : > { %935 = vst.msk [vmem:[#allocation2 + $0x24] sm:$0xf] %vm925_vm7, %v836_v28  ;;  %v1781_v31 = vrot.slane %v1780_v3, 4  ;;  %v10239_v3 = vld [vmem:[%s11793_s25 + $0x64] sm:$0xf] }
 0x11c   : > { %v565_v7 = vrot.slane %v563_v18, 5  ;;  %v3579_v28 = vrot.slane %v10239_v3, 5  ;;  %v983_v63 = vld [vmem:[%s11793_s25 + $0x54] sm:$0xe]  ;;  %v10080_v11 = vld [vmem:[%s11793_s25 + $0x64] sm:$0xf] }
 0x11d   : > { %841 = vrot.lane.b32.xlu0 %v542_v16, %s11732_s28  ;;  %v1786_v9 = vsel %vm11812_vm5, %v1781_v31, %v1785_v30  ;;  %v3001_v16 = vor.u32 %v3000_v4, %v2997_v35  ;;  %v569_v31 = vrot.slane %v567_v10, 4  ;;  %v9957_v35 = vrot.slane %v983_v63, 9  ;;  %v10081_v3 = vld [vmem:[%s11793_s25 + $0x68] sm:$0x1] }
 0x11e   : > { %1444 = vrot.lane.b32.xlu1 %v9980_v19, %s11731_s27  ;;  %v3017_v19 = vsel %vm11812_vm5, %v3012_v53, %v3016_v8  ;;  %v1799_v8 = vrot.slane %v1797_v1, 5 }
 0x11f   : > { %v2064_v29 = vpop.permute.xlu0 %2063  ;;  %v3002_v21 = vrot.slane %v3001_v16, 4  ;;  %v570_v39 = vor.u32 %v569_v31, %v565_v7  ;;  %v9982_v16 = vld [vmem:[%s11793_s25 + $0x60] sm:$0xf]  ;;  %v2358_v31 = vrot.slane %v10081_v3, 5 }
 0x120   : > { %2166 = vst.msk [vmem:[#allocation2 + $0x18] sm:$0xf] %vm2159_vm10, %v2064_v29  ;;  %v2664_v33 = vpop.permute.xlu1 %2663  ;;  %1446 = vrot.lane.b32.xlu2 %v9981_v34, %s11731_s27  ;;  %v10025_v29 = vld [vmem:[%s11793_s25 + $0x60] sm:$0xf]  ;;  %v984_v34 = vld [vmem:[%s11793_s25 + $0x58] sm:$0xf] }
 0x121   : > { %2545 = vst.msk [vmem:[#allocation2 + $0x18] sm:$0xf] %vm15547_vm11, %v12291_v23  ;;  %v10118_v23 = vrot.slane %v10076_v42, 9  ;;  %v3007_v40 = vsel %vm11812_vm5, %v3002_v21, %v12375_v46  ;;  %v1788_v41 = vshrl.u32 %v10025_v29, 16  ;;  %v1791_v42 = vshll.u32 %v10025_v29, 16 }
 0x122   : > { %2766 = vst.msk [vmem:[#allocation2 + $0x18] sm:$0xf] %vm15544_vm12, %v2664_v33  ;;  %v12372_v43 = vpop.permute.xlu2 %1436  ;;  %v1124_v26 = vrot.slane %v984_v34, 5  ;;  %v3581_v46 = vrot.slane %v3579_v28, 4 }
 0x123   : > { %v2349_v55 = vsel %vm11795_vm2, %v10118_v23, %v2348_v45  ;;  %v571_v45 = vrot.slane %v570_v39, 4  ;;  %v1790_v49 = vrot.slane %v1788_v41, 4  ;;  %v9983_v39 = vld [vmem:[%s11793_s25 + $0x64] sm:$0xf] }
 0x124   : > { %v1125_v18 = vsel %vm11795_vm2, %v9957_v35, %v1124_v26 }
 0x125   : > { %1225 = vrot.lane.b32.xlu0 %v1121_v38, %s11730_s26  ;;  %v3580_v38 = vsel %vm11795_vm2, %v10280_v20, %v3579_v28 }
 0x126   : > { %2077 = vrot.lane.b32.xlu1 %v1786_v9, %s11733_s29  ;;  %v573_v9 = vshll.u32 %v351_v32, 16 }
 0x127   : > { %v2445_v44 = vpop.permute.xlu0 %2444 }
 0x128   : > { %2546 = vst.msk [vmem:[#allocation2 + $0x1c] sm:$0xf] %vm15547_vm11, %v2445_v44  ;;  %v3297_v51 = vpop.permute.xlu1 %3296  ;;  %2454 = vrot.lane.b32.xlu2 %v2349_v55, %s11734_s30  ;;  %v985_v44 = vld [vmem:[%s11793_s25 + $0x5c] sm:$0x1]  ;;  %v575_v48 = vrot.slane %v573_v9, 5 }
 0x129   : > { %2767 = vst.msk [vmem:[#allocation2 + $0x1c] sm:$0xf] %vm15544_vm12, %v12313_v50  ;;  %v554_v50 = vshrl.u32 %v349_v54, 16  ;;  %v1127_v57 = vrot.slane %v985_v44, 5 }
 0x12a   : > { %3398 = vst.msk [vmem:[#allocation2 + $0x1c] sm:$0xf] %vm15546_vm13, %v3297_v51  ;;  %v12394_v52 = vpop.permute.xlu2 %2069  ;;  %v1793_v51 = vrot.slane %v1791_v42, 5  ;;  %v576_v47 = vsel %vm11812_vm5, %v571_v45, %v575_v48 }
 0x12b   : > { %v556_v12 = vrot.slane %v554_v50, 4 }
 0x12c   : > { %v1794_v50 = vor.u32 %v1793_v51, %v1790_v49  ;;  %v10242_v49 = vld [vmem:[%s11793_s25 + $0x70] sm:$0xf]  ;;  %v10144_v51 = vld [vmem:[%s11793_s25 + $0x6c] sm:$0xf] }
 0x12d   : > { %2075 = vrot.lane.b32.xlu0 %v1776_v56, %s11733_s29  ;;  %v1126_v56 = vrot.slane %v1124_v26, 4 }
 0x12e   : > { %2675 = vrot.lane.b32.xlu1 %v10142_v62, %s11735_s6  ;;  %v3583_v62 = vsel %vm11795_vm2, %v3581_v46, %v3582_v27  ;;  %v1795_v4 = vrot.slane %v1794_v50, 4  ;;  %v10189_v46 = vld [vmem:[%s11793_s25 + $0x74] sm:$0x1] }
 0x12f   : > { %v3295_v36 = vpop.permute.xlu0 %3294 }
 0x130   : > { %3397 = vst.msk [vmem:[#allocation2 + $0x18] sm:$0xf] %vm15546_vm13, %v3295_v36  ;;  %v834_v14 = vpop.permute.xlu1 %833  ;;  %2677 = vrot.lane.b32.xlu2 %v10143_v15, %s11735_s6 }
 0x131   : > { %3776 = vst.msk [vmem:[#allocation2 + $0x18] sm:$0xf] %vm3769_vm14, %v12332_v5  ;;  %v560_v5 = vor.u32 %v559_v13, %v556_v12  ;;  %v1803_v12 = vrot.slane %v1801_v2, 4  ;;  %v266_v13 = vld [vmem:[%s11793_s25 + $0x40] sm:$0xf] }
 0x132   : > { %3813 = vst.msk [vmem:[#allocation2 + $0x18] sm:$0xf] %vm3806_vm15, %v11738_v61  ;;  %v12413_v22 = vpop.permute.xlu2 %2667 }
 0x133   : > { %934 = vst.msk [vmem:[#allocation2 + $0x20] sm:$0xf] %vm925_vm7, %v834_v14  ;;  %v561_v30 = vrot.slane %v560_v5, 4  ;;  %v10027_v14 = vld [vmem:[%s11793_s25 + $0x68] sm:$0x1]  ;;  %v1804_v17 = vor.u32 %v1803_v12, %v1799_v8  ;;  %v1800_v5 = vsel %vm11812_vm5, %v1795_v4, %v1799_v8 }
 0x134   : > { %v1807_v10 = vshll.u32 %v10027_v14, 16  ;;  %303 = vst.msk [vmem:[#allocation2 + $0x2c] sm:$0xf] %vm291_vm6, %v266_v13  ;;  %v10145_v13 = vld [vmem:[%s11793_s25 + $0x70] sm:$0xf] }
 0x135   : > { %2456 = vrot.lane.b32.xlu0 %v2352_v6, %s11734_s30  ;;  %v566_v23 = vsel %vm11812_vm5, %v561_v30, %v565_v7  ;;  %v10187_v6 = vld [vmem:[%s11793_s25 + $0x6c] sm:$0xf]  ;;  %v1805_v21 = vrot.slane %v1804_v17, 4  ;;  %v10188_v30 = vld [vmem:[%s11793_s25 + $0x70] sm:$0xf] }
 0x136   : > { %3308 = vrot.lane.b32.xlu1 %v3017_v19, %s11736_s7  ;;  %v2355_v19 = vrot.slane %v10080_v11, 5  ;;  %v3019_v20 = vshrl.u32 %v10187_v6, 16  ;;  %v3028_v41 = vshll.u32 %v10188_v30, 16  ;;  %v3032_v42 = vshrl.u32 %v10188_v30, 16  ;;  %v986_v17 = vld [vmem:[%s11793_s25 + $0x60] sm:$0xe] }
 0x137   : > { %v3676_v24 = vpop.permute.xlu0 %3675 }
 0x138   : > { %3777 = vst.msk [vmem:[#allocation2 + $0x1c] sm:$0xf] %vm3769_vm14, %v3676_v24  ;;  %v1218_v33 = vpop.permute.xlu1 %1217  ;;  %3685 = vrot.lane.b32.xlu2 %v3580_v38, %s11737_s8  ;;  %v1809_v24 = vrot.slane %v1807_v10, 5  ;;  %v2357_v29 = vrot.slane %v2355_v19, 4  ;;  %v3021_v32 = vrot.slane %v3019_v20, 4  ;;  %v3030_v44 = vrot.slane %v3028_v41, 5 }
 0x139   : > { %3814 = vst.msk [vmem:[#allocation2 + $0x1c] sm:$0xf] %vm3806_vm15, %v11738_v61  ;;  %v3034_v45 = vrot.slane %v3032_v42, 4  ;;  %v268_v41 = vld [vmem:[%s11793_s25 + $0x4c] sm:$0xf] }
 0x13a   : > { %1317 = vst.msk [vmem:[#allocation2 + $0x24] sm:$0xf] %vm1307_vm8, %v1218_v33  ;;  %v12434_v54 = vpop.permute.xlu2 %3300  ;;  %v1810_v38 = vsel %vm11812_vm5, %v1805_v21, %v1809_v24  ;;  %v2359_v9 = vsel %vm11795_vm2, %v2357_v29, %v2358_v31  ;;  %v354_v21 = vld [vmem:[%s11793_s25 + $0x68] sm:$0x1]  ;;  %v9958_v24 = vrot.slane %v986_v17, 9 }
 0x13b   : > { %305 = vst.msk [vmem:[#allocation2 + $0x34] sm:$0xf] %vm291_vm6, %v268_v41 }
 0x13d   : > { %3306 = vrot.lane.b32.xlu0 %v3007_v40, %s11736_s7  ;;  %v10079_v40 = vld [vmem:[%s11793_s25 + $0x60] sm:$0xe] }
 0x13e   : > { %845 = vrot.lane.b32.xlu1 %v566_v23, %s11732_s28 }
 0x13f   : > { %v1216_v55 = vpop.permute.xlu0 %1215 }
 0x140   : > { %1316 = vst.msk [vmem:[#allocation2 + $0x20] sm:$0xf] %vm1307_vm8, %v1216_v55  ;;  %v2068_v59 = vpop.permute.xlu1 %2067  ;;  %847 = vrot.lane.b32.xlu2 %v576_v47, %s11732_s28  ;;  %v3035_v55 = vor.u32 %v3034_v45, %v3030_v44  ;;  %v10243_v47 = vld [vmem:[%s11793_s25 + $0x74] sm:$0x1] }
 0x141   : > { %1537 = vst.msk [vmem:[#allocation2 + $0x20] sm:$0xf] %vm1528_vm9, %v12372_v43  ;;  %v1128_v43 = vsel %vm11795_vm2, %v1126_v56, %v1127_v57  ;;  %v3038_v57 = vshll.u32 %v10189_v46, 16 }
 0x142   : > { %2168 = vst.msk [vmem:[#allocation2 + $0x20] sm:$0xf] %vm2159_vm10, %v2068_v59  ;;  %v838_v36 = vpop.permute.xlu2 %837  ;;  %v3586_v59 = vrot.slane %v10242_v49, 5  ;;  %v3036_v60 = vrot.slane %v3035_v55, 4 }
 0x143   : > { %936 = vst.msk [vmem:[#allocation2 + $0x28] sm:$0xf] %vm925_vm7, %v838_v36 }
 0x144   : > { %v3588_v36 = vrot.slane %v3586_v59, 4 }
 0x145   : > { %3687 = vrot.lane.b32.xlu0 %v3583_v62, %s11737_s8  ;;  %v3040_v62 = vrot.slane %v3038_v57, 5 }
 0x146   : > { %1229 = vrot.lane.b32.xlu1 %v1128_v43, %s11730_s26  ;;  %v353_v43 = vld [vmem:[%s11793_s25 + $0x64] sm:$0xf] }
 0x147   : > { %v1439_v53 = vpop.permute.xlu0 %1438  ;;  %v3041_v11 = vsel %vm11812_vm5, %v3036_v60, %v3040_v62  ;;  %v587_v14 = vshll.u32 %v353_v43, 16 }
 0x148   : > { %1538 = vst.msk [vmem:[#allocation2 + $0x24] sm:$0xf] %vm1528_vm9, %v1439_v53  ;;  %v2449_v15 = vpop.permute.xlu1 %2448  ;;  %1448 = vrot.lane.b32.xlu2 %v9982_v16, %s11731_s27  ;;  %v3589_v53 = vrot.slane %v10243_v47, 5 }
 0x149   : > { %2169 = vst.msk [vmem:[#allocation2 + $0x24] sm:$0xf] %vm2159_vm10, %v12394_v52  ;;  %v3022_v52 = vshll.u32 %v10187_v6, 16  ;;  %v10241_v6 = vld [vmem:[%s11793_s25 + $0x6c] sm:$0xe] }
 0x14a   : > { %2548 = vst.msk [vmem:[#allocation2 + $0x24] sm:$0xf] %vm15547_vm11, %v2449_v15  ;;  %v12472_v7 = vpop.permute.xlu2 %1221  ;;  %v591_v15 = vshrl.u32 %v353_v43, 16  ;;  %v3590_v16 = vsel %vm11795_vm2, %v3588_v36, %v3589_v53 }
 0x14b   : > { %v3024_v33 = vrot.slane %v3022_v52, 5 }
 0x14c   : > { %v593_v3 = vrot.slane %v591_v15, 4 }
 0x14d   : > { %1227 = vrot.lane.b32.xlu0 %v1125_v18, %s11730_s26  ;;  %v3025_v37 = vor.u32 %v3024_v33, %v3021_v32  ;;  %v987_v18 = vld [vmem:[%s11793_s25 + $0x64] sm:$0xf]  ;;  %v597_v33 = vshll.u32 %v354_v21, 16 }
 0x14e   : > { %2079 = vrot.lane.b32.xlu1 %v1800_v5, %s11733_s29  ;;  %v589_v5 = vrot.slane %v587_v14, 5  ;;  %v10190_v14 = vld [vmem:[%s11793_s25 + $0x78] sm:$0xf] }
 0x14f   : > { %v2447_v28 = vpop.permute.xlu0 %2446  ;;  %v3026_v48 = vrot.slane %v3025_v37, 4 }
 0x150   : > { %2547 = vst.msk [vmem:[#allocation2 + $0x20] sm:$0xf] %vm15547_vm11, %v2447_v28  ;;  %v3299_v34 = vpop.permute.xlu1 %3298  ;;  %2081 = vrot.lane.b32.xlu2 %v1810_v38, %s11733_s29  ;;  %v1131_v28 = vrot.slane %v987_v18, 5  ;;  %v594_v32 = vor.u32 %v593_v3, %v589_v5  ;;  %v10191_v3 = vld [vmem:[%s11793_s25 + $0x7c] sm:$0xf] }
 0x151   : > { %2768 = vst.msk [vmem:[#allocation2 + $0x20] sm:$0xf] %vm15544_vm12, %v12413_v22  ;;  %v10119_v22 = vrot.slane %v10079_v40, 9  ;;  %v3031_v58 = vsel %vm11812_vm5, %v3026_v48, %v3030_v44  ;;  %v267_v44 = vld [vmem:[%s11793_s25 + $0x48] sm:$0xf] }
 0x152   : > { %3399 = vst.msk [vmem:[#allocation2 + $0x20] sm:$0xf] %vm15546_vm13, %v3299_v34  ;;  %v12488_v23 = vpop.permute.xlu2 %2071  ;;  %v988_v34 = vld [vmem:[%s11793_s25 + $0x68] sm:$0x1]  ;;  %v1132_v38 = vsel %vm11795_vm2, %v9958_v24, %v1131_v28  ;;  %v595_v37 = vrot.slane %v594_v32, 4 }
 0x153   : > { %v2356_v56 = vsel %vm11795_vm2, %v10119_v22, %v2355_v19  ;;  %v10281_v19 = vrot.slane %v10241_v6, 9  ;;  %v1134_v40 = vrot.slane %v988_v34, 5  ;;  %v599_v22 = vrot.slane %v597_v33, 5  ;;  %v10029_v48 = vld [vmem:[%s11793_s25 + $0x70] sm:$0xf] }
 0x154   : > { %304 = vst.msk [vmem:[#allocation2 + $0x30] sm:$0xf] %vm291_vm6, %v267_v44  ;;  %v1821_v57 = vshll.u32 %v10029_v48, 16  ;;  %v3043_v6 = vshrl.u32 %v10190_v14, 16  ;;  %v3052_v33 = vshll.u32 %v10191_v3, 16  ;;  %v11334_v44 = vld [vmem:[%s15539_s1 + $0x28] sm:$0xff] }
 0x155   : > { %1450 = vrot.lane.b32.xlu0 %v9983_v39, %s11731_s27  ;;  %v3587_v30 = vsel %vm11795_vm2, %v10281_v19, %v3586_v59  ;;  %v1133_v39 = vrot.slane %v1131_v28, 4  ;;  %v9985_v59 = vld [vmem:[%s11793_s25 + $0x70] sm:$0xf]  ;;  %v11336_v19 = vld [vmem:[%s15539_s1 + $0x38] sm:$0xff] }
 0x156   : > { %2460 = vrot.lane.b32.xlu1 %v2359_v9, %s11734_s30  ;;  %v1823_v60 = vrot.slane %v1821_v57, 5  ;;  %4055 = vmatpush.bf16.msra.mxu0 %v11336_v19  ;;  %v356_v28 = vld [vmem:[%s11793_s25 + $0x70] sm:$0xf]  ;;  %v10147_v34 = vld [vmem:[%s11793_s25 + $0x7c] sm:$0xf] }
 0x157   : > { %v2670_v26 = vpop.permute.xlu0 %2669  ;;  %v11331_v19 = vld [vmem:[%s15539_s1 + $0x10] sm:$0xff] }
 0x158   : > { %2769 = vst.msk [vmem:[#allocation2 + $0x24] sm:$0xf] %vm15544_vm12, %v2670_v26  ;;  %v3680_v27 = vpop.permute.xlu1 %3679  ;;  %2679 = vrot.lane.b32.xlu2 %v10144_v51, %s11735_s6  ;;  %v1135_v51 = vsel %vm11795_vm2, %v1133_v39, %v1134_v40  ;;  %v10244_v39 = vld [vmem:[%s11793_s25 + $0x78] sm:$0xe]  ;;  %v10245_v40 = vld [vmem:[%s11793_s25 + $0x7c] sm:$0xf] }
 0x159   : > { %3400 = vst.msk [vmem:[#allocation2 + $0x24] sm:$0xf] %vm15546_vm13, %v12434_v54  ;;  %v352_v54 = vld [vmem:[%s11793_s25 + $0x60] sm:$0xf] }
 0x15a   : > { %3779 = vst.msk [vmem:[#allocation2 + $0x24] sm:$0xf] %vm3769_vm14, %v3680_v27  ;;  %v578_v50 = vshrl.u32 %v352_v54, 16  ;;  %v581_v63 = vshll.u32 %v352_v54, 16  ;;  %v12508_v1 = vpop.permute.xlu2 %2452  ;;  %v10083_v54 = vld [vmem:[%s11793_s25 + $0x70] sm:$0xf] }
 0x15b   : > { %3816 = vst.msk [vmem:[#allocation2 + $0x24] sm:$0xf] %vm3806_vm15, %v11738_v61 }
 0x15c   : > { %v580_v35 = vrot.slane %v578_v50, 4  ;;  %v583_v4 = vrot.slane %v581_v63, 5 }
 0x15d   : > { %2458 = vrot.lane.b32.xlu0 %v2356_v56, %s11734_s30  ;;  %v600_v56 = vsel %vm11812_vm5, %v595_v37, %v599_v22 }
 0x15e   : > { %3310 = vrot.lane.b32.xlu1 %v3031_v58, %s11736_s7  ;;  %v584_v12 = vor.u32 %v583_v4, %v580_v35  ;;  %v1825_v58 = vshrl.u32 %v10029_v48, 16  ;;  %v2362_v35 = vrot.slane %v10083_v54, 5  ;;  %v9984_v4 = vld [vmem:[%s11793_s25 + $0x6c] sm:$0xf] }
 0x15f   : > { %v3678_v2 = vpop.permute.xlu0 %3677  ;;  %v355_v48 = vld [vmem:[%s11793_s25 + $0x6c] sm:$0xf] }
 0x160   : > { %3778 = vst.msk [vmem:[#allocation2 + $0x20] sm:$0xf] %vm3769_vm14, %v3678_v2  ;;  %v1220_v8 = vpop.permute.xlu1 %1219  ;;  %3312 = vrot.lane.b32.xlu2 %v3041_v11, %s11736_s7  ;;  %v585_v10 = vrot.slane %v584_v12, 4  ;;  %v1827_v62 = vrot.slane %v1825_v58, 4  ;;  %v10030_v2 = vld [vmem:[%s11793_s25 + $0x74] sm:$0x1] }
 0x161   : > { %3815 = vst.msk [vmem:[#allocation2 + $0x20] sm:$0xf] %vm3806_vm15, %v11738_v61  ;;  %v1831_v11 = vshll.u32 %v10030_v2, 16  ;;  %v10084_v12 = vld [vmem:[%s11793_s25 + $0x74] sm:$0x1] }
 0x162   : > { %1318 = vst.msk [vmem:[#allocation2 + $0x28] sm:$0xf] %vm1307_vm8, %v1220_v8  ;;  %v12526_v20 = vpop.permute.xlu2 %3302  ;;  %v590_v31 = vsel %vm11812_vm5, %v585_v10, %v589_v5  ;;  %v1828_v8 = vor.u32 %v1827_v62, %v1823_v60  ;;  %v2365_v15 = vrot.slane %v10084_v12, 5  ;;  %v357_v58 = vld [vmem:[%s11793_s25 + $0x74] sm:$0x1]  ;;  %v11332_v12 = vld [vmem:[%s15539_s1 + $0x18] sm:$0xff] }
 0x163   : > { %v1833_v18 = vrot.slane %v1831_v11, 5  ;;  %v10246_v62 = vld [vmem:[%s11793_s25 + $0x80] sm:$0x1]  ;;  %v621_v2 = vshll.u32 %v357_v58, 16 }
 0x164   : > { %v1829_v17 = vrot.slane %v1828_v8, 4 }
 0x165   : > { %2681 = vrot.lane.b32.xlu0 %v10145_v13, %s11735_s6 }
 0x166   : > { %3691 = vrot.lane.b32.xlu1 %v3590_v16, %s11737_s8  ;;  %v3046_v16 = vshll.u32 %v10190_v14, 16  ;;  %v1834_v32 = vsel %vm11812_vm5, %v1829_v17, %v1833_v18 }
 0x167   : > { %v840_v52 = vpop.permute.xlu0 %839 }
 0x168   : > { %937 = vst.msk [vmem:[#allocation2 + $0x2c] sm:$0xf] %vm925_vm7, %v840_v52  ;;  %v1443_v29 = vpop.permute.xlu1 %1442  ;;  %849 = vrot.lane.b32.xlu2 %v590_v31, %s11732_s28  ;;  %v3045_v52 = vrot.slane %v3043_v6, 4  ;;  %v3048_v21 = vrot.slane %v3046_v16, 5  ;;  %v11335_v31 = vld [vmem:[%s15539_s1 + $0x30] sm:$0xff] }
 0x169   : > { %1319 = vst.msk [vmem:[#allocation2 + $0x2c] sm:$0xf] %vm1307_vm8, %v12472_v7  ;;  %v10028_v7 = vld [vmem:[%s11793_s25 + $0x6c] sm:$0xf]  ;;  %4056 = vmatpush.bf16.msra.mxu0 %v11335_v31  ;;  %v10032_v6 = vld [vmem:[%s11793_s25 + $0x7c] sm:$0xf] }
 0x16a   : > { %1540 = vst.msk [vmem:[#allocation2 + $0x2c] sm:$0xf] %vm1528_vm9, %v1443_v29  ;;  %v1812_v42 = vshrl.u32 %v10028_v7, 16  ;;  %v1815_v9 = vshll.u32 %v10028_v7, 16  ;;  %v12545_v26 = vpop.permute.xlu2 %3683  ;;  %v615_v7 = vshrl.u32 %v356_v28, 16 }
 0x16c   : > { %v1814_v46 = vrot.slane %v1812_v42, 4  ;;  %v1817_v27 = vrot.slane %v1815_v9, 5  ;;  %v10192_v42 = vld [vmem:[%s11793_s25 + $0x80] sm:$0x1]  ;;  %v3054_v9 = vrot.slane %v3052_v33, 5 }
 0x16d   : > { %3689 = vrot.lane.b32.xlu0 %v3587_v30, %s11737_s8  ;;  %v3049_v30 = vor.u32 %v3048_v21, %v3045_v52  ;;  %4057 = vmatpush.bf16.msra.mxu0 %v11334_v44  ;;  %v3062_v57 = vshll.u32 %v10192_v42, 16  ;;  %v1845_v52 = vshll.u32 %v10032_v6, 16  ;;  %v1849_v21 = vshrl.u32 %v10032_v6, 16  ;;  %v11329_v42 = vld [vmem:[%s15539_s1] sm:$0xff] }
 0x16e   : > { %1231 = vrot.lane.b32.xlu1 %v1132_v38, %s11730_s26  ;;  %v1818_v55 = vor.u32 %v1817_v27, %v1814_v46  ;;  %v611_v38 = vshll.u32 %v356_v28, 16  ;;  %v10146_v46 = vld [vmem:[%s11793_s25 + $0x78] sm:$0xf]  ;;  %v10282_v27 = vrot.slane %v10244_v39, 9  ;;  %v269_v28 = vld [vmem:[%s11793_s25 + $0x54] sm:$0xf] }
 0x16f   : > { %v1441_v45 = vpop.permute.xlu0 %1440  ;;  %v3050_v41 = vrot.slane %v3049_v30, 4  ;;  %306 = vst.msk [vmem:[#allocation2 + $0x38] sm:$0xf] %vm291_vm6, %v269_v28  ;;  %v11330_v30 = vld [vmem:[%s15539_s1 + $0x8] sm:$0xff] }
 0x170   : > { %1539 = vst.msk [vmem:[#allocation2 + $0x28] sm:$0xf] %vm1528_vm9, %v1441_v45  ;;  %v2451_v49 = vpop.permute.xlu1 %2450  ;;  %1233 = vrot.lane.b32.xlu2 %v1135_v51, %s11730_s26  ;;  %v1819_v47 = vrot.slane %v1818_v55, 4  ;;  %v12618_v51 = vrot.slane %v611_v38, 5  ;;  %v617_v55 = vrot.slane %v615_v7, 4  ;;  %v12672_v38 = vrot.slane %v1845_v52, 5 }
 0x171   : > { %2170 = vst.msk [vmem:[#allocation2 + $0x28] sm:$0xf] %vm2159_vm10, %v12488_v23  ;;  %v10082_v23 = vld [vmem:[%s11793_s25 + $0x6c] sm:$0xe]  ;;  %v1851_v7 = vrot.slane %v1849_v21, 4 }
 0x172   : > { %2549 = vst.msk [vmem:[#allocation2 + $0x28] sm:$0xf] %vm15547_vm11, %v2451_v49  ;;  %v12565_v50 = vpop.permute.xlu2 %1223  ;;  %v10120_v43 = vrot.slane %v10082_v23, 9  ;;  %v1824_v53 = vsel %vm11812_vm5, %v1819_v47, %v1823_v60  ;;  %v3593_v49 = vrot.slane %v10245_v40, 5  ;;  %v11333_v23 = vld [vmem:[%s15539_s1 + $0x20] sm:$0xff]  ;;  %v602_v47 = vshrl.u32 %v355_v48, 16 }
 0x173   : > { %v605_v60 = vshll.u32 %v355_v48, 16  ;;  %4058 = vmatpush.bf16.msra.mxu0 %v11333_v23  ;;  %v1852_v48 = vor.u32 %v1851_v7, %v12672_v38  ;;  %v10148_v21 = vld [vmem:[%s11793_s25 + $0x84] sm:$0xf]  ;;  %v11312_v28 = vld [vmem:[#allocation2 + $0x8] sm:$0xff] }
 0x174   : > { %v2363_v13 = vsel %vm11795_vm2, %v10120_v43, %v2362_v35  ;;  %v3595_v43 = vrot.slane %v3593_v49, 4 }
 0x175   : > { %851 = vrot.lane.b32.xlu0 %v600_v56, %s11732_s28  ;;  %v607_v8 = vrot.slane %v605_v60, 5  ;;  %v9987_v60 = vld [vmem:[%s11793_s25 + $0x7c] sm:$0xf] }
 0x176   : > { %1454 = vrot.lane.b32.xlu1 %v9985_v59, %s11731_s27  ;;  %v3055_v59 = vsel %vm11812_vm5, %v3050_v41, %v3054_v9  ;;  %v270_v41 = vld [vmem:[%s11793_s25 + $0x58] sm:$0xf] }
 0x177   : > { %v2074_v63 = vpop.permute.xlu0 %2073  ;;  %4059 = vmatpush.bf16.msra.mxu0 %v11332_v12  ;;  %307 = vst.msk [vmem:[#allocation2 + $0x3c] sm:$0xf] %vm291_vm6, %v270_v41 }
 0x178   : > { %2171 = vst.msk [vmem:[#allocation2 + $0x2c] sm:$0xf] %vm2159_vm10, %v2074_v63  ;;  %v2674_v36 = vpop.permute.xlu1 %2673  ;;  %2083 = vrot.lane.b32.xlu2 %v1824_v53, %s11733_s29  ;;  %v618_v63 = vor.u32 %v617_v55, %v12618_v51  ;;  %v604_v53 = vrot.slane %v602_v47, 4 }
 0x179   : > { %2550 = vst.msk [vmem:[#allocation2 + $0x2c] sm:$0xf] %vm15547_vm11, %v12508_v1  ;;  %v2364_v1 = vrot.slane %v2362_v35, 4  ;;  %v3596_v35 = vrot.slane %v10246_v62, 5 }
 0x17a   : > { %2771 = vst.msk [vmem:[#allocation2 + $0x2c] sm:$0xf] %vm15544_vm12, %v2674_v36  ;;  %v12582_v10 = vpop.permute.xlu2 %1446  ;;  %v3064_v36 = vrot.slane %v3062_v57, 5  ;;  %v619_v14 = vrot.slane %v618_v63, 4  ;;  %v608_v18 = vor.u32 %v607_v8, %v604_v53 }
 0x17b   : > { %v2366_v29 = vsel %vm11795_vm2, %v2364_v1, %v2365_v15  ;;  %v623_v1 = vrot.slane %v621_v2, 5  ;;  %v3597_v16 = vsel %vm11795_vm2, %v3595_v43, %v3596_v35  ;;  %4060 = vmatpush.bf16.msra.mxu0 %v11331_v19  ;;  %v10085_v43 = vld [vmem:[%s11793_s25 + $0x78] sm:$0xe] }
 0x17d   : > { %1452 = vrot.lane.b32.xlu0 %v9984_v4, %s11731_s27 }
 0x17e   : > { %2462 = vrot.lane.b32.xlu1 %v2363_v13, %s11734_s30 }
 0x17f   : > { %v2672_v5 = vpop.permute.xlu0 %2671  ;;  %4061 = vmatpush.bf16.msra.mxu0 %v11330_v30 }
 0x180   : > { %2770 = vst.msk [vmem:[#allocation2 + $0x28] sm:$0xf] %vm15544_vm12, %v2672_v5  ;;  %v3682_v24 = vpop.permute.xlu1 %3681  ;;  %2464 = vrot.lane.b32.xlu2 %v2366_v29, %s11734_s30  ;;  %v989_v5 = vld [vmem:[%s11793_s25 + $0x6c] sm:$0xe]  ;;  %v609_v29 = vrot.slane %v608_v18, 4 }
 0x181   : > { %3401 = vst.msk [vmem:[#allocation2 + $0x28] sm:$0xf] %vm15546_vm13, %v12526_v20  ;;  %v3056_v20 = vshrl.u32 %v10191_v3, 16  ;;  %v990_v3 = vld [vmem:[%s11793_s25 + $0x70] sm:$0xf] }
 0x182   : > { %3780 = vst.msk [vmem:[#allocation2 + $0x28] sm:$0xf] %vm3769_vm14, %v3682_v24  ;;  %v12609_v22 = vpop.permute.xlu2 %2454  ;;  %v9959_v24 = vrot.slane %v989_v5, 9  ;;  %v1138_v33 = vrot.slane %v990_v3, 5 }
 0x183   : > { %3817 = vst.msk [vmem:[#allocation2 + $0x28] sm:$0xf] %vm3806_vm15, %v11738_v61  ;;  %v3058_v37 = vrot.slane %v3056_v20, 4  ;;  %v10031_v20 = vld [vmem:[%s11793_s25 + $0x78] sm:$0xf]  ;;  %4062 = vmatpush.bf16.msra.mxu0 %v11329_v42 }
 0x184   : > { %v1139_v40 = vsel %vm11795_vm2, %v9959_v24, %v1138_v33  ;;  %v1839_v44 = vshll.u32 %v10031_v20, 16 }
 0x185   : > { %2085 = vrot.lane.b32.xlu0 %v1834_v32, %s11733_s29  ;;  %v3059_v54 = vor.u32 %v3058_v37, %v3054_v9  ;;  %v614_v9 = vsel %vm11812_vm5, %v609_v29, %v12618_v51  ;;  %v1836_v37 = vshrl.u32 %v10031_v20, 16 }
 0x186   : > { %2685 = vrot.lane.b32.xlu1 %v10147_v34, %s11735_s6  ;;  %v10033_v34 = vld [vmem:[%s11793_s25 + $0x80] sm:$0x1] }
 0x187   : > { %v3305_v45 = vpop.permute.xlu0 %3304  ;;  %v3060_v4 = vrot.slane %v3059_v54, 4  ;;  %v1838_v55 = vrot.slane %v1836_v37, 4  ;;  %v10194_v54 = vld [vmem:[%s11793_s25 + $0x88] sm:$0xf] }
 0x188   : > { %3402 = vst.msk [vmem:[#allocation2 + $0x2c] sm:$0xf] %vm15546_vm13, %v3305_v45  ;;  %v844_v56 = vpop.permute.xlu1 %843  ;;  %3314 = vrot.lane.b32.xlu2 %v3055_v59, %s11736_s7  ;;  %v991_v45 = vld [vmem:[%s11793_s25 + $0x74] sm:$0x1]  ;;  %v1853_v59 = vrot.slane %v1852_v48, 4  ;;  %v3076_v63 = vshll.u32 %v10194_v54, 16 }
 0x189   : > { %3781 = vst.msk [vmem:[#allocation2 + $0x2c] sm:$0xf] %vm3769_vm14, %v12545_v26  ;;  %v3594_v26 = vsel %vm11795_vm2, %v10282_v27, %v3593_v49  ;;  %v3065_v17 = vsel %vm11812_vm5, %v3060_v4, %v3064_v36  ;;  %v11311_v27 = vld [vmem:[#allocation2] sm:$0xff]  ;;  %v1140_v49 = vrot.slane %v1138_v33, 4  ;;  %v1141_v51 = vrot.slane %v991_v45, 5 }
 0x18a   : > { %3818 = vst.msk [vmem:[#allocation2 + $0x2c] sm:$0xf] %vm3806_vm15, %v11738_v61  ;;  %v12637_v11 = vpop.permute.xlu2 %2677  ;;  %4063 = vmatmul.bf16.vlgmr.msra.gmra.mxu0 %v11311_v27  ;;  %v3080_v2 = vshrl.u32 %v10194_v54, 16  ;;  %v10086_v4 = vld [vmem:[%s11793_s25 + $0x7c] sm:$0xf] }
 0x18b   : > { %939 = vst.msk [vmem:[#allocation2 + $0x34] sm:$0xf] %vm925_vm7, %v844_v56  ;;  %v1841_v56 = vrot.slane %v1839_v44, 5  ;;  %v1142_v62 = vsel %vm11795_vm2, %v1140_v49, %v1141_v51  ;;  %v2369_v12 = vrot.slane %v10086_v4, 5  ;;  %v10247_v45 = vld [vmem:[%s11793_s25 + $0x84] sm:$0xe] }
 0x18c   : > { %v10248_v27 = vld [vmem:[%s11793_s25 + $0x88] sm:$0xf]  ;;  %v10283_v49 = vrot.slane %v10247_v45, 9  ;;  %v9988_v45 = vld [vmem:[%s11793_s25 + $0x84] sm:$0xf] }
 0x18d   : > { %2683 = vrot.lane.b32.xlu0 %v10146_v46, %s11735_s6  ;;  %v1855_v46 = vshll.u32 %v10033_v34, 16  ;;  %v2371_v29 = vrot.slane %v2369_v12, 4 }
 0x18e   : > { %3693 = vrot.lane.b32.xlu1 %v3594_v26, %s11737_s8  ;;  %v1842_v26 = vor.u32 %v1841_v56, %v1838_v55 }
 0x18f   : > { %v842_v13 = vpop.permute.xlu0 %841  ;;  %v1857_v23 = vrot.slane %v1855_v46, 5 }
 0x190   : > { %938 = vst.msk [vmem:[#allocation2 + $0x30] sm:$0xf] %vm925_vm7, %v842_v13  ;;  %v1445_v15 = vpop.permute.xlu1 %1444  ;;  %3695 = vrot.lane.b32.xlu2 %v3597_v16, %s11737_s8  ;;  %v1843_v36 = vrot.slane %v1842_v26, 4  ;;  %v12711_v13 = vrot.slane %v3076_v63, 5  ;;  %v358_v16 = vld [vmem:[%s11793_s25 + $0x78] sm:$0xf] }
 0x191   : > { %1320 = vst.msk [vmem:[#allocation2 + $0x30] sm:$0xf] %vm1307_vm8, %v12565_v50  ;;  %v624_v50 = vsel %vm11812_vm5, %v619_v14, %v623_v1  ;;  %v1858_v35 = vsel %vm11812_vm5, %v1853_v59, %v1857_v23  ;;  %v3082_v14 = vrot.slane %v3080_v2, 4  ;;  %v10193_v1 = vld [vmem:[%s11793_s25 + $0x84] sm:$0xf]  ;;  %v626_v24 = vshrl.u32 %v358_v16, 16 }
 0x192   : > { %1541 = vst.msk [vmem:[#allocation2 + $0x30] sm:$0xf] %vm1528_vm9, %v1445_v15  ;;  %v12662_v31 = vpop.permute.xlu2 %3685  ;;  %v10195_v15 = vld [vmem:[%s11793_s25 + $0x8c] sm:$0x1]  ;;  %v1848_v18 = vsel %vm11812_vm5, %v1843_v36, %v12672_v38  ;;  %v3067_v19 = vshrl.u32 %v10193_v1, 16  ;;  %v3070_v5 = vshll.u32 %v10193_v1, 16 }
 0x193   : > { %v3083_v3 = vor.u32 %v3082_v14, %v12711_v13  ;;  %v3086_v52 = vshll.u32 %v10195_v15, 16  ;;  %v10034_v59 = vld [vmem:[%s11793_s25 + $0x84] sm:$0xf]  ;;  %v11313_v15 = vld [vmem:[#allocation2 + $0x10] sm:$0xff] }
 0x194   : > { %v3072_v33 = vrot.slane %v3070_v5, 5 }
 0x195   : > { %3316 = vrot.lane.b32.xlu0 %v3065_v17, %s11736_s7  ;;  %v3084_v38 = vrot.slane %v3083_v3, 4  ;;  %v3088_v7 = vrot.slane %v3086_v52, 5  ;;  %v10035_v3 = vld [vmem:[%s11793_s25 + $0x88] sm:$0xf] }
 0x196   : > { %855 = vrot.lane.b32.xlu1 %v624_v50, %s11732_s28  ;;  %v10087_v50 = vld [vmem:[%s11793_s25 + $0x80] sm:$0x1] }
 0x197   : > { %v1226_v32 = vpop.permute.xlu0 %1225  ;;  %v2372_v30 = vrot.slane %v10087_v50, 5  ;;  %v3089_v46 = vsel %vm11812_vm5, %v3084_v38, %v3088_v7 }
 0x198   : > { %1321 = vst.msk [vmem:[#allocation2 + $0x34] sm:$0xf] %vm1307_vm8, %v1226_v32  ;;  %v2078_v39 = vpop.permute.xlu1 %2077  ;;  %1235 = vrot.lane.b32.xlu2 %v1139_v40, %s11730_s26  ;;  %v3069_v32 = vrot.slane %v3067_v19, 4  ;;  %v628_v40 = vrot.slane %v626_v24, 4  ;;  %v271_v24 = vld [vmem:[%s11793_s25 + $0x60] sm:$0xf] }
 0x199   : > { %1542 = vst.msk [vmem:[#allocation2 + $0x34] sm:$0xf] %vm1528_vm9, %v12582_v10  ;;  %v9986_v10 = vld [vmem:[%s11793_s25 + $0x78] sm:$0xf]  ;;  %v2373_v37 = vsel %vm11795_vm2, %v2371_v29, %v2372_v30  ;;  %v1869_v30 = vshll.u32 %v10035_v3, 16 }
 0x19a   : > { %2173 = vst.msk [vmem:[#allocation2 + $0x34] sm:$0xf] %vm2159_vm10, %v2078_v39  ;;  %v848_v57 = vpop.permute.xlu2 %847  ;;  %4068 = vmatmul.bf16.gmra.mxu0 %v11312_v28  ;;  %v359_v39 = vld [vmem:[%s11793_s25 + $0x7c] sm:$0xf]  ;;  %v3073_v44 = vor.u32 %v3072_v33, %v3069_v32  ;;  %v992_v29 = vld [vmem:[%s11793_s25 + $0x78] sm:$0xe] }
 0x19b   : > { %941 = vst.msk [vmem:[#allocation2 + $0x3c] sm:$0xf] %vm925_vm7, %v848_v57  ;;  %v639_v48 = vshrl.u32 %v359_v39, 16  ;;  %v1873_v32 = vshrl.u32 %v10035_v3, 16  ;;  %v9960_v33 = vrot.slane %v992_v29, 9  ;;  %v11315_v29 = vld [vmem:[#allocation2 + $0x20] sm:$0xff] }
 0x19c   : > { %v3074_v51 = vrot.slane %v3073_v44, 4  ;;  %308 = vst.msk [vmem:[#allocation2 + $0x40] sm:$0xf] %vm291_vm6, %v271_v24  ;;  %v10196_v44 = vld [vmem:[%s11793_s25 + $0x90] sm:$0xf] }
 0x19d   : > { %853 = vrot.lane.b32.xlu0 %v614_v9, %s11732_s28  ;;  %v10149_v9 = vld [vmem:[%s11793_s25 + $0x88] sm:$0xf]  ;;  %v641_v23 = vrot.slane %v639_v48, 4 }
 0x19e   : > { %1456 = vrot.lane.b32.xlu1 %v9986_v10, %s11731_s27  ;;  %v635_v10 = vshll.u32 %v359_v39, 16  ;;  %v3079_v2 = vsel %vm11812_vm5, %v3074_v51, %v12711_v13  ;;  %v1871_v39 = vrot.slane %v1869_v30, 5  ;;  %v3094_v51 = vshll.u32 %v10196_v44, 16 }
 0x19f   : > { %v2076_v58 = vpop.permute.xlu0 %2075 }
 0x1a0   : > { %2172 = vst.msk [vmem:[#allocation2 + $0x30] sm:$0xf] %vm2159_vm10, %v2076_v58  ;;  %v2676_v47 = vpop.permute.xlu1 %2675  ;;  %1458 = vrot.lane.b32.xlu2 %v9987_v60, %s11731_s27  ;;  %v637_v57 = vrot.slane %v635_v10, 5  ;;  %v3600_v58 = vrot.slane %v10248_v27, 5 }
 0x1a1   : > { %2551 = vst.msk [vmem:[#allocation2 + $0x30] sm:$0xf] %vm15547_vm11, %v12609_v22  ;;  %v10121_v22 = vrot.slane %v10085_v43, 9  ;;  %v1860_v43 = vshrl.u32 %v10034_v59, 16 }
 0x1a2   : > { %2772 = vst.msk [vmem:[#allocation2 + $0x30] sm:$0xf] %vm15544_vm12, %v2676_v47  ;;  %v12708_v53 = vpop.permute.xlu2 %1448  ;;  %v360_v47 = vld [vmem:[%s11793_s25 + $0x80] sm:$0x1]  ;;  %v3601_v26 = vsel %vm11795_vm2, %v10283_v49, %v3600_v58  ;;  %v642_v63 = vor.u32 %v641_v23, %v637_v57  ;;  %v3602_v13 = vrot.slane %v3600_v58, 4  ;;  %v11314_v58 = vld [vmem:[#allocation2 + $0x18] sm:$0xff] }
 0x1a3   : > { %v2370_v17 = vsel %vm11795_vm2, %v10121_v22, %v2369_v12  ;;  %v645_v4 = vshll.u32 %v360_v47, 16  ;;  %v10249_v22 = vld [vmem:[%s11793_s25 + $0x8c] sm:$0x1]  ;;  %v994_v12 = vld [vmem:[%s11793_s25 + $0x80] sm:$0x1] }
 0x1a4   : > { %v643_v14 = vrot.slane %v642_v63, 4  ;;  %v1148_v50 = vrot.slane %v994_v12, 5  ;;  %v10090_v49 = vld [vmem:[%s11793_s25 + $0x8c] sm:$0x1] }
 0x1a5   : > { %1237 = vrot.lane.b32.xlu0 %v1142_v62, %s11730_s26  ;;  %v993_v62 = vld [vmem:[%s11793_s25 + $0x7c] sm:$0xf]  ;;  %v647_v1 = vrot.slane %v645_v4, 5  ;;  %v2379_v47 = vrot.slane %v10090_v49, 5 }
 0x1a6   : > { %2089 = vrot.lane.b32.xlu1 %v1858_v35, %s11733_s29  ;;  %v1863_v35 = vshll.u32 %v10034_v59, 16 }
 0x1a7   : > { %v2457_v8 = vpop.permute.xlu0 %2456 }
 0x1a8   : > { %2552 = vst.msk [vmem:[#allocation2 + $0x34] sm:$0xf] %vm15547_vm11, %v2457_v8  ;;  %v3309_v6 = vpop.permute.xlu1 %3308  ;;  %2466 = vrot.lane.b32.xlu2 %v2370_v17, %s11734_s30  ;;  %v1145_v8 = vrot.slane %v993_v62, 5  ;;  %v1865_v17 = vrot.slane %v1863_v35, 5  ;;  %v10088_v35 = vld [vmem:[%s11793_s25 + $0x84] sm:$0xe] }
 0x1a9   : > { %2773 = vst.msk [vmem:[#allocation2 + $0x34] sm:$0xf] %vm15544_vm12, %v12637_v11  ;;  %v629_v11 = vshll.u32 %v358_v16, 16  ;;  %v1862_v16 = vrot.slane %v1860_v43, 4  ;;  %v9989_v43 = vld [vmem:[%s11793_s25 + $0x88] sm:$0xf] }
 0x1aa   : > { %3404 = vst.msk [vmem:[#allocation2 + $0x34] sm:$0xf] %vm15546_vm13, %v3309_v6  ;;  %v12730_v20 = vpop.permute.xlu2 %2081  ;;  %v3603_v6 = vrot.slane %v10249_v22, 5  ;;  %4073 = vmatmul.bf16.gmra.mxu0 %v11313_v15  ;;  %v1147_v5 = vrot.slane %v1145_v8, 4  ;;  %v1146_v48 = vsel %vm11795_vm2, %v9960_v33, %v1145_v8 }
 0x1ab   : > { %v631_v41 = vrot.slane %v629_v11, 5  ;;  %v1866_v28 = vor.u32 %v1865_v17, %v1862_v16  ;;  %v10251_v17 = vld [vmem:[%s11793_s25 + $0x94] sm:$0xf] }
 0x1ac   : > { %v3604_v11 = vsel %vm11795_vm2, %v3602_v13, %v3603_v6  ;;  %v10198_v6 = vld [vmem:[%s11793_s25 + $0x98] sm:$0x1]  ;;  %v3607_v24 = vrot.slane %v10251_v17, 5 }
 0x1ad   : > { %2087 = vrot.lane.b32.xlu0 %v1848_v18, %s11733_s29  ;;  %v3110_v3 = vshll.u32 %v10198_v6, 16 }
 0x1ae   : > { %2687 = vrot.lane.b32.xlu1 %v10148_v21, %s11735_s6  ;;  %v648_v21 = vsel %vm11812_vm5, %v643_v14, %v647_v1 }
 0x1af   : > { %v3307_v34 = vpop.permute.xlu0 %3306 }
 0x1b0   : > { %3403 = vst.msk [vmem:[#allocation2 + $0x30] sm:$0xf] %vm15546_vm13, %v3307_v34  ;;  %v846_v42 = vpop.permute.xlu1 %845  ;;  %2689 = vrot.lane.b32.xlu2 %v10149_v9, %s11735_s6  ;;  %v1867_v34 = vrot.slane %v1866_v28, 4  ;;  %v10036_v9 = vld [vmem:[%s11793_s25 + $0x8c] sm:$0x1]  ;;  %v3112_v28 = vrot.slane %v3110_v3, 5 }
 0x1b1   : > { %3782 = vst.msk [vmem:[#allocation2 + $0x30] sm:$0xf] %vm3769_vm14, %v12662_v31  ;;  %v632_v31 = vor.u32 %v631_v41, %v628_v40  ;;  %v12791_v40 = vld [vmem:[%s11793_s25 + $0x88] sm:$0xf]  ;;  %v1875_v41 = vrot.slane %v1873_v32, 4 }
 0x1b2   : > { %3819 = vst.msk [vmem:[#allocation2 + $0x30] sm:$0xf] %vm3806_vm15, %v11738_v61  ;;  %v12749_v55 = vpop.permute.xlu2 %2679  ;;  %v1872_v27 = vsel %vm11812_vm5, %v1867_v34, %v1871_v39  ;;  %v362_v34 = vld [vmem:[%s11793_s25 + $0x88] sm:$0xf] }
 0x1b3   : > { %940 = vst.msk [vmem:[#allocation2 + $0x38] sm:$0xf] %vm925_vm7, %v846_v42  ;;  %v633_v54 = vrot.slane %v632_v31, 4  ;;  %v272_v42 = vld [vmem:[%s11793_s25 + $0x64] sm:$0xf]  ;;  %v1876_v10 = vor.u32 %v1875_v41, %v1871_v39  ;;  %v2376_v31 = vrot.slane %v12791_v40, 5 }
 0x1b4   : > { %309 = vst.msk [vmem:[#allocation2 + $0x44] sm:$0xf] %vm291_vm6, %v272_v42  ;;  %v3609_v39 = vrot.slane %v3607_v24, 4 }
 0x1b5   : > { %2468 = vrot.lane.b32.xlu0 %v2373_v37, %s11734_s30  ;;  %v638_v36 = vsel %vm11812_vm5, %v633_v54, %v637_v57  ;;  %v2378_v54 = vrot.slane %v2376_v31, 4 }
 0x1b6   : > { %3320 = vrot.lane.b32.xlu1 %v3089_v46, %s11736_s7  ;;  %v1879_v46 = vshll.u32 %v10036_v9, 16 }
 0x1b7   : > { %v3688_v56 = vpop.permute.xlu0 %3687 }
 0x1b8   : > { %3783 = vst.msk [vmem:[#allocation2 + $0x34] sm:$0xf] %vm3769_vm14, %v3688_v56  ;;  %v1230_v60 = vpop.permute.xlu1 %1229  ;;  %3697 = vrot.lane.b32.xlu2 %v3601_v26, %s11737_s8  ;;  %v1877_v56 = vrot.slane %v1876_v10, 4  ;;  %v1881_v57 = vrot.slane %v1879_v46, 5  ;;  %v3096_v26 = vrot.slane %v3094_v51, 5 }
 0x1b9   : > { %3820 = vst.msk [vmem:[#allocation2 + $0x34] sm:$0xf] %vm3806_vm15, %v11738_v61  ;;  %v10250_v10 = vld [vmem:[%s11793_s25 + $0x90] sm:$0xe]  ;;  %v995_v46 = vld [vmem:[%s11793_s25 + $0x84] sm:$0xe] }
 0x1ba   : > { %1323 = vst.msk [vmem:[#allocation2 + $0x3c] sm:$0xf] %vm1307_vm8, %v1230_v60  ;;  %v12770_v18 = vpop.permute.xlu2 %3312  ;;  %4078 = vmatmul.bf16.gmra.mxu0 %v11314_v58  ;;  %v10197_v60 = vld [vmem:[%s11793_s25 + $0x94] sm:$0xf]  ;;  %v10284_v49 = vrot.slane %v10250_v10, 9 }
 0x1bb   : > { %v3100_v4 = vshll.u32 %v10197_v60, 16  ;;  %v3104_v22 = vshrl.u32 %v10197_v60, 16  ;;  %v363_v58 = vld [vmem:[%s11793_s25 + $0x8c] sm:$0x1] }
 0x1bd   : > { %3318 = vrot.lane.b32.xlu0 %v3079_v2, %s11736_s7  ;;  %v1882_v2 = vsel %vm11812_vm5, %v1877_v56, %v1881_v57  ;;  %v3102_v1 = vrot.slane %v3100_v4, 5  ;;  %v3106_v15 = vrot.slane %v3104_v22, 4  ;;  %v274_v22 = vld [vmem:[%s11793_s25 + $0x70] sm:$0xf] }
 0x1be   : > { %857 = vrot.lane.b32.xlu1 %v638_v36, %s11732_s28  ;;  %v2380_v36 = vsel %vm11795_vm2, %v2378_v54, %v2379_v47  ;;  %311 = vst.msk [vmem:[#allocation2 + $0x4c] sm:$0xf] %vm291_vm6, %v274_v22 }
 0x1bf   : > { %v1228_v19 = vpop.permute.xlu0 %1227 }
 0x1c0   : > { %1322 = vst.msk [vmem:[#allocation2 + $0x38] sm:$0xf] %vm1307_vm8, %v1228_v19  ;;  %v2080_v52 = vpop.permute.xlu1 %2079  ;;  %859 = vrot.lane.b32.xlu2 %v648_v21, %s11732_s28  ;;  %v10150_v19 = vld [vmem:[%s11793_s25 + $0x90] sm:$0xf]  ;;  %v10252_v21 = vld [vmem:[%s11793_s25 + $0x98] sm:$0x1] }
 0x1c1   : > { %1543 = vst.msk [vmem:[#allocation2 + $0x38] sm:$0xf] %vm1528_vm9, %v12708_v53  ;;  %v1149_v53 = vsel %vm11795_vm2, %v1147_v5, %v1148_v50  ;;  %v3107_v5 = vor.u32 %v3106_v15, %v3102_v1  ;;  %v3610_v40 = vrot.slane %v10252_v21, 5 }
 0x1c2   : > { %2174 = vst.msk [vmem:[#allocation2 + $0x38] sm:$0xf] %vm2159_vm10, %v2080_v52  ;;  %v850_v38 = vpop.permute.xlu2 %849 }
 0x1c3   : > { %942 = vst.msk [vmem:[#allocation2 + $0x40] sm:$0xf] %vm925_vm7, %v850_v38 }
 0x1c5   : > { %3699 = vrot.lane.b32.xlu0 %v3604_v11, %s11737_s8  ;;  %v3108_v11 = vrot.slane %v3107_v5, 4 }
 0x1c6   : > { %1241 = vrot.lane.b32.xlu1 %v1149_v53, %s11730_s26 }
 0x1c7   : > { %v1451_v7 = vpop.permute.xlu0 %1450  ;;  %v3113_v42 = vsel %vm11812_vm5, %v3108_v11, %v3112_v28  ;;  %v10092_v11 = vld [vmem:[%s11793_s25 + $0x94] sm:$0xf] }
 0x1c8   : > { %1544 = vst.msk [vmem:[#allocation2 + $0x3c] sm:$0xf] %vm1528_vm9, %v1451_v7  ;;  %v2461_v37 = vpop.permute.xlu1 %2460  ;;  %1460 = vrot.lane.b32.xlu2 %v9988_v45, %s11731_s27  ;;  %v663_v45 = vshrl.u32 %v362_v34, 16 }
 0x1c9   : > { %2175 = vst.msk [vmem:[#allocation2 + $0x3c] sm:$0xf] %vm2159_vm10, %v12730_v20  ;;  %v3091_v20 = vshrl.u32 %v10196_v44, 16  ;;  %v659_v44 = vshll.u32 %v362_v34, 16  ;;  %v10039_v34 = vld [vmem:[%s11793_s25 + $0x98] sm:$0x1] }
 0x1ca   : > { %2554 = vst.msk [vmem:[#allocation2 + $0x3c] sm:$0xf] %vm15547_vm11, %v2461_v37  ;;  %v12811_v59 = vpop.permute.xlu2 %1233  ;;  %4083 = vmatmul.bf16.gmra.mxu0 %v11315_v29  ;;  %v10151_v37 = vld [vmem:[%s11793_s25 + $0x94] sm:$0xf]  ;;  %v665_v51 = vrot.slane %v663_v45, 4 }
 0x1cb   : > { %v3093_v62 = vrot.slane %v3091_v20, 4  ;;  %v661_v20 = vrot.slane %v659_v44, 5  ;;  %v10199_v45 = vld [vmem:[%s11793_s25 + $0x9c] sm:$0xf] }
 0x1cd   : > { %1239 = vrot.lane.b32.xlu0 %v1146_v48, %s11730_s26  ;;  %v3097_v8 = vor.u32 %v3096_v26, %v3093_v62  ;;  %v3611_v48 = vsel %vm11795_vm2, %v3609_v39, %v3610_v40  ;;  %v3608_v62 = vsel %vm11795_vm2, %v10284_v49, %v3607_v24  ;;  %v666_v26 = vor.u32 %v665_v51, %v661_v20  ;;  %v9990_v39 = vld [vmem:[%s11793_s25 + $0x90] sm:$0xf] }
 0x1ce   : > { %2091 = vrot.lane.b32.xlu1 %v1872_v27, %s11733_s29 }
 0x1cf   : > { %v2459_v23 = vpop.permute.xlu0 %2458  ;;  %v3098_v13 = vrot.slane %v3097_v8, 4 }
 0x1d0   : > { %2553 = vst.msk [vmem:[#allocation2 + $0x38] sm:$0xf] %vm15547_vm11, %v2459_v23  ;;  %v3311_v63 = vpop.permute.xlu1 %3310  ;;  %2093 = vrot.lane.b32.xlu2 %v1882_v2, %s11733_s29  ;;  %v9961_v23 = vrot.slane %v995_v46, 9  ;;  %v997_v2 = vld [vmem:[%s11793_s25 + $0x8c] sm:$0x1]  ;;  %v3115_v46 = vshrl.u32 %v10199_v45, 16 }
 0x1d1   : > { %2774 = vst.msk [vmem:[#allocation2 + $0x38] sm:$0xf] %vm15544_vm12, %v12749_v55  ;;  %v10122_v55 = vrot.slane %v10088_v35, 9  ;;  %v3103_v52 = vsel %vm11812_vm5, %v3098_v13, %v3102_v1  ;;  %v10037_v35 = vld [vmem:[%s11793_s25 + $0x90] sm:$0xf]  ;;  %v1155_v4 = vrot.slane %v997_v2, 5 }
 0x1d2   : > { %3405 = vst.msk [vmem:[#allocation2 + $0x38] sm:$0xf] %vm15546_vm13, %v3311_v63  ;;  %v12827_v12 = vpop.permute.xlu2 %2083  ;;  %v669_v63 = vshll.u32 %v363_v58, 16  ;;  %v1884_v8 = vshrl.u32 %v10037_v35, 16  ;;  %v273_v13 = vld [vmem:[%s11793_s25 + $0x6c] sm:$0xf] }
 0x1d3   : > { %v2377_v50 = vsel %vm11795_vm2, %v10122_v55, %v2376_v31  ;;  %v996_v31 = vld [vmem:[%s11793_s25 + $0x88] sm:$0xf]  ;;  %v1887_v55 = vshll.u32 %v10037_v35, 16  ;;  %310 = vst.msk [vmem:[#allocation2 + $0x48] sm:$0xf] %vm291_vm6, %v273_v13  ;;  %v3117_v58 = vrot.slane %v3115_v46, 4 }
 0x1d4   : > { %v1152_v54 = vrot.slane %v996_v31, 5  ;;  %v671_v1 = vrot.slane %v669_v63, 5  ;;  %v1886_v17 = vrot.slane %v1884_v8, 4  ;;  %v3118_v31 = vshll.u32 %v10199_v45, 16  ;;  %v10253_v35 = vld [vmem:[%s11793_s25 + $0x9c] sm:$0xe] }
 0x1d5   : > { %1462 = vrot.lane.b32.xlu0 %v9989_v43, %s11731_s27  ;;  %v364_v13 = vld [vmem:[%s11793_s25 + $0x90] sm:$0xf]  ;;  %v10041_v45 = vld [vmem:[%s11793_s25 + $0xa0] sm:$0xf] }
 0x1d6   : > { %2472 = vrot.lane.b32.xlu1 %v2380_v36, %s11734_s30  ;;  %v1153_v43 = vsel %vm11795_vm2, %v9961_v23, %v1152_v54  ;;  %v11316_v36 = vld [vmem:[#allocation2 + $0x28] sm:$0xff]  ;;  %v3120_v23 = vrot.slane %v3118_v31, 5  ;;  %v998_v46 = vld [vmem:[%s11793_s25 + $0x90] sm:$0xe] }
 0x1d7   : > { %v2682_v14 = vpop.permute.xlu0 %2681 }
 0x1d8   : > { %2775 = vst.msk [vmem:[#allocation2 + $0x3c] sm:$0xf] %vm15544_vm12, %v2682_v14  ;;  %v3692_v16 = vpop.permute.xlu1 %3691  ;;  %2691 = vrot.lane.b32.xlu2 %v10150_v19, %s11735_s6  ;;  %v667_v14 = vrot.slane %v666_v26, 4  ;;  %v1889_v19 = vrot.slane %v1887_v55, 5 }
 0x1d9   : > { %3406 = vst.msk [vmem:[#allocation2 + $0x3c] sm:$0xf] %vm15546_vm13, %v12770_v18  ;;  %v361_v18 = vld [vmem:[%s11793_s25 + $0x84] sm:$0xf] }
 0x1da   : > { %3785 = vst.msk [vmem:[#allocation2 + $0x3c] sm:$0xf] %vm3769_vm14, %v3692_v16  ;;  %v650_v30 = vshrl.u32 %v361_v18, 16  ;;  %v653_v32 = vshll.u32 %v361_v18, 16  ;;  %v12847_v53 = vpop.permute.xlu2 %2464  ;;  %v10038_v16 = vld [vmem:[%s11793_s25 + $0x94] sm:$0xf]  ;;  %4088 = vmatmul.bf16.gmra.mxu0 %v11316_v36  ;;  %v1890_v3 = vor.u32 %v1889_v19, %v1886_v17 }
 0x1db   : > { %3822 = vst.msk [vmem:[#allocation2 + $0x3c] sm:$0xf] %vm3806_vm15, %v11738_v61  ;;  %v1893_v21 = vshll.u32 %v10038_v16, 16  ;;  %v1897_v24 = vshrl.u32 %v10038_v16, 16  ;;  %v9991_v18 = vld [vmem:[%s11793_s25 + $0x94] sm:$0xf] }
 0x1dc   : > { %v652_v38 = vrot.slane %v650_v30, 4  ;;  %v655_v7 = vrot.slane %v653_v32, 5  ;;  %v1891_v28 = vrot.slane %v1890_v3, 4  ;;  %v10201_v36 = vld [vmem:[%s11793_s25 + $0xa4] sm:$0x1]  ;;  %v10285_v16 = vrot.slane %v10253_v35, 9 }
 0x1dd   : > { %2470 = vrot.lane.b32.xlu0 %v2377_v50, %s11734_s30  ;;  %v1895_v29 = vrot.slane %v1893_v21, 5  ;;  %v1899_v30 = vrot.slane %v1897_v24, 4  ;;  %v3134_v3 = vshll.u32 %v10201_v36, 16  ;;  %v276_v35 = vld [vmem:[%s11793_s25 + $0x7c] sm:$0xf] }
 0x1de   : > { %3322 = vrot.lane.b32.xlu1 %v3103_v52, %s11736_s7  ;;  %v656_v9 = vor.u32 %v655_v7, %v652_v38  ;;  %v672_v52 = vsel %vm11812_vm5, %v667_v14, %v671_v1  ;;  %v2383_v7 = vrot.slane %v10092_v11, 5  ;;  %v10255_v11 = vld [vmem:[%s11793_s25 + $0xa4] sm:$0x1]  ;;  %313 = vst.msk [vmem:[#allocation2 + $0x54] sm:$0xf] %vm291_vm6, %v276_v35 }
 0x1df   : > { %v3690_v33 = vpop.permute.xlu0 %3689  ;;  %v9992_v36 = vld [vmem:[%s11793_s25 + $0x9c] sm:$0xf] }
 0x1e0   : > { %3784 = vst.msk [vmem:[#allocation2 + $0x38] sm:$0xf] %vm3769_vm14, %v3690_v33  ;;  %v1232_v41 = vpop.permute.xlu1 %1231  ;;  %3324 = vrot.lane.b32.xlu2 %v3113_v42, %s11736_s7  ;;  %v657_v27 = vrot.slane %v656_v9, 4  ;;  %v1900_v42 = vor.u32 %v1899_v30, %v1895_v29  ;;  %v1903_v9 = vshll.u32 %v10039_v34, 16 }
 0x1e1   : > { %3821 = vst.msk [vmem:[#allocation2 + $0x38] sm:$0xf] %vm3806_vm15, %v11738_v61 }
 0x1e2   : > { %1324 = vst.msk [vmem:[#allocation2 + $0x40] sm:$0xf] %vm1307_vm8, %v1232_v41  ;;  %v12865_v56 = vpop.permute.xlu2 %3314  ;;  %v662_v60 = vsel %vm11812_vm5, %v657_v27, %v661_v20  ;;  %v1896_v41 = vsel %vm11812_vm5, %v1891_v28, %v1895_v29  ;;  %v1901_v27 = vrot.slane %v1900_v42, 4  ;;  %v1905_v49 = vrot.slane %v1903_v9, 5 }
 0x1e4   : > { %v1906_v26 = vsel %vm11812_vm5, %v1901_v27, %v1905_v49  ;;  %v999_v27 = vld [vmem:[%s11793_s25 + $0x94] sm:$0xf]  ;;  %v1917_v49 = vshll.u32 %v10041_v45, 16 }
 0x1e5   : > { %2693 = vrot.lane.b32.xlu0 %v10151_v37, %s11735_s6  ;;  %v10093_v37 = vld [vmem:[%s11793_s25 + $0x98] sm:$0x1] }
 0x1e6   : > { %3703 = vrot.lane.b32.xlu1 %v3611_v48, %s11737_s8  ;;  %v2386_v10 = vrot.slane %v10093_v37, 5  ;;  %v11317_v48 = vld [vmem:[#allocation2 + $0x30] sm:$0xff] }
 0x1e7   : > { %v852_v57 = vpop.permute.xlu0 %851 }
 0x1e8   : > { %943 = vst.msk [vmem:[#allocation2 + $0x44] sm:$0xf] %vm925_vm7, %v852_v57  ;;  %v1455_v47 = vpop.permute.xlu1 %1454  ;;  %861 = vrot.lane.b32.xlu2 %v662_v60, %s11732_s28  ;;  %v10200_v57 = vld [vmem:[%s11793_s25 + $0xa0] sm:$0xf]  ;;  %v11318_v34 = vld [vmem:[#allocation2 + $0x38] sm:$0xff] }
 0x1e9   : > { %1325 = vst.msk [vmem:[#allocation2 + $0x44] sm:$0xf] %vm1307_vm8, %v12811_v59  ;;  %v1154_v59 = vrot.slane %v1152_v54, 4  ;;  %v3124_v63 = vshll.u32 %v10200_v57, 16  ;;  %v3128_v2 = vshrl.u32 %v10200_v57, 16  ;;  %v9962_v57 = vrot.slane %v998_v46, 9 }
 0x1ea   : > { %1546 = vst.msk [vmem:[#allocation2 + $0x44] sm:$0xf] %vm1528_vm9, %v1455_v47  ;;  %v12884_v15 = vpop.permute.xlu2 %3695  ;;  %4093 = vmatmul.bf16.gmra.mxu0 %v11317_v48  ;;  %v365_v47 = vld [vmem:[%s11793_s25 + $0x94] sm:$0xf]  ;;  %v4737_v46 = vld [vmem:[#allocation3] sm:$0xf] }
 0x1eb   : > { %v1156_v50 = vsel %vm11795_vm2, %v1154_v59, %v1155_v4  ;;  %v687_v59 = vshrl.u32 %v365_v47, 16  ;;  %v10254_v4 = vld [vmem:[%s11793_s25 + $0xa0] sm:$0xf]  ;;  %v3126_v8 = vrot.slane %v3124_v63, 5  ;;  %v3130_v55 = vrot.slane %v3128_v2, 4 }
 0x1ec   : > { %v3614_v17 = vrot.slane %v10254_v4, 5 }
 0x1ed   : > { %3701 = vrot.lane.b32.xlu0 %v3608_v62, %s11737_s8  ;;  %v3121_v62 = vor.u32 %v3120_v23, %v3117_v58  ;;  %v3131_v24 = vor.u32 %v3130_v55, %v3126_v8  ;;  %v275_v58 = vld [vmem:[%s11793_s25 + $0x78] sm:$0xf] }
 0x1ee   : > { %1243 = vrot.lane.b32.xlu1 %v1153_v43, %s11730_s26  ;;  %v683_v43 = vshll.u32 %v365_v47, 16  ;;  %v3615_v28 = vsel %vm11795_vm2, %v10285_v16, %v3614_v17  ;;  %v3616_v30 = vrot.slane %v3614_v17, 4  ;;  %312 = vst.msk [vmem:[#allocation2 + $0x50] sm:$0xf] %vm291_vm6, %v275_v58 }
 0x1ef   : > { %v1453_v6 = vpop.permute.xlu0 %1452  ;;  %v3122_v22 = vrot.slane %v3121_v62, 4  ;;  %v12989_v62 = vrot.slane %v1917_v49, 5 }
 0x1f0   : > { %1545 = vst.msk [vmem:[#allocation2 + $0x40] sm:$0xf] %vm1528_vm9, %v1453_v6  ;;  %v2463_v5 = vpop.permute.xlu1 %2462  ;;  %1245 = vrot.lane.b32.xlu2 %v1156_v50, %s11730_s26  ;;  %v10152_v6 = vld [vmem:[%s11793_s25 + $0x9c] sm:$0xf]  ;;  %v12948_v19 = vrot.slane %v683_v43, 5 }
 0x1f1   : > { %2176 = vst.msk [vmem:[#allocation2 + $0x40] sm:$0xf] %vm2159_vm10, %v12827_v12  ;;  %v10091_v12 = vld [vmem:[%s11793_s25 + $0x90] sm:$0xe]  ;;  %v3127_v21 = vsel %vm11812_vm5, %v3122_v22, %v3126_v8  ;;  %v10042_v43 = vld [vmem:[%s11793_s25 + $0xa4] sm:$0x1] }
 0x1f2   : > { %2555 = vst.msk [vmem:[#allocation2 + $0x40] sm:$0xf] %vm15547_vm11, %v2463_v5  ;;  %v12904_v32 = vpop.permute.xlu2 %1235  ;;  %v10123_v38 = vrot.slane %v10091_v12, 9  ;;  %v689_v5 = vrot.slane %v687_v59, 4  ;;  %v677_v12 = vshll.u32 %v364_v13, 16 }
 0x1f3   : > { %v1000_v22 = vld [vmem:[%s11793_s25 + $0x98] sm:$0x1] }
 0x1f4   : > { %v2384_v44 = vsel %vm11795_vm2, %v10123_v38, %v2383_v7  ;;  %v3132_v38 = vrot.slane %v3131_v24, 4  ;;  %v1162_v17 = vrot.slane %v1000_v22, 5 }
 0x1f5   : > { %863 = vrot.lane.b32.xlu0 %v672_v52, %s11732_s28  ;;  %v366_v52 = vld [vmem:[%s11793_s25 + $0x98] sm:$0x1] }
 0x1f6   : > { %1466 = vrot.lane.b32.xlu1 %v9991_v18, %s11731_s27  ;;  %v674_v18 = vshrl.u32 %v364_v13, 16  ;;  %v693_v29 = vshll.u32 %v366_v52, 16 }
 0x1f7   : > { %v2086_v33 = vpop.permute.xlu0 %2085 }
 0x1f8   : > { %2177 = vst.msk [vmem:[#allocation2 + $0x44] sm:$0xf] %vm2159_vm10, %v2086_v33  ;;  %v2686_v40 = vpop.permute.xlu1 %2685  ;;  %2095 = vrot.lane.b32.xlu2 %v1896_v41, %s11733_s29  ;;  %v3617_v33 = vrot.slane %v10255_v11, 5  ;;  %v695_v37 = vrot.slane %v693_v29, 5  ;;  %v10095_v11 = vld [vmem:[%s11793_s25 + $0xa0] sm:$0xf] }
 0x1f9   : > { %2556 = vst.msk [vmem:[#allocation2 + $0x44] sm:$0xf] %vm15547_vm11, %v12847_v53  ;;  %v2385_v53 = vrot.slane %v2383_v7, 4  ;;  %v3136_v7 = vrot.slane %v3134_v3, 5  ;;  %v10094_v29 = vld [vmem:[%s11793_s25 + $0x9c] sm:$0xe] }
 0x1fa   : > { %2777 = vst.msk [vmem:[#allocation2 + $0x44] sm:$0xf] %vm15544_vm12, %v2686_v40  ;;  %v12921_v20 = vpop.permute.xlu2 %1458  ;;  %v679_v40 = vrot.slane %v677_v12, 5  ;;  %4098 = vmatmul.bf16.gmra.mxu0 %v11318_v34 }
 0x1fb   : > { %v2387_v60 = vsel %vm11795_vm2, %v2385_v53, %v2386_v10  ;;  %v3618_v53 = vsel %vm11795_vm2, %v3616_v30, %v3617_v33  ;;  %v3137_v10 = vsel %vm11812_vm5, %v3132_v38, %v3136_v7  ;;  %v11488_v33 = vld [vmem:[%s15541_s3 + $0x38] sm:$0xff]  ;;  %v2390_v38 = vrot.slane %v10095_v11, 5 }
 0x1fc   : > { %v10124_v7 = vrot.slane %v10094_v29, 9  ;;  %8948 = vmatpush.bf16.msra.mxu1 %v11488_v33  ;;  %11648 = vmatpush.bf16.msra.mxu3 %v11488_v33 }
 0x1fd   : > { %1464 = vrot.lane.b32.xlu0 %v9990_v39, %s11731_s27  ;;  %v676_v39 = vrot.slane %v674_v18, 4  ;;  %v9993_v18 = vld [vmem:[%s11793_s25 + $0xa0] sm:$0xf] }
 0x1fe   : > { %2474 = vrot.lane.b32.xlu1 %v2384_v44, %s11734_s30 }
 0x1ff   : > { %v2684_v51 = vpop.permute.xlu0 %2683  ;;  %v680_v48 = vor.u32 %v679_v40, %v676_v39  ;;  %v10204_v39 = vld [vmem:[%s11793_s25 + $0xb0] sm:$0x1] }
 0x200   : > { %2776 = vst.msk [vmem:[#allocation2 + $0x40] sm:$0xf] %vm15544_vm12, %v2684_v51  ;;  %v3694_v54 = vpop.permute.xlu1 %3693  ;;  %2476 = vrot.lane.b32.xlu2 %v2387_v60, %s11734_s30  ;;  %v1921_v51 = vshrl.u32 %v10041_v45, 16  ;;  %v1159_v60 = vrot.slane %v999_v27, 5  ;;  %v367_v45 = vld [vmem:[%s11793_s25 + $0x9c] sm:$0xf]  ;;  %v2391_v27 = vsel %vm11795_vm2, %v10124_v7, %v2390_v38 }
 0x201   : > { %3407 = vst.msk [vmem:[#allocation2 + $0x40] sm:$0xf] %vm15546_vm13, %v12865_v56  ;;  %v10153_v56 = vld [vmem:[%s11793_s25 + $0xa0] sm:$0xf]  ;;  %v681_v23 = vrot.slane %v680_v48, 4  ;;  %v15557_v48 = vmov 0 }
 0x202   : > { %3786 = vst.msk [vmem:[#allocation2 + $0x40] sm:$0xf] %vm3769_vm14, %v3694_v54  ;;  %v12942_v14 = vpop.permute.xlu2 %2466  ;;  %v1160_v59 = vsel %vm11795_vm2, %v9962_v57, %v1159_v60  ;;  %v1161_v16 = vrot.slane %v1159_v60, 4  ;;  %v15558_v48 = vsel %vm13042_vm3, 4294967295, %v15557_v48  ;;  %v13062_v60 = vld [vmem:[%s15540_s2] ss:$0 sm:$0xff] }
 0x203   : > { %3823 = vst.msk [vmem:[#allocation2 + $0x40] sm:$0xf] %vm3806_vm15, %v11738_v61  ;;  %v686_v4 = vsel %vm11812_vm5, %v681_v23, %v12948_v19  ;;  %v3158_v23 = vshll.u32 %v10204_v39, 16 }
 0x204   : > { %v1163_v12 = vsel %vm11795_vm2, %v1161_v16, %v1162_v17  ;;  %15559 = vst [vmem:[#allocation6_spill] sm:$0xff] %v15558_v48  ;;  %v11485_v16 = vld [vmem:[%s15541_s3 + $0x20] sm:$0xff] }
 0x205   : > { %2097 = vrot.lane.b32.xlu0 %v1906_v26, %s11733_s29  ;;  %v1923_v26 = vrot.slane %v1921_v51, 4 }
 0x206   : > { %2697 = vrot.lane.b32.xlu1 %v10153_v56, %s11735_s6 }
 0x207   : > { %v3317_v1 = vpop.permute.xlu0 %3316  ;;  %v1924_v8 = vor.u32 %v1923_v26, %v12989_v62  ;;  %v4064_v55 = vpop.f32.mrf.mxu0  ;;  %v10154_v26 = vld [vmem:[%s11793_s25 + $0xa8] sm:$0xf] }
 0x208   : > { %3408 = vst.msk [vmem:[#allocation2 + $0x44] sm:$0xf] %vm15546_vm13, %v3317_v1  ;;  %v856_v50 = vpop.permute.xlu1 %855  ;;  %3326 = vrot.lane.b32.xlu2 %v3127_v21, %s11736_s7  ;;  %v368_v55 = vld [vmem:[%s11793_s25 + $0xa0] sm:$0xf] }
 0x209   : > { %3787 = vst.msk [vmem:[#allocation2 + $0x44] sm:$0xf] %vm3769_vm14, %v12884_v15  ;;  %v690_v15 = vor.u32 %v689_v5, %v12948_v19  ;;  %v1925_v3 = vrot.slane %v1924_v8, 4  ;;  %v711_v11 = vshrl.u32 %v368_v55, 16 }
 0x20a   : > { %3824 = vst.msk [vmem:[#allocation2 + $0x44] sm:$0xf] %vm3806_vm15, %v11738_v61  ;;  %v12964_v41 = vpop.permute.xlu2 %2689 }
 0x20b   : > { %945 = vst.msk [vmem:[#allocation2 + $0x4c] sm:$0xf] %vm925_vm7, %v856_v50  ;;  %v691_v9 = vrot.slane %v690_v15, 4  ;;  %v10203_v50 = vld [vmem:[%s11793_s25 + $0xac] sm:$0xf] }
 0x20c   : > { %v3152_v15 = vshrl.u32 %v10203_v50, 16 }
 0x20d   : > { %2695 = vrot.lane.b32.xlu0 %v10152_v6, %s11735_s6  ;;  %v696_v31 = vsel %vm11812_vm5, %v691_v9, %v695_v37  ;;  %v10202_v9 = vld [vmem:[%s11793_s25 + $0xa8] sm:$0xf] }
 0x20e   : > { %3705 = vrot.lane.b32.xlu1 %v3615_v28, %s11737_s8  ;;  %v3148_v28 = vshll.u32 %v10203_v50, 16  ;;  %v3139_v58 = vshrl.u32 %v10202_v9, 16  ;;  %v10155_v50 = vld [vmem:[%s11793_s25 + $0xac] sm:$0xf] }
 0x20f   : > { %v854_v42 = vpop.permute.xlu0 %853 }
 0x210   : > { %944 = vst.msk [vmem:[#allocation2 + $0x48] sm:$0xf] %vm925_vm7, %v854_v42  ;;  %v1457_v44 = vpop.permute.xlu1 %1456  ;;  %3707 = vrot.lane.b32.xlu2 %v3618_v53, %s11737_s8  ;;  %v13027_v40 = vrot.slane %v3148_v28, 5  ;;  %v3154_v42 = vrot.slane %v3152_v15, 4  ;;  %v13035_v53 = vrot.slane %v11738_v61, 7 }
 0x211   : > { %1326 = vst.msk [vmem:[#allocation2 + $0x48] sm:$0xf] %vm1307_vm8, %v12904_v32  ;;  %v10040_v32 = vld [vmem:[%s11793_s25 + $0x9c] sm:$0xf]  ;;  %v11319_v6 = vld [vmem:[#allocation2 + $0x40] sm:$0xff] }
 0x212   : > { %1547 = vst.msk [vmem:[#allocation2 + $0x48] sm:$0xf] %vm1528_vm9, %v1457_v44  ;;  %v12984_v54 = vpop.permute.xlu2 %3697  ;;  %v1908_v63 = vshrl.u32 %v10040_v32, 16  ;;  %v1911_v2 = vshll.u32 %v10040_v32, 16  ;;  %4103 = vmatmul.bf16.gmra.mxu0 %v11319_v6  ;;  %v4738_v49 = vsel %vm13042_vm3, %v13035_v53, %v4737_v46  ;;  %v10096_v32 = vld [vmem:[%s11793_s25 + $0xa4] sm:$0x1]  ;;  %v3155_v57 = vor.u32 %v3154_v42, %v13027_v40 }
 0x213   : > { %15556 = vst [vmem:[#allocation5_spill] sm:$0xff] %v13035_v53 }
 0x214   : > { %v1910_v1 = vrot.slane %v1908_v63, 4  ;;  %v1913_v13 = vrot.slane %v1911_v2, 5  ;;  %4739 = vst [vmem:[#allocation3] sm:$0xf] %v4738_v49  ;;  %v701_v63 = vshll.u32 %v367_v45, 16  ;;  %v11486_v2 = vld [vmem:[%s15541_s3 + $0x28] sm:$0xff] }
 0x215   : > { %3328 = vrot.lane.b32.xlu0 %v3137_v10, %s11736_s7  ;;  %v11487_v10 = vld [vmem:[%s15541_s3 + $0x30] sm:$0xff]  ;;  %v3156_v35 = vrot.slane %v3155_v57, 4  ;;  %v13126_v49 = vld [vmem:[%s11793_s25 + $0xa0] sm:$0xf]  ;;  %v713_v57 = vrot.slane %v711_v11, 4 }
 0x216   : > { %867 = vrot.lane.b32.xlu1 %v696_v31, %s11732_s28  ;;  %v1914_v24 = vor.u32 %v1913_v13, %v1910_v1  ;;  %8949 = vmatpush.bf16.msra.mxu1 %v11487_v10  ;;  %v703_v6 = vrot.slane %v701_v63, 5  ;;  %v10043_v63 = vld [vmem:[%s11793_s25 + $0xa8] sm:$0xf] }
 0x217   : > { %v1238_v47 = vpop.permute.xlu0 %1237  ;;  %11649 = vmatpush.bf16.msra.mxu3 %v11487_v10  ;;  %v4746_v10 = vld [vmem:[#allocation3 + $0xc] sm:$0xf] }
 0x218   : > { %1327 = vst.msk [vmem:[#allocation2 + $0x4c] sm:$0xf] %vm1307_vm8, %v1238_v47  ;;  %v2090_v56 = vpop.permute.xlu1 %2089  ;;  %1247 = vrot.lane.b32.xlu2 %v1160_v59, %s11730_s26  ;;  %v1915_v34 = vrot.slane %v1914_v24, 4  ;;  %v698_v47 = vshrl.u32 %v367_v45, 16  ;;  %v707_v24 = vshll.u32 %v368_v55, 16 }
 0x219   : > { %1548 = vst.msk [vmem:[#allocation2 + $0x4c] sm:$0xf] %vm1528_vm9, %v12921_v20  ;;  %v1927_v20 = vshll.u32 %v10042_v43, 16  ;;  %v2393_v43 = vrot.slane %v10096_v32, 5 }
 0x21a   : > { %2179 = vst.msk [vmem:[#allocation2 + $0x4c] sm:$0xf] %vm2159_vm10, %v2090_v56  ;;  %v860_v19 = vpop.permute.xlu2 %859  ;;  %v1920_v51 = vsel %vm11812_vm5, %v1915_v34, %v12989_v62  ;;  %v2392_v56 = vrot.slane %v2390_v38, 4  ;;  %8950 = vmatpush.bf16.msra.mxu1 %v11486_v2  ;;  %v700_v1 = vrot.slane %v698_v47, 4  ;;  %v11484_v34 = vld [vmem:[%s15541_s3 + $0x18] sm:$0xff] }
 0x21b   : > { %947 = vst.msk [vmem:[#allocation2 + $0x54] sm:$0xf] %vm925_vm7, %v860_v19  ;;  %v1929_v52 = vrot.slane %v1927_v20, 5  ;;  %11650 = vmatpush.bf16.msra.mxu3 %v11486_v2  ;;  %v3160_v20 = vrot.slane %v3158_v23, 5  ;;  %v13082_v19 = vld [vmem:[%s11793_s25 + $0xac] sm:$0xf] }
 0x21c   : > { %v4865_v38 = vld [vmem:[#allocation3] sm:$0x1]  ;;  %v3621_v45 = vrot.slane %v13082_v19, 5  ;;  %v369_v23 = vld [vmem:[%s11793_s25 + $0xa4] sm:$0x1] }
 0x21d   : > { %865 = vrot.lane.b32.xlu0 %v686_v4, %s11732_s28  ;;  %v1930_v30 = vsel %vm11812_vm5, %v1925_v3, %v1929_v52  ;;  %v3141_v4 = vrot.slane %v3139_v58, 4  ;;  %v13091_v52 = vrot.slane %v13035_v53, 4 }
 0x21e   : > { %1468 = vrot.lane.b32.xlu1 %v9992_v36, %s11731_s27  ;;  %8951 = vmatpush.bf16.msra.mxu1 %v11485_v16 }
 0x21f   : > { %v2088_v5 = vpop.permute.xlu0 %2087  ;;  %11651 = vmatpush.bf16.msra.mxu3 %v11485_v16 }
 0x220   : > { %2178 = vst.msk [vmem:[#allocation2 + $0x48] sm:$0xf] %vm2159_vm10, %v2088_v5  ;;  %v2688_v21 = vpop.permute.xlu1 %2687  ;;  %1470 = vrot.lane.b32.xlu2 %v9993_v18, %s11731_s27  ;;  %v15562_v18 = vmov 0 }
 0x221   : > { %2557 = vst.msk [vmem:[#allocation2 + $0x48] sm:$0xf] %vm15547_vm11, %v12942_v14  ;;  %v4066_v14 = vpop.f32.mrf.mxu0 }
 0x222   : > { %2778 = vst.msk [vmem:[#allocation2 + $0x48] sm:$0xf] %vm15544_vm12, %v2688_v21  ;;  %v13030_v37 = vpop.permute.xlu2 %1460  ;;  %v2394_v21 = vsel %vm11795_vm2, %v2392_v56, %v2393_v43  ;;  %v704_v14 = vor.u32 %v703_v6, %v700_v1  ;;  %8952 = vmatpush.bf16.msra.mxu1 %v11484_v34  ;;  %v1932_v1 = vshrl.u32 %v10043_v63, 16  ;;  %v11482_v6 = vld [vmem:[%s15541_s3 + $0x8] sm:$0xff] }
 0x223   : > { %11652 = vmatpush.bf16.msra.mxu3 %v11484_v34 }
 0x224   : > { %v705_v58 = vrot.slane %v704_v14, 4  ;;  %v1934_v34 = vrot.slane %v1932_v1, 4  ;;  %v10205_v1 = vld [vmem:[%s11793_s25 + $0xb4] sm:$0xf] }
 0x225   : > { %1249 = vrot.lane.b32.xlu0 %v1163_v12, %s11730_s26  ;;  %v10256_v12 = vld [vmem:[%s11793_s25 + $0xa8] sm:$0xe] }
 0x226   : > { %2101 = vrot.lane.b32.xlu1 %v1930_v30, %s11733_s29  ;;  %v3161_v30 = vsel %vm11812_vm5, %v3156_v35, %v3160_v20  ;;  %v10286_v42 = vrot.slane %v10256_v12, 9  ;;  %v717_v35 = vshll.u32 %v369_v23, 16 }
 0x227   : > { %v2469_v44 = vpop.permute.xlu0 %2468 }
 0x228   : > { %2558 = vst.msk [vmem:[#allocation2 + $0x4c] sm:$0xf] %vm15547_vm11, %v2469_v44  ;;  %v3321_v31 = vpop.permute.xlu1 %3320  ;;  %2478 = vrot.lane.b32.xlu2 %v2391_v27, %s11734_s30  ;;  %v709_v27 = vrot.slane %v707_v24, 5  ;;  %v3622_v2 = vsel %vm11795_vm2, %v10286_v42, %v3621_v45  ;;  %v13169_v42 = vld [vmem:[%s11793_s25 + $0xac] sm:$0xf] }
 0x229   : > { %2779 = vst.msk [vmem:[#allocation2 + $0x4c] sm:$0xf] %vm15544_vm12, %v12964_v41  ;;  %v3142_v41 = vshll.u32 %v10202_v9, 16  ;;  %v4069_v62 = vpop.f32.mrf.mxu0  ;;  %vm4372_vm12 = vsmask.f32 4368  ;;  %v1941_v23 = vshll.u32 %v13169_v42, 16 }
 0x22a   : > { %3410 = vst.msk [vmem:[#allocation2 + $0x4c] sm:$0xf] %vm15546_vm13, %v3321_v31  ;;  %v4070_v59 = vadd.f32 %v13062_v60, %v4069_v62  ;;  %v13071_v36 = vpop.permute.xlu2 %2093  ;;  %vm13086_vm1 = vmor %vm4371_vm4, %vm4372_vm12  ;;  %v714_v56 = vor.u32 %v713_v57, %v709_v27  ;;  %v710_v20 = vsel %vm11812_vm5, %v705_v58, %v709_v27  ;;  %vm15565_vm12 = vsmask.f32 7938 }
 0x22b   : > { %v3144_v22 = vrot.slane %v3142_v41, 5  ;;  %v4389_v29 = vsel %vm13086_vm1, %v13091_v52, %v13035_v53  ;;  %v11483_v41 = vld [vmem:[%s15541_s3 + $0x10] sm:$0xff] }
 0x22c   : > { %v4156_v13 = vmax.f32 %v4070_v59, 0.0  ;;  %4740 = vst [vmem:[#allocation3 + $0x4] sm:$0xf] %v4389_v29  ;;  %v10258_v59 = vld [vmem:[%s11793_s25 + $0xb0] sm:$0x1]  ;;  %8953 = vmatpush.bf16.msra.mxu1 %v11483_v41  ;;  %11653 = vmatpush.bf16.msra.mxu3 %v11483_v41 }
 0x22d   : > { %2099 = vrot.lane.b32.xlu0 %v1920_v51, %s11733_s29  ;;  %4861 = vst [vmem:[#allocation3 + $0xd0] sm:$0xf] %v4389_v29  ;;  %v3624_v24 = vrot.slane %v10258_v59, 5 }
 0x22e   : > { %2699 = vrot.lane.b32.xlu1 %v10154_v26, %s11735_s6  ;;  %v4337_v5 = vpack.c.bf16 %v4156_v13, %v4156_v13  ;;  %v1935_v13 = vshll.u32 %v10043_v63, 16  ;;  %v277_v63 = vld [vmem:[%s11793_s25 + $0x84] sm:$0xf] }
 0x22f   : > { %v3319_v8 = vpop.permute.xlu0 %3318  ;;  %314 = vst.msk [vmem:[#allocation2 + $0x58] sm:$0xf] %vm291_vm6, %v277_v63 }
 0x230   : > { %3409 = vst.msk [vmem:[#allocation2 + $0x48] sm:$0xf] %vm15546_vm13, %v3319_v8  ;;  %v858_v17 = vpop.permute.xlu1 %857  ;;  %vm13099_vm13 = vmand %vm4741_vm0, %vm4371_vm4  ;;  %v4392_v28 = vshrl.u32 %v4337_v5, 16  ;;  %v4395_v15 = vshll.u32 %v4337_v5, 16  ;;  %2701 = vrot.lane.b32.xlu2 %v10155_v50, %s11735_s6  ;;  %v715_v50 = vrot.slane %v714_v56, 4  ;;  %8954 = vmatpush.bf16.msra.mxu1 %v11482_v6 }
 0x231   : > { %3788 = vst.msk [vmem:[#allocation2 + $0x48] sm:$0xf] %vm3769_vm14, %v12984_v54  ;;  %v3145_v54 = vor.u32 %v3144_v22, %v3141_v4  ;;  %v15563_v18 = vsel %vm13099_vm13, 4294967295, %v15562_v18  ;;  %v4071_v33 = vpop.f32.mrf.mxu0  ;;  %v4866_v9 = vsel %vm13099_vm13, 0, %v4865_v38  ;;  %v1166_v4 = vrot.slane %v13126_v49, 5  ;;  %11654 = vmatpush.bf16.msra.mxu3 %v11482_v6  ;;  %vm13213_vm4 = vmand %vm4741_vm0, %vm15565_vm12 }
 0x232   : > { %3825 = vst.msk [vmem:[#allocation2 + $0x48] sm:$0xf] %vm3806_vm15, %v11738_v61  ;;  %v13116_v7 = vrot.slane %v4392_v28, 7  ;;  %v4072_v39 = vadd.f32 %v13062_v60, %v4071_v33  ;;  %v13122_v46 = vpop.permute.xlu2 %2691  ;;  %v1937_v38 = vrot.slane %v1935_v13, 5  ;;  %v13193_v56 = vld [vmem:[%s11793_s25 + $0xac] sm:$0xf] }
 0x233   : > { %15564 = vst [vmem:[#allocation7_spill] sm:$0xff] %v15563_v18  ;;  %v3146_v44 = vrot.slane %v3145_v54, 4  ;;  %v4975_v16 = vld [vmem:[#allocation3 + $0x4] sm:$0xf]  ;;  %v3623_v54 = vrot.slane %v3621_v45, 4  ;;  %v1168_v28 = vrot.slane %v1166_v4, 4 }
 0x234   : > { %946 = vst.msk [vmem:[#allocation2 + $0x50] sm:$0xf] %vm925_vm7, %v858_v17  ;;  %v4397_v51 = vor.u32 %v4395_v15, %v13116_v7  ;;  %v4157_v32 = vmax.f32 %v4072_v39, 0.0  ;;  %v4398_v55 = vrot.slane %v13116_v7, 4  ;;  %v1003_v17 = vld [vmem:[%s11793_s25 + $0xa4] sm:$0x1]  ;;  %v1938_v41 = vor.u32 %v1937_v38, %v1934_v34 }
 0x235   : > { %2480 = vrot.lane.b32.xlu0 %v2394_v21, %s11734_s30  ;;  %4867 = vst [vmem:[#allocation3] sm:$0x1] %v4866_v9  ;;  %v3151_v43 = vsel %vm11812_vm5, %v3146_v44, %v13027_v40  ;;  %v719_v21 = vrot.slane %v717_v35, 5  ;;  %v1169_v33 = vrot.slane %v1003_v17, 5  ;;  %v11481_v7 = vld [vmem:[%s15541_s3] sm:$0xff]  ;;  %vm15569_vm0 = vcmask 454016  }
 0x236   : > { %3332 = vrot.lane.b32.xlu1 %v3161_v30, %s11736_s7  ;;  %v4747_v26 = vsel %vm13042_vm3, %v4397_v51, %v4746_v10  ;;  %v4338_v62 = vpack.c.bf16 %v4157_v32, %v4157_v32  ;;  %5007 = vst [vmem:[#allocation4 + $0x24] sm:$0xf] %v4975_v16  ;;  %v4750_v30 = vld [vmem:[#allocation3 + $0x14] sm:$0x1]  ;;  %v3625_v10 = vsel %vm11795_vm2, %v3623_v54, %v3624_v24  ;;  %v4743_v6 = vld [vmem:[#allocation3 + $0x8] sm:$0x1] }
 0x237   : > { %v3700_v31 = vpop.permute.xlu0 %3699  ;;  %4748 = vst [vmem:[#allocation3 + $0xc] sm:$0xf] %v4747_v26  ;;  %v720_v45 = vsel %vm11812_vm5, %v715_v50, %v719_v21  ;;  %8955 = vmatpush.bf16.msra.mxu1 %v11481_v7  ;;  %11655 = vmatpush.bf16.msra.mxu3 %v11481_v7  ;;  %v1170_v58 = vsel %vm11795_vm2, %v1168_v28, %v1169_v33  ;;  %v9994_v16 = vld [vmem:[%s11793_s25 + $0xa8] sm:$0xf]  ;;  %v10099_v50 = vld [vmem:[%s11793_s25 + $0xb0] sm:$0x1] }
 0x238   : > { %3789 = vst.msk [vmem:[#allocation2 + $0x4c] sm:$0xf] %vm3769_vm14, %v3700_v31  ;;  %v1242_v47 = vpop.permute.xlu1 %1241  ;;  %v4400_v22 = vshrl.u32 %v4338_v62, 16  ;;  %v4403_v8 = vshll.u32 %v4338_v62, 16  ;;  %3709 = vrot.lane.b32.xlu2 %v3622_v2, %s11737_s8  ;;  %v1001_v31 = vld [vmem:[%s11793_s25 + $0x9c] sm:$0xe]  ;;  %v4744_v28 = vsel %vm13099_vm13, %v13091_v52, %v4743_v6 }
 0x239   : > { %3826 = vst.msk [vmem:[#allocation2 + $0x4c] sm:$0xf] %vm3806_vm15, %v11738_v61  ;;  %v4074_v40 = vpop.f32.mrf.mxu0  ;;  %v9963_v2 = vrot.slane %v1001_v31, 9  ;;  %v3163_v21 = vshrl.u32 %v10205_v1, 16  ;;  %v2400_v38 = vrot.slane %v10099_v50, 5  ;;  %vm15570_vm12 = vcmask 519616  }
 0x23a   : > { %1329 = vst.msk [vmem:[#allocation2 + $0x54] sm:$0xf] %vm1307_vm8, %v1242_v47  ;;  %v4402_v19 = vrot.slane %v4400_v22, 7  ;;  %v4075_v5 = vadd.f32 %v13062_v60, %v4074_v40  ;;  %v13157_v12 = vpop.permute.xlu2 %3324  ;;  %v4753_v22 = vld [vmem:[#allocation3 + $0x18] sm:$0xf] }
 0x23b   : > { %v1167_v17 = vsel %vm11795_vm2, %v9963_v2, %v1166_v4  ;;  %v1945_v4 = vshrl.u32 %v13169_v42, 16  ;;  %v4757_v7 = vld [vmem:[#allocation3 + $0x20] sm:$0x1]  ;;  %4745 = vst [vmem:[#allocation3 + $0x8] sm:$0x1] %v4744_v28 }
 0x23c   : > { %v4405_v15 = vor.u32 %v4403_v8, %v4402_v19  ;;  %v4407_v29 = vrot.slane %v4402_v19, 4  ;;  %v4158_v14 = vmax.f32 %v4075_v5, 0.0  ;;  %v15566_v19 = vmov 0  ;;  %v4862_v31 = vld [vmem:[#allocation3 + $0xd4] sm:$0x1] }
 0x23d   : > { %3330 = vrot.lane.b32.xlu0 %v3151_v43, %s11736_s7  ;;  %v15567_v19 = vsel %vm13213_vm4, 4294967295, %v15566_v19  ;;  %v2397_v5 = vrot.slane %v13193_v56, 5  ;;  %v4863_v63 = vsel %vm13099_vm13, %v13091_v52, %v4862_v31 }
 0x23e   : > { %869 = vrot.lane.b32.xlu1 %v710_v20, %s11732_s28  ;;  %v4406_v9 = vsel %vm13086_vm1, %v4398_v55, %v4405_v15  ;;  %v4339_v44 = vpack.c.bf16 %v4158_v14, %v4158_v14  ;;  %v4868_v27 = vld [vmem:[#allocation3 + $0xc] sm:$0x1]  ;;  %v1939_v20 = vrot.slane %v1938_v41, 4  ;;  %v13200_v55 = vrot.slane %v1941_v23, 5  ;;  %15568 = vst [vmem:[#allocation8_spill] sm:$0xff] %v15567_v19 }
 0x23f   : > { %v1240_v11 = vpop.permute.xlu0 %1239  ;;  %v4869_v51 = vsel %vm13099_vm13, 0, %v4868_v27  ;;  %4749 = vst [vmem:[#allocation3 + $0x10] sm:$0xf] %v4406_v9  ;;  %v2399_v34 = vrot.slane %v2397_v5, 4  ;;  %v1947_v23 = vrot.slane %v1945_v4, 4 }
 0x240   : > { %1328 = vst.msk [vmem:[#allocation2 + $0x50] sm:$0xf] %vm1307_vm8, %v1240_v11  ;;  %v2092_v39 = vpop.permute.xlu1 %2091  ;;  %v4409_v32 = vshrl.u32 %v4339_v44, 16  ;;  %v4412_v57 = vshll.u32 %v4339_v44, 16  ;;  %871 = vrot.lane.b32.xlu2 %v720_v45, %s11732_s28  ;;  %v1944_v49 = vsel %vm11812_vm5, %v1939_v20, %v13200_v55  ;;  %v3166_v11 = vshll.u32 %v10205_v1, 16 }
 0x241   : > { %1549 = vst.msk [vmem:[#allocation2 + $0x50] sm:$0xf] %vm1528_vm9, %v13030_v37  ;;  %v4751_v37 = vsel %vm13099_vm13, %v4407_v29, %v4750_v30  ;;  %v4076_v47 = vpop.f32.mrf.mxu0  ;;  %v3165_v44 = vrot.slane %v3163_v21, 4  ;;  %v1948_v2 = vor.u32 %v1947_v23, %v13200_v55  ;;  %v10259_v23 = vld [vmem:[%s11793_s25 + $0xb4] sm:$0xe] }
 0x242   : > { %2180 = vst.msk [vmem:[#allocation2 + $0x50] sm:$0xf] %vm2159_vm10, %v2092_v39  ;;  %v13188_v26 = vrot.slane %v4409_v32, 7  ;;  %v4077_v62 = vadd.f32 %v13062_v60, %v4076_v47  ;;  %v862_v43 = vpop.permute.xlu2 %861  ;;  %v3168_v27 = vrot.slane %v3166_v11, 5  ;;  %v9995_v47 = vld [vmem:[%s11793_s25 + $0xac] sm:$0xf] }
 0x243   : > { %4870 = vst [vmem:[#allocation3 + $0xc] sm:$0x1] %v4869_v51  ;;  %v10045_v51 = vld [vmem:[%s11793_s25 + $0xb0] sm:$0x1] }
 0x244   : > { %4752 = vst [vmem:[#allocation3 + $0x14] sm:$0x1] %v4751_v37  ;;  %v4414_v35 = vor.u32 %v4412_v57, %v13188_v26  ;;  %v4159_v8 = vmax.f32 %v4077_v62, 0.0  ;;  %v4415_v30 = vrot.slane %v13188_v26, 4  ;;  %v13244_v57 = vld [vmem:[%s11793_s25 + $0xb8] sm:$0xf] }
 0x245   : > { %3711 = vrot.lane.b32.xlu0 %v3625_v10, %s11737_s8  ;;  %948 = vst.msk [vmem:[#allocation2 + $0x58] sm:$0xf] %vm925_vm7, %v862_v43  ;;  %v10097_v26 = vld [vmem:[%s11793_s25 + $0xa8] sm:$0xe]  ;;  %v1951_v43 = vshll.u32 %v10045_v51, 16 }
 0x246   : > { %1253 = vrot.lane.b32.xlu1 %v1170_v58, %s11730_s26  ;;  %v4340_v40 = vpack.c.bf16 %v4159_v8, %v4159_v8  ;;  %v3172_v8 = vshll.u32 %v13244_v57, 16  ;;  %4864 = vst [vmem:[#allocation3 + $0xd4] sm:$0x1] %v4863_v63  ;;  %v10125_v1 = vrot.slane %v10097_v26, 9  ;;  %v10156_v26 = vld [vmem:[%s11793_s25 + $0xb4] sm:$0xf] }
 0x247   : > { %v1463_v59 = vpop.permute.xlu0 %1462 }
 0x248   : > { %1550 = vst.msk [vmem:[#allocation2 + $0x54] sm:$0xf] %vm1528_vm9, %v1463_v59  ;;  %v2473_v13 = vpop.permute.xlu1 %2472  ;;  %v4417_v54 = vshrl.u32 %v4340_v40, 16  ;;  %1472 = vrot.lane.b32.xlu2 %v9994_v16, %s11731_s27  ;;  %v4420_v33 = vshll.u32 %v4340_v40, 16  ;;  %v2401_v59 = vsel %vm11795_vm2, %v2399_v34, %v2400_v38  ;;  %v13268_v50 = vrot.slane %v3172_v8, 5 }
 0x249   : > { %2181 = vst.msk [vmem:[#allocation2 + $0x54] sm:$0xf] %vm2159_vm10, %v13071_v36  ;;  %v4754_v36 = vsel %vm13042_vm3, %v4414_v35, %v4753_v22  ;;  %v4079_v15 = vpop.f32.mrf.mxu0  ;;  %v3169_v22 = vor.u32 %v3168_v27, %v3165_v44  ;;  %v2398_v11 = vsel %vm11795_vm2, %v10125_v1, %v2397_v5  ;;  %v11341_v38 = vld [vmem:[#allocation4 + $0x20] sm:$0xf0] }
 0x24a   : > { %2560 = vst.msk [vmem:[#allocation2 + $0x54] sm:$0xf] %vm15547_vm11, %v2473_v13  ;;  %v4419_v14 = vrot.slane %v4417_v54, 7  ;;  %v13235_v39 = vpop.permute.xlu2 %1245  ;;  %v4080_v42 = vadd.f32 %v13062_v60, %v4079_v15  ;;  %v1949_v13 = vrot.slane %v1948_v2, 4  ;;  %v13273_v54 = vld [vmem:[%s11793_s25 + $0xb8] sm:$0xf] }
 0x24b   : > { %v4923_v24 = vld [vmem:[#allocation3 + $0x14] sm:$0x1]  ;;  %4755 = vst [vmem:[#allocation3 + $0x18] sm:$0xf] %v4754_v36  ;;  %v3170_v36 = vrot.slane %v3169_v22, 4  ;;  %v3176_v15 = vshrl.u32 %v13244_v57, 16 }
 0x24c   : > { %v4924_v29 = vsel %vm13213_vm4, 0, %v4923_v24  ;;  %v4422_v45 = vor.u32 %v4420_v33, %v4419_v14  ;;  %v4424_v10 = vrot.slane %v4419_v14, 4  ;;  %v4160_v37 = vmax.f32 %v4080_v42, 0.0  ;;  %v278_v42 = vld [vmem:[%s11793_s25 + $0x88] sm:$0xf] }
 0x24d   : > { %1251 = vrot.lane.b32.xlu0 %v1167_v17, %s11730_s26  ;;  %4925 = vst [vmem:[#allocation3 + $0x14] sm:$0x1] %v4924_v29  ;;  %v1953_v17 = vrot.slane %v1951_v43, 5  ;;  %v3175_v56 = vsel %vm11812_vm5, %v3170_v36, %v13268_v50  ;;  %v3628_v14 = vrot.slane %v13273_v54, 5  ;;  %v371_v27 = vld [vmem:[%s11793_s25 + $0xac] sm:$0xf] }
 0x24e   : > { %2103 = vrot.lane.b32.xlu1 %v1944_v49, %s11733_s29  ;;  %v4423_v58 = vsel %vm13086_vm1, %v4415_v30, %v4422_v45  ;;  %v4758_v41 = vsel %vm13099_vm13, %v4424_v10, %v4757_v7  ;;  %v4341_v62 = vpack.c.bf16 %v4160_v37, %v4160_v37  ;;  %v10261_v30 = vld [vmem:[%s11793_s25 + $0xbc] sm:$0x1]  ;;  %v10157_v37 = vld [vmem:[%s11793_s25 + $0xb8] sm:$0xf]  ;;  %v3178_v57 = vrot.slane %v3176_v15, 4 }
 0x24f   : > { %v2471_v9 = vpop.permute.xlu0 %2470  ;;  %4756 = vst [vmem:[#allocation3 + $0x1c] sm:$0xf] %v4423_v58  ;;  %v1954_v24 = vsel %vm11812_vm5, %v1949_v13, %v1953_v17  ;;  %v3631_v31 = vrot.slane %v10261_v30, 5  ;;  %v735_v2 = vshrl.u32 %v371_v27, 16  ;;  %v10287_v13 = vrot.slane %v10259_v23, 9 }
 0x250   : > { %2559 = vst.msk [vmem:[#allocation2 + $0x50] sm:$0xf] %vm15547_vm11, %v2471_v9  ;;  %v3323_v32 = vpop.permute.xlu1 %3322  ;;  %v4426_v55 = vshrl.u32 %v4341_v62, 16  ;;  %v4429_v4 = vshll.u32 %v4341_v62, 16  ;;  %2105 = vrot.lane.b32.xlu2 %v1954_v24, %s11733_s29  ;;  %v4760_v9 = vld [vmem:[#allocation3 + $0x24] sm:$0xf]  ;;  %v3179_v1 = vor.u32 %v3178_v57, %v13268_v50 }
 0x251   : > { %2780 = vst.msk [vmem:[#allocation2 + $0x50] sm:$0xf] %vm15569_vm0, %v13122_v46  ;;  %v4974_v46 = vld [vmem:[#allocation3] sm:$0xf]  ;;  %v4081_v20 = vpop.f32.mrf.mxu0  ;;  %v1004_v62 = vld [vmem:[%s11793_s25 + $0xa8] sm:$0xe] }
 0x252   : > { %3411 = vst.msk [vmem:[#allocation2 + $0x50] sm:$0xf] %vm15570_vm12, %v3323_v32  ;;  %v4871_v35 = vld [vmem:[#allocation3 + $0x18] sm:$0x1]  ;;  %v13263_v40 = vpop.permute.xlu2 %2095  ;;  %v4082_v6 = vadd.f32 %v13062_v60, %v4081_v20  ;;  %v13275_v49 = vrot.slane %v4426_v55, 7  ;;  %v3630_v32 = vrot.slane %v3628_v14, 4 }
 0x253   : > { %4759 = vst [vmem:[#allocation3 + $0x20] sm:$0x1] %v4758_v41  ;;  %v4872_v52 = vsel %vm13099_vm13, 0, %v4871_v35  ;;  %v4976_v35 = vld [vmem:[#allocation3 + $0xc] sm:$0xf]  ;;  %v737_v36 = vrot.slane %v735_v2, 4 }
 0x254   : > { %4873 = vst [vmem:[#allocation3 + $0x18] sm:$0x1] %v4872_v52  ;;  %v4431_v7 = vor.u32 %v4429_v4, %v13275_v49  ;;  %v3632_v22 = vsel %vm11795_vm2, %v3630_v32, %v3631_v31  ;;  %v4432_v8 = vrot.slane %v13275_v49, 4  ;;  %v4977_v52 = vld [vmem:[#allocation3 + $0x10] sm:$0xf]  ;;  %v9964_v50 = vrot.slane %v1004_v62, 9 }
 0x255   : > { %1474 = vrot.lane.b32.xlu0 %v9995_v47, %s11731_s27  ;;  %5006 = vst [vmem:[#allocation4] sm:$0xf] %v4974_v46  ;;  %v731_v46 = vshll.u32 %v371_v27, 16  ;;  %v4764_v4 = vld [vmem:[#allocation3 + $0x2c] sm:$0x1] }
 0x256   : > { %2484 = vrot.lane.b32.xlu1 %v2401_v59, %s11734_s30  ;;  %v6641_v28 = vld [vmem:[#allocation3 + $0x1c] sm:$0xf]  ;;  %v4761_v47 = vsel %vm13042_vm3, %v4431_v7, %v4760_v9  ;;  %315 = vst.msk [vmem:[#allocation2 + $0x5c] sm:$0xf] %vm291_vm6, %v278_v42  ;;  %v3629_v42 = vsel %vm11795_vm2, %v10287_v13, %v3628_v14  ;;  %v4767_v57 = vld [vmem:[#allocation3 + $0x30] sm:$0xf] }
 0x257   : > { %v2694_v16 = vpop.permute.xlu0 %2693  ;;  %6673 = vst [vmem:[#allocation4 + $0x3c] sm:$0xf] %v6641_v28  ;;  %v13325_v17 = vrot.slane %v731_v46, 5  ;;  %v372_v28 = vld [vmem:[%s11793_s25 + $0xb0] sm:$0x1] }
 0x258   : > { %2781 = vst.msk [vmem:[#allocation2 + $0x54] sm:$0xf] %vm15569_vm0, %v2694_v16  ;;  %v3704_v21 = vpop.permute.xlu1 %3703  ;;  %2703 = vrot.lane.b32.xlu2 %v10156_v26, %s11735_s6  ;;  %v10047_v26 = vld [vmem:[%s11793_s25 + $0xb8] sm:$0xf] }
 0x259   : > { %3412 = vst.msk [vmem:[#allocation2 + $0x54] sm:$0xf] %vm15570_vm12, %v13157_v12  ;;  %v4161_v12 = vmax.f32 %v4082_v6, 0.0  ;;  %v4084_v33 = vpop.f32.mrf.mxu0  ;;  %v13323_v6 = vld [vmem:[%s11793_s25 + $0xac] sm:$0xf]  ;;  %v738_v9 = vor.u32 %v737_v36, %v13325_v17  ;;  %vm15571_vm12 = vmmov %vm15569_vm0 }
 0x25a   : > { %3791 = vst.msk [vmem:[#allocation2 + $0x54] sm:$0xf] %vm3769_vm14, %v3704_v21  ;;  %v4926_v29 = vld [vmem:[#allocation3 + $0x20] sm:$0x1]  ;;  %v13298_v45 = vpop.permute.xlu2 %2476  ;;  %v4085_v63 = vadd.f32 %v13062_v60, %v4084_v33  ;;  %v1173_v15 = vrot.slane %v13323_v6, 5 }
 0x25b   : > { %3828 = vst.msk [vmem:[#allocation2 + $0x54] sm:$0xf] %vm3806_vm15, %v11738_v61  ;;  %v4927_v5 = vsel %vm13213_vm4, 0, %v4926_v29  ;;  %v6640_v34 = vld [vmem:[#allocation3 + $0x18] sm:$0xf]  ;;  %v4342_v44 = vpack.c.bf16 %v4161_v12, %v4161_v12 }
 0x25c   : > { %6672 = vst [vmem:[#allocation4 + $0x18] sm:$0xf] %v6640_v34  ;;  %v10446_v51 = vld [vmem:[#allocation4] sm:$0xf]  ;;  %v4162_v16 = vmax.f32 %v4085_v63, 0.0  ;;  %v1174_v54 = vsel %vm11795_vm2, %v9964_v50, %v1173_v15 }
 0x25d   : > { %2482 = vrot.lane.b32.xlu0 %v2398_v11, %s11734_s30  ;;  %4928 = vst [vmem:[#allocation3 + $0x20] sm:$0x1] %v4927_v5  ;;  %v10447_v58 = vor.u32 %v11341_v38, %v10446_v51  ;;  %v4434_v43 = vshrl.u32 %v4342_v44, 16  ;;  %v4437_v59 = vshll.u32 %v4342_v44, 16  ;;  %v3180_v5 = vrot.slane %v3179_v1, 4 }
 0x25e   : > { %3334 = vrot.lane.b32.xlu1 %v3175_v56, %s11736_s7  ;;  %4762 = vst [vmem:[#allocation3 + $0x24] sm:$0xf] %v4761_v47  ;;  %v4343_v12 = vpack.c.bf16 %v4162_v16, %v4162_v16  ;;  %v10207_v56 = vld [vmem:[%s11793_s25 + $0xbc] sm:$0x1]  ;;  %v741_v44 = vshll.u32 %v372_v28, 16  ;;  %v1969_v16 = vshrl.u32 %v10047_v26, 16 }
 0x25f   : > { %v3702_v10 = vpop.permute.xlu0 %3701  ;;  %8956 = vmatmul.bf16.vlgmr.msra.gmra.mxu1 %v10447_v58  ;;  %v4436_v20 = vrot.slane %v4434_v43, 7  ;;  %5008 = vst [vmem:[#allocation4 + $0x48] sm:$0xf] %v4976_v35  ;;  %v3182_v7 = vshll.u32 %v10207_v56, 16  ;;  %v370_v43 = vld [vmem:[%s11793_s25 + $0xa8] sm:$0xf] }
 0x260   : > { %3790 = vst.msk [vmem:[#allocation2 + $0x50] sm:$0xf] %vm3769_vm14, %v3702_v10  ;;  %v1244_v41 = vpop.permute.xlu1 %1243  ;;  %v4443_v34 = vshrl.u32 %v4343_v12, 16  ;;  %v4446_v38 = vshll.u32 %v4343_v12, 16  ;;  %v743_v23 = vrot.slane %v741_v44, 5  ;;  %v725_v1 = vshll.u32 %v370_v43, 16 }
 0x261   : > { %3827 = vst.msk [vmem:[#allocation2 + $0x50] sm:$0xf] %vm3806_vm15, %v11738_v61  ;;  %v4086_v55 = vpop.f32.mrf.mxu0  ;;  %v4439_v21 = vor.u32 %v4437_v59, %v4436_v20  ;;  %v4441_v49 = vrot.slane %v4436_v20, 4  ;;  %v3184_v31 = vrot.slane %v3182_v7, 5  ;;  %v10100_v35 = vld [vmem:[%s11793_s25 + $0xb4] sm:$0xe] }
 0x262   : > { %1330 = vst.msk [vmem:[#allocation2 + $0x58] sm:$0xf] %vm1307_vm8, %v1244_v41  ;;  %v13327_v24 = vpop.permute.xlu2 %3326  ;;  %v739_v41 = vrot.slane %v738_v9, 4  ;;  %v9997_v50 = vld [vmem:[%s11793_s25 + $0xb8] sm:$0xf]  ;;  %v10126_v56 = vrot.slane %v10100_v35, 9 }
 0x263   : > { %5009 = vst [vmem:[#allocation4 + $0x6c] sm:$0xf] %v4977_v52  ;;  %v4440_v29 = vsel %vm13086_vm1, %v4432_v8, %v4439_v21  ;;  %v4765_v33 = vsel %vm13099_vm13, %v4441_v49, %v4764_v4  ;;  %v3185_v58 = vsel %vm11812_vm5, %v3180_v5, %v3184_v31  ;;  %v722_v8 = vshrl.u32 %v370_v43, 16  ;;  %v4979_v21 = vld [vmem:[#allocation3 + $0x1c] sm:$0xf] }
 0x264   : > { %4763 = vst [vmem:[#allocation3 + $0x28] sm:$0xf] %v4440_v29  ;;  %3336 = vrot.lane.b32.xlu2 %v3185_v58, %s11736_s7  ;;  %v1965_v52 = vshll.u32 %v10047_v26, 16  ;;  %v744_v13 = vsel %vm11812_vm5, %v739_v41, %v743_v23  ;;  %v13377_v28 = vld [vmem:[%s11793_s25 + $0xb8] sm:$0xf] }
 0x265   : > { %2705 = vrot.lane.b32.xlu0 %v10157_v37, %s11735_s6  ;;  %v4874_v10 = vld [vmem:[#allocation3 + $0x24] sm:$0x1]  ;;  %4766 = vst [vmem:[#allocation3 + $0x2c] sm:$0x1] %v4765_v33  ;;  %v4087_v37 = vadd.f32 %v13062_v60, %v4086_v55  ;;  %v4978_v55 = vld [vmem:[#allocation3 + $0x18] sm:$0xf] }
 0x266   : > { %3715 = vrot.lane.b32.xlu1 %v3632_v22, %s11737_s8  ;;  %v4875_v27 = vsel %vm13099_vm13, 0, %v4874_v10  ;;  %v10482_v14 = vld [vmem:[#allocation4 + $0x48] sm:$0xf]  ;;  %v10048_v5 = vld [vmem:[%s11793_s25 + $0xbc] sm:$0x1]  ;;  %v2404_v10 = vrot.slane %v13377_v28, 5 }
 0x267   : > { %v864_v11 = vpop.permute.xlu0 %863  ;;  %4876 = vst [vmem:[#allocation3 + $0x24] sm:$0x1] %v4875_v27  ;;  %v4163_v22 = vmax.f32 %v4087_v37, 0.0  ;;  %v4771_v58 = vld [vmem:[#allocation3 + $0x38] sm:$0x1] }
 0x268   : > { %949 = vst.msk [vmem:[#allocation2 + $0x5c] sm:$0xf] %vm925_vm7, %v864_v11  ;;  %v1467_v30 = vpop.permute.xlu1 %1466  ;;  %v727_v11 = vrot.slane %v725_v1, 5  ;;  %v1006_v35 = vld [vmem:[%s11793_s25 + $0xb0] sm:$0x1] }
 0x269   : > { %1331 = vst.msk [vmem:[#allocation2 + $0x5c] sm:$0xf] %vm1307_vm8, %v13235_v39  ;;  %v13346_v39 = vrot.slane %v4443_v34, 7  ;;  %v4089_v51 = vpop.f32.mrf.mxu0  ;;  %v4344_v36 = vpack.c.bf16 %v4163_v22, %v4163_v22  ;;  %v1971_v34 = vrot.slane %v1969_v16, 4  ;;  %v280_v6 = vld [vmem:[%s11793_s25 + $0x94] sm:$0xf] }
 0x26a   : > { %1552 = vst.msk [vmem:[#allocation2 + $0x5c] sm:$0xf] %vm1528_vm9, %v1467_v30  ;;  %v11350_v47 = vld [vmem:[#allocation4 + $0x68] sm:$0xf0]  ;;  %v13361_v63 = vpop.permute.xlu2 %3707  ;;  %v4090_v62 = vadd.f32 %v13062_v60, %v4089_v51  ;;  %v13381_v30 = vrot.slane %v1965_v52, 5 }
 0x26b   : > { %v4448_v32 = vor.u32 %v4446_v38, %v13346_v39  ;;  %v10483_v2 = vor.u32 %v11350_v47, %v10482_v14  ;;  %5010 = vst [vmem:[#allocation4 + $0x90] sm:$0xf] %v4978_v55  ;;  %v4451_v38 = vshrl.u32 %v4344_v36, 16  ;;  %v4454_v7 = vshll.u32 %v4344_v36, 16 }
 0x26c   : > { %v4164_v49 = vmax.f32 %v4090_v62, 0.0  ;;  %v4929_v4 = vld [vmem:[#allocation3 + $0x2c] sm:$0x1]  ;;  %5011 = vst [vmem:[#allocation4 + $0xb4] sm:$0xf] %v4979_v21  ;;  %v4449_v44 = vrot.slane %v13346_v39, 4  ;;  %v1972_v47 = vor.u32 %v1971_v34, %v13381_v30 }
 0x26d   : > { %3713 = vrot.lane.b32.xlu0 %v3629_v42, %s11737_s8  ;;  %v4768_v59 = vsel %vm13042_vm3, %v4448_v32, %v4767_v57  ;;  %v4930_v33 = vsel %vm13213_vm4, 0, %v4929_v4  ;;  %v1975_v14 = vshll.u32 %v10048_v5, 16  ;;  %v4453_v37 = vrot.slane %v4451_v38, 7  ;;  %v13432_v5 = vld [vmem:[%s11793_s25 + $0xc4] sm:$0xf] }
 0x26e   : > { %1255 = vrot.lane.b32.xlu1 %v1174_v54, %s11730_s26  ;;  %4769 = vst [vmem:[#allocation3 + $0x30] sm:$0xf] %v4768_v59  ;;  %v4345_v12 = vpack.c.bf16 %v4164_v49, %v4164_v49  ;;  %v9996_v54 = vld [vmem:[%s11793_s25 + $0xb4] sm:$0xf]  ;;  %v4774_v59 = vld [vmem:[#allocation3 + $0x3c] sm:$0xf] }
 0x26f   : > { %v1465_v46 = vpop.permute.xlu0 %1464  ;;  %8961 = vmatmul.bf16.gmra.mxu1 %v10483_v2  ;;  %4931 = vst [vmem:[#allocation3 + $0x2c] sm:$0x1] %v4930_v33  ;;  %v4456_v26 = vor.u32 %v4454_v7, %v4453_v37  ;;  %v4458_v62 = vrot.slane %v4453_v37, 4  ;;  %v1175_v55 = vrot.slane %v1173_v15, 4  ;;  %v1973_v16 = vrot.slane %v1972_v47, 4 }
 0x270   : > { %1551 = vst.msk [vmem:[#allocation2 + $0x58] sm:$0xf] %vm1528_vm9, %v1465_v46  ;;  %v2475_v20 = vpop.permute.xlu1 %2474  ;;  %v4460_v51 = vshrl.u32 %v4345_v12, 16  ;;  %v4463_v32 = vshll.u32 %v4345_v12, 16  ;;  %v1977_v36 = vrot.slane %v1975_v14, 5 }
 0x271   : > { %2182 = vst.msk [vmem:[#allocation2 + $0x58] sm:$0xf] %vm2159_vm10, %v13263_v40  ;;  %v724_v40 = vrot.slane %v722_v8, 4  ;;  %v4091_v29 = vpop.f32.mrf.mxu0  ;;  %v4457_v8 = vsel %vm13086_vm1, %v4449_v44, %v4456_v26  ;;  %v10209_v15 = vld [vmem:[%s11793_s25 + $0xc4] sm:$0xf] }
 0x272   : > { %2561 = vst.msk [vmem:[#allocation2 + $0x58] sm:$0xf] %vm15547_vm11, %v2475_v20  ;;  %v13385_v42 = vpop.permute.xlu2 %1247  ;;  %v4092_v27 = vadd.f32 %v13062_v60, %v4091_v29  ;;  %v13397_v46 = vrot.slane %v4460_v51, 7  ;;  %v4772_v20 = vsel %vm13099_vm13, %v4458_v62, %v4771_v58  ;;  %v10518_v52 = vld [vmem:[#allocation4 + $0x90] sm:$0xf]  ;;  %v1978_v33 = vsel %vm11812_vm5, %v1973_v16, %v1977_v36 }
 0x273   : > { %v728_v31 = vor.u32 %v727_v11, %v724_v40  ;;  %4770 = vst [vmem:[#allocation3 + $0x34] sm:$0xf] %v4457_v8  ;;  %v3196_v34 = vshll.u32 %v10209_v15, 16  ;;  %v279_v44 = vld [vmem:[%s11793_s25 + $0x90] sm:$0xf]  ;;  %v3635_v51 = vrot.slane %v13432_v5, 5 }
 0x274   : > { %v4165_v39 = vmax.f32 %v4092_v27, 0.0  ;;  %v4465_v1 = vor.u32 %v4463_v32, %v13397_v46  ;;  %4773 = vst [vmem:[#allocation3 + $0x38] sm:$0x1] %v4772_v20  ;;  %v4466_v27 = vrot.slane %v13397_v46, 4  ;;  %v10210_v14 = vld [vmem:[%s11793_s25 + $0xc8] sm:$0x1] }
 0x275   : > { %875 = vrot.lane.b32.xlu0 %v744_v13, %s11732_s28  ;;  %v729_v41 = vrot.slane %v728_v31, 4  ;;  %v4877_v23 = vld [vmem:[#allocation3 + $0x30] sm:$0x1]  ;;  %v1176_v13 = vrot.slane %v1006_v35, 5  ;;  %317 = vst.msk [vmem:[#allocation2 + $0x64] sm:$0xf] %vm291_vm6, %v280_v6 }
 0x276   : > { %1478 = vrot.lane.b32.xlu1 %v9997_v50, %s11731_s27  ;;  %v4878_v2 = vsel %vm13099_vm13, 0, %v4877_v23  ;;  %v4346_v22 = vpack.c.bf16 %v4165_v39, %v4165_v39  ;;  %v4775_v21 = vsel %vm13042_vm3, %v4465_v1, %v4774_v59  ;;  %316 = vst.msk [vmem:[#allocation2 + $0x60] sm:$0xf] %vm291_vm6, %v279_v44  ;;  %v13451_v58 = vrot.slane %v3196_v34, 5  ;;  %v4778_v47 = vld [vmem:[#allocation3 + $0x44] sm:$0x1] }
 0x277   : > { %v2098_v9 = vpop.permute.xlu0 %2097  ;;  %v734_v43 = vsel %vm11812_vm5, %v729_v41, %v13325_v17  ;;  %4879 = vst [vmem:[#allocation3 + $0x30] sm:$0x1] %v4878_v2  ;;  %v11359_v17 = vld [vmem:[#allocation4 + $0xb0] sm:$0xf0]  ;;  %v1177_v29 = vsel %vm11795_vm2, %v1175_v55, %v1176_v13  ;;  %v3206_v46 = vshll.u32 %v10210_v14, 16 }
 0x278   : > { %2183 = vst.msk [vmem:[#allocation2 + $0x5c] sm:$0xf] %vm2159_vm10, %v2098_v9  ;;  %v2698_v57 = vpop.permute.xlu1 %2697  ;;  %873 = vrot.lane.b32.xlu2 %v734_v43, %s11732_s28  ;;  %v4468_v49 = vshrl.u32 %v4346_v22, 16  ;;  %v10519_v50 = vor.u32 %v11359_v17, %v10518_v52  ;;  %v4471_v7 = vshll.u32 %v4346_v22, 16  ;;  %v10159_v9 = vld [vmem:[%s11793_s25 + $0xc4] sm:$0xf] }
 0x279   : > { %2562 = vst.msk [vmem:[#allocation2 + $0x5c] sm:$0xf] %vm15547_vm11, %v13298_v45  ;;  %v2405_v45 = vsel %vm11795_vm2, %v10126_v56, %v2404_v10  ;;  %v4094_v40 = vpop.f32.mrf.mxu0  ;;  %v10262_v56 = vld [vmem:[%s11793_s25 + $0xc0] sm:$0xe]  ;;  %v10046_v2 = vld [vmem:[%s11793_s25 + $0xb4] sm:$0xf] }
 0x27a   : > { %2783 = vst.msk [vmem:[#allocation2 + $0x5c] sm:$0xf] %vm15569_vm0, %v2698_v57  ;;  %v13420_v4 = vpop.permute.xlu2 %1470  ;;  %vm15572_vm0 = vcmask 519616   ;;  %v4470_v38 = vrot.slane %v4468_v49, 7  ;;  %v4095_v31 = vadd.f32 %v13062_v60, %v4094_v40  ;;  %v10158_v59 = vld [vmem:[%s11793_s25 + $0xc0] sm:$0xf] }
 0x27b   : > { %4776 = vst [vmem:[#allocation3 + $0x3c] sm:$0xf] %v4775_v21  ;;  %v4932_v37 = vld [vmem:[#allocation3 + $0x38] sm:$0x1]  ;;  %v1956_v8 = vshrl.u32 %v10046_v2, 16  ;;  %v1959_v20 = vshll.u32 %v10046_v2, 16 }
 0x27c   : > { %v4475_v32 = vrot.slane %v4470_v38, 4  ;;  %v4933_v60 = vsel %vm13213_vm4, 0, %v4932_v37  ;;  %v4473_v41 = vor.u32 %v4471_v7, %v4470_v38  ;;  %v4166_v26 = vmax.f32 %v4095_v31, 0.0  ;;  %v4980_v1 = vld [vmem:[#allocation3 + $0x24] sm:$0xf] }
 0x27d   : > { %1476 = vrot.lane.b32.xlu0 %v9996_v54, %s11731_s27  ;;  %v10288_v54 = vrot.slane %v10262_v56, 9  ;;  %4934 = vst [vmem:[#allocation3 + $0x38] sm:$0x1] %v4933_v60  ;;  %v374_v17 = vld [vmem:[%s11793_s25 + $0xb8] sm:$0xf]  ;;  %v1958_v16 = vrot.slane %v1956_v8, 4 }
 0x27e   : > { %2486 = vrot.lane.b32.xlu1 %v2405_v45, %s11734_s30  ;;  %v4474_v52 = vsel %vm13086_vm1, %v4466_v27, %v4473_v41  ;;  %v375_v55 = vld [vmem:[%s11793_s25 + $0xbc] sm:$0x1]  ;;  %v4347_v13 = vpack.c.bf16 %v4166_v26, %v4166_v26  ;;  %v1961_v36 = vrot.slane %v1959_v20, 5  ;;  %v755_v21 = vshll.u32 %v374_v17, 16  ;;  %v13481_v6 = vld [vmem:[%s15540_s2] ss:$0 sm:$0xff] }
 0x27f   : > { %v2696_v11 = vpop.permute.xlu0 %2695  ;;  %8966 = vmatmul.bf16.gmra.mxu1 %v10519_v50  ;;  %v3636_v49 = vsel %vm11795_vm2, %v10288_v54, %v3635_v51  ;;  %v3208_v40 = vrot.slane %v3206_v46, 5  ;;  %v373_v50 = vld [vmem:[%s11793_s25 + $0xb4] sm:$0xf]  ;;  %4777 = vst [vmem:[#allocation3 + $0x40] sm:$0xf] %v4474_v52  ;;  %v765_v7 = vshll.u32 %v375_v55, 16 }
 0x280   : > { %2782 = vst.msk [vmem:[#allocation2 + $0x58] sm:$0xf] %vm15571_vm12, %v2696_v11  ;;  %v3706_v12 = vpop.permute.xlu1 %3705  ;;  %1257 = vrot.lane.b32.xlu2 %v1177_v29, %s11730_s26  ;;  %vm15573_vm12 = vmmov %vm15572_vm0  ;;  %v759_v11 = vshrl.u32 %v374_v17, 16  ;;  %v1962_v29 = vor.u32 %v1961_v36, %v1958_v16  ;;  %v13485_v56 = vrot.slane %v755_v21, 5  ;;  %v4981_v34 = vld [vmem:[#allocation3 + $0x28] sm:$0xf] }
 0x281   : > { %3413 = vst.msk [vmem:[#allocation2 + $0x58] sm:$0xf] %vm15572_vm0, %v13327_v24  ;;  %v3200_v24 = vshrl.u32 %v10209_v15, 16  ;;  %v4096_v43 = vpop.f32.mrf.mxu0  ;;  %v4477_v44 = vshrl.u32 %v4347_v13, 16  ;;  %v4480_v54 = vshll.u32 %v4347_v13, 16  ;;  %vm15574_vm0 = vcmask 454016  }
 0x282   : > { %3792 = vst.msk [vmem:[#allocation2 + $0x58] sm:$0xf] %vm3769_vm14, %v3706_v12  ;;  %v4880_v57 = vld [vmem:[#allocation3 + $0x3c] sm:$0x1]  ;;  %v13458_v45 = vpop.permute.xlu2 %2478  ;;  %v4097_v15 = vadd.f32 %v13481_v6, %v4096_v43  ;;  %v761_v38 = vrot.slane %v759_v11, 4  ;;  %v1963_v31 = vrot.slane %v1962_v29, 4 }
 0x283   : > { %3829 = vst.msk [vmem:[#allocation2 + $0x58] sm:$0xf] %vm3806_vm15, %v11738_v61  ;;  %v3202_v23 = vrot.slane %v3200_v24, 4  ;;  %v4881_v62 = vsel %vm13099_vm13, 0, %v4880_v57  ;;  %v10102_v60 = vld [vmem:[%s11793_s25 + $0xbc] sm:$0x1] }
 0x284   : > { %4882 = vst [vmem:[#allocation3 + $0x3c] sm:$0x1] %v4881_v62  ;;  %v762_v14 = vor.u32 %v761_v38, %v13485_v56  ;;  %v767_v62 = vrot.slane %v765_v7, 5  ;;  %v4781_v43 = vld [vmem:[#allocation3 + $0x48] sm:$0xf] }
 0x285   : > { %2109 = vrot.lane.b32.xlu0 %v1978_v33, %s11733_s29  ;;  %v3203_v22 = vor.u32 %v3202_v23, %v13451_v58  ;;  %v746_v33 = vshrl.u32 %v373_v50, 16  ;;  %5012 = vst [vmem:[#allocation4 + $0xd8] sm:$0xf] %v4980_v1  ;;  %v13511_v20 = vld [vmem:[%s11793_s25 + $0xb8] sm:$0xf] }
 0x286   : > { %2709 = vrot.lane.b32.xlu1 %v10159_v9, %s11735_s6  ;;  %v749_v9 = vshll.u32 %v373_v50, 16  ;;  %5013 = vst [vmem:[#allocation4 + $0xfc] sm:$0xf] %v4981_v34  ;;  %v1180_v55 = vrot.slane %v13511_v20, 5  ;;  %v1009_v16 = vld [vmem:[%s11793_s25 + $0xbc] sm:$0x1] }
 0x287   : > { %v3329_v39 = vpop.permute.xlu0 %3328  ;;  %v3204_v12 = vrot.slane %v3203_v22, 4  ;;  %v748_v27 = vrot.slane %v746_v33, 4  ;;  %v1183_v11 = vrot.slane %v1009_v16, 5  ;;  %v9998_v7 = vld [vmem:[%s11793_s25 + $0xc0] sm:$0xf] }
 0x288   : > { %3414 = vst.msk [vmem:[#allocation2 + $0x5c] sm:$0xf] %vm15573_vm12, %v3329_v39  ;;  %v868_v35 = vpop.permute.xlu1 %867  ;;  %v751_v37 = vrot.slane %v749_v9, 5  ;;  %v1968_v39 = vsel %vm11812_vm5, %v1963_v31, %v13381_v30  ;;  %v763_v30 = vrot.slane %v762_v14, 4  ;;  %v4785_v9 = vld [vmem:[#allocation3 + $0x50] sm:$0x1]  ;;  %vm15575_vm12 = vmmov %vm15574_vm0 }
 0x289   : > { %3793 = vst.msk [vmem:[#allocation2 + $0x5c] sm:$0xf] %vm3769_vm14, %v13361_v63  ;;  %v4779_v63 = vsel %vm13099_vm13, %v4475_v32, %v4778_v47  ;;  %v13490_v32 = vrot.slane %v4477_v44, 7  ;;  %v4099_v41 = vpop.f32.mrf.mxu0  ;;  %v4167_v47 = vmax.f32 %v4097_v15, 0.0  ;;  %v3209_v26 = vsel %vm11812_vm5, %v3204_v12, %v3208_v40  ;;  %2107 = vrot.lane.b32.xlu2 %v1968_v39, %s11733_s29  ;;  %v10208_v12 = vld [vmem:[%s11793_s25 + $0xc0] sm:$0xf] }
 0x28a   : > { %3830 = vst.msk [vmem:[#allocation2 + $0x5c] sm:$0xf] %vm3806_vm15, %v11738_v61  ;;  %v13493_v57 = vpop.permute.xlu2 %2701  ;;  %v752_v46 = vor.u32 %v751_v37, %v748_v27  ;;  %v4100_v1 = vadd.f32 %v13481_v6, %v4099_v41  ;;  %v1182_v40 = vrot.slane %v1180_v55, 4  ;;  %v3187_v44 = vshrl.u32 %v10208_v12, 16  ;;  %v4982_v14 = vld [vmem:[#allocation3 + $0x30] sm:$0xf] }
 0x28b   : > { %951 = vst.msk [vmem:[#allocation2 + $0x64] sm:$0xf] %vm925_vm7, %v868_v35  ;;  %v4482_v2 = vor.u32 %v4480_v54, %v13490_v32  ;;  %v4348_v52 = vpack.c.bf16 %v4167_v47, %v4167_v47  ;;  %v4483_v17 = vrot.slane %v13490_v32, 4  ;;  %v4983_v37 = vld [vmem:[#allocation3 + $0x34] sm:$0xf] }
 0x28c   : > { %4780 = vst [vmem:[#allocation3 + $0x44] sm:$0x1] %v4779_v63  ;;  %v753_v22 = vrot.slane %v752_v46, 4  ;;  %v4168_v29 = vmax.f32 %v4100_v1, 0.0  ;;  %v10050_v41 = vld [vmem:[%s11793_s25 + $0xc4] sm:$0xf] }
 0x28d   : > { %2707 = vrot.lane.b32.xlu0 %v10158_v59, %s11735_s6  ;;  %v2407_v59 = vrot.slane %v10102_v60, 5  ;;  %v4782_v8 = vsel %vm13042_vm3, %v4482_v2, %v4781_v43  ;;  %v4485_v36 = vshrl.u32 %v4348_v52, 16  ;;  %v4488_v21 = vshll.u32 %v4348_v52, 16  ;;  %v11368_v34 = vld [vmem:[#allocation4 + $0xf8] sm:$0xf0] }
 0x28e   : > { %3717 = vrot.lane.b32.xlu1 %v3636_v49, %s11737_s8  ;;  %4783 = vst [vmem:[#allocation3 + $0x48] sm:$0xf] %v4782_v8  ;;  %v10554_v49 = vld [vmem:[#allocation4 + $0xd8] sm:$0xf]  ;;  %v758_v38 = vsel %vm11812_vm5, %v753_v22, %v13485_v56  ;;  %v4349_v32 = vpack.c.bf16 %v4168_v29, %v4168_v29  ;;  %v3189_v60 = vrot.slane %v3187_v44, 4  ;;  %v1989_v46 = vshll.u32 %v10050_v41, 16 }
 0x28f   : > { %v866_v24 = vpop.permute.xlu0 %865  ;;  %v4487_v15 = vrot.slane %v4485_v36, 7  ;;  %v10555_v31 = vor.u32 %v11368_v34, %v10554_v49  ;;  %5014 = vst [vmem:[#allocation4 + $0x120] sm:$0xf] %v4982_v14  ;;  %v10051_v47 = vld [vmem:[%s11793_s25 + $0xc8] sm:$0x1]  ;;  %v1993_v2 = vshrl.u32 %v10050_v41, 16 }
 0x290   : > { %950 = vst.msk [vmem:[#allocation2 + $0x60] sm:$0xf] %vm925_vm7, %v866_v24  ;;  %v1469_v23 = vpop.permute.xlu1 %1468  ;;  %v3190_v24 = vshll.u32 %v10208_v12, 16  ;;  %v13551_v52 = vrot.slane %v1989_v46, 5  ;;  %v4497_v16 = vshll.u32 %v4349_v32, 16 }
 0x291   : > { %1332 = vst.msk [vmem:[#allocation2 + $0x60] sm:$0xf] %vm1307_vm8, %v13385_v42  ;;  %v2406_v42 = vrot.slane %v2404_v10, 4  ;;  %v768_v10 = vsel %vm11812_vm5, %v763_v30, %v767_v62  ;;  %v4101_v33 = vpop.f32.mrf.mxu0  ;;  %v4490_v27 = vor.u32 %v4488_v21, %v4487_v15  ;;  %v4492_v54 = vrot.slane %v4487_v15, 4  ;;  %8971 = vmatmul.bf16.gmra.mxu1 %v10555_v31  ;;  %v10049_v30 = vld [vmem:[%s11793_s25 + $0xc0] sm:$0xf] }
 0x292   : > { %1553 = vst.msk [vmem:[#allocation2 + $0x60] sm:$0xf] %vm1528_vm9, %v1469_v23  ;;  %v3192_v56 = vrot.slane %v3190_v24, 5  ;;  %v4102_v22 = vadd.f32 %v13481_v6, %v4101_v33  ;;  %v1995_v1 = vrot.slane %v1993_v2, 4  ;;  %v4788_v15 = vld [vmem:[#allocation3 + $0x54] sm:$0xf] }
 0x293   : > { %v4935_v35 = vld [vmem:[#allocation3 + $0x44] sm:$0x1]  ;;  %v2408_v63 = vsel %vm11795_vm2, %v2406_v42, %v2407_v59  ;;  %v4491_v23 = vsel %vm13086_vm1, %v4483_v17, %v4490_v27  ;;  %5015 = vst [vmem:[#allocation4 + $0x144] sm:$0xf] %v4983_v37  ;;  %v4786_v42 = vsel %vm13099_vm13, %v4492_v54, %v4785_v9  ;;  %v1999_v59 = vshll.u32 %v10051_v47, 16 }
 0x294   : > { %v4936_v28 = vsel %vm13213_vm4, 0, %v4935_v35  ;;  %2488 = vrot.lane.b32.xlu2 %v2408_v63, %s11734_s30  ;;  %4784 = vst [vmem:[#allocation3 + $0x4c] sm:$0xf] %v4491_v23  ;;  %v3193_v62 = vor.u32 %v3192_v56, %v3189_v60  ;;  %v4494_v35 = vshrl.u32 %v4349_v32, 16  ;;  %v1996_v21 = vor.u32 %v1995_v1, %v13551_v52  ;;  %v10264_v29 = vld [vmem:[%s11793_s25 + $0xc8] sm:$0x1] }
 0x295   : > { %3340 = vrot.lane.b32.xlu0 %v3209_v26, %s11736_s7  ;;  %4937 = vst [vmem:[#allocation3 + $0x44] sm:$0x1] %v4936_v28  ;;  %v4883_v39 = vld [vmem:[#allocation3 + $0x48] sm:$0x1]  ;;  %v1980_v28 = vshrl.u32 %v10049_v30, 16  ;;  %v2001_v49 = vrot.slane %v1999_v59, 5 }
 0x296   : > { %879 = vrot.lane.b32.xlu1 %v768_v10, %s11732_s28  ;;  %v4884_v26 = vsel %vm13099_vm13, 0, %v4883_v39  ;;  %v3194_v8 = vrot.slane %v3193_v62, 4  ;;  %v1184_v10 = vsel %vm11795_vm2, %v1182_v40, %v1183_v11  ;;  %v13557_v63 = vrot.slane %v4494_v35, 7  ;;  %4787 = vst [vmem:[#allocation3 + $0x50] sm:$0x1] %v4786_v42  ;;  %v11320_v62 = vld [vmem:[#allocation2 + $0x48] sm:$0xff] }
 0x297   : > { %v1250_v13 = vpop.permute.xlu0 %1249  ;;  %4885 = vst [vmem:[#allocation3 + $0x48] sm:$0x1] %v4884_v26  ;;  %v1997_v12 = vrot.slane %v1996_v21, 4  ;;  %v3637_v33 = vrot.slane %v3635_v51, 4  ;;  %v3638_v9 = vrot.slane %v10264_v29, 5  ;;  %4108 = vmatmul.bf16.gmra.mxu0 %v11320_v62 }
 0x298   : > { %1333 = vst.msk [vmem:[#allocation2 + $0x64] sm:$0xf] %vm1307_vm8, %v1250_v13  ;;  %v2102_v50 = vpop.permute.xlu1 %2101  ;;  %v1983_v13 = vshll.u32 %v10049_v30, 16  ;;  %v3199_v36 = vsel %vm11812_vm5, %v3194_v8, %v13451_v58  ;;  %v4499_v40 = vor.u32 %v4497_v16, %v13557_v63  ;;  %v4169_v58 = vmax.f32 %v4102_v22, 0.0  ;;  %v10590_v44 = vld [vmem:[#allocation4 + $0x120] sm:$0xf] }
 0x299   : > { %1554 = vst.msk [vmem:[#allocation2 + $0x64] sm:$0xf] %vm1528_vm9, %v13420_v4  ;;  %v13536_v4 = vpop.permute.xlu2 %3709  ;;  %v4104_v11 = vpop.f32.mrf.mxu0  ;;  %v2002_v31 = vsel %vm11812_vm5, %v1997_v12, %v2001_v49  ;;  %v13578_v5 = vld [vmem:[%s11793_s25 + $0xc4] sm:$0xf]  ;;  %v3639_v14 = vsel %vm11795_vm2, %v3637_v33, %v3638_v9  ;;  %v10105_v41 = vld [vmem:[%s11793_s25 + $0xc8] sm:$0x1] }
 0x29a   : > { %2185 = vst.msk [vmem:[#allocation2 + $0x64] sm:$0xf] %vm2159_vm10, %v2102_v50  ;;  %v1982_v50 = vrot.slane %v1980_v28, 4  ;;  %v11377_v24 = vld [vmem:[#allocation4 + $0x140] sm:$0xf0]  ;;  %v4350_v51 = vpack.c.bf16 %v4169_v58, %v4169_v58  ;;  %v4105_v37 = vadd.f32 %v13481_v6, %v4104_v11  ;;  %v2411_v26 = vrot.slane %v13578_v5, 5 }
 0x29b   : > { %v10591_v60 = vor.u32 %v11377_v24, %v10590_v44  ;;  %v10160_v47 = vld [vmem:[%s11793_s25 + $0xcc] sm:$0xf]  ;;  %v4500_v46 = vrot.slane %v13557_v63, 4  ;;  %v1007_v59 = vld [vmem:[%s11793_s25 + $0xb4] sm:$0xe] }
 0x29c   : > { %3338 = vrot.lane.b32.xlu2 %v3199_v36, %s11736_s7  ;;  %v4502_v2 = vshrl.u32 %v4350_v51, 16  ;;  %v2413_v42 = vrot.slane %v2411_v26, 4  ;;  %v4984_v30 = vld [vmem:[#allocation3 + $0x3c] sm:$0xf]  ;;  %v4170_v35 = vmax.f32 %v4105_v37, 0.0  ;;  %v9965_v8 = vrot.slane %v1007_v59, 9 }
 0x29d   : > { %877 = vrot.lane.b32.xlu0 %v758_v38, %s11732_s28  ;;  %v4938_v32 = vld [vmem:[#allocation3 + $0x50] sm:$0x1]  ;;  %5016 = vst [vmem:[#allocation4 + $0x168] sm:$0xf] %v4984_v30  ;;  %v4792_v49 = vld [vmem:[#allocation3 + $0x5c] sm:$0x1] }
 0x29e   : > { %1480 = vrot.lane.b32.xlu1 %v9998_v7, %s11731_s27  ;;  %v4789_v7 = vsel %vm13042_vm3, %v4499_v40, %v4788_v15  ;;  %v4939_v39 = vsel %vm13213_vm4, 0, %v4938_v32  ;;  %v4504_v22 = vrot.slane %v4502_v2, 7  ;;  %v10212_v15 = vld [vmem:[%s11793_s25 + $0xd0] sm:$0xf]  ;;  %v9999_v62 = vld [vmem:[%s11793_s25 + $0xc4] sm:$0xf] }
 0x29f   : > { %v2100_v43 = vpop.permute.xlu0 %2099  ;;  %4790 = vst [vmem:[#allocation3 + $0x54] sm:$0xf] %v4789_v7  ;;  %v3220_v33 = vshll.u32 %v10212_v15, 16  ;;  %v3224_v58 = vshrl.u32 %v10212_v15, 16  ;;  %v11321_v30 = vld [vmem:[#allocation2 + $0x50] sm:$0xff] }
 0x2a0   : > { %2184 = vst.msk [vmem:[#allocation2 + $0x60] sm:$0xf] %vm2159_vm10, %v2100_v43  ;;  %v2700_v17 = vpop.permute.xlu1 %2699  ;;  %v4505_v43 = vshll.u32 %v4350_v51, 16  ;;  %v4509_v21 = vrot.slane %v4504_v22, 4  ;;  %v1011_v5 = vld [vmem:[%s11793_s25 + $0xc4] sm:$0xf] }
 0x2a1   : > { %2563 = vst.msk [vmem:[#allocation2 + $0x60] sm:$0xf] %vm15547_vm11, %v13458_v45  ;;  %v1985_v45 = vrot.slane %v1983_v13, 5  ;;  %v13569_v34 = vpop.permute.xlu2 %871  ;;  %8976 = vmatmul.bf16.gmra.mxu1 %v10591_v60  ;;  %v4106_v1 = vpop.f32.mrf.mxu0  ;;  %v3222_v9 = vrot.slane %v3220_v33, 5  ;;  %v3226_v44 = vrot.slane %v3224_v58, 4 }
 0x2a2   : > { %2784 = vst.msk [vmem:[#allocation2 + $0x60] sm:$0xf] %vm15574_vm0, %v2700_v17  ;;  %vm15576_vm0 = vcmask 519616   ;;  %v4351_v17 = vpack.c.bf16 %v4170_v35, %v4170_v35  ;;  %v4507_v36 = vor.u32 %v4505_v43, %v4504_v22  ;;  %v4107_v40 = vadd.f32 %v13481_v6, %v4106_v1  ;;  %v4795_v60 = vld [vmem:[#allocation3 + $0x60] sm:$0xf] }
 0x2a3   : > { %v1986_v38 = vor.u32 %v1985_v45, %v1982_v50  ;;  %4940 = vst [vmem:[#allocation3 + $0x50] sm:$0x1] %v4939_v39  ;;  %v1181_v50 = vsel %vm11795_vm2, %v9965_v8, %v1180_v55  ;;  %v10213_v45 = vld [vmem:[%s11793_s25 + $0xd4] sm:$0x1]  ;;  %v4793_v20 = vsel %vm13099_vm13, %v4509_v21, %v4792_v49  ;;  %v376_v35 = vld [vmem:[%s11793_s25 + $0xc0] sm:$0xf] }
 0x2a4   : > { %3719 = vrot.lane.b32.xlu2 %v3639_v14, %s11737_s8  ;;  %v4508_v12 = vsel %vm13086_vm1, %v4500_v46, %v4507_v36  ;;  %v4511_v7 = vshrl.u32 %v4351_v17, 16  ;;  %v3230_v24 = vshll.u32 %v10213_v45, 16  ;;  %v4171_v51 = vmax.f32 %v4107_v40, 0.0  ;;  %4794 = vst [vmem:[#allocation3 + $0x5c] sm:$0x1] %v4793_v20  ;;  %v11512_v20 = vld [vmem:[%s15541_s3 + $0xf8] sm:$0xff] }
 0x2a5   : > { %1261 = vrot.lane.b32.xlu0 %v1184_v10, %s11730_s26  ;;  %v1987_v54 = vrot.slane %v1986_v38, 4  ;;  %v281_v10 = vld [vmem:[%s11793_s25 + $0x9c] sm:$0xf]  ;;  %v10211_v38 = vld [vmem:[%s11793_s25 + $0xcc] sm:$0xf]  ;;  %9215 = vmatpush.bf16.msrb.mxu1 %v11512_v20 }
 0x2a6   : > { %2113 = vrot.lane.b32.xlu1 %v2002_v31, %s11733_s29  ;;  %v4886_v28 = vld [vmem:[#allocation3 + $0x54] sm:$0x1]  ;;  %318 = vst.msk [vmem:[#allocation2 + $0x68] sm:$0xf] %vm291_vm6, %v281_v10  ;;  %v3211_v55 = vshrl.u32 %v10211_v38, 16  ;;  %v3214_v6 = vshll.u32 %v10211_v38, 16  ;;  %v4352_v8 = vpack.c.bf16 %v4171_v51, %v4171_v51 }
 0x2a7   : > { %v2481_v27 = vpop.permute.xlu0 %2480  ;;  %v1992_v23 = vsel %vm11812_vm5, %v1987_v54, %v13551_v52  ;;  %v4985_v52 = vld [vmem:[#allocation3 + $0x40] sm:$0xf]  ;;  %v4887_v63 = vsel %vm13099_vm13, 0, %v4886_v28  ;;  %v4514_v31 = vshll.u32 %v4351_v17, 16  ;;  %4791 = vst [vmem:[#allocation3 + $0x58] sm:$0xf] %v4508_v12  ;;  %v3227_v54 = vor.u32 %v3226_v44, %v3222_v9  ;;  %4113 = vmatmul.bf16.gmra.mxu0 %v11321_v30 }
 0x2a8   : > { %2564 = vst.msk [vmem:[#allocation2 + $0x64] sm:$0xf] %vm15547_vm11, %v2481_v27  ;;  %v3333_v56 = vpop.permute.xlu1 %3332  ;;  %v3213_v27 = vrot.slane %v3211_v55, 4  ;;  %v3216_v14 = vrot.slane %v3214_v6, 5  ;;  %v13629_v37 = vrot.slane %v4511_v7, 7  ;;  %v3232_v39 = vrot.slane %v3230_v24, 5 }
 0x2a9   : > { %2785 = vst.msk [vmem:[#allocation2 + $0x64] sm:$0xf] %vm15575_vm12, %v13493_v57  ;;  %v2414_v57 = vrot.slane %v10105_v41, 5  ;;  %v13602_v13 = vpop.permute.xlu2 %1472  ;;  %vm15577_vm12 = vmmov %vm15576_vm0  ;;  %v282_v41 = vld [vmem:[%s11793_s25 + $0xa0] sm:$0xf]  ;;  %v3228_v2 = vrot.slane %v3227_v54, 4 }
 0x2aa   : > { %3416 = vst.msk [vmem:[#allocation2 + $0x64] sm:$0xf] %vm15576_vm0, %v3333_v56  ;;  %v13645_v22 = vld [vmem:[%s11793_s25 + $0xc4] sm:$0xf]  ;;  %v770_v28 = vshrl.u32 %v376_v35, 16  ;;  %v773_v10 = vshll.u32 %v376_v35, 16 }
 0x2ab   : > { %5017 = vst [vmem:[#allocation4 + $0x18c] sm:$0xf] %v4985_v52  ;;  %v2415_v11 = vsel %vm11795_vm2, %v2413_v42, %v2414_v57  ;;  %v3233_v52 = vsel %vm11812_vm5, %v3228_v2, %v3232_v39  ;;  %v13655_v17 = vld [vmem:[%s11793_s25 + $0xd0] sm:$0xf]  ;;  %v10267_v45 = vld [vmem:[%s11793_s25 + $0xd4] sm:$0x1] }
 0x2ac   : > { %4888 = vst [vmem:[#allocation3 + $0x54] sm:$0x1] %v4887_v63  ;;  %1259 = vrot.lane.b32.xlu2 %v1181_v50, %s11730_s26  ;;  %v4941_v63 = vld [vmem:[#allocation3 + $0x5c] sm:$0x1]  ;;  %v772_v21 = vrot.slane %v770_v28, 4  ;;  %v775_v49 = vrot.slane %v773_v10, 5 }
 0x2ad   : > { %2111 = vrot.lane.b32.xlu0 %v1992_v23, %s11733_s29  ;;  %v3217_v23 = vor.u32 %v3216_v14, %v3213_v27  ;;  %319 = vst.msk [vmem:[#allocation2 + $0x6c] sm:$0xf] %vm291_vm6, %v282_v41  ;;  %v4942_v36 = vsel %vm13213_vm4, 0, %v4941_v63  ;;  %v3642_v50 = vrot.slane %v13655_v17, 5  ;;  %v4519_v40 = vshrl.u32 %v4352_v8, 16  ;;  %v11508_v17 = vld [vmem:[%s15541_s3 + $0xd8] sm:$0xff] }
 0x2ae   : > { %2711 = vrot.lane.b32.xlu1 %v10160_v47, %s11735_s6  ;;  %v4516_v47 = vor.u32 %v4514_v31, %v13629_v37  ;;  %953 = vst.msk [vmem:[#allocation2 + $0x6c] sm:$0xf] %vm925_vm7, %v13569_v34  ;;  %v779_v34 = vshll.u32 %v13645_v22, 16  ;;  %v776_v12 = vor.u32 %v775_v49, %v772_v21  ;;  %v3645_v33 = vrot.slane %v10267_v45, 5  ;;  %v10103_v58 = vld [vmem:[%s11793_s25 + $0xc0] sm:$0xe] }
 0x2af   : > { %v3331_v16 = vpop.permute.xlu0 %3330  ;;  %v3218_v43 = vrot.slane %v3217_v23, 4  ;;  %4943 = vst [vmem:[#allocation3 + $0x5c] sm:$0x1] %v4942_v36  ;;  %v4522_v38 = vshll.u32 %v4352_v8, 16  ;;  %v10127_v55 = vrot.slane %v10103_v58, 9  ;;  %v4521_v6 = vrot.slane %v4519_v40, 7 }
 0x2b0   : > { %3415 = vst.msk [vmem:[#allocation2 + $0x60] sm:$0xf] %vm15577_vm12, %v3331_v16  ;;  %v870_v29 = vpop.permute.xlu1 %869  ;;  %v4796_v42 = vsel %vm13042_vm3, %v4516_v47, %v4795_v60  ;;  %v4517_v16 = vrot.slane %v13629_v37, 4  ;;  %v13665_v15 = vrot.slane %v779_v34, 5  ;;  %v4799_v7 = vld [vmem:[#allocation3 + $0x68] sm:$0x1] }
 0x2b1   : > { %3794 = vst.msk [vmem:[#allocation2 + $0x60] sm:$0xf] %vm3769_vm14, %v13536_v4  ;;  %v10626_v4 = vld [vmem:[#allocation4 + $0x168] sm:$0xf]  ;;  %v13636_v46 = vpop.permute.xlu2 %2105  ;;  %v3223_v1 = vsel %vm11812_vm5, %v3218_v43, %v3222_v9  ;;  %v777_v9 = vrot.slane %v776_v12, 4  ;;  %v2412_v51 = vsel %vm11795_vm2, %v10127_v55, %v2411_v26  ;;  %v1187_v39 = vrot.slane %v1011_v5, 5 }
 0x2b2   : > { %3831 = vst.msk [vmem:[#allocation2 + $0x60] sm:$0xf] %vm3806_vm15, %v11738_v61  ;;  %v11386_v32 = vld [vmem:[#allocation4 + $0x188] sm:$0xf0]  ;;  %v4986_v44 = vld [vmem:[#allocation3 + $0x48] sm:$0xf] }
 0x2b3   : > { %952 = vst.msk [vmem:[#allocation2 + $0x68] sm:$0xf] %vm925_vm7, %v870_v29  ;;  %v10627_v57 = vor.u32 %v11386_v32, %v10626_v4  ;;  %v3644_v29 = vrot.slane %v3642_v50, 4  ;;  %v11511_v31 = vld [vmem:[%s15541_s3 + $0xf0] sm:$0xff]  ;;  %v4524_v4 = vor.u32 %v4522_v38, %v4521_v6  ;;  %v4987_v54 = vld [vmem:[#allocation3 + $0x4c] sm:$0xf]  ;;  %v782_v32 = vsel %vm11812_vm5, %v777_v9, %v13665_v15 }
 0x2b4   : > { %1482 = vrot.lane.b32.xlu2 %v9999_v62, %s11731_s27  ;;  %4797 = vst [vmem:[#allocation3 + $0x60] sm:$0xf] %v4796_v42  ;;  %v1012_v41 = vld [vmem:[%s11793_s25 + $0xc8] sm:$0x1]  ;;  %v1010_v47 = vld [vmem:[%s11793_s25 + $0xc0] sm:$0xe]  ;;  %9216 = vmatpush.bf16.msrb.mxu1 %v11511_v31 }
 0x2b5   : > { %2492 = vrot.lane.b32.xlu0 %v2415_v11, %s11734_s30  ;;  %8981 = vmatmul.bf16.gmra.mxu1 %v10627_v57  ;;  %v3646_v27 = vsel %vm11795_vm2, %v3644_v29, %v3645_v33  ;;  %5018 = vst [vmem:[#allocation4 + $0x1b0] sm:$0xf] %v4986_v44  ;;  %v4525_v60 = vsel %vm13086_vm1, %v4517_v16, %v4524_v4  ;;  %v1190_v23 = vrot.slane %v1012_v41, 5  ;;  %v11510_v62 = vld [vmem:[%s15541_s3 + $0xe8] sm:$0xff]  ;;  %v783_v57 = vshrl.u32 %v13645_v22, 16  ;;  %v11322_v31 = vld [vmem:[#allocation2 + $0x58] sm:$0xff] }
 0x2b6   : > { %3344 = vrot.lane.b32.xlu1 %v3233_v52, %s11736_s7  ;;  %5019 = vst [vmem:[#allocation4 + $0x1d4] sm:$0xf] %v4987_v54  ;;  %v1189_v2 = vrot.slane %v1187_v39, 4  ;;  %v9966_v43 = vrot.slane %v1010_v47, 9  ;;  %v13710_v30 = vld [vmem:[%s11793_s25 + $0xd0] sm:$0xf] }
 0x2b7   : > { %v3712_v56 = vpop.permute.xlu0 %3711  ;;  %4798 = vst [vmem:[#allocation3 + $0x64] sm:$0xf] %v4525_v60  ;;  %v10161_v35 = vld [vmem:[%s11793_s25 + $0xd0] sm:$0xf]  ;;  %v2013_v10 = vshll.u32 %v13710_v30, 16  ;;  %vm15578_vm0 = vcmask 454016   ;;  %4118 = vmatmul.bf16.gmra.mxu0 %v11322_v31 }
 0x2b8   : > { %3795 = vst.msk [vmem:[#allocation2 + $0x64] sm:$0xf] %vm3769_vm14, %v3712_v56  ;;  %v1254_v59 = vpop.permute.xlu1 %1253  ;;  %v1191_v22 = vsel %vm11795_vm2, %v1189_v2, %v1190_v23  ;;  %9217 = vmatpush.bf16.msrb.mxu1 %v11510_v62  ;;  %v1188_v16 = vsel %vm11795_vm2, %v9966_v43, %v1187_v39  ;;  %v10265_v49 = vld [vmem:[%s11793_s25 + $0xcc] sm:$0xe]  ;;  %v4989_v29 = vld [vmem:[#allocation3 + $0x58] sm:$0xf] }
 0x2b9   : > { %3832 = vst.msk [vmem:[#allocation2 + $0x64] sm:$0xf] %vm3806_vm15, %v11738_v61  ;;  %v13686_v14 = vpop.permute.xlu2 %2703  ;;  %v13726_v12 = vrot.slane %v2013_v10, 5  ;;  %v10289_v38 = vrot.slane %v10265_v49, 9  ;;  %v10001_v9 = vld [vmem:[%s11793_s25 + $0xd0] sm:$0xf] }
 0x2ba   : > { %1335 = vst.msk [vmem:[#allocation2 + $0x6c] sm:$0xf] %vm1307_vm8, %v1254_v59  ;;  %v10052_v59 = vld [vmem:[%s11793_s25 + $0xcc] sm:$0xf]  ;;  %v10108_v4 = vld [vmem:[%s11793_s25 + $0xd4] sm:$0x1] }
 0x2bb   : > { %v4889_v37 = vld [vmem:[#allocation3 + $0x60] sm:$0x1]  ;;  %v2004_v8 = vshrl.u32 %v10052_v59, 16  ;;  %v2007_v52 = vshll.u32 %v10052_v59, 16  ;;  %5021 = vst [vmem:[#allocation4 + $0x21c] sm:$0xf] %v4989_v29  ;;  %v3643_v44 = vsel %vm11795_vm2, %v10289_v38, %v3642_v50 }
 0x2bc   : > { %2490 = vrot.lane.b32.xlu2 %v2412_v51, %s11734_s30  ;;  %v4890_v26 = vsel %vm13099_vm13, 0, %v4889_v37  ;;  %v10106_v50 = vld [vmem:[%s11793_s25 + $0xcc] sm:$0xe]  ;;  %v283_v37 = vld [vmem:[%s11793_s25 + $0xa8] sm:$0xf]  ;;  %v11507_v39 = vld [vmem:[%s15541_s3 + $0xd0] sm:$0xff] }
 0x2bd   : > { %3342 = vrot.lane.b32.xlu0 %v3223_v1, %s11736_s7  ;;  %4891 = vst [vmem:[#allocation3 + $0x60] sm:$0x1] %v4890_v26  ;;  %v10662_v1 = vld [vmem:[#allocation4 + $0x1b0] sm:$0xf]  ;;  %v11395_v63 = vld [vmem:[#allocation4 + $0x1d0] sm:$0xf0] }
 0x2be   : > { %881 = vrot.lane.b32.xlu1 %v782_v32, %s11732_s28  ;;  %v2006_v34 = vrot.slane %v2004_v8, 4  ;;  %v2009_v36 = vrot.slane %v2007_v52, 5  ;;  %v10663_v21 = vor.u32 %v11395_v63, %v10662_v1  ;;  %v2421_v32 = vrot.slane %v10108_v4, 5  ;;  %320 = vst.msk [vmem:[#allocation2 + $0x70] sm:$0xf] %vm291_vm6, %v283_v37 }
 0x2bf   : > { %v1252_v11 = vpop.permute.xlu0 %1251  ;;  %v10214_v26 = vld [vmem:[%s11793_s25 + $0xd8] sm:$0xf]  ;;  %v10128_v47 = vrot.slane %v10106_v50, 9  ;;  %v2017_v43 = vshrl.u32 %v13710_v30, 16  ;;  %v14360_v53 = vld [vmem:[#allocation3 + $0x24] sm:$0xf] }
 0x2c0   : > { %1334 = vst.msk [vmem:[#allocation2 + $0x68] sm:$0xf] %vm1307_vm8, %v1252_v11  ;;  %v2104_v24 = vpop.permute.xlu1 %2103  ;;  %v2010_v45 = vor.u32 %v2009_v36, %v2006_v34  ;;  %v785_v11 = vrot.slane %v783_v57, 4  ;;  %v3235_v41 = vshrl.u32 %v10214_v26, 16  ;;  %v13763_v57 = vld [vmem:[%s11793_s25 + $0xdc] sm:$0xf] }
 0x2c1   : > { %1555 = vst.msk [vmem:[#allocation2 + $0x68] sm:$0xf] %vm1528_vm9, %v13602_v13  ;;  %v4526_v13 = vrot.slane %v4521_v6, 4  ;;  %v3337_v40 = vpop.permute.xlu2 %3336  ;;  %v10107_v6 = vld [vmem:[%s11793_s25 + $0xd0] sm:$0xf]  ;;  %v3238_v2 = vshll.u32 %v10214_v26, 16 }
 0x2c2   : > { %2186 = vst.msk [vmem:[#allocation2 + $0x68] sm:$0xf] %vm2159_vm10, %v2104_v24  ;;  %v2011_v58 = vrot.slane %v2010_v45, 4  ;;  %v786_v24 = vor.u32 %v785_v11, %v13665_v15  ;;  %v378_v15 = vld [vmem:[%s11793_s25 + $0xc8] sm:$0x1]  ;;  %v3237_v59 = vrot.slane %v3235_v41, 4 }
 0x2c3   : > { %v4800_v56 = vsel %vm13099_vm13, %v4526_v13, %v4799_v7  ;;  %v11509_v7 = vld [vmem:[%s15541_s3 + $0xe0] sm:$0xff]  ;;  %v2418_v13 = vrot.slane %v10107_v6, 5  ;;  %v789_v54 = vshll.u32 %v378_v15, 16  ;;  %v3240_v8 = vrot.slane %v3238_v2, 5  ;;  %v11506_v34 = vld [vmem:[%s15541_s3 + $0xc8] sm:$0xff] }
 0x2c4   : > { %4801 = vst [vmem:[#allocation3 + $0x68] sm:$0x1] %v4800_v56  ;;  %2713 = vrot.lane.b32.xlu2 %v10161_v35, %s11735_s6  ;;  %9218 = vmatpush.bf16.msrb.mxu1 %v11509_v7  ;;  %v787_v5 = vrot.slane %v786_v24, 4  ;;  %v11404_v23 = vld [vmem:[#allocation4 + $0x218] sm:$0xf0]  ;;  %v3244_v30 = vshll.u32 %v13763_v57, 16 }
 0x2c5   : > { %3723 = vrot.lane.b32.xlu0 %v3646_v27, %s11737_s8  ;;  %8986 = vmatmul.bf16.gmra.mxu1 %v10663_v21  ;;  %v2016_v27 = vsel %vm11812_vm5, %v2011_v58, %v13726_v12  ;;  %v2420_v60 = vrot.slane %v2418_v13, 4  ;;  %v791_v56 = vrot.slane %v789_v54, 5  ;;  %v2419_v10 = vsel %vm11795_vm2, %v10128_v47, %v2418_v13  ;;  %v284_v36 = vld [vmem:[%s11793_s25 + $0xac] sm:$0xf]  ;;  %v10054_v45 = vld [vmem:[%s11793_s25 + $0xd4] sm:$0x1] }
 0x2c6   : > { %1265 = vrot.lane.b32.xlu1 %v1191_v22, %s11730_s26  ;;  %v3241_v63 = vor.u32 %v3240_v8, %v3237_v59  ;;  %v2019_v21 = vrot.slane %v2017_v43, 4  ;;  %321 = vst.msk [vmem:[#allocation2 + $0x74] sm:$0xf] %vm291_vm6, %v284_v36  ;;  %v11505_v11 = vld [vmem:[%s15541_s3 + $0xc0] sm:$0xff]  ;;  %v380_v58 = vld [vmem:[%s11793_s25 + $0xd0] sm:$0xf] }
 0x2c7   : > { %v1475_v42 = vpop.permute.xlu0 %1474  ;;  %v792_v35 = vsel %vm11812_vm5, %v787_v5, %v791_v56  ;;  %v2422_v1 = vsel %vm11795_vm2, %v2420_v60, %v2421_v32  ;;  %v11323_v38 = vld [vmem:[#allocation2 + $0x60] sm:$0xff]  ;;  %v2023_v6 = vshll.u32 %v10054_v45, 16  ;;  %v807_v4 = vshrl.u32 %v380_v58, 16  ;;  %v381_v5 = vld [vmem:[%s11793_s25 + $0xd4] sm:$0x1] }
 0x2c8   : > { %1556 = vst.msk [vmem:[#allocation2 + $0x6c] sm:$0xf] %vm1528_vm9, %v1475_v42  ;;  %v2485_v28 = vpop.permute.xlu1 %2484  ;;  %9219 = vmatpush.bf16.msrb.mxu1 %v11508_v17  ;;  %v3242_v49 = vrot.slane %v3241_v63, 4  ;;  %4123 = vmatmul.bf16.gmra.mxu0 %v11323_v38  ;;  %v5807_v17 = vld [vmem:[#allocation3 + $0xc] sm:$0xf] }
 0x2c9   : > { %2187 = vst.msk [vmem:[#allocation2 + $0x6c] sm:$0xf] %vm2159_vm10, %v13636_v46  ;;  %v4988_v46 = vld [vmem:[#allocation3 + $0x54] sm:$0xf]  ;;  %v2025_v15 = vrot.slane %v2023_v6, 5  ;;  %v809_v56 = vrot.slane %v807_v4, 4 }
 0x2ca   : > { %2566 = vst.msk [vmem:[#allocation2 + $0x6c] sm:$0xf] %vm15547_vm11, %v2485_v28  ;;  %v4990_v28 = vld [vmem:[#allocation3 + $0x60] sm:$0xf]  ;;  %v5808_v54 = vld [vmem:[#allocation3 + $0x10] sm:$0xf] }
 0x2cb   : > { %v4944_v33 = vld [vmem:[#allocation3 + $0x68] sm:$0x1]  ;;  %5020 = vst [vmem:[#allocation4 + $0x1f8] sm:$0xf] %v4988_v46  ;;  %v13786_v46 = vrot.slane %v3244_v30, 5 }
 0x2cc   : > { %v4945_v20 = vsel %vm13213_vm4, 0, %v4944_v33  ;;  %3721 = vrot.lane.b32.xlu2 %v3643_v44, %s11737_s8  ;;  %9220 = vmatpush.bf16.msrb.mxu1 %v11507_v39  ;;  %5022 = vst [vmem:[#allocation4 + $0x240] sm:$0xf] %v4990_v28  ;;  %v2020_v33 = vor.u32 %v2019_v21, %v13726_v12  ;;  %v10270_v44 = vld [vmem:[%s11793_s25 + $0xe0] sm:$0x1] }
 0x2cd   : > { %1263 = vrot.lane.b32.xlu0 %v1188_v16, %s11730_s26  ;;  %4946 = vst [vmem:[#allocation3 + $0x68] sm:$0x1] %v4945_v20  ;;  %v4991_v16 = vld [vmem:[#allocation3 + $0x64] sm:$0xf]  ;;  %v10163_v20 = vld [vmem:[%s11793_s25 + $0xdc] sm:$0xf]  ;;  %v3247_v7 = vsel %vm11812_vm5, %v3242_v49, %v13786_v46 }
 0x2ce   : > { %2115 = vrot.lane.b32.xlu1 %v2016_v27, %s11733_s29  ;;  %5023 = vst [vmem:[#allocation4 + $0x264] sm:$0xf] %v4991_v16  ;;  %v10268_v27 = vld [vmem:[%s11793_s25 + $0xd8] sm:$0xe]  ;;  %v2021_v13 = vrot.slane %v2020_v33, 4  ;;  %v3652_v50 = vrot.slane %v10270_v44, 5 }
 0x2cf   : > { %v2483_v55 = vpop.permute.xlu0 %2482  ;;  %5839 = vst [vmem:[#allocation4 + $0xc] sm:$0xf] %v5807_v17  ;;  %v10290_v32 = vrot.slane %v10268_v27, 9  ;;  %v5041_v39 = vld [vmem:[#allocation3 + $0xc] sm:$0xf] }
 0x2d0   : > { %2565 = vst.msk [vmem:[#allocation2 + $0x68] sm:$0xf] %vm15547_vm11, %v2483_v55  ;;  %v3335_v51 = vpop.permute.xlu1 %3334  ;;  %9221 = vmatpush.bf16.msrb.mxu1 %v11506_v34  ;;  %v10000_v55 = vld [vmem:[%s11793_s25 + $0xcc] sm:$0xf]  ;;  %v2026_v47 = vsel %vm11812_vm5, %v2021_v13, %v2025_v15  ;;  %v10216_v34 = vld [vmem:[%s11793_s25 + $0xe0] sm:$0x1] }
 0x2d1   : > { %2786 = vst.msk [vmem:[#allocation2 + $0x68] sm:$0xf] %vm15578_vm0, %v13686_v14  ;;  %v1013_v59 = vld [vmem:[%s11793_s25 + $0xcc] sm:$0xe]  ;;  %v10056_v21 = vld [vmem:[%s11793_s25 + $0xdc] sm:$0xf] }
 0x2d2   : > { %3417 = vst.msk [vmem:[#allocation2 + $0x68] sm:$0xf] %vm15577_vm12, %v3335_v51  ;;  %v10698_v14 = vld [vmem:[#allocation4 + $0x1f8] sm:$0xf]  ;;  %v874_v62 = vpop.permute.xlu2 %873  ;;  %v803_v51 = vshll.u32 %v380_v58, 16  ;;  %v9967_v63 = vrot.slane %v1013_v59, 9 }
 0x2d3   : > { %954 = vst.msk [vmem:[#allocation2 + $0x70] sm:$0xf] %vm925_vm7, %v874_v62  ;;  %v10699_v52 = vor.u32 %v11404_v23, %v10698_v14  ;;  %v10734_v26 = vld [vmem:[#allocation4 + $0x240] sm:$0xf]  ;;  %v3248_v23 = vshrl.u32 %v13763_v57, 16  ;;  %v813_v62 = vshll.u32 %v381_v5, 16 }
 0x2d4   : > { %883 = vrot.lane.b32.xlu2 %v792_v35, %s11732_s28  ;;  %9222 = vmatpush.bf16.msrb.mxu1 %v11505_v11  ;;  %5840 = vst [vmem:[#allocation4 + $0x30] sm:$0xf] %v5808_v54  ;;  %v13813_v60 = vrot.slane %v803_v51, 5  ;;  %v13824_v35 = vld [vmem:[%s11793_s25 + $0xd0] sm:$0xf]  ;;  %v2037_v6 = vshll.u32 %v10056_v21, 16 }
 0x2d5   : > { %1486 = vrot.lane.b32.xlu0 %v10001_v9, %s11731_s27  ;;  %8991 = vmatmul.bf16.gmra.mxu1 %v10699_v52  ;;  %v11413_v14 = vld [vmem:[#allocation4 + $0x260] sm:$0xf0]  ;;  %v5111_v52 = vshrl.u32 %v5041_v39, 16  ;;  %v1194_v16 = vrot.slane %v13824_v35, 5  ;;  %v3250_v36 = vrot.slane %v3248_v23, 4 }
 0x2d6   : > { %2496 = vrot.lane.b32.xlu1 %v2422_v1, %s11734_s30  ;;  %v10735_v2 = vor.u32 %v11413_v14, %v10734_v26  ;;  %v810_v8 = vor.u32 %v809_v56, %v13813_v60  ;;  %v5114_v1 = vshll.u32 %v5041_v39, 16  ;;  %v5809_v49 = vld [vmem:[#allocation3 + $0x18] sm:$0xf]  ;;  %v5810_v45 = vld [vmem:[#allocation3 + $0x1c] sm:$0xf]  ;;  %v13858_v26 = vrot.slane %v2037_v6, 5 }
 0x2d7   : > { %v2706_v42 = vpop.permute.xlu0 %2705  ;;  %5841 = vst [vmem:[#allocation4 + $0x54] sm:$0xf] %v5809_v49  ;;  %v10162_v38 = vld [vmem:[%s11793_s25 + $0xd8] sm:$0xf]  ;;  %v1195_v44 = vsel %vm11795_vm2, %v9967_v63, %v1194_v16  ;;  %v5113_v27 = vrot.slane %v5111_v52, 4 }
 0x2d8   : > { %2787 = vst.msk [vmem:[#allocation2 + $0x6c] sm:$0xf] %vm15578_vm0, %v2706_v42  ;;  %v3716_v22 = vpop.permute.xlu1 %3715  ;;  %v5116_v51 = vrot.slane %v5114_v1, 5  ;;  %v5811_v17 = vld [vmem:[#allocation3 + $0x24] sm:$0xf] }
 0x2d9   : > { %3418 = vst.msk [vmem:[#allocation2 + $0x6c] sm:$0xf] %vm15577_vm12, %v3337_v40  ;;  %v10269_v40 = vld [vmem:[%s11793_s25 + $0xdc] sm:$0xf]  ;;  %v5812_v15 = vld [vmem:[#allocation3 + $0x28] sm:$0xf]  ;;  %vm15579_vm12 = vmmov %vm15578_vm0 }
 0x2da   : > { %3797 = vst.msk [vmem:[#allocation2 + $0x6c] sm:$0xf] %vm3769_vm14, %v3716_v22  ;;  %v3649_v24 = vrot.slane %v10269_v40, 5  ;;  %v1258_v12 = vpop.permute.xlu2 %1257  ;;  %v379_v22 = vld [vmem:[%s11793_s25 + $0xcc] sm:$0xf]  ;;  %v811_v40 = vrot.slane %v810_v8, 4 }
 0x2db   : > { %3834 = vst.msk [vmem:[#allocation2 + $0x6c] sm:$0xf] %vm3806_vm15, %v11738_v61  ;;  %v797_v33 = vshll.u32 %v379_v22, 16  ;;  %v10057_v5 = vld [vmem:[%s11793_s25 + $0xe0] sm:$0x1] }
 0x2dc   : > { %v13805_v31 = vpop.f32.mrf.mxu1  ;;  %1484 = vrot.lane.b32.xlu2 %v10000_v55, %s11731_s27  ;;  %v3651_v37 = vrot.slane %v3649_v24, 4  ;;  %v3650_v57 = vsel %vm11795_vm2, %v10290_v32, %v3649_v24  ;;  %5842 = vst [vmem:[#allocation4 + $0x78] sm:$0xf] %v5810_v45  ;;  %v3251_v55 = vor.u32 %v3250_v36, %v13786_v46  ;;  %v5042_v56 = vld [vmem:[#allocation3 + $0x10] sm:$0xf]  ;;  %v2047_v59 = vshll.u32 %v10057_v5, 16 }
 0x2dd   : > { %2494 = vrot.lane.b32.xlu0 %v2419_v10, %s11734_s30  ;;  %v815_v10 = vrot.slane %v813_v62, 5  ;;  %v799_v13 = vrot.slane %v797_v33, 5  ;;  %5843 = vst [vmem:[#allocation4 + $0x9c] sm:$0xf] %v5811_v17  ;;  %v11338_v23 = vld [vmem:[#allocation4 + $0xc] sm:$0xf] }
 0x2de   : > { %3346 = vrot.lane.b32.xlu1 %v3247_v7, %s11736_s7  ;;  %v3653_v43 = vsel %vm11795_vm2, %v3651_v37, %v3652_v50  ;;  %v2041_v7 = vshrl.u32 %v10056_v21, 16  ;;  %v5044_v50 = vld [vmem:[#allocation3 + $0x18] sm:$0xf]  ;;  %v3252_v37 = vrot.slane %v3251_v55, 4  ;;  %5844 = vst [vmem:[#allocation4 + $0xc0] sm:$0xf] %v5812_v15 }
 0x2df   : > { %v3714_v29 = vpop.permute.xlu0 %3713  ;;  %v816_v4 = vsel %vm11812_vm5, %v811_v40, %v815_v10  ;;  %v13866_v8 = vld [vmem:[%s11793_s25 + $0xdc] sm:$0xf]  ;;  %v10002_v52 = vld [vmem:[%s11793_s25 + $0xd8] sm:$0xf]  ;;  %v5124_v10 = vshrl.u32 %v5042_v56, 16  ;;  %v5138_v63 = vshll.u32 %v5044_v50, 16 }
 0x2e0   : > { %3796 = vst.msk [vmem:[#allocation2 + $0x68] sm:$0xf] %vm3769_vm14, %v3714_v29  ;;  %v1256_v9 = vpop.permute.xlu1 %1255  ;;  %v794_v29 = vshrl.u32 %v379_v22, 16  ;;  %v2043_v14 = vrot.slane %v2041_v7, 4  ;;  %v5043_v22 = vld [vmem:[#allocation3 + $0x14] sm:$0x1] }
 0x2e1   : > { %3833 = vst.msk [vmem:[#allocation2 + $0x68] sm:$0xf] %vm3806_vm15, %v11738_v61  ;;  %v10003_v36 = vld [vmem:[%s11793_s25 + $0xdc] sm:$0xf]  ;;  %v5046_v17 = vld [vmem:[#allocation3 + $0x20] sm:$0x1] }
 0x2e2   : > { %1336 = vst.msk [vmem:[#allocation2 + $0x70] sm:$0xf] %vm1307_vm8, %v1256_v9  ;;  %v286_v9 = vld [vmem:[%s11793_s25 + $0xb8] sm:$0xf]  ;;  %v796_v46 = vrot.slane %v794_v29, 4  ;;  %v2044_v49 = vor.u32 %v2043_v14, %v13858_v26  ;;  %v2425_v29 = vrot.slane %v13866_v8, 5 }
 0x2e3   : > { %v2108_v28 = vpop.permute.xlu2 %2107  ;;  %323 = vst.msk [vmem:[#allocation2 + $0x7c] sm:$0xf] %vm291_vm6, %v286_v9  ;;  %v2049_v9 = vrot.slane %v2047_v59, 5  ;;  %v14601_v3 = vld [vmem:[#allocation3 + $0x48] sm:$0xf] }
 0x2e4   : > { %2117 = vrot.lane.b32.xlu2 %v2026_v47, %s11733_s29  ;;  %v13832_v30 = vpop.f32.mrf.mxu1  ;;  %v10456_v47 = vld [vmem:[#allocation4 + $0x2c] sm:$0xf0]  ;;  %v800_v62 = vor.u32 %v799_v13, %v796_v46  ;;  %v5140_v46 = vrot.slane %v5138_v63, 5  ;;  %v14664_v18 = vld [vmem:[#allocation3 + $0x60] sm:$0xf] }
 0x2e5   : > { %2717 = vrot.lane.b32.xlu0 %v10163_v20, %s11735_s6  ;;  %8996 = vmatmul.bf16.gmra.mxu1 %v10735_v2  ;;  %v3254_v20 = vshll.u32 %v10216_v34, 16  ;;  %v5135_v2 = vshrl.u32 %v5044_v50, 16  ;;  %v10459_v34 = vor.u32 %v11338_v23, %v10456_v47 }
 0x2e6   : > { %3727 = vrot.lane.b32.xlu1 %v3653_v43, %s11737_s8  ;;  %v13862_v43 = vld [vmem:[#allocation3 + $0x24] sm:$0xf]  ;;  %v801_v40 = vrot.slane %v800_v62, 4 }
 0x2e7   : > { %v876_v41 = vpop.permute.xlu0 %875  ;;  %v3256_v32 = vrot.slane %v3254_v20, 5  ;;  %v5045_v20 = vld [vmem:[#allocation3 + $0x1c] sm:$0xf]  ;;  %v5137_v55 = vrot.slane %v5135_v2, 4  ;;  %v5159_v6 = vshrl.u32 %v13862_v43, 16  ;;  %v5162_v7 = vshll.u32 %v13862_v43, 16 }
 0x2e8   : > { %955 = vst.msk [vmem:[#allocation2 + $0x74] sm:$0xf] %vm925_vm7, %v876_v41  ;;  %v1479_v42 = vpop.permute.xlu1 %1478  ;;  %v11324_v11 = vld [vmem:[#allocation2 + $0x68] sm:$0xff]  ;;  %v5117_v41 = vor.u32 %v5116_v51, %v5113_v27  ;;  %v10055_v27 = vld [vmem:[%s11793_s25 + $0xd8] sm:$0xf]  ;;  %v5144_v50 = vshll.u32 %v5045_v20, 16 }
 0x2e9   : > { %1337 = vst.msk [vmem:[#allocation2 + $0x74] sm:$0xf] %vm1307_vm8, %v1258_v12  ;;  %v285_v12 = vld [vmem:[%s11793_s25 + $0xb4] sm:$0xf]  ;;  %4128 = vmatmul.bf16.gmra.mxu0 %v11324_v11  ;;  %v3257_v1 = vsel %vm11812_vm5, %v3252_v37, %v3256_v32  ;;  %v5148_v15 = vshrl.u32 %v5045_v20, 16  ;;  %v806_v37 = vsel %vm11812_vm5, %v801_v40, %v13813_v60  ;;  %v2028_v47 = vshrl.u32 %v10055_v27, 16 }
 0x2ea   : > { %1558 = vst.msk [vmem:[#allocation2 + $0x74] sm:$0xf] %vm1528_vm9, %v1479_v42  ;;  %v5118_v45 = vrot.slane %v5117_v41, 4  ;;  %v1015_v32 = vld [vmem:[%s11793_s25 + $0xd4] sm:$0x1]  ;;  %v2031_v62 = vshll.u32 %v10055_v27, 16 }
 0x2eb   : > { %322 = vst.msk [vmem:[#allocation2 + $0x78] sm:$0xf] %vm291_vm6, %v285_v12  ;;  %v10218_v12 = vld [vmem:[%s11793_s25 + $0xe8] sm:$0xf]  ;;  %v5048_v41 = vld [vmem:[#allocation3 + $0x28] sm:$0xf] }
 0x2ec   : > { %2715 = vrot.lane.b32.xlu2 %v10162_v38, %s11735_s6  ;;  %v13860_v39 = vpop.f32.mrf.mxu1  ;;  %v5130_v38 = vshll.u32 %v5043_v22, 16  ;;  %v5146_v2 = vrot.slane %v5144_v50, 5  ;;  %v5154_v60 = vshll.u32 %v5046_v17, 16  ;;  %v11347_v40 = vld [vmem:[#allocation4 + $0x54] sm:$0xf]  ;;  %v2030_v35 = vrot.slane %v2028_v47, 4 }
 0x2ed   : > { %3725 = vrot.lane.b32.xlu0 %v3650_v57, %s11737_s8  ;;  %v10109_v57 = vld [vmem:[%s11793_s25 + $0xd8] sm:$0xe]  ;;  %v10164_v17 = vld [vmem:[%s11793_s25 + $0xe4] sm:$0xf] }
 0x2ee   : > { %1267 = vrot.lane.b32.xlu1 %v1195_v44, %s11730_s26  ;;  %v2489_v54 = vpop.permute.xlu2 %2488  ;;  %v10129_v11 = vrot.slane %v10109_v57, 9  ;;  %v5132_v14 = vrot.slane %v5130_v38, 5  ;;  %v3268_v57 = vshll.u32 %v10218_v12, 16 }
 0x2ef   : > { %v1477_v58 = vpop.permute.xlu0 %1476 }
 0x2f0   : > { %1557 = vst.msk [vmem:[#allocation2 + $0x70] sm:$0xf] %vm1528_vm9, %v1477_v58  ;;  %v2487_v24 = vpop.permute.xlu1 %2486  ;;  %v5126_v58 = vrot.slane %v5124_v10, 4  ;;  %v2426_v13 = vsel %vm11795_vm2, %v10129_v11, %v2425_v29  ;;  %v5813_v10 = vld [vmem:[#allocation3 + $0x30] sm:$0xf]  ;;  %v13912_v20 = vrot.slane %v3268_v57, 5 }
 0x2f1   : > { %2188 = vst.msk [vmem:[#allocation2 + $0x70] sm:$0xf] %vm2159_vm10, %v2108_v28  ;;  %v5120_v28 = vshll.u32 %v5042_v56, 16  ;;  %v5141_v56 = vor.u32 %v5140_v46, %v5137_v55  ;;  %v10492_v11 = vld [vmem:[#allocation4 + $0x74] sm:$0xf0] }
 0x2f2   : > { %2567 = vst.msk [vmem:[#allocation2 + $0x70] sm:$0xf] %vm15547_vm11, %v2487_v24  ;;  %v2045_v24 = vrot.slane %v2044_v49, 4  ;;  %v10495_v43 = vor.u32 %v11347_v40, %v10492_v11 }
 0x2f3   : > { %v5122_v33 = vrot.slane %v5120_v28, 5  ;;  %v1196_v28 = vrot.slane %v1194_v16, 4  ;;  %v2033_v16 = vrot.slane %v2031_v62, 5  ;;  %5845 = vst [vmem:[#allocation4 + $0xe4] sm:$0xf] %v5813_v10 }
 0x2f4   : > { %3348 = vrot.lane.b32.xlu2 %v3257_v1, %s11736_s7  ;;  %v13894_v23 = vpop.f32.mrf.mxu1  ;;  %v5142_v1 = vrot.slane %v5141_v56, 4  ;;  %v2050_v22 = vsel %vm11812_vm5, %v2045_v24, %v2049_v9  ;;  %v5049_v24 = vld [vmem:[#allocation3 + $0x2c] sm:$0x1] }
 0x2f5   : > { %887 = vrot.lane.b32.xlu0 %v816_v4, %s11732_s28  ;;  %9223 = vmatmul.bf16.vlgmr.msrb.gmra.mxu1 %v10459_v34  ;;  %v5123_v51 = vsel %vm11812_vm5, %v5118_v45, %v5122_v33  ;;  %v5127_v4 = vor.u32 %v5126_v58, %v5122_v33  ;;  %v5168_v34 = vshll.u32 %v5048_v41, 16  ;;  %v5172_v45 = vshrl.u32 %v5048_v41, 16 }
 0x2f6   : > { %1490 = vrot.lane.b32.xlu1 %v10003_v36, %s11731_s27  ;;  %v3339_v44 = vpop.permute.xlu2 %3338  ;;  %5504 = vst [vmem:[#allocation4 + $0x4c] sm:$0xf] %v5123_v51  ;;  %v1197_v36 = vrot.slane %v1015_v32, 5  ;;  %v5147_v33 = vsel %vm11812_vm5, %v5142_v1, %v5146_v2  ;;  %v5161_v58 = vrot.slane %v5159_v6, 4  ;;  %v5050_v51 = vld [vmem:[#allocation3 + $0x30] sm:$0xf] }
 0x2f7   : > { %v2110_v42 = vpop.permute.xlu0 %2109  ;;  %v5128_v5 = vrot.slane %v5127_v4, 4  ;;  %v5170_v27 = vrot.slane %v5168_v34, 5  ;;  %v10219_v4 = vld [vmem:[%s11793_s25 + $0xec] sm:$0x1]  ;;  %5506 = vst [vmem:[#allocation4 + $0x94] sm:$0xf] %v5147_v33 }
 0x2f8   : > { %2189 = vst.msk [vmem:[#allocation2 + $0x74] sm:$0xf] %vm2159_vm10, %v2110_v42  ;;  %v2710_v21 = vpop.permute.xlu1 %2709  ;;  %v5150_v42 = vrot.slane %v5148_v15, 4  ;;  %v5174_v46 = vrot.slane %v5172_v45, 4  ;;  %v1198_v50 = vsel %vm11795_vm2, %v1196_v28, %v1197_v36  ;;  %v10165_v15 = vld [vmem:[%s11793_s25 + $0xe8] sm:$0xf] }
 0x2f9   : > { %2568 = vst.msk [vmem:[#allocation2 + $0x74] sm:$0xf] %vm15547_vm11, %v2489_v54  ;;  %v5133_v49 = vsel %vm11812_vm5, %v5128_v5, %v5132_v14  ;;  %v10271_v32 = vld [vmem:[%s11793_s25 + $0xe4] sm:$0xe]  ;;  %v3278_v62 = vshll.u32 %v10219_v4, 16  ;;  %v5183_v57 = vshrl.u32 %v5050_v51, 16 }
 0x2fa   : > { %2789 = vst.msk [vmem:[#allocation2 + $0x74] sm:$0xf] %vm15578_vm0, %v2710_v21  ;;  %vm15580_vm0 = vcmask 519616   ;;  %v5151_v63 = vor.u32 %v5150_v42, %v5146_v2  ;;  %v5814_v21 = vld [vmem:[#allocation3 + $0x34] sm:$0xf]  ;;  %v5175_v14 = vor.u32 %v5174_v46, %v5170_v27  ;;  %v10291_v28 = vrot.slane %v10271_v32, 9 }
 0x2fb   : > { %5846 = vst [vmem:[#allocation4 + $0x108] sm:$0xf] %v5814_v21  ;;  %v13932_v2 = vld [vmem:[%s11793_s25 + $0xe8] sm:$0xf]  ;;  %v3280_v21 = vrot.slane %v3278_v62, 5  ;;  %v2427_v46 = vrot.slane %v2425_v29, 4 }
 0x2fc   : > { %885 = vrot.lane.b32.xlu2 %v806_v37, %s11732_s28  ;;  %v5152_v9 = vrot.slane %v5151_v63, 4  ;;  %5505 = vst [vmem:[#allocation4 + $0x70] sm:$0xf] %v5133_v49  ;;  %v13926_v41 = vpop.f32.mrf.mxu1  ;;  %v3656_v10 = vrot.slane %v13932_v2, 5  ;;  %v10217_v63 = vld [vmem:[%s11793_s25 + $0xe4] sm:$0xf] }
 0x2fd   : > { %1488 = vrot.lane.b32.xlu0 %v10002_v52, %s11731_s27  ;;  %v3272_v52 = vshrl.u32 %v10218_v12, 16  ;;  %v5164_v12 = vrot.slane %v5162_v7, 5  ;;  %v5051_v49 = vld [vmem:[#allocation3 + $0x34] sm:$0xf]  ;;  %v3262_v33 = vshll.u32 %v10217_v63, 16  ;;  %s15397_s27 = scalar_lea.vmem %s15543_s5, %s11310_s11 }
 0x2fe   : > { %2498 = vrot.lane.b32.xlu1 %v2426_v13, %s11734_s30  ;;  %v3720_v38 = vpop.permute.xlu2 %3719  ;;  %v5178_v13 = vshll.u32 %v5049_v24, 16  ;;  %v5192_v40 = vshll.u32 %v5051_v49, 16  ;;  %v5196_v24 = vshrl.u32 %v5051_v49, 16  ;;  %v10528_v32 = vld [vmem:[#allocation4 + $0xbc] sm:$0xf0] }
 0x2ff   : > { %v2708_v54 = vpop.permute.xlu0 %2707  ;;  %v3274_v55 = vrot.slane %v3272_v52, 4  ;;  %v5165_v37 = vor.u32 %v5164_v12, %v5161_v58  ;;  %v5186_v52 = vshll.u32 %v5050_v51, 16  ;;  %v288_v49 = vld [vmem:[%s11793_s25 + $0xc4] sm:$0xf] }
 0x300   : > { %2788 = vst.msk [vmem:[#allocation2 + $0x70] sm:$0xf] %vm15579_vm12, %v2708_v54  ;;  %v3718_v59 = vpop.permute.xlu1 %3717  ;;  %vm15581_vm12 = vmmov %vm15580_vm0  ;;  %v2034_v54 = vor.u32 %v2033_v16, %v2030_v35  ;;  %v5180_v56 = vrot.slane %v5178_v13, 5  ;;  %v10111_v35 = vld [vmem:[%s11793_s25 + $0xe0] sm:$0x1]  ;;  %v3259_v16 = vshrl.u32 %v10217_v63, 16 }
 0x301   : > { %3419 = vst.msk [vmem:[#allocation2 + $0x70] sm:$0xf] %vm15580_vm0, %v3339_v44  ;;  %v5156_v44 = vrot.slane %v5154_v60, 5  ;;  %v3275_v47 = vor.u32 %v3274_v55, %v13912_v20  ;;  %v5166_v42 = vrot.slane %v5165_v37, 4  ;;  %v2428_v13 = vrot.slane %v10111_v35, 5 }
 0x302   : > { %3798 = vst.msk [vmem:[#allocation2 + $0x70] sm:$0xf] %vm3769_vm14, %v3718_v59  ;;  %v5176_v59 = vrot.slane %v5175_v14, 4  ;;  %v2035_v1 = vrot.slane %v2034_v54, 4  ;;  %v5052_v54 = vld [vmem:[#allocation3 + $0x38] sm:$0x1] }
 0x303   : > { %3835 = vst.msk [vmem:[#allocation2 + $0x70] sm:$0xf] %vm3806_vm15, %v11738_v61  ;;  %v5157_v5 = vsel %vm11812_vm5, %v5152_v9, %v5156_v44  ;;  %v5171_v60 = vsel %vm11812_vm5, %v5166_v42, %v5170_v27  ;;  %v3276_v36 = vrot.slane %v3275_v47, 4  ;;  %v5185_v9 = vrot.slane %v5183_v57, 4  ;;  %v5816_v27 = vld [vmem:[#allocation3 + $0x40] sm:$0xf] }
 0x304   : > { %1269 = vrot.lane.b32.xlu2 %v1198_v50, %s11730_s26  ;;  %5507 = vst [vmem:[#allocation4 + $0xb8] sm:$0xf] %v5157_v5  ;;  %v5181_v34 = vsel %vm11812_vm5, %v5176_v59, %v5180_v56  ;;  %v2040_v11 = vsel %vm11812_vm5, %v2035_v1, %v13858_v26  ;;  %v5188_v44 = vrot.slane %v5186_v52, 5  ;;  %v5815_v26 = vld [vmem:[#allocation3 + $0x3c] sm:$0xf]  ;;  %v13958_v4 = vpop.f32.mrf.mxu1  ;;  %v3264_v50 = vrot.slane %v3262_v33, 5 }
 0x305   : > { %2121 = vrot.lane.b32.xlu0 %v2050_v22, %s11733_s29  ;;  %9228 = vmatmul.bf16.gmra.mxu1 %v10495_v43  ;;  %5508 = vst [vmem:[#allocation4 + $0xdc] sm:$0xf] %v5171_v60  ;;  %v3281_v12 = vsel %vm11812_vm5, %v3276_v36, %v3280_v21  ;;  %v5198_v43 = vrot.slane %v5196_v24, 4  ;;  %v5202_v5 = vshll.u32 %v5052_v54, 16  ;;  %v2429_v8 = vsel %vm11795_vm2, %v2427_v46, %v2428_v13  ;;  %v11496_v47 = vld [vmem:[%s15541_s3 + $0x78] sm:$0xff] }
 0x306   : > { %2721 = vrot.lane.b32.xlu1 %v10165_v15, %s11735_s6  ;;  %v1260_v22 = vpop.permute.xlu2 %1259  ;;  %5509 = vst [vmem:[#allocation4 + $0x100] sm:$0xf] %v5181_v34  ;;  %v5189_v51 = vor.u32 %v5188_v44, %v5185_v9  ;;  %v5053_v1 = vld [vmem:[#allocation3 + $0x3c] sm:$0xf]  ;;  %11656 = vmatpush.bf16.msra.mxu2 %v11496_v47  ;;  %v287_v21 = vld [vmem:[%s11793_s25 + $0xc0] sm:$0xf] }
 0x307   : > { %v3341_v6 = vpop.permute.xlu0 %3340  ;;  %5847 = vst [vmem:[#allocation4 + $0x12c] sm:$0xf] %v5815_v26  ;;  %v5204_v42 = vrot.slane %v5202_v5, 5  ;;  %9037 = vmatpush.bf16.msrb.mxu0 %v11496_v47  ;;  %v5207_v63 = vshrl.u32 %v5053_v1, 16  ;;  %v5210_v34 = vshll.u32 %v5053_v1, 16  ;;  %vm15582_vm0 = vcmask 454016  }
 0x308   : > { %3420 = vst.msk [vmem:[#allocation2 + $0x74] sm:$0xf] %vm15581_vm12, %v3341_v6  ;;  %v880_v7 = vpop.permute.xlu1 %879  ;;  %v5194_v6 = vrot.slane %v5192_v40, 5  ;;  %v5190_v37 = vrot.slane %v5189_v51, 4  ;;  %v5054_v40 = vld [vmem:[#allocation3 + $0x40] sm:$0xf]  ;;  %vm15583_vm12 = vmmov %vm15582_vm0 }
 0x309   : > { %3799 = vst.msk [vmem:[#allocation2 + $0x74] sm:$0xf] %vm3769_vm14, %v3720_v38  ;;  %v3657_v38 = vsel %vm11795_vm2, %v10291_v28, %v3656_v10  ;;  %v11495_v28 = vld [vmem:[%s15541_s3 + $0x70] sm:$0xff]  ;;  %v5216_v35 = vshll.u32 %v5054_v40, 16  ;;  %v5209_v9 = vrot.slane %v5207_v63, 4  ;;  %v5212_v44 = vrot.slane %v5210_v34, 5 }
 0x30a   : > { %3836 = vst.msk [vmem:[#allocation2 + $0x74] sm:$0xf] %vm3806_vm15, %v11738_v61  ;;  %v5199_v56 = vor.u32 %v5198_v43, %v5194_v6  ;;  %v5195_v62 = vsel %vm11812_vm5, %v5190_v37, %v5194_v6  ;;  %11657 = vmatpush.bf16.msra.mxu2 %v11495_v28  ;;  %v5817_v26 = vld [vmem:[#allocation3 + $0x48] sm:$0xf]  ;;  %v5059_v51 = vld [vmem:[#allocation3 + $0x54] sm:$0xf] }
 0x30b   : > { %957 = vst.msk [vmem:[#allocation2 + $0x7c] sm:$0xf] %vm925_vm7, %v880_v7  ;;  %v11356_v7 = vld [vmem:[#allocation4 + $0x9c] sm:$0xf]  ;;  %9038 = vmatpush.bf16.msrb.mxu0 %v11495_v28  ;;  %v5218_v24 = vrot.slane %v5216_v35, 5  ;;  %v5213_v6 = vor.u32 %v5212_v44, %v5209_v9  ;;  %v5258_v5 = vshll.u32 %v5059_v51, 16 }
 0x30c   : > { %2119 = vrot.lane.b32.xlu2 %v2040_v11, %s11733_s29  ;;  %5848 = vst [vmem:[#allocation4 + $0x150] sm:$0xf] %v5816_v27  ;;  %v10531_v59 = vor.u32 %v11356_v7, %v10528_v32  ;;  %v5200_v52 = vrot.slane %v5199_v56, 4  ;;  %v5818_v27 = vld [vmem:[#allocation3 + $0x4c] sm:$0xf]  ;;  %v5255_v32 = vshrl.u32 %v5059_v51, 16 }
 0x30d   : > { %2719 = vrot.lane.b32.xlu0 %v10164_v17, %s11735_s6  ;;  %v3261_v17 = vrot.slane %v3259_v16, 4  ;;  %5510 = vst [vmem:[#allocation4 + $0x124] sm:$0xf] %v5195_v62  ;;  %v5220_v16 = vshrl.u32 %v5054_v40, 16  ;;  %v11365_v13 = vld [vmem:[#allocation4 + $0xe4] sm:$0xf] }
 0x30e   : > { %3729 = vrot.lane.b32.xlu1 %v3657_v38, %s11737_s8  ;;  %v1483_v15 = vpop.permute.xlu2 %1482  ;;  %v5205_v60 = vsel %vm11812_vm5, %v5200_v52, %v5204_v42  ;;  %324 = vst.msk [vmem:[#allocation2 + $0x80] sm:$0xf] %vm291_vm6, %v287_v21  ;;  %v11494_v38 = vld [vmem:[%s15541_s3 + $0x68] sm:$0xff]  ;;  %v5055_v37 = vld [vmem:[#allocation3 + $0x44] sm:$0x1]  ;;  %v5214_v43 = vrot.slane %v5213_v6, 4 }
 0x30f   : > { %v878_v45 = vpop.permute.xlu0 %877  ;;  %v3265_v29 = vor.u32 %v3264_v50, %v3261_v17  ;;  %5511 = vst [vmem:[#allocation4 + $0x148] sm:$0xf] %v5205_v60  ;;  %11658 = vmatpush.bf16.msra.mxu2 %v11494_v38  ;;  %9039 = vmatpush.bf16.msrb.mxu0 %v11494_v38  ;;  %v3658_v17 = vrot.slane %v3656_v10, 4  ;;  %v5060_v54 = vld [vmem:[#allocation3 + $0x58] sm:$0xf]  ;;  %v5226_v2 = vshll.u32 %v5055_v37, 16 }
 0x310   : > { %956 = vst.msk [vmem:[#allocation2 + $0x78] sm:$0xf] %vm925_vm7, %v878_v45  ;;  %v1481_v55 = vpop.permute.xlu1 %1480  ;;  %v13982_v45 = vpop.f32.mrf.mxu1  ;;  %v10564_v7 = vld [vmem:[#allocation4 + $0x104] sm:$0xf0]  ;;  %v5268_v56 = vshrl.u32 %v5060_v54, 16  ;;  %v11492_v42 = vld [vmem:[%s15541_s3 + $0x58] sm:$0xff] }
 0x311   : > { %1338 = vst.msk [vmem:[#allocation2 + $0x78] sm:$0xf] %vm1307_vm8, %v1260_v22  ;;  %v11325_v58 = vld [vmem:[#allocation2 + $0x70] sm:$0xff]  ;;  %v3266_v22 = vrot.slane %v3265_v29, 4  ;;  %v5219_v29 = vsel %vm11812_vm5, %v5214_v43, %v5218_v24  ;;  %v10567_v1 = vor.u32 %v11365_v13, %v10564_v7  ;;  %v5228_v63 = vrot.slane %v5226_v2, 5 }
 0x312   : > { %1559 = vst.msk [vmem:[#allocation2 + $0x78] sm:$0xf] %vm1528_vm9, %v1481_v55  ;;  %4133 = vmatmul.bf16.gmra.mxu0 %v11325_v58  ;;  %v10273_v58 = vld [vmem:[%s11793_s25 + $0xec] sm:$0x1]  ;;  %v5270_v28 = vrot.slane %v5268_v56, 4 }
 0x313   : > { %325 = vst.msk [vmem:[#allocation2 + $0x84] sm:$0xf] %vm291_vm6, %v288_v49  ;;  %v3271_v33 = vsel %vm11812_vm5, %v3266_v22, %v13912_v20  ;;  %v11493_v20 = vld [vmem:[%s15541_s3 + $0x60] sm:$0xff]  ;;  %v3659_v50 = vrot.slane %v10273_v58, 5  ;;  %v5061_v22 = vld [vmem:[#allocation3 + $0x5c] sm:$0x1] }
 0x314   : > { %2500 = vrot.lane.b32.xlu2 %v2429_v8, %s11734_s30  ;;  %5849 = vst [vmem:[#allocation4 + $0x174] sm:$0xf] %v5817_v26  ;;  %11659 = vmatpush.bf16.msra.mxu2 %v11493_v20  ;;  %v4109_v60 = vpop.f32.mrf.mxu0  ;;  %v5056_v34 = vld [vmem:[#allocation3 + $0x48] sm:$0xf]  ;;  %v5274_v40 = vshll.u32 %v5061_v22, 16 }
 0x315   : > { %3352 = vrot.lane.b32.xlu0 %v3281_v12, %s11736_s7  ;;  %9233 = vmatmul.bf16.gmra.mxu1 %v10531_v59  ;;  %v5222_v12 = vrot.slane %v5220_v16, 4  ;;  %5850 = vst [vmem:[#allocation4 + $0x198] sm:$0xf] %v5818_v27  ;;  %v3660_v62 = vsel %vm11795_vm2, %v3658_v17, %v3659_v50  ;;  %v5257_v59 = vrot.slane %v5255_v32, 4  ;;  %v5231_v38 = vshrl.u32 %v5056_v34, 16  ;;  %v11490_v17 = vld [vmem:[%s15541_s3 + $0x48] sm:$0xff] }
 0x316   : > { %v2491_v36 = vpop.permute.xlu2 %2490  ;;  %9040 = vmatpush.bf16.msrb.mxu0 %v11493_v20  ;;  %5512 = vst [vmem:[#allocation4 + $0x16c] sm:$0xf] %v5219_v29  ;;  %v5057_v27 = vld [vmem:[#allocation3 + $0x4c] sm:$0xf]  ;;  %v11489_v29 = vld [vmem:[%s15541_s3 + $0x40] sm:$0xff] }
 0x317   : > { %v1262_v14 = vpop.permute.xlu0 %1261  ;;  %v5223_v46 = vor.u32 %v5222_v12, %v5218_v24  ;;  %v5276_v24 = vrot.slane %v5274_v40, 5  ;;  %v5240_v20 = vshll.u32 %v5057_v27, 16  ;;  %v5244_v6 = vshrl.u32 %v5057_v27, 16 }
 0x318   : > { %1339 = vst.msk [vmem:[#allocation2 + $0x7c] sm:$0xf] %vm1307_vm8, %v1262_v14  ;;  %v2114_v57 = vpop.permute.xlu1 %2113  ;;  %v5264_v14 = vshll.u32 %v5060_v54, 16  ;;  %v14004_v10 = vpop.f32.mrf.mxu1  ;;  %11660 = vmatpush.bf16.msra.mxu2 %v11492_v42  ;;  %v5233_v37 = vrot.slane %v5231_v38, 4 }
 0x319   : > { %1560 = vst.msk [vmem:[#allocation2 + $0x7c] sm:$0xf] %vm1528_vm9, %v1483_v15  ;;  %v5224_v47 = vrot.slane %v5223_v46, 4  ;;  %v14042_v56 = vrot.slane %v5240_v20, 5  ;;  %v14047_v2 = vrot.slane %v5244_v6, 4 }
 0x31a   : > { %2191 = vst.msk [vmem:[#allocation2 + $0x7c] sm:$0xf] %vm2159_vm10, %v2114_v57  ;;  %v5260_v57 = vrot.slane %v5258_v5, 5  ;;  %v5266_v52 = vrot.slane %v5264_v14, 5  ;;  %9041 = vmatpush.bf16.msrb.mxu0 %v11492_v42  ;;  %v5819_v14 = vld [vmem:[#allocation3 + $0x54] sm:$0xf] }
 0x31b   : > { %v5229_v35 = vsel %vm11812_vm5, %v5224_v47, %v5228_v63  ;;  %v4802_v42 = vld [vmem:[#allocation3 + $0x6c] sm:$0xf]  ;;  %5851 = vst [vmem:[#allocation4 + $0x1bc] sm:$0xf] %v5819_v14  ;;  %v5820_v63 = vld [vmem:[#allocation3 + $0x58] sm:$0xf] }
 0x31c   : > { %3350 = vrot.lane.b32.xlu2 %v3271_v33, %s11736_s7  ;;  %v5261_v49 = vor.u32 %v5260_v57, %v5257_v59  ;;  %v11491_v33 = vld [vmem:[%s15541_s3 + $0x50] sm:$0xff]  ;;  %5513 = vst [vmem:[#allocation4 + $0x190] sm:$0xf] %v5229_v35 }
 0x31d   : > { %11661 = vmatpush.bf16.msra.mxu2 %v11491_v33  ;;  %v11374_v57 = vld [vmem:[#allocation4 + $0x12c] sm:$0xf]  ;;  %5852 = vst [vmem:[#allocation4 + $0x1e0] sm:$0xf] %v5820_v63 }
 0x31e   : > { %v2714_v15 = vpop.permute.xlu2 %2713  ;;  %v5262_v58 = vrot.slane %v5261_v49, 4  ;;  %9042 = vmatpush.bf16.msrb.mxu0 %v11491_v33 }
 0x31f   : > { %v2112_v11 = vpop.permute.xlu0 %2111 }
 0x320   : > { %2190 = vst.msk [vmem:[#allocation2 + $0x78] sm:$0xf] %vm2159_vm10, %v2112_v11  ;;  %v2712_v55 = vpop.permute.xlu1 %2711  ;;  %v5271_v11 = vor.u32 %v5270_v28, %v5266_v52  ;;  %v5267_v50 = vsel %vm11812_vm5, %v5262_v58, %v5266_v52  ;;  %v14035_v7 = vpop.f32.mrf.mxu1  ;;  %v10600_v52 = vld [vmem:[#allocation4 + $0x14c] sm:$0xf0] }
 0x321   : > { %2569 = vst.msk [vmem:[#allocation2 + $0x78] sm:$0xf] %vm15547_vm11, %v2491_v36  ;;  %v14016_v36 = vld [vmem:[%s15540_s2] ss:$0 sm:$0xff]  ;;  %11662 = vmatpush.bf16.msra.mxu2 %v11490_v17 }
 0x322   : > { %2790 = vst.msk [vmem:[#allocation2 + $0x78] sm:$0xf] %vm15582_vm0, %v2712_v55  ;;  %v4110_v21 = vadd.f32 %v14016_v36, %v4109_v60  ;;  %v5234_v55 = vshll.u32 %v5056_v34, 16  ;;  %v5272_v44 = vrot.slane %v5271_v11, 4  ;;  %vm15584_vm0 = vcmask 519616   ;;  %9043 = vmatpush.bf16.msrb.mxu0 %v11490_v17 }
 0x323   : > { %5516 = vst [vmem:[#allocation4 + $0x1fc] sm:$0xf] %v5267_v50  ;;  %v5247_v60 = vor.u32 %v14047_v2, %v14042_v56  ;;  %v5063_v11 = vld [vmem:[#allocation3 + $0x64] sm:$0xf] }
 0x324   : > { %3731 = vrot.lane.b32.xlu2 %v3660_v62, %s11737_s8  ;;  %v4172_v16 = vmax.f32 %v4110_v21, 0.0  ;;  %v5277_v54 = vsel %vm11812_vm5, %v5272_v44, %v5276_v24  ;;  %v5236_v43 = vrot.slane %v5234_v55, 5  ;;  %v10603_v55 = vor.u32 %v11374_v57, %v10600_v52  ;;  %v5064_v57 = vld [vmem:[#allocation3 + $0x68] sm:$0x1] }
 0x325   : > { %9238 = vmatmul.bf16.gmra.mxu1 %v10567_v1  ;;  %5517 = vst [vmem:[#allocation4 + $0x220] sm:$0xf] %v5277_v54  ;;  %11663 = vmatpush.bf16.msra.mxu2 %v11489_v29  ;;  %v5288_v6 = vshll.u32 %v5063_v11, 16 }
 0x326   : > { %v3722_v9 = vpop.permute.xlu2 %3721  ;;  %v4353_v26 = vpack.c.bf16 %v4172_v16, %v4172_v16  ;;  %v5237_v47 = vor.u32 %v5236_v43, %v5233_v37  ;;  %9044 = vmatpush.bf16.msrb.mxu0 %v11489_v29 }
 0x327   : > { %v2493_v8 = vpop.permute.xlu0 %2492 }
 0x328   : > { %2570 = vst.msk [vmem:[#allocation2 + $0x7c] sm:$0xf] %vm15547_vm11, %v2493_v8  ;;  %v3345_v12 = vpop.permute.xlu1 %3344  ;;  %v4528_v46 = vshrl.u32 %v4353_v26, 16  ;;  %v4531_v13 = vshll.u32 %v4353_v26, 16  ;;  %v5062_v8 = vld [vmem:[#allocation3 + $0x60] sm:$0xf] }
 0x329   : > { %2791 = vst.msk [vmem:[#allocation2 + $0x7c] sm:$0xf] %vm15583_vm12, %v2714_v15  ;;  %vm15585_vm12 = vmmov %vm15584_vm0  ;;  %v4111_v15 = vpop.f32.mrf.mxu0  ;;  %v5279_v34 = vshrl.u32 %v5062_v8, 16  ;;  %v5282_v21 = vshll.u32 %v5062_v8, 16  ;;  %v5238_v35 = vrot.slane %v5237_v47, 4  ;;  %v5290_v47 = vrot.slane %v5288_v6, 5 }
 0x32a   : > { %3422 = vst.msk [vmem:[#allocation2 + $0x7c] sm:$0xf] %vm15584_vm0, %v3345_v12  ;;  %v14039_v32 = vrot.slane %v4528_v46, 7  ;;  %v4112_v5 = vadd.f32 %v14016_v36, %v4111_v15  ;;  %v11400_v27 = vld [vmem:[#allocation4 + $0x1fc] sm:$0xf]  ;;  %v5292_v46 = vshrl.u32 %v5063_v11, 16 }
 0x32b   : > { %v5281_v58 = vrot.slane %v5279_v34, 4  ;;  %v5284_v38 = vrot.slane %v5282_v21, 5  ;;  %v5243_v44 = vsel %vm11812_vm5, %v5238_v35, %v14042_v56  ;;  %v5298_v35 = vshll.u32 %v5064_v57, 16 }
 0x32c   : > { %v4533_v62 = vor.u32 %v4531_v13, %v14039_v32  ;;  %v4173_v59 = vmax.f32 %v4112_v5, 0.0  ;;  %v4534_v24 = vrot.slane %v14039_v32, 4  ;;  %v14064_v13 = vpop.f32.mrf.mxu1  ;;  %5514 = vst [vmem:[#allocation4 + $0x1b4] sm:$0xf] %v5243_v44  ;;  %v4806_v32 = vld [vmem:[#allocation3 + $0x74] sm:$0x1] }
 0x32d   : > { %v5285_v20 = vor.u32 %v5284_v38, %v5281_v58  ;;  %vm15586_vm0 = vcmask 454016  }
 0x32e   : > { %v884_v1 = vpop.permute.xlu2 %883  ;;  %v4354_v28 = vpack.c.bf16 %v4173_v59, %v4173_v59  ;;  %v4803_v40 = vsel %vm13042_vm3, %v4533_v62, %v4802_v42  ;;  %v5294_v62 = vrot.slane %v5292_v46, 4 }
 0x32f   : > { %v3343_v51 = vpop.permute.xlu0 %3342  ;;  %959 = vst.msk [vmem:[#allocation2 + $0x84] sm:$0xf] %vm925_vm7, %v884_v1  ;;  %v5286_v29 = vrot.slane %v5285_v20, 4 }
 0x330   : > { %3421 = vst.msk [vmem:[#allocation2 + $0x78] sm:$0xf] %vm15585_vm12, %v3343_v51  ;;  %v882_v22 = vpop.permute.xlu1 %881  ;;  %v4536_v16 = vshrl.u32 %v4354_v28, 16  ;;  %v4539_v33 = vshll.u32 %v4354_v28, 16  ;;  %v10700_v51 = vld [vmem:[#allocation4 + $0x21c] sm:$0xf0]  ;;  %v5295_v11 = vor.u32 %v5294_v62, %v5290_v47 }
 0x331   : > { %3800 = vst.msk [vmem:[#allocation2 + $0x78] sm:$0xf] %vm3769_vm14, %v3722_v9  ;;  %v4114_v9 = vpop.f32.mrf.mxu0  ;;  %v10703_v15 = vor.u32 %v11400_v27, %v10700_v51  ;;  %v5300_v51 = vrot.slane %v5298_v35, 5 }
 0x332   : > { %3837 = vst.msk [vmem:[#allocation2 + $0x78] sm:$0xf] %vm3806_vm15, %v11738_v61  ;;  %v4538_v12 = vrot.slane %v4536_v16, 7  ;;  %v4115_v26 = vadd.f32 %v14016_v36, %v4114_v9  ;;  %v10636_v9 = vld [vmem:[#allocation4 + $0x194] sm:$0xf0]  ;;  %v5296_v27 = vrot.slane %v5295_v11, 4 }
 0x333   : > { %958 = vst.msk [vmem:[#allocation2 + $0x80] sm:$0xf] %vm925_vm7, %v882_v22  ;;  %9080 = vmatmul.bf16.vlgmr.msra.gmra.mxu2 %v10703_v15  ;;  %v11392_v11 = vld [vmem:[#allocation4 + $0x1bc] sm:$0xf] }
 0x334   : > { %4804 = vst [vmem:[#allocation3 + $0x6c] sm:$0xf] %v4803_v40  ;;  %v4541_v17 = vor.u32 %v4539_v33, %v4538_v12  ;;  %v4174_v50 = vmax.f32 %v4115_v26, 0.0  ;;  %v4543_v37 = vrot.slane %v4538_v12, 4  ;;  %v5291_v40 = vsel %vm11812_vm5, %v5286_v29, %v5290_v47  ;;  %v11383_v33 = vld [vmem:[#allocation4 + $0x174] sm:$0xf] }
 0x335   : > { %9243 = vmatmul.bf16.gmra.mxu1 %v10603_v55  ;;  %v14080_v55 = vpop.f32.mrf.mxu1  ;;  %5518 = vst [vmem:[#allocation4 + $0x244] sm:$0xf] %v5291_v40  ;;  %v10639_v6 = vor.u32 %v11383_v33, %v10636_v9  ;;  %v5301_v15 = vsel %vm11812_vm5, %v5296_v27, %v5300_v51  ;;  %v10672_v33 = vld [vmem:[#allocation4 + $0x1dc] sm:$0xf0] }
 0x336   : > { %v1485_v54 = vpop.permute.xlu2 %1484  ;;  %v4355_v5 = vpack.c.bf16 %v4174_v50, %v4174_v50  ;;  %v4542_v8 = vsel %vm13086_vm1, %v4534_v24, %v4541_v17  ;;  %v4807_v1 = vsel %vm13099_vm13, %v4543_v37, %v4806_v32  ;;  %v4809_v24 = vld [vmem:[#allocation3 + $0x78] sm:$0xf]  ;;  %5519 = vst [vmem:[#allocation4 + $0x268] sm:$0xf] %v5301_v15 }
 0x337   : > { %v3724_v49 = vpop.permute.xlu0 %3723  ;;  %4805 = vst [vmem:[#allocation3 + $0x70] sm:$0xf] %v4542_v8 }
 0x338   : > { %3801 = vst.msk [vmem:[#allocation2 + $0x7c] sm:$0xf] %vm3769_vm14, %v3724_v49  ;;  %v1266_v43 = vpop.permute.xlu1 %1265  ;;  %v4545_v59 = vshrl.u32 %v4355_v5, 16  ;;  %v4548_v22 = vshll.u32 %v4355_v5, 16  ;;  %v289_v49 = vld [vmem:[%s11793_s25 + $0xcc] sm:$0xf] }
 0x339   : > { %3838 = vst.msk [vmem:[#allocation2 + $0x7c] sm:$0xf] %vm3806_vm15, %v11738_v61  ;;  %v4116_v28 = vpop.f32.mrf.mxu0  ;;  %v4813_v5 = vld [vmem:[#allocation3 + $0x80] sm:$0x1] }
 0x33a   : > { %1341 = vst.msk [vmem:[#allocation2 + $0x84] sm:$0xf] %vm1307_vm8, %v1266_v43  ;;  %v4547_v34 = vrot.slane %v4545_v59, 7  ;;  %v4117_v21 = vadd.f32 %v14016_v36, %v4116_v28  ;;  %v5822_v28 = vld [vmem:[#allocation3 + $0x64] sm:$0xf] }
 0x33b   : > { %v4892_v52 = vld [vmem:[#allocation3 + $0x6c] sm:$0x1]  ;;  %4808 = vst [vmem:[#allocation3 + $0x74] sm:$0x1] %v4807_v1  ;;  %v5821_v1 = vld [vmem:[#allocation3 + $0x60] sm:$0xf] }
 0x33c   : > { %v4893_v63 = vsel %vm13099_vm13, 0, %v4892_v52  ;;  %v4175_v16 = vmax.f32 %v4117_v21, 0.0  ;;  %v4550_v38 = vor.u32 %v4548_v22, %v4547_v34  ;;  %326 = vst.msk [vmem:[#allocation2 + $0x88] sm:$0xf] %vm291_vm6, %v289_v49  ;;  %v4551_v37 = vrot.slane %v4547_v34, 4 }
 0x33d   : > { %4894 = vst [vmem:[#allocation3 + $0x6c] sm:$0x1] %v4893_v63  ;;  %v11409_v34 = vld [vmem:[#allocation4 + $0x244] sm:$0xf] }
 0x33e   : > { %v2118_v58 = vpop.permute.xlu2 %2117  ;;  %v4356_v12 = vpack.c.bf16 %v4175_v16, %v4175_v16  ;;  %v4810_v46 = vsel %vm13042_vm3, %v4550_v38, %v4809_v24  ;;  %5853 = vst [vmem:[#allocation4 + $0x204] sm:$0xf] %v5821_v1  ;;  %v10736_v16 = vld [vmem:[#allocation4 + $0x264] sm:$0xf0] }
 0x33f   : > { %v1264_v14 = vpop.permute.xlu0 %1263  ;;  %4811 = vst [vmem:[#allocation3 + $0x78] sm:$0xf] %v4810_v46  ;;  %v10739_v9 = vor.u32 %v11409_v34, %v10736_v16  ;;  %v290_v24 = vld [vmem:[%s11793_s25 + $0xd0] sm:$0xf]  ;;  %v4993_v16 = vld [vmem:[#allocation3 + $0x70] sm:$0xf] }
 0x340   : > { %1340 = vst.msk [vmem:[#allocation2 + $0x80] sm:$0xf] %vm1307_vm8, %v1264_v14  ;;  %v11326_v42 = vld [vmem:[#allocation2 + $0x78] sm:$0xff]  ;;  %v2116_v44 = vpop.permute.xlu1 %2115  ;;  %v4553_v20 = vshrl.u32 %v4356_v12, 16  ;;  %v4556_v17 = vshll.u32 %v4356_v12, 16 }
 0x341   : > { %1561 = vst.msk [vmem:[#allocation2 + $0x80] sm:$0xf] %vm1528_vm9, %v1485_v54  ;;  %4138 = vmatmul.bf16.gmra.mxu0 %v11326_v42  ;;  %v4119_v62 = vpop.f32.mrf.mxu0  ;;  %v14092_v42 = vpop.f32.mrf.mxu1 }
 0x342   : > { %2192 = vst.msk [vmem:[#allocation2 + $0x80] sm:$0xf] %vm2159_vm10, %v2116_v44  ;;  %v4947_v50 = vld [vmem:[#allocation3 + $0x74] sm:$0x1]  ;;  %v4555_v43 = vrot.slane %v4553_v20, 7  ;;  %v4120_v52 = vadd.f32 %v14016_v36, %v4119_v62 }
 0x343   : > { %v4948_v54 = vsel %vm13213_vm4, 0, %v4947_v50  ;;  %5854 = vst [vmem:[#allocation4 + $0x228] sm:$0xf] %v5822_v28  ;;  %9085 = vmatmul.bf16.gmra.mxu2 %v10739_v9 }
 0x344   : > { %4949 = vst [vmem:[#allocation3 + $0x74] sm:$0x1] %v4948_v54  ;;  %v4558_v8 = vor.u32 %v4556_v17, %v4555_v43  ;;  %v4560_v29 = vrot.slane %v4555_v43, 4  ;;  %v4176_v22 = vmax.f32 %v4120_v52, 0.0  ;;  %v5065_v21 = vld [vmem:[#allocation3 + $0x6c] sm:$0xf]  ;;  %v10675_v17 = vor.u32 %v11392_v11, %v10672_v33 }
 0x345   : > { %9248 = vmatmul.bf16.gmra.mxu1 %v10639_v6  ;;  %v5306_v27 = vshll.u32 %v5065_v21, 16  ;;  %v4992_v46 = vld [vmem:[#allocation3 + $0x6c] sm:$0xf]  ;;  %327 = vst.msk [vmem:[#allocation2 + $0x8c] sm:$0xf] %vm291_vm6, %v290_v24  ;;  %vm15588_vm6 = vcmask 388416  }
 0x346   : > { %v2716_v32 = vpop.permute.xlu2 %2715  ;;  %v4559_v59 = vsel %vm13086_vm1, %v4551_v37, %v4558_v8  ;;  %v4814_v57 = vsel %vm13099_vm13, %v4560_v29, %v4813_v5  ;;  %v4895_v63 = vld [vmem:[#allocation3 + $0x78] sm:$0x1]  ;;  %v4357_v40 = vpack.c.bf16 %v4176_v22, %v4176_v22  ;;  %5024 = vst [vmem:[#allocation4 + $0x288] sm:$0xf] %v4992_v46  ;;  %v5066_v8 = vld [vmem:[#allocation3 + $0x70] sm:$0xf] }
 0x347   : > { %v1487_v26 = vpop.permute.xlu0 %1486  ;;  %4812 = vst [vmem:[#allocation3 + $0x7c] sm:$0xf] %v4559_v59  ;;  %v4896_v49 = vsel %vm13099_vm13, 0, %v4895_v63  ;;  %v11520_v22 = vld [vmem:[%s15541_s3 + $0x138] sm:$0xff]  ;;  %v5312_v63 = vshll.u32 %v5066_v8, 16  ;;  %v5316_v34 = vshrl.u32 %v5066_v8, 16 }
 0x348   : > { %1562 = vst.msk [vmem:[#allocation2 + $0x84] sm:$0xf] %vm1528_vm9, %v1487_v26  ;;  %v2497_v14 = vpop.permute.xlu1 %2496  ;;  %v4562_v38 = vshrl.u32 %v4357_v40, 16  ;;  %v5303_v26 = vshrl.u32 %v5065_v21, 16  ;;  %v4565_v20 = vshll.u32 %v4357_v40, 16  ;;  %9304 = vmatpush.bf16.msrb.mxu2 %v11520_v22 }
 0x349   : > { %2193 = vst.msk [vmem:[#allocation2 + $0x84] sm:$0xf] %vm2159_vm10, %v2118_v58  ;;  %v4121_v12 = vpop.f32.mrf.mxu0  ;;  %v14108_v50 = vpop.f32.mrf.mxu1  ;;  %v5314_v9 = vrot.slane %v5312_v63, 5 }
 0x34a   : > { %2572 = vst.msk [vmem:[#allocation2 + $0x84] sm:$0xf] %vm15547_vm11, %v2497_v14  ;;  %v4564_v51 = vrot.slane %v4562_v38, 7  ;;  %v4122_v6 = vadd.f32 %v14016_v36, %v4121_v12  ;;  %v5305_v43 = vrot.slane %v5303_v26, 4 }
 0x34b   : > { %4815 = vst [vmem:[#allocation3 + $0x80] sm:$0x1] %v4814_v57  ;;  %v5067_v46 = vld [vmem:[#allocation3 + $0x74] sm:$0x1] }
 0x34c   : > { %4897 = vst [vmem:[#allocation3 + $0x78] sm:$0x1] %v4896_v49  ;;  %v4177_v54 = vmax.f32 %v4122_v6, 0.0  ;;  %v4567_v5 = vor.u32 %v4565_v20, %v4564_v51  ;;  %v4568_v21 = vrot.slane %v4564_v51, 4  ;;  %v11401_v20 = vld [vmem:[#allocation4 + $0x204] sm:$0xf] }
 0x34d   : > { %5025 = vst [vmem:[#allocation4 + $0x2ac] sm:$0xf] %v4993_v16 }
 0x34e   : > { %v3349_v35 = vpop.permute.xlu2 %3348  ;;  %v4358_v14 = vpack.c.bf16 %v4177_v54, %v4177_v54 }
 0x34f   : > { %v2495_v47 = vpop.permute.xlu0 %2494 }
 0x350   : > { %2571 = vst.msk [vmem:[#allocation2 + $0x80] sm:$0xf] %vm15547_vm11, %v2495_v47  ;;  %v3347_v58 = vpop.permute.xlu1 %3346  ;;  %vm15587_vm11 = vmmov %vm15585_vm12  ;;  %v4816_v47 = vld [vmem:[#allocation3 + $0x84] sm:$0xf]  ;;  %v4570_v59 = vshrl.u32 %v4358_v14, 16  ;;  %v4573_v57 = vshll.u32 %v4358_v14, 16 }
 0x351   : > { %2792 = vst.msk [vmem:[#allocation2 + $0x80] sm:$0xf] %vm15586_vm0, %v2716_v32  ;;  %v5308_v32 = vrot.slane %v5306_v27, 5  ;;  %v4124_v1 = vpop.f32.mrf.mxu0  ;;  %v4817_v49 = vsel %vm13042_vm3, %v4567_v5, %v4816_v47  ;;  %v14126_v24 = vpop.f32.mrf.mxu1  ;;  %v5823_v5 = vld [vmem:[#allocation3 + $0x6c] sm:$0xf] }
 0x352   : > { %3423 = vst.msk [vmem:[#allocation2 + $0x80] sm:$0xf] %vm15585_vm12, %v3347_v58  ;;  %v4950_v15 = vld [vmem:[#allocation3 + $0x80] sm:$0x1]  ;;  %v4572_v40 = vrot.slane %v4570_v59, 7  ;;  %v4125_v11 = vadd.f32 %v14016_v36, %v4124_v1  ;;  %v5322_v1 = vshll.u32 %v5067_v46, 16 }
 0x353   : > { %v4951_v37 = vsel %vm13213_vm4, 0, %v4950_v15  ;;  %v5309_v28 = vor.u32 %v5308_v32, %v5305_v43  ;;  %4818 = vst [vmem:[#allocation3 + $0x84] sm:$0xf] %v4817_v49  ;;  %v4823_v32 = vld [vmem:[#allocation3 + $0x90] sm:$0xf]  ;;  %v11519_v46 = vld [vmem:[%s15541_s3 + $0x130] sm:$0xff] }
 0x354   : > { %4952 = vst [vmem:[#allocation3 + $0x80] sm:$0x1] %v4951_v37  ;;  %v4575_v33 = vor.u32 %v4573_v57, %v4572_v40  ;;  %v4577_v58 = vrot.slane %v4572_v40, 4  ;;  %v4178_v38 = vmax.f32 %v4125_v11, 0.0  ;;  %v10770_v57 = vld [vmem:[#allocation4 + $0x288] sm:$0xf]  ;;  %9305 = vmatpush.bf16.msrb.mxu2 %v11519_v46 }
 0x355   : > { %9253 = vmatmul.bf16.gmra.mxu1 %v10675_v17  ;;  %v5310_v51 = vrot.slane %v5309_v28, 4  ;;  %v10708_v17 = vld [vmem:[#allocation4 + $0x224] sm:$0xf0]  ;;  %5855 = vst [vmem:[#allocation4 + $0x24c] sm:$0xf] %v5823_v5 }
 0x356   : > { %v886_v29 = vpop.permute.xlu2 %885  ;;  %v4576_v12 = vsel %vm13086_vm1, %v4568_v21, %v4575_v33  ;;  %v4359_v27 = vpack.c.bf16 %v4178_v38, %v4178_v38  ;;  %v11422_v21 = vld [vmem:[#allocation4 + $0x2a8] sm:$0xf0]  ;;  %v5324_v38 = vrot.slane %v5322_v1, 5  ;;  %v4830_v46 = vld [vmem:[#allocation3 + $0x9c] sm:$0xf] }
 0x357   : > { %v2718_v44 = vpop.permute.xlu0 %2717  ;;  %960 = vst.msk [vmem:[#allocation2 + $0x88] sm:$0xf] %vm925_vm7, %v886_v29  ;;  %v5824_v29 = vld [vmem:[#allocation3 + $0x70] sm:$0xf]  ;;  %v5315_v49 = vsel %vm11812_vm5, %v5310_v51, %v5314_v9  ;;  %v10771_v11 = vor.u32 %v11422_v21, %v10770_v57 }
 0x358   : > { %2793 = vst.msk [vmem:[#allocation2 + $0x84] sm:$0xf] %vm15586_vm0, %v2718_v44  ;;  %v3728_v62 = vpop.permute.xlu1 %3727  ;;  %v5318_v44 = vrot.slane %v5316_v34, 4  ;;  %v4579_v54 = vshrl.u32 %v4359_v27, 16  ;;  %v4582_v37 = vshll.u32 %v4359_v27, 16 }
 0x359   : > { %3424 = vst.msk [vmem:[#allocation2 + $0x84] sm:$0xf] %vm15587_vm11, %v3349_v35  ;;  %v4820_v35 = vld [vmem:[#allocation3 + $0x8c] sm:$0x1]  ;;  %v4126_v14 = vpop.f32.mrf.mxu0  ;;  %9001 = vmatmul.bf16.vlgmr.msra.gmra.mxu3 %v10771_v11 }
 0x35a   : > { %3803 = vst.msk [vmem:[#allocation2 + $0x84] sm:$0xf] %vm3769_vm14, %v3728_v62  ;;  %v4821_v26 = vsel %vm13099_vm13, %v4577_v58, %v4820_v35  ;;  %v14134_v8 = vrot.slane %v4579_v54, 7  ;;  %v4127_v47 = vadd.f32 %v14016_v36, %v4126_v14  ;;  %v10711_v62 = vor.u32 %v11401_v20, %v10708_v17  ;;  %v4898_v22 = vld [vmem:[#allocation3 + $0x84] sm:$0x1] }
 0x35b   : > { %3840 = vst.msk [vmem:[#allocation2 + $0x84] sm:$0xf] %vm3806_vm15, %v11738_v61  ;;  %v4899_v34 = vsel %vm13099_vm13, 0, %v4898_v22  ;;  %v5069_v22 = vld [vmem:[#allocation3 + $0x7c] sm:$0xf] }
 0x35c   : > { %4819 = vst [vmem:[#allocation3 + $0x88] sm:$0xf] %v4576_v12  ;;  %v4584_v28 = vor.u32 %v4582_v37, %v14134_v8  ;;  %v4179_v63 = vmax.f32 %v4127_v47, 0.0  ;;  %v14145_v12 = vpop.f32.mrf.mxu1  ;;  %v4585_v5 = vrot.slane %v14134_v8, 4 }
 0x35d   : > { %4822 = vst [vmem:[#allocation3 + $0x8c] sm:$0x1] %v4821_v26 }
 0x35e   : > { %v1270_v6 = vpop.permute.xlu2 %1269  ;;  %5856 = vst [vmem:[#allocation4 + $0x270] sm:$0xf] %v5824_v29  ;;  %v4824_v40 = vsel %vm13042_vm3, %v4584_v28, %v4823_v32  ;;  %v4360_v35 = vpack.c.bf16 %v4179_v63, %v4179_v63  ;;  %v14158_v32 = vld [vmem:[#allocation3 + $0xc] sm:$0xf]  ;;  %v11410_v63 = vld [vmem:[#allocation4 + $0x24c] sm:$0xf] }
 0x35f   : > { %v3726_v52 = vpop.permute.xlu0 %3725  ;;  %4900 = vst [vmem:[#allocation3 + $0x84] sm:$0x1] %v4899_v34 }
 0x360   : > { %3802 = vst.msk [vmem:[#allocation2 + $0x80] sm:$0xf] %vm3769_vm14, %v3726_v52  ;;  %v1268_v15 = vpop.permute.xlu1 %1267  ;;  %v5319_v52 = vor.u32 %v5318_v44, %v5314_v9  ;;  %v5068_v44 = vld [vmem:[#allocation3 + $0x78] sm:$0xf]  ;;  %v4587_v9 = vshrl.u32 %v4360_v35, 16  ;;  %v4590_v20 = vshll.u32 %v4360_v35, 16 }
 0x361   : > { %3839 = vst.msk [vmem:[#allocation2 + $0x80] sm:$0xf] %vm3806_vm15, %v11738_v61  ;;  %v5327_v54 = vshrl.u32 %v5068_v44, 16  ;;  %v5330_v29 = vshll.u32 %v5068_v44, 16 }
 0x362   : > { %1342 = vst.msk [vmem:[#allocation2 + $0x88] sm:$0xf] %vm1307_vm8, %v1268_v15  ;;  %v5320_v58 = vrot.slane %v5319_v52, 4  ;;  %v4589_v17 = vrot.slane %v4587_v9, 7  ;;  %v5336_v9 = vshll.u32 %v5069_v22, 16 }
 0x363   : > { %4825 = vst [vmem:[#allocation3 + $0x90] sm:$0xf] %v4824_v40  ;;  %v5329_v28 = vrot.slane %v5327_v54, 4  ;;  %v5332_v35 = vrot.slane %v5330_v29, 5  ;;  %v5340_v54 = vshrl.u32 %v5069_v22, 16 }
 0x364   : > { %v4953_v16 = vld [vmem:[#allocation3 + $0x8c] sm:$0x1]  ;;  %5520 = vst [vmem:[#allocation4 + $0x28c] sm:$0xf] %v5315_v49  ;;  %v5325_v37 = vsel %vm11812_vm5, %v5320_v58, %v5324_v38  ;;  %v4592_v14 = vor.u32 %v4590_v20, %v4589_v17  ;;  %v5920_v58 = vshrl.u32 %v14158_v32, 16  ;;  %v14169_v44 = vpop.f32.mrf.mxu1 }
 0x365   : > { %9258 = vmatmul.bf16.gmra.mxu1 %v10711_v62  ;;  %v4954_v26 = vsel %vm13213_vm4, 0, %v4953_v16  ;;  %v4594_v62 = vrot.slane %v4589_v17, 4  ;;  %5521 = vst [vmem:[#allocation4 + $0x2b0] sm:$0xf] %v5325_v37  ;;  %v10744_v34 = vld [vmem:[#allocation4 + $0x26c] sm:$0xf0]  ;;  %v5333_v29 = vor.u32 %v5332_v35, %v5329_v28 }
 0x366   : > { %v2120_v33 = vpop.permute.xlu2 %2119  ;;  %4955 = vst [vmem:[#allocation3 + $0x8c] sm:$0x1] %v4954_v26  ;;  %v4593_v8 = vsel %vm13086_vm1, %v4585_v5, %v4592_v14  ;;  %v14167_v38 = vld [vmem:[#allocation3 + $0x1c] sm:$0xf]  ;;  %v10747_v20 = vor.u32 %v11410_v63, %v10744_v34  ;;  %v11504_v17 = vld [vmem:[%s15541_s3 + $0xb8] sm:$0xff]  ;;  %v14201_v56 = vrot.slane %v5920_v58, 4 }
 0x367   : > { %v888_v43 = vpop.permute.xlu0 %887  ;;  %15589 = vst [vmem:[#allocation9_spill] sm:$0xff] %v14169_v44  ;;  %v5070_v14 = vld [vmem:[#allocation3 + $0x80] sm:$0x1]  ;;  %9126 = vmatpush.bf16.msrb.mxu3 %v11504_v17  ;;  %v4995_v34 = vld [vmem:[#allocation3 + $0x7c] sm:$0xf] }
 0x368   : > { %961 = vst.msk [vmem:[#allocation2 + $0x8c] sm:$0xf] %vm925_vm7, %v888_v43  ;;  %v11327_v59 = vld [vmem:[#allocation2 + $0x80] sm:$0xff]  ;;  %v1491_v27 = vpop.permute.xlu1 %1490  ;;  %vm15590_vm7 = vmmov %vm15588_vm6 }
 0x369   : > { %1343 = vst.msk [vmem:[#allocation2 + $0x8c] sm:$0xf] %vm1307_vm8, %v1270_v6  ;;  %4143 = vmatmul.bf16.gmra.mxu0 %v11327_v59  ;;  %v4129_v6 = vpop.f32.mrf.mxu0  ;;  %v4827_v59 = vld [vmem:[#allocation3 + $0x98] sm:$0x1]  ;;  %vm15591_vm8 = vmmov %vm15586_vm0 }
 0x36a   : > { %v4130_v15 = vadd.f32 %v14016_v36, %v4129_v6  ;;  %1564 = vst.msk [vmem:[#allocation2 + $0x8c] sm:$0xf] %vm1528_vm9, %v1491_v27  ;;  %v4901_v47 = vld [vmem:[#allocation3 + $0x90] sm:$0x1]  ;;  %v4828_v26 = vsel %vm13099_vm13, %v4594_v62, %v4827_v59  ;;  %v4994_v27 = vld [vmem:[#allocation3 + $0x78] sm:$0xf] }
 0x36b   : > { %v4902_v57 = vsel %vm13099_vm13, 0, %v4901_v47  ;;  %4826 = vst [vmem:[#allocation3 + $0x94] sm:$0xf] %v4593_v8  ;;  %v5923_v47 = vshll.u32 %v14158_v32, 16  ;;  %v5338_v8 = vrot.slane %v5336_v9, 5 }
 0x36c   : > { %v4180_v43 = vmax.f32 %v4130_v15, 0.0  ;;  %4903 = vst [vmem:[#allocation3 + $0x90] sm:$0x1] %v4902_v57  ;;  %v11418_v15 = vld [vmem:[#allocation4 + $0x28c] sm:$0xf] }
 0x36d   : > { %4829 = vst [vmem:[#allocation3 + $0x98] sm:$0x1] %v4828_v26  ;;  %v10772_v62 = vld [vmem:[#allocation4 + $0x2ac] sm:$0xf0]  ;;  %v14193_v26 = vrot.slane %v5247_v60, 4 }
 0x36e   : > { %v2501_v52 = vpop.permute.xlu2 %2500  ;;  %v4361_v1 = vpack.c.bf16 %v4180_v43, %v4180_v43  ;;  %v14181_v43 = vld [vmem:[#allocation3 + $0x18] sm:$0xf]  ;;  %5026 = vst [vmem:[#allocation4 + $0x2d0] sm:$0xf] %v4994_v27  ;;  %v5072_v27 = vld [vmem:[#allocation3 + $0x88] sm:$0xf] }
 0x36f   : > { %v1489_v51 = vpop.permute.xlu0 %1488  ;;  %v5826_v9 = vld [vmem:[#allocation3 + $0x7c] sm:$0xf]  ;;  %5027 = vst [vmem:[#allocation4 + $0x2f4] sm:$0xf] %v4995_v34 }
 0x370   : > { %1563 = vst.msk [vmem:[#allocation2 + $0x88] sm:$0xf] %vm1528_vm9, %v1489_v51  ;;  %v2499_v21 = vpop.permute.xlu1 %2498  ;;  %v4596_v40 = vshrl.u32 %v4361_v1, 16  ;;  %v4599_v11 = vshll.u32 %v4361_v1, 16  ;;  %v10775_v1 = vor.u32 %v11418_v15, %v10772_v62  ;;  %vm15592_vm9 = vmmov %vm15586_vm0  ;;  %v14199_v15 = vpop.f32.mrf.mxu1 }
 0x371   : > { %2194 = vst.msk [vmem:[#allocation2 + $0x88] sm:$0xf] %vm2159_vm10, %v2120_v33  ;;  %v4131_v16 = vpop.f32.mrf.mxu0  ;;  %v5058_v33 = vld [vmem:[#allocation3 + $0x50] sm:$0x1] }
 0x372   : > { %2573 = vst.msk [vmem:[#allocation2 + $0x88] sm:$0xf] %vm15588_vm6, %v2499_v21  ;;  %v4132_v51 = vadd.f32 %v14016_v36, %v4131_v16  ;;  %v14176_v6 = vrot.slane %v4596_v40, 7  ;;  %v5250_v59 = vshll.u32 %v5058_v33, 16  ;;  %v5342_v40 = vrot.slane %v5340_v54, 4  ;;  %9090 = vmatmul.bf16.gmra.mxu2 %v10775_v1 }
 0x373   : > { %v5825_v16 = vld [vmem:[#allocation3 + $0x78] sm:$0xf]  ;;  %v5334_v33 = vrot.slane %v5333_v29, 4  ;;  %v5364_v29 = vshrl.u32 %v5072_v27, 16  ;;  %v5038_v1 = vld [vmem:[#allocation3] sm:$0xf] }
 0x374   : > { %v4181_v37 = vmax.f32 %v4132_v51, 0.0  ;;  %v4601_v5 = vor.u32 %v4599_v11, %v14176_v6  ;;  %v5346_v11 = vshll.u32 %v5070_v14, 16  ;;  %v4956_v54 = vld [vmem:[#allocation3 + $0x98] sm:$0x1]  ;;  %5857 = vst [vmem:[#allocation4 + $0x294] sm:$0xf] %v5825_v16 }
 0x375   : > { %9263 = vmatmul.bf16.gmra.mxu1 %v10747_v20  ;;  %v14196_v20 = vrot.slane %v5250_v59, 5  ;;  %v4957_v2 = vsel %vm13213_vm4, 0, %v4956_v54  ;;  %v5339_v60 = vsel %vm11812_vm5, %v5334_v33, %v5338_v8  ;;  %v5360_v14 = vshll.u32 %v5072_v27, 16  ;;  %v5073_v59 = vld [vmem:[#allocation3 + $0x8c] sm:$0x1] }
 0x376   : > { %v3351_v22 = vpop.permute.xlu2 %3350  ;;  %v4831_v63 = vsel %vm13042_vm3, %v4601_v5, %v4830_v46  ;;  %v4362_v21 = vpack.c.bf16 %v4181_v37, %v4181_v37  ;;  %v5343_v37 = vor.u32 %v5342_v40, %v5338_v8  ;;  %v5348_v5 = vrot.slane %v5346_v11, 5  ;;  %4958 = vst [vmem:[#allocation3 + $0x98] sm:$0x1] %v4957_v2  ;;  %v14209_v16 = vld [vmem:[#allocation3 + $0x10] sm:$0xf] }
 0x377   : > { %v2122_v49 = vpop.permute.xlu0 %2121  ;;  %4832 = vst [vmem:[#allocation3 + $0x9c] sm:$0xf] %v4831_v63  ;;  %v5090_v8 = vshll.u32 %v5038_v1, 16  ;;  %v14211_v27 = vrot.slane %v5360_v14, 5  ;;  %v4834_v54 = vld [vmem:[#allocation3 + $0xa4] sm:$0x1] }
 0x378   : > { %2195 = vst.msk [vmem:[#allocation2 + $0x8c] sm:$0xf] %vm2159_vm10, %v2122_v49  ;;  %v2722_v28 = vpop.permute.xlu1 %2721  ;;  %vm15593_vm10 = vmmov %vm15587_vm11  ;;  %v4604_v46 = vshrl.u32 %v4362_v21, 16  ;;  %v4607_v62 = vshll.u32 %v4362_v21, 16  ;;  %v5344_v11 = vrot.slane %v5343_v37, 4 }
 0x379   : > { %2574 = vst.msk [vmem:[#allocation2 + $0x8c] sm:$0xf] %vm15590_vm7, %v2501_v52  ;;  %v5071_v52 = vld [vmem:[#allocation3 + $0x84] sm:$0xf]  ;;  %v10806_v21 = vld [vmem:[#allocation4 + $0x2d0] sm:$0xf]  ;;  %vm15594_vm11 = vmmov %vm15593_vm10 }
 0x37a   : > { %2795 = vst.msk [vmem:[#allocation2 + $0x8c] sm:$0xf] %vm15591_vm8, %v2722_v28  ;;  %v5351_v51 = vshrl.u32 %v5071_v52, 16  ;;  %v5354_v17 = vshll.u32 %v5071_v52, 16  ;;  %v4606_v34 = vrot.slane %v4604_v46, 7  ;;  %v5092_v37 = vrot.slane %v5090_v8, 5 }
 0x37b   : > { %5858 = vst [vmem:[#allocation4 + $0x2b8] sm:$0xf] %v5826_v9  ;;  %v4602_v9 = vrot.slane %v14176_v6, 4  ;;  %v11419_v57 = vld [vmem:[#allocation4 + $0x294] sm:$0xf]  ;;  %v5349_v6 = vsel %vm11812_vm5, %v5344_v11, %v5348_v5 }
 0x37c   : > { %v5353_v52 = vrot.slane %v5351_v51, 4  ;;  %v5356_v58 = vrot.slane %v5354_v17, 5  ;;  %5522 = vst [vmem:[#allocation4 + $0x2d4] sm:$0xf] %v5339_v60  ;;  %v5366_v51 = vrot.slane %v5364_v29, 4  ;;  %v4609_v17 = vor.u32 %v4607_v62, %v4606_v34 }
 0x37d   : > { %v11431_v60 = vld [vmem:[#allocation4 + $0x2f0] sm:$0xf0]  ;;  %5523 = vst [vmem:[#allocation4 + $0x2f8] sm:$0xf] %v5349_v6 }
 0x37e   : > { %v4904_v63 = vld [vmem:[#allocation3 + $0x9c] sm:$0x1]  ;;  %v3732_v40 = vpop.permute.xlu2 %3731  ;;  %v10807_v49 = vor.u32 %v11431_v60, %v10806_v21  ;;  %v5367_v62 = vor.u32 %v5366_v51, %v14211_v27  ;;  %v4610_v5 = vsel %vm13086_vm1, %v4602_v9, %v4609_v17  ;;  %v5828_v9 = vld [vmem:[#allocation3 + $0x88] sm:$0xf] }
 0x37f   : > { %v2720_v35 = vpop.permute.xlu0 %2719  ;;  %v4905_v28 = vsel %vm13099_vm13, 0, %v4904_v63  ;;  %v5357_v63 = vor.u32 %v5356_v58, %v5353_v52  ;;  %v14227_v52 = vpop.f32.mrf.mxu1  ;;  %4833 = vst [vmem:[#allocation3 + $0xa0] sm:$0xf] %v4610_v5 }
 0x380   : > { %2794 = vst.msk [vmem:[#allocation2 + $0x88] sm:$0xf] %vm15592_vm9, %v2720_v35  ;;  %v5087_v35 = vshrl.u32 %v5038_v1, 16  ;;  %v3730_v46 = vpop.permute.xlu1 %3729  ;;  %v4611_v1 = vrot.slane %v4606_v34, 4  ;;  %v14224_v34 = vrot.slane %v5923_v47, 5  ;;  %9006 = vmatmul.bf16.gmra.mxu3 %v10807_v49  ;;  %v5368_v17 = vrot.slane %v5367_v62, 4 }
 0x381   : > { %3425 = vst.msk [vmem:[#allocation2 + $0x88] sm:$0xf] %vm15593_vm10, %v3351_v22  ;;  %v5074_v22 = vld [vmem:[#allocation3 + $0x90] sm:$0xf]  ;;  %v4997_v47 = vld [vmem:[#allocation3 + $0x88] sm:$0xf] }
 0x382   : > { %4906 = vst [vmem:[#allocation3 + $0x9c] sm:$0x1] %v4905_v28  ;;  %v5089_v2 = vrot.slane %v5087_v35, 4  ;;  %v5370_v28 = vshll.u32 %v5073_v59, 16  ;;  %v5375_v14 = vshrl.u32 %v5074_v22, 16  ;;  %v5378_v29 = vshll.u32 %v5074_v22, 16 }
 0x383   : > { %3804 = vst.msk [vmem:[#allocation2 + $0x88] sm:$0xf] %vm3769_vm14, %v3730_v46  ;;  %v5075_v35 = vld [vmem:[#allocation3 + $0x94] sm:$0xf]  ;;  %v10780_v58 = vld [vmem:[#allocation4 + $0x2b4] sm:$0xf0]  ;;  %v4835_v32 = vsel %vm13099_vm13, %v4611_v1, %v4834_v54 }
 0x384   : > { %15595 = vst [vmem:[#allocation10_spill] sm:$0xff] %v14227_v52  ;;  %v4996_v22 = vld [vmem:[#allocation3 + $0x84] sm:$0xf]  ;;  %v5093_v11 = vor.u32 %v5092_v37, %v5089_v2  ;;  %v10783_v8 = vor.u32 %v11419_v57, %v10780_v58  ;;  %v5358_v21 = vrot.slane %v5357_v63, 4  ;;  %v5372_v51 = vrot.slane %v5370_v28, 5  ;;  %v11518_v28 = vld [vmem:[%s15541_s3 + $0x128] sm:$0xff] }
 0x385   : > { %3841 = vst.msk [vmem:[#allocation2 + $0x88] sm:$0xf] %vm3806_vm15, %v11738_v61  ;;  %v5827_v49 = vld [vmem:[#allocation3 + $0x84] sm:$0xf]  ;;  %v5377_v46 = vrot.slane %v5375_v14, 4  ;;  %v5380_v60 = vrot.slane %v5378_v29, 5  ;;  %9306 = vmatpush.bf16.msrb.mxu2 %v11518_v28 }
 0x386   : > { %9268 = vmatmul.bf16.gmra.mxu1 %v10783_v8  ;;  %v4920_v59 = vld [vmem:[#allocation3 + $0x8] sm:$0x1]  ;;  %v11427_v57 = vld [vmem:[#allocation4 + $0x2d4] sm:$0xf]  ;;  %4836 = vst [vmem:[#allocation3 + $0xa4] sm:$0x1] %v4835_v32  ;;  %v5363_v63 = vsel %vm11812_vm5, %v5358_v21, %v14211_v27  ;;  %v5373_v27 = vsel %vm11812_vm5, %v5368_v17, %v5372_v51 }
 0x387   : > { %v3353_v33 = vpop.permute.xlu0 %3352  ;;  %v5094_v6 = vrot.slane %v5093_v11, 4  ;;  %5028 = vst [vmem:[#allocation4 + $0x318] sm:$0xf] %v4996_v22  ;;  %v11503_v14 = vld [vmem:[%s15541_s3 + $0xb0] sm:$0xff]  ;;  %v5076_v29 = vld [vmem:[#allocation3 + $0x98] sm:$0x1]  ;;  %v5381_v62 = vor.u32 %v5380_v60, %v5377_v46 }
 0x388   : > { %3426 = vst.msk [vmem:[#allocation2 + $0x8c] sm:$0xf] %vm15594_vm11, %v3353_v33  ;;  %v5388_v5 = vshrl.u32 %v5075_v35, 16  ;;  %9127 = vmatpush.bf16.msrb.mxu3 %v11503_v14  ;;  %v4921_v11 = vsel %vm13213_vm4, 0, %v4920_v59  ;;  %v10808_v32 = vld [vmem:[#allocation4 + $0x2f4] sm:$0xf0] }
 0x389   : > { %3805 = vst.msk [vmem:[#allocation2 + $0x8c] sm:$0xf] %vm3769_vm14, %v3732_v40  ;;  %v5039_v40 = vld [vmem:[#allocation3 + $0x4] sm:$0xf]  ;;  %v14252_v46 = vld [vmem:[#allocation3 + $0x9c] sm:$0xf] }
 0x38a   : > { %3842 = vst.msk [vmem:[#allocation2 + $0x8c] sm:$0xf] %vm3806_vm15, %v11738_v61  ;;  %v5384_v61 = vshll.u32 %v5075_v35, 16  ;;  %v5096_v2 = vshll.u32 %v5039_v40, 16  ;;  %v5100_v54 = vshrl.u32 %v5039_v40, 16  ;;  %v5390_v21 = vrot.slane %v5388_v5, 4 }
 0x38b   : > { %5029 = vst [vmem:[#allocation4 + $0x33c] sm:$0xf] %v4997_v47  ;;  %v10811_v35 = vor.u32 %v11427_v57, %v10808_v32  ;;  %v4998_v51 = vld [vmem:[#allocation3 + $0x90] sm:$0xf]  ;;  %v4999_v17 = vld [vmem:[#allocation3 + $0x94] sm:$0xf] }
 0x38c   : > { %v14246_v58 = vrot.slane %v5384_v61, 5  ;;  %5859 = vst [vmem:[#allocation4 + $0x2dc] sm:$0xf] %v5827_v49  ;;  %v5098_v8 = vrot.slane %v5096_v2, 5  ;;  %v5102_v47 = vrot.slane %v5100_v54, 4  ;;  %v14256_v61 = vpop.f32.mrf.mxu1  ;;  %v5382_v59 = vrot.slane %v5381_v62, 4 }
 0x38d   : > { %5860 = vst [vmem:[#allocation4 + $0x300] sm:$0xf] %v5828_v9  ;;  %9095 = vmatmul.bf16.gmra.mxu2 %v10811_v35  ;;  %v5829_v57 = vld [vmem:[#allocation3 + $0x90] sm:$0xf]  ;;  %v4837_v28 = vld [vmem:[#allocation3 + $0xa8] sm:$0xf] }
 0x38e   : > { %5524 = vst [vmem:[#allocation4 + $0x31c] sm:$0xf] %v5363_v63  ;;  %v5099_v49 = vsel %vm11812_vm5, %v5094_v6, %v5098_v8  ;;  %v5391_v2 = vor.u32 %v5390_v21, %v14246_v58  ;;  %v10842_v6 = vld [vmem:[#allocation4 + $0x318] sm:$0xf]  ;;  %v5830_v5 = vld [vmem:[#allocation3 + $0x94] sm:$0xf] }
 0x38f   : > { %v4134_v37 = vpop.f32.mrf.mxu0  ;;  %5525 = vst [vmem:[#allocation4 + $0x340] sm:$0xf] %v5373_v27  ;;  %v5399_v62 = vshrl.u32 %v14252_v46, 16  ;;  %v11517_v21 = vld [vmem:[%s15541_s3 + $0x120] sm:$0xff] }
 0x390   : > { %v4135_v1 = vadd.f32 %v14016_v36, %v4134_v37  ;;  %v5394_v36 = vshll.u32 %v5076_v29, 16  ;;  %v4959_v37 = vld [vmem:[#allocation3 + $0xa4] sm:$0x1]  ;;  %4922 = vst [vmem:[#allocation3 + $0x8] sm:$0x1] %v4921_v11  ;;  %v5103_v29 = vor.u32 %v5102_v47, %v5098_v8  ;;  %v11502_v11 = vld [vmem:[%s15541_s3 + $0xa8] sm:$0xff]  ;;  %9307 = vmatpush.bf16.msrb.mxu2 %v11517_v21 }
 0x391   : > { %v11328_v40 = vld [vmem:[#allocation2 + $0x88] sm:$0xff]  ;;  %v4960_v63 = vsel %vm13213_vm4, 0, %v4959_v37  ;;  %5502 = vst [vmem:[#allocation4 + $0x4] sm:$0xf] %v5099_v49  ;;  %v5392_v47 = vrot.slane %v5391_v2, 4  ;;  %9128 = vmatpush.bf16.msrb.mxu3 %v11502_v11  ;;  %v5402_v37 = vshll.u32 %v14252_v46, 16 }
 0x392   : > { %v4182_v22 = vmax.f32 %v4135_v1, 0.0  ;;  %4148 = vmatmul.bf16.gmra.mxu0 %v11328_v40  ;;  %v5396_v9 = vrot.slane %v5394_v36, 5  ;;  %4961 = vst [vmem:[#allocation3 + $0xa4] sm:$0x1] %v4960_v63  ;;  %v11440_v36 = vld [vmem:[#allocation4 + $0x338] sm:$0xf0] }
 0x393   : > { %v14267_v40 = vld [vmem:[%s15540_s2] ss:$0 sm:$0xff]  ;;  %v10843_v8 = vor.u32 %v11440_v36, %v10842_v6  ;;  %v11428_v32 = vld [vmem:[#allocation4 + $0x2dc] sm:$0xf]  ;;  %5030 = vst [vmem:[#allocation4 + $0x360] sm:$0xf] %v4998_v51  ;;  %v5387_v51 = vsel %vm11812_vm5, %v5382_v59, %v14246_v58 }
 0x394   : > { %v4363_v60 = vpack.c.bf16 %v4182_v22, %v4182_v22  ;;  %5031 = vst [vmem:[#allocation4 + $0x384] sm:$0xf] %v4999_v17  ;;  %v5104_v63 = vrot.slane %v5103_v29, 4  ;;  %v15596_v2 = vshll.u32 %v14209_v16, 16  ;;  %v5078_v46 = vld [vmem:[#allocation3 + $0xa0] sm:$0xf]  ;;  %v5397_v58 = vsel %vm11812_vm5, %v5392_v47, %v5396_v9 }
 0x395   : > { %9011 = vmatmul.bf16.gmra.mxu3 %v10843_v8  ;;  %5861 = vst [vmem:[#allocation4 + $0x324] sm:$0xf] %v5829_v57  ;;  %v5401_v36 = vrot.slane %v5399_v62, 4  ;;  %v11436_v57 = vld [vmem:[#allocation4 + $0x31c] sm:$0xf]  ;;  %v5408_v9 = vshll.u32 %v5078_v46, 16 }
 0x396   : > { %v4613_v54 = vshrl.u32 %v4363_v60, 16  ;;  %v4616_v1 = vshll.u32 %v4363_v60, 16  ;;  %v10816_v60 = vld [vmem:[#allocation4 + $0x2fc] sm:$0xf0]  ;;  %v14283_v6 = vrot.slane %v15596_v2, 5  ;;  %v5412_v47 = vshrl.u32 %v5078_v46, 16 }
 0x397   : > { %v4136_v14 = vpop.f32.mrf.mxu0  ;;  %5862 = vst [vmem:[#allocation4 + $0x348] sm:$0xf] %v5830_v5  ;;  %v5040_v29 = vld [vmem:[#allocation3 + $0x8] sm:$0x1]  ;;  %v5000_v8 = vld [vmem:[#allocation3 + $0x9c] sm:$0xf] }
 0x398   : > { %v14262_v22 = vrot.slane %v4613_v54, 7  ;;  %v4137_v27 = vadd.f32 %v14267_v40, %v4136_v14  ;;  %v10819_v54 = vor.u32 %v11428_v32, %v10816_v60  ;;  %v5106_v11 = vshll.u32 %v5040_v29, 16  ;;  %v10844_v21 = vld [vmem:[#allocation4 + $0x33c] sm:$0xf0]  ;;  %5526 = vst [vmem:[#allocation4 + $0x364] sm:$0xf] %v5387_v51 }
 0x399   : > { %v5404_v32 = vrot.slane %v5402_v37, 5  ;;  %v5001_v5 = vld [vmem:[#allocation3 + $0xa0] sm:$0xf]  ;;  %5527 = vst [vmem:[#allocation4 + $0x388] sm:$0xf] %v5397_v58 }
 0x39a   : > { %v4618_v35 = vor.u32 %v4616_v1, %v14262_v22  ;;  %v4183_v49 = vmax.f32 %v4137_v27, 0.0  ;;  %v4619_v1 = vrot.slane %v14262_v22, 4  ;;  %9273 = vmatmul.bf16.gmra.mxu1 %v10819_v54  ;;  %v14290_v22 = vpop.f32.mrf.mxu1  ;;  %v5108_v62 = vrot.slane %v5106_v11, 5  ;;  %v5831_v60 = vld [vmem:[#allocation3 + $0x9c] sm:$0xf] }
 0x39b   : > { %5032 = vst [vmem:[#allocation4 + $0x3a8] sm:$0xf] %v5000_v8  ;;  %v5079_v2 = vld [vmem:[#allocation3 + $0xa4] sm:$0x1]  ;;  %v10847_v54 = vor.u32 %v11436_v57, %v10844_v21  ;;  %v10878_v29 = vld [vmem:[#allocation4 + $0x360] sm:$0xf] }
 0x39c   : > { %v4838_v17 = vsel %vm13042_vm3, %v4618_v35, %v4837_v28  ;;  %v4364_v14 = vpack.c.bf16 %v4183_v49, %v4183_v49  ;;  %v4841_v28 = vld [vmem:[#allocation3 + $0xb0] sm:$0x1]  ;;  %v5405_v49 = vor.u32 %v5404_v32, %v5401_v36  ;;  %v5109_v37 = vsel %vm11812_vm5, %v5104_v63, %v5108_v62  ;;  %5033 = vst [vmem:[#allocation4 + $0x3cc] sm:$0xf] %v5001_v5  ;;  %v11449_v51 = vld [vmem:[#allocation4 + $0x380] sm:$0xf0] }
 0x39d   : > { %4839 = vst [vmem:[#allocation3 + $0xa8] sm:$0xf] %v4838_v17  ;;  %v5873_v11 = vld [vmem:[#allocation3 + $0x14] sm:$0x1]  ;;  %v5414_v57 = vrot.slane %v5412_v47, 4  ;;  %v5418_v21 = vshll.u32 %v5079_v2, 16  ;;  %9100 = vmatmul.bf16.gmra.mxu2 %v10847_v54 }
 0x39e   : > { %v4621_v59 = vshrl.u32 %v4364_v14, 16  ;;  %v4624_v27 = vshll.u32 %v4364_v14, 16  ;;  %5503 = vst [vmem:[#allocation4 + $0x28] sm:$0xf] %v5109_v37  ;;  %v5406_v33 = vrot.slane %v5405_v49, 4  ;;  %v11516_v62 = vld [vmem:[%s15541_s3 + $0x118] sm:$0xff]  ;;  %v10879_v49 = vor.u32 %v11449_v51, %v10878_v29 }
 0x39f   : > { %5863 = vst [vmem:[#allocation4 + $0x36c] sm:$0xf] %v5831_v60  ;;  %v5832_v32 = vld [vmem:[#allocation3 + $0xa0] sm:$0xf]  ;;  %v14302_v5 = vld [vmem:[#allocation3 + $0x10] sm:$0xf]  ;;  %9308 = vmatpush.bf16.msrb.mxu2 %v11516_v62 }
 0x3a0   : > { %v4623_v35 = vrot.slane %v4621_v59, 7  ;;  %v5410_v59 = vrot.slane %v5408_v9, 5  ;;  %v6756_v60 = vshll.u32 %v14181_v43, 16  ;;  %v10852_v2 = vld [vmem:[#allocation4 + $0x344] sm:$0xf0]  ;;  %v5420_v9 = vrot.slane %v5418_v21, 5 }
 0x3a1   : > { %v11337_v47 = vld [vmem:[#allocation4 + $0x4] sm:$0xf]  ;;  %5864 = vst [vmem:[#allocation4 + $0x390] sm:$0xf] %v5832_v32  ;;  %v5537_v51 = vld [vmem:[#allocation3 + $0xc] sm:$0xe] }
 0x3a2   : > { %v4626_v17 = vor.u32 %v4624_v27, %v4623_v35  ;;  %v4628_v14 = vrot.slane %v4623_v35, 4  ;;  %v15597_v27 = vshrl.u32 %v14209_v16, 16  ;;  %v11437_v35 = vld [vmem:[#allocation4 + $0x324] sm:$0xf]  ;;  %v11501_v16 = vld [vmem:[%s15541_s3 + $0xa0] sm:$0xff]  ;;  %v14319_v37 = vpop.f32.mrf.mxu1 }
 0x3a3   : > { %9129 = vmatpush.bf16.msrb.mxu3 %v11501_v16  ;;  %v14336_v21 = vld [vmem:[#allocation3 + $0x18] sm:$0xf] }
 0x3a4   : > { %v4907_v58 = vld [vmem:[#allocation3 + $0xa8] sm:$0x1]  ;;  %v4627_v36 = vsel %vm13086_vm1, %v4619_v1, %v4626_v17  ;;  %v4842_v46 = vsel %vm13099_vm13, %v4628_v14, %v4841_v28  ;;  %v5935_v8 = vrot.slane %v15597_v27, 4  ;;  %v5411_v1 = vsel %vm11812_vm5, %v5406_v33, %v5410_v59 }
 0x3a5   : > { %v4908_v63 = vsel %vm13099_vm13, 0, %v4907_v58  ;;  %4840 = vst [vmem:[#allocation3 + $0xac] sm:$0xf] %v4627_v36  ;;  %v5415_v28 = vor.u32 %v5414_v57, %v5410_v59  ;;  %v5253_v33 = vsel %vm11812_vm5, %v14193_v26, %v14196_v20  ;;  %v5926_v17 = vor.u32 %v14224_v34, %v14201_v56  ;;  %v10448_v59 = vld [vmem:[#allocation4 + $0x24] sm:$0xf0]  ;;  %9016 = vmatmul.bf16.gmra.mxu3 %v10879_v49 }
 0x3a6   : > { %4909 = vst [vmem:[#allocation3 + $0xa8] sm:$0x1] %v4908_v63  ;;  %v5939_v14 = vshll.u32 %v5873_v11, 16  ;;  %v5936_v29 = vor.u32 %v5935_v8, %v14283_v6  ;;  %v10855_v58 = vor.u32 %v11437_v35, %v10852_v2  ;;  %v5639_v20 = vrot.slane %v14302_v5, 5  ;;  %v5539_v11 = vld [vmem:[#allocation3 + $0x14] sm:$0x1] }
 0x3a7   : > { %4843 = vst [vmem:[#allocation3 + $0xb0] sm:$0x1] %v4842_v46  ;;  %v5416_v54 = vrot.slane %v5415_v28, 4  ;;  %v15598_v36 = vshll.u32 %v14167_v38, 16  ;;  %v6766_v56 = vshrl.u32 %v14167_v38, 16  ;;  %v10451_v34 = vor.u32 %v11337_v47, %v10448_v59 }
 0x3a8   : > { %5528 = vst [vmem:[#allocation4 + $0x3ac] sm:$0xf] %v5411_v1  ;;  %v15599_v57 = vshrl.u32 %v14181_v43, 16  ;;  %v14334_v8 = vrot.slane %v6756_v60, 5  ;;  %v5927_v63 = vrot.slane %v5926_v17, 4  ;;  %v5941_v32 = vrot.slane %v5939_v14, 5 }
 0x3a9   : > { %v5421_v26 = vsel %vm11812_vm5, %v5416_v54, %v5420_v9  ;;  %5515 = vst [vmem:[#allocation4 + $0x1d8] sm:$0xf] %v5253_v33  ;;  %v14327_v46 = vrot.slane %v15598_v36, 5  ;;  %9045 = vmatmul.bf16.vlgmr.msrb.gmra.mxu0 %v10451_v34  ;;  %v11445_v35 = vld [vmem:[#allocation4 + $0x364] sm:$0xf]  ;;  %v5937_v28 = vrot.slane %v5936_v29, 4 }
 0x3aa   : > { %5529 = vst [vmem:[#allocation4 + $0x3d0] sm:$0xf] %v5421_v26  ;;  %v14332_v27 = vrot.slane %v15599_v57, 4  ;;  %v10880_v1 = vld [vmem:[#allocation4 + $0x384] sm:$0xf0]  ;;  %v10397_v38 = vrot.slane %v5537_v51, 9  ;;  %9278 = vmatmul.bf16.gmra.mxu1 %v10855_v58  ;;  %v5932_v36 = vsel %vm11812_vm5, %v5927_v63, %v14283_v6 }
 0x3ab   : > { %v5641_v49 = vrot.slane %v5639_v20, 4  ;;  %v5642_v2 = vrot.slane %v5539_v11, 5  ;;  %v6706_v51 = vld [vmem:[#allocation3 + $0x20] sm:$0x1]  ;;  %v6768_v26 = vrot.slane %v6766_v56, 4  ;;  %v10883_v58 = vor.u32 %v11445_v35, %v10880_v1  ;;  %v14344_v11 = vpop.f32.mrf.mxu1 }
 0x3ac   : > { %v5081_v62 = vld [vmem:[#allocation3 + $0xac] sm:$0xf]  ;;  %v5944_v34 = vshrl.u32 %v14336_v21, 16  ;;  %v6759_v56 = vor.u32 %v14334_v8, %v14332_v27  ;;  %v10914_v35 = vld [vmem:[#allocation4 + $0x3a8] sm:$0xf]  ;;  %v5640_v6 = vsel %vm11795_vm2, %v10397_v38, %v5639_v20  ;;  %v5947_v8 = vshll.u32 %v14336_v21, 16 }
 0x3ad   : > { %v5080_v5 = vld [vmem:[#allocation3 + $0xa8] sm:$0xf]  ;;  %v5003_v9 = vld [vmem:[#allocation3 + $0xac] sm:$0xf]  ;;  %v5432_v59 = vshll.u32 %v5081_v62, 16  ;;  %v5436_v29 = vshrl.u32 %v5081_v62, 16  ;;  %9105 = vmatmul.bf16.gmra.mxu2 %v10883_v58  ;;  %v6769_v20 = vor.u32 %v6768_v26, %v14327_v46 }
 0x3ae   : > { %v4962_v16 = vld [vmem:[#allocation3 + $0xb0] sm:$0x1]  ;;  %v5002_v60 = vld [vmem:[#allocation3 + $0xa8] sm:$0xf]  ;;  %v5423_v33 = vshrl.u32 %v5080_v5, 16  ;;  %v5426_v14 = vshll.u32 %v5080_v5, 16  ;;  %v5942_v5 = vsel %vm11812_vm5, %v5937_v28, %v5941_v32 }
 0x3af   : > { %v4963_v43 = vsel %vm13213_vm4, 0, %v4962_v16  ;;  %v5833_v47 = vld [vmem:[#allocation3 + $0xa8] sm:$0xf]  ;;  %v5834_v54 = vld [vmem:[#allocation3 + $0xac] sm:$0xf]  ;;  %v5434_v16 = vrot.slane %v5432_v59, 5 }
 0x3b0   : > { %4964 = vst [vmem:[#allocation3 + $0xb0] sm:$0x1] %v4963_v43  ;;  %v5425_v17 = vrot.slane %v5423_v33, 4  ;;  %v5428_v57 = vrot.slane %v5426_v14, 5  ;;  %v5438_v43 = vrot.slane %v5436_v29, 4  ;;  %v5643_v33 = vsel %vm11795_vm2, %v5641_v49, %v5642_v2 }
 0x3b1   : > { %5034 = vst [vmem:[#allocation4 + $0x3f0] sm:$0xf] %v5002_v60  ;;  %v11458_v1 = vld [vmem:[#allocation4 + $0x3c8] sm:$0xf0]  ;;  %v10888_v62 = vld [vmem:[#allocation4 + $0x38c] sm:$0xf0] }
 0x3b2   : > { %5035 = vst [vmem:[#allocation4 + $0x414] sm:$0xf] %v5003_v9  ;;  %v11446_v63 = vld [vmem:[#allocation4 + $0x36c] sm:$0xf]  ;;  %v5429_v60 = vor.u32 %v5428_v57, %v5425_v17  ;;  %v5439_v9 = vor.u32 %v5438_v43, %v5434_v16  ;;  %v5876_v14 = vld [vmem:[#allocation3 + $0x20] sm:$0x1]  ;;  %v10915_v17 = vor.u32 %v11458_v1, %v10914_v35 }
 0x3b3   : > { %5865 = vst [vmem:[#allocation4 + $0x3b4] sm:$0xf] %v5833_v47  ;;  %v5875_v47 = vld [vmem:[#allocation3 + $0x1c] sm:$0xf]  ;;  %v11346_v32 = vld [vmem:[#allocation4 + $0x4c] sm:$0xf] }
 0x3b4   : > { %5866 = vst [vmem:[#allocation4 + $0x3d8] sm:$0xf] %v5834_v54  ;;  %v10484_v28 = vld [vmem:[#allocation4 + $0x6c] sm:$0xf0]  ;;  %v5946_v27 = vrot.slane %v5944_v34, 4  ;;  %v5953_v54 = vshll.u32 %v5875_v47, 16 }
 0x3b5   : > { %6335 = vst [vmem:[#allocation4 + $0x10] sm:$0xf] %v5932_v36  ;;  %v5957_v59 = vshrl.u32 %v5875_v47, 16  ;;  %v6772_v38 = vshll.u32 %v6706_v51, 16  ;;  %v5430_v36 = vrot.slane %v5429_v60, 4  ;;  %v6760_v57 = vrot.slane %v6759_v56, 4  ;;  %9021 = vmatmul.bf16.gmra.mxu3 %v10915_v17 }
 0x3b6   : > { %6336 = vst [vmem:[#allocation4 + $0x34] sm:$0xf] %v5942_v5  ;;  %v5440_v49 = vrot.slane %v5439_v9, 4  ;;  %v5949_v58 = vrot.slane %v5947_v8, 5  ;;  %v14356_v43 = vld [vmem:[#allocation3 + $0x24] sm:$0xf]  ;;  %v10891_v51 = vor.u32 %v11446_v63, %v10888_v62  ;;  %v10487_v60 = vor.u32 %v11346_v32, %v10484_v28 }
 0x3b7   : > { %v5082_v29 = vld [vmem:[#allocation3 + $0xb0] sm:$0x1]  ;;  %5776 = vst [vmem:[#allocation4 + $0x50] sm:$0xf] %v5640_v6  ;;  %v5435_v34 = vsel %vm11812_vm5, %v5430_v36, %v5434_v16  ;;  %v5955_v21 = vrot.slane %v5953_v54, 5  ;;  %v5959_v5 = vrot.slane %v5957_v59, 4  ;;  %v14372_v59 = vpop.f32.mrf.mxu1  ;;  %v6765_v32 = vsel %vm11812_vm5, %v6760_v57, %v14327_v46 }
 0x3b8   : > { %v5442_v2 = vshll.u32 %v5082_v29, 16  ;;  %5777 = vst [vmem:[#allocation4 + $0x74] sm:$0xf] %v5643_v33  ;;  %v5963_v47 = vshll.u32 %v5876_v14, 16  ;;  %v5950_v35 = vor.u32 %v5949_v58, %v5946_v27  ;;  %v6770_v1 = vrot.slane %v6769_v20, 4  ;;  %v11515_v46 = vld [vmem:[%s15541_s3 + $0x110] sm:$0xff] }
 0x3b9   : > { %5530 = vst [vmem:[#allocation4 + $0x3f4] sm:$0xf] %v5435_v34  ;;  %v6774_v56 = vrot.slane %v6772_v38, 5  ;;  %v14365_v6 = vld [vmem:[%s15542_s4] ss:$0 sm:$0xff]  ;;  %v5960_v9 = vor.u32 %v5959_v5, %v5955_v21  ;;  %v6777_v27 = vshrl.u32 %v14360_v53, 16  ;;  %9050 = vmatmul.bf16.gmra.mxu0 %v10487_v60  ;;  %v9081_v5 = vpop.f32.mrf.mxu2  ;;  %9309 = vmatpush.bf16.msrb.mxu2 %v11515_v46 }
 0x3ba   : > { %v5444_v26 = vrot.slane %v5442_v2, 5  ;;  %v5540_v16 = vld [vmem:[#allocation3 + $0x18] sm:$0xe]  ;;  %v5951_v14 = vrot.slane %v5950_v35, 4  ;;  %v5965_v8 = vrot.slane %v5963_v47, 5  ;;  %v8993_v54 = vadd.f32 %v14365_v6, %v14145_v12  ;;  %9283 = vmatmul.bf16.gmra.mxu1 %v10891_v51  ;;  %v11500_v34 = vld [vmem:[%s15541_s3 + $0x98] sm:$0xff] }
 0x3bb   : > { %v5541_v63 = vld [vmem:[#allocation3 + $0x1c] sm:$0xf]  ;;  %v10398_v62 = vrot.slane %v5540_v16, 9  ;;  %v11454_v20 = vld [vmem:[#allocation4 + $0x3ac] sm:$0xf]  ;;  %v5968_v28 = vshrl.u32 %v14356_v43, 16  ;;  %9130 = vmatpush.bf16.msrb.mxu3 %v11500_v34 }
 0x3bc   : > { %v5445_v33 = vsel %vm11812_vm5, %v5440_v49, %v5444_v26  ;;  %v10916_v38 = vld [vmem:[#allocation4 + $0x3cc] sm:$0xf0]  ;;  %v5956_v29 = vsel %vm11812_vm5, %v5951_v14, %v5955_v21  ;;  %v5961_v36 = vrot.slane %v5960_v9, 4  ;;  %v5542_v49 = vld [vmem:[#allocation3 + $0x20] sm:$0x1]  ;;  %v5646_v12 = vrot.slane %v5541_v63, 5 }
 0x3bd   : > { %5531 = vst [vmem:[#allocation4 + $0x418] sm:$0xf] %v5445_v33  ;;  %v5649_v57 = vrot.slane %v5542_v49, 5  ;;  %v5971_v26 = vshll.u32 %v14356_v43, 16  ;;  %v10950_v60 = vld [vmem:[#allocation4 + $0x3f0] sm:$0xf]  ;;  %v14393_v16 = vadd.f32 %v9081_v5, %v8993_v54  ;;  %v10919_v63 = vor.u32 %v11454_v20, %v10916_v38 }
 0x3be   : > { %v4139_v17 = vpop.f32.mrf.mxu0  ;;  %6337 = vst [vmem:[#allocation4 + $0x58] sm:$0xf] %v5956_v29  ;;  %v5966_v21 = vsel %vm11812_vm5, %v5961_v36, %v5965_v8  ;;  %v5647_v47 = vsel %vm11795_vm2, %v10398_v62, %v5646_v12  ;;  %v5648_v51 = vrot.slane %v5646_v12, 4  ;;  %v11467_v9 = vld [vmem:[#allocation4 + $0x410] sm:$0xf0]  ;;  %v11499_v33 = vld [vmem:[%s15541_s3 + $0x90] sm:$0xff]  ;;  %v6775_v8 = vsel %vm11812_vm5, %v6770_v1, %v6774_v56 }
 0x3bf   : > { %v4140_v58 = vadd.f32 %v14267_v40, %v4139_v17  ;;  %7168 = vst [vmem:[#allocation4 + $0x1c] sm:$0xf] %v6765_v32  ;;  %v11514_v14 = vld [vmem:[%s15541_s3 + $0x108] sm:$0xff]  ;;  %v5970_v43 = vrot.slane %v5968_v28, 4  ;;  %v6642_v54 = vld [vmem:[#allocation3 + $0x24] sm:$0xf]  ;;  %9131 = vmatpush.bf16.msrb.mxu3 %v11499_v33  ;;  %9110 = vmatmul.bf16.gmra.mxu2 %v10919_v63  ;;  %v10951_v28 = vor.u32 %v11467_v9, %v10950_v60 }
 0x3c0   : > { %15600 = vst [vmem:[#allocation11_spill] sm:$0xff] %v14393_v16  ;;  %v5650_v62 = vsel %vm11795_vm2, %v5648_v51, %v5649_v57  ;;  %v6643_v32 = vld [vmem:[#allocation3 + $0x28] sm:$0xf]  ;;  %v5879_v36 = vld [vmem:[#allocation3 + $0x2c] sm:$0x1]  ;;  %v5973_v12 = vrot.slane %v5971_v26, 5  ;;  %9310 = vmatpush.bf16.msrb.mxu2 %v11514_v14  ;;  %v14407_v51 = vpop.f32.mrf.mxu1 }
 0x3c1   : > { %v4184_v35 = vmax.f32 %v4140_v58, 0.0  ;;  %6338 = vst [vmem:[#allocation4 + $0x7c] sm:$0xf] %v5966_v21  ;;  %v5878_v29 = vld [vmem:[#allocation3 + $0x28] sm:$0xf] }
 0x3c2   : > { %5778 = vst [vmem:[#allocation4 + $0x98] sm:$0xf] %v5647_v47  ;;  %v14405_v49 = vld [vmem:[#allocation3 + $0x30] sm:$0xf]  ;;  %v5977_v58 = vshll.u32 %v5878_v29, 16  ;;  %v5981_v1 = vshrl.u32 %v5878_v29, 16  ;;  %v5974_v5 = vor.u32 %v5973_v12, %v5970_v43 }
 0x3c3   : > { %v4365_v17 = vpack.c.bf16 %v4184_v35, %v4184_v35  ;;  %5779 = vst [vmem:[#allocation4 + $0xbc] sm:$0xf] %v5650_v62  ;;  %v11455_v46 = vld [vmem:[#allocation4 + $0x3b4] sm:$0xf]  ;;  %v10520_v20 = vld [vmem:[#allocation4 + $0xb4] sm:$0xf0] }
 0x3c4   : > { %7169 = vst [vmem:[#allocation4 + $0x40] sm:$0xf] %v6775_v8  ;;  %v11355_v56 = vld [vmem:[#allocation4 + $0x94] sm:$0xf]  ;;  %v10924_v38 = vld [vmem:[#allocation4 + $0x3d4] sm:$0xf0] }
 0x3c5   : > { %v4630_v34 = vshrl.u32 %v4365_v17, 16  ;;  %6674 = vst [vmem:[#allocation4 + $0x60] sm:$0xf] %v6642_v54  ;;  %v5979_v21 = vrot.slane %v5977_v58, 5  ;;  %v5987_v47 = vshll.u32 %v5879_v36, 16  ;;  %v4633_v35 = vshll.u32 %v4365_v17, 16  ;;  %9026 = vmatmul.bf16.gmra.mxu3 %v10951_v28 }
 0x3c6   : > { %v4141_v57 = vpop.f32.mrf.mxu0  ;;  %6675 = vst [vmem:[#allocation4 + $0x84] sm:$0xf] %v6643_v32  ;;  %v5983_v14 = vrot.slane %v5981_v1, 4  ;;  %v5543_v8 = vld [vmem:[#allocation3 + $0x24] sm:$0xe]  ;;  %v5975_v54 = vrot.slane %v5974_v5, 4  ;;  %v10927_v32 = vor.u32 %v11455_v46, %v10924_v38 }
 0x3c7   : > { %v14409_v26 = vrot.slane %v4630_v34, 7  ;;  %v4142_v33 = vadd.f32 %v14267_v40, %v4141_v57  ;;  %v4844_v62 = vld [vmem:[#allocation3 + $0xb4] sm:$0xf]  ;;  %v5544_v60 = vld [vmem:[#allocation3 + $0x28] sm:$0xf]  ;;  %v5989_v58 = vrot.slane %v5987_v47, 5  ;;  %v10523_v57 = vor.u32 %v11355_v56, %v10520_v20 }
 0x3c8   : > { %v5545_v36 = vld [vmem:[#allocation3 + $0x2c] sm:$0x1]  ;;  %v5980_v12 = vsel %vm11812_vm5, %v5975_v54, %v5979_v21  ;;  %v5984_v17 = vor.u32 %v5983_v14, %v5979_v21  ;;  %v10399_v34 = vrot.slane %v5543_v8, 9  ;;  %v5653_v63 = vrot.slane %v5544_v60, 5  ;;  %v6708_v46 = vld [vmem:[#allocation3 + $0x28] sm:$0xf] }
 0x3c9   : > { %v4635_v43 = vor.u32 %v4633_v35, %v14409_v26  ;;  %v4185_v29 = vmax.f32 %v4142_v33, 0.0  ;;  %6339 = vst [vmem:[#allocation4 + $0xa0] sm:$0xf] %v5980_v12  ;;  %v5656_v35 = vrot.slane %v5545_v36, 5  ;;  %9055 = vmatmul.bf16.gmra.mxu0 %v10523_v57  ;;  %v11463_v2 = vld [vmem:[#allocation4 + $0x3f4] sm:$0xf]  ;;  %v14433_v12 = vpop.f32.mrf.mxu2 }
 0x3ca   : > { %v5985_v9 = vrot.slane %v5984_v17, 4  ;;  %v10952_v54 = vld [vmem:[#allocation4 + $0x414] sm:$0xf0]  ;;  %v11498_v21 = vld [vmem:[%s15541_s3 + $0x88] sm:$0xff]  ;;  %v5654_v56 = vsel %vm11795_vm2, %v10399_v34, %v5653_v63  ;;  %v5655_v20 = vrot.slane %v5653_v63, 4  ;;  %9288 = vmatmul.bf16.gmra.mxu1 %v10927_v32  ;;  %v6779_v8 = vrot.slane %v6777_v27, 4  ;;  %v14435_v27 = vpop.f32.mrf.mxu1 }
 0x3cb   : > { %v4845_v1 = vsel %vm13042_vm3, %v4635_v43, %v4844_v62  ;;  %v4366_v5 = vpack.c.bf16 %v4185_v29, %v4185_v29  ;;  %v4848_v28 = vld [vmem:[#allocation3 + $0xbc] sm:$0x1]  ;;  %5780 = vst [vmem:[#allocation4 + $0xe0] sm:$0xf] %v5654_v56  ;;  %v6709_v14 = vld [vmem:[#allocation3 + $0x2c] sm:$0x1]  ;;  %9132 = vmatpush.bf16.msrb.mxu3 %v11498_v21 }
 0x3cc   : > { %4846 = vst [vmem:[#allocation3 + $0xb4] sm:$0xf] %v4845_v1  ;;  %v5990_v47 = vsel %vm11812_vm5, %v5985_v9, %v5989_v58  ;;  %v15601_v62 = vshll.u32 %v14360_v53, 16  ;;  %v5657_v29 = vsel %vm11795_vm2, %v5655_v20, %v5656_v35  ;;  %v6786_v63 = vshll.u32 %v6708_v46, 16  ;;  %v6644_v58 = vld [vmem:[#allocation3 + $0x30] sm:$0xf] }
 0x3cd   : > { %v4638_v38 = vshrl.u32 %v4366_v5, 16  ;;  %v4641_v33 = vshll.u32 %v4366_v5, 16  ;;  %6340 = vst [vmem:[#allocation4 + $0xc4] sm:$0xf] %v5990_v47  ;;  %v6790_v32 = vshrl.u32 %v6708_v46, 16  ;;  %v4636_v36 = vrot.slane %v14409_v26, 4 }
 0x3ce   : > { %v6782_v60 = vrot.slane %v15601_v62, 5  ;;  %15602 = vst [vmem:[#allocation12_spill] sm:$0xff] %v14433_v12  ;;  %v6796_v17 = vshll.u32 %v6709_v14, 16  ;;  %v6788_v1 = vrot.slane %v6786_v63, 5  ;;  %v10955_v5 = vor.u32 %v11463_v2, %v10952_v54  ;;  %v11364_v62 = vld [vmem:[#allocation4 + $0xdc] sm:$0xf] }
 0x3cf   : > { %v4640_v43 = vrot.slane %v4638_v38, 7  ;;  %5781 = vst [vmem:[#allocation4 + $0x104] sm:$0xf] %v5657_v29  ;;  %v6792_v57 = vrot.slane %v6790_v32, 4  ;;  %v15604_v2 = vshrl.u32 %v14405_v49, 16  ;;  %v15605_v47 = vshll.u32 %v14405_v49, 16 }
 0x3d0   : > { %v6783_v9 = vor.u32 %v6782_v60, %v6779_v8  ;;  %15603 = vst [vmem:[#allocation13_spill] sm:$0xff] %v14435_v27  ;;  %v6798_v56 = vrot.slane %v6796_v17, 5  ;;  %v14449_v8 = vld [vmem:[#allocation3 + $0x10] sm:$0xf]  ;;  %9115 = vmatmul.bf16.gmra.mxu2 %v10955_v5  ;;  %v6645_v60 = vld [vmem:[#allocation3 + $0x34] sm:$0xf] }
 0x3d1   : > { %v4643_v53 = vor.u32 %v4641_v33, %v4640_v43  ;;  %v4645_v34 = vrot.slane %v4640_v43, 4  ;;  %v6793_v46 = vor.u32 %v6792_v57, %v6788_v1  ;;  %6676 = vst [vmem:[#allocation4 + $0xa8] sm:$0xf] %v6644_v58  ;;  %v5994_v54 = vrot.slane %v15604_v2, 4  ;;  %v10556_v29 = vld [vmem:[#allocation4 + $0xfc] sm:$0xf0] }
 0x3d2   : > { %v6784_v38 = vrot.slane %v6783_v9, 4  ;;  %v5997_v14 = vrot.slane %v15605_v47, 5  ;;  %v8998_v43 = vadd.f32 %v14365_v6, %v14199_v15  ;;  %v5535_v63 = vld [vmem:[#allocation3 + $0x4] sm:$0xf]  ;;  %v5881_v49 = vld [vmem:[#allocation3 + $0x34] sm:$0xf]  ;;  %v14456_v5 = vpop.f32.mrf.mxu1 }
 0x3d3   : > { %v4910_v21 = vld [vmem:[#allocation3 + $0xb4] sm:$0x1]  ;;  %v4644_v35 = vsel %vm13086_vm1, %v4636_v36, %v4643_v53  ;;  %v4849_v26 = vsel %vm13099_vm13, %v4645_v34, %v4848_v28  ;;  %v6794_v28 = vrot.slane %v6793_v46, 4  ;;  %v5882_v36 = vld [vmem:[#allocation3 + $0x38] sm:$0x1]  ;;  %v5632_v58 = vrot.slane %v5535_v63, 5 }
 0x3d4   : > { %v4911_v20 = vsel %vm13099_vm13, 0, %v4910_v21  ;;  %4847 = vst [vmem:[#allocation3 + $0xb8] sm:$0xf] %v4644_v35  ;;  %v6789_v33 = vsel %vm11812_vm5, %v6784_v38, %v6788_v1  ;;  %v5998_v9 = vor.u32 %v5997_v14, %v5994_v54  ;;  %v5534_v17 = vld [vmem:[#allocation3] sm:$0xe]  ;;  %v10559_v34 = vor.u32 %v11364_v62, %v10556_v29  ;;  %v9086_v1 = vpop.f32.mrf.mxu2  ;;  %v11534_v12 = vld [vmem:[%s15541_s3 + $0x1a8] sm:$0xff] }
 0x3d5   : > { %4912 = vst [vmem:[#allocation3 + $0xb4] sm:$0x1] %v4911_v20  ;;  %v6799_v32 = vsel %vm11812_vm5, %v6794_v28, %v6798_v56  ;;  %v5536_v57 = vld [vmem:[#allocation3 + $0x8] sm:$0x1]  ;;  %v14458_v15 = vadd.f32 %v9086_v1, %v8998_v43  ;;  %v6001_v21 = vshll.u32 %v5881_v49, 16  ;;  %v6005_v35 = vshrl.u32 %v5881_v49, 16 }
 0x3d6   : > { %4850 = vst [vmem:[#allocation3 + $0xbc] sm:$0x1] %v4849_v26  ;;  %v6011_v26 = vshll.u32 %v5882_v36, 16  ;;  %v10396_v20 = vrot.slane %v5534_v17, 9  ;;  %v14460_v2 = vld [vmem:[#allocation3 + $0xc] sm:$0xe] }
 0x3d7   : > { %7170 = vst [vmem:[#allocation4 + $0x64] sm:$0xf] %v6789_v33  ;;  %v5999_v33 = vrot.slane %v5998_v9, 4  ;;  %v5634_v14 = vrot.slane %v5632_v58, 4  ;;  %v5635_v28 = vrot.slane %v5536_v57, 5  ;;  %v6003_v57 = vrot.slane %v6001_v21, 5 }
 0x3d8   : > { %7171 = vst [vmem:[#allocation4 + $0x88] sm:$0xf] %v6799_v32  ;;  %v14462_v62 = vld [vmem:[#allocation3 + $0x18] sm:$0xe]  ;;  %v14468_v32 = vld [vmem:[#allocation3 + $0x30] sm:$0xf]  ;;  %v5633_v1 = vsel %vm11795_vm2, %v10396_v20, %v5632_v58 }
 0x3d9   : > { %6677 = vst [vmem:[#allocation4 + $0xcc] sm:$0xf] %v6645_v60  ;;  %9060 = vmatmul.bf16.gmra.mxu0 %v10559_v34  ;;  %v14464_v60 = vld [vmem:[#allocation3 + $0x1c] sm:$0xf]  ;;  %v6007_v52 = vrot.slane %v6005_v35, 4  ;;  %v6004_v21 = vsel %vm11812_vm5, %v5999_v33, %v6003_v57  ;;  %v15608_v20 = vrot.slane %v14449_v8, 5 }
 0x3da   : > { %15606 = vst [vmem:[#allocation14_spill] sm:$0xff] %v14456_v5  ;;  %v11373_v33 = vld [vmem:[#allocation4 + $0x124] sm:$0xf]  ;;  %v11544_v16 = vld [vmem:[%s15541_s3 + $0x1f8] sm:$0xff] }
 0x3db   : > { %15607 = vst [vmem:[#allocation15_spill] sm:$0xff] %v14458_v15  ;;  %v5005_v38 = vld [vmem:[#allocation3 + $0xb8] sm:$0xf]  ;;  %9571 = vmatpush.bf16.msra.mxu1 %v11544_v16 }
 0x3dc   : > { %v5083_v46 = vld [vmem:[#allocation3 + $0xb4] sm:$0xf]  ;;  %v5084_v56 = vld [vmem:[#allocation3 + $0xb8] sm:$0xf]  ;;  %5037 = vst [vmem:[#allocation4 + $0x45c] sm:$0xf] %v5005_v38 }
 0x3dd   : > { %v4965_v54 = vld [vmem:[#allocation3 + $0xbc] sm:$0x1]  ;;  %v5836_v47 = vld [vmem:[#allocation3 + $0xb8] sm:$0xf]  ;;  %v5004_v29 = vld [vmem:[#allocation3 + $0xb4] sm:$0xf] }
 0x3de   : > { %v4966_v43 = vsel %vm13213_vm4, 0, %v4965_v54  ;;  %v5447_v63 = vshrl.u32 %v5083_v46, 16  ;;  %v5835_v49 = vld [vmem:[#allocation3 + $0xb4] sm:$0xf]  ;;  %v5450_v36 = vshll.u32 %v5083_v46, 16  ;;  %v5456_v9 = vshll.u32 %v5084_v56, 16 }
 0x3df   : > { %4967 = vst [vmem:[#allocation3 + $0xbc] sm:$0x1] %v4966_v43  ;;  %v5460_v34 = vshrl.u32 %v5084_v56, 16  ;;  %v11536_v54 = vld [vmem:[%s15541_s3 + $0x1b8] sm:$0xff]  ;;  %v5636_v43 = vsel %vm11795_vm2, %v5634_v14, %v5635_v28  ;;  %v11497_v56 = vld [vmem:[%s15541_s3 + $0x80] sm:$0xff]  ;;  %v6008_v28 = vor.u32 %v6007_v52, %v6003_v57 }
 0x3e0   : > { %5036 = vst [vmem:[#allocation4 + $0x438] sm:$0xf] %v5004_v29  ;;  %v5449_v17 = vrot.slane %v5447_v63, 4  ;;  %v5452_v38 = vrot.slane %v5450_v36, 5  ;;  %v5458_v53 = vrot.slane %v5456_v9, 5  ;;  %v14485_v29 = vrot.slane %v15608_v20, 4  ;;  %9482 = vmatpush.bf16.msra.mxu0 %v11536_v54  ;;  %9133 = vmatpush.bf16.msrb.mxu3 %v11497_v56  ;;  %v14490_v9 = vpop.f32.mrf.mxu1 }
 0x3e1   : > { %5867 = vst [vmem:[#allocation4 + $0x3fc] sm:$0xf] %v5835_v49  ;;  %v5462_v58 = vrot.slane %v5460_v34, 4  ;;  %v6013_v49 = vrot.slane %v6011_v26, 5  ;;  %v5546_v36 = vld [vmem:[#allocation3 + $0x30] sm:$0xe] }
 0x3e2   : > { %5868 = vst [vmem:[#allocation4 + $0x420] sm:$0xf] %v5836_v47  ;;  %v5453_v35 = vor.u32 %v5452_v38, %v5449_v17  ;;  %v10592_v34 = vld [vmem:[#allocation4 + $0x144] sm:$0xf0]  ;;  %v6804_v17 = vshll.u32 %v14468_v32, 16  ;;  %v6009_v38 = vrot.slane %v6008_v28, 4 }
 0x3e3   : > { %5774 = vst [vmem:[#allocation4 + $0x8] sm:$0xf] %v5633_v1  ;;  %v11476_v20 = vld [vmem:[#allocation4 + $0x458] sm:$0xf0]  ;;  %v5463_v15 = vor.u32 %v5462_v58, %v5458_v53  ;;  %v11535_v54 = vld [vmem:[%s15541_s3 + $0x1b0] sm:$0xff] }
 0x3e4   : > { %5775 = vst [vmem:[#allocation4 + $0x2c] sm:$0xf] %v5636_v43  ;;  %v5454_v46 = vrot.slane %v5453_v35, 4  ;;  %v5547_v43 = vld [vmem:[#allocation3 + $0x34] sm:$0xf]  ;;  %9483 = vmatpush.bf16.msra.mxu0 %v11535_v54  ;;  %v10400_v35 = vrot.slane %v5546_v36, 9 }
 0x3e5   : > { %15609 = vst [vmem:[#allocation16_spill] sm:$0xff] %v14490_v9  ;;  %v14496_v52 = vld [vmem:[#allocation3 + $0x3c] sm:$0xf]  ;;  %v5548_v58 = vld [vmem:[#allocation3 + $0x38] sm:$0x1]  ;;  %v11513_v28 = vld [vmem:[%s15541_s3 + $0x100] sm:$0xff] }
 0x3e6   : > { %6341 = vst [vmem:[#allocation4 + $0xe8] sm:$0xf] %v6004_v21  ;;  %v5085_v1 = vld [vmem:[#allocation3 + $0xbc] sm:$0x1]  ;;  %v4144_v26 = vpop.f32.mrf.mxu0  ;;  %v5459_v56 = vsel %vm11812_vm5, %v5454_v46, %v5458_v53  ;;  %v6014_v53 = vsel %vm11812_vm5, %v6009_v38, %v6013_v49  ;;  %v5464_v54 = vrot.slane %v5463_v15, 4  ;;  %v11528_v36 = vld [vmem:[%s15541_s3 + $0x178] sm:$0xff]  ;;  %9311 = vmatpush.bf16.msrb.mxu2 %v11513_v28 }
 0x3e7   : > { %v10986_v57 = vld [vmem:[#allocation4 + $0x438] sm:$0xf]  ;;  %v5466_v63 = vshll.u32 %v5085_v1, 16  ;;  %v4145_v14 = vadd.f32 %v14267_v40, %v4144_v26  ;;  %5532 = vst [vmem:[#allocation4 + $0x43c] sm:$0xf] %v5459_v56  ;;  %9393 = vmatpush.bf16.msra.mxu3 %v11528_v36  ;;  %v5663_v49 = vrot.slane %v5548_v58, 5 }
 0x3e8   : > { %v10987_v47 = vor.u32 %v11476_v20, %v10986_v57  ;;  %v11464_v21 = vld [vmem:[#allocation4 + $0x3fc] sm:$0xf]  ;;  %v5660_v20 = vrot.slane %v5547_v43, 5  ;;  %v14512_v26 = vld [vmem:[#allocation3 + $0x3c] sm:$0xf]  ;;  %v10595_v57 = vor.u32 %v11373_v33, %v10592_v34  ;;  %9484 = vmatpush.bf16.msra.mxu0 %v11534_v12  ;;  %v6016_v34 = vshrl.u32 %v14496_v52, 16 }
 0x3e9   : > { %v10960_v46 = vld [vmem:[#allocation4 + $0x41c] sm:$0xf0]  ;;  %v5468_v1 = vrot.slane %v5466_v63, 5  ;;  %v4186_v44 = vmax.f32 %v4145_v14, 0.0  ;;  %6342 = vst [vmem:[#allocation4 + $0x10c] sm:$0xf] %v6014_v53 }
 0x3ea   : > { %9031 = vmatmul.bf16.gmra.mxu3 %v10987_v47  ;;  %v10963_v56 = vor.u32 %v11464_v21, %v10960_v46  ;;  %v11533_v63 = vld [vmem:[%s15541_s3 + $0x1a0] sm:$0xff]  ;;  %v5661_v14 = vsel %vm11795_vm2, %v10400_v35, %v5660_v20  ;;  %v5662_v47 = vrot.slane %v5660_v20, 4  ;;  %v6019_v38 = vshll.u32 %v14496_v52, 16  ;;  %v6712_v21 = vld [vmem:[#allocation3 + $0x38] sm:$0x1]  ;;  %9065 = vmatmul.bf16.gmra.mxu0 %v10595_v57  ;;  %v11543_v35 = vld [vmem:[%s15541_s3 + $0x1f0] sm:$0xff]  ;;  %v14540_v20 = vpop.f32.mrf.mxu1 }
 0x3eb   : > { %v5469_v15 = vsel %vm11812_vm5, %v5464_v54, %v5468_v1  ;;  %v6711_v33 = vld [vmem:[#allocation3 + $0x34] sm:$0xf]  ;;  %v4367_v43 = vpack.c.bf16 %v4186_v44, %v4186_v44  ;;  %v14527_v28 = vld [vmem:[#allocation3 + $0x48] sm:$0xf]  ;;  %5782 = vst [vmem:[#allocation4 + $0x128] sm:$0xf] %v5661_v14  ;;  %9572 = vmatpush.bf16.msra.mxu1 %v11543_v35 }
 0x3ec   : > { %9293 = vmatmul.bf16.gmra.mxu1 %v10963_v56  ;;  %5533 = vst [vmem:[#allocation4 + $0x460] sm:$0xf] %v5469_v15  ;;  %v11552_v58 = vld [vmem:[%s15541_s3 + $0x238] sm:$0xff]  ;;  %v5664_v44 = vsel %vm11795_vm2, %v5662_v47, %v5663_v49  ;;  %v15610_v52 = vshrl.u32 %v14468_v32, 16  ;;  %v6806_v1 = vrot.slane %v6804_v17, 5  ;;  %v6810_v16 = vshll.u32 %v6711_v33, 16  ;;  %9485 = vmatpush.bf16.msra.mxu0 %v11533_v63 }
 0x3ed   : > { %v4647_v46 = vshrl.u32 %v4367_v43, 16  ;;  %v4650_v54 = vshll.u32 %v4367_v43, 16  ;;  %5783 = vst [vmem:[#allocation4 + $0x14c] sm:$0xf] %v5664_v44  ;;  %v4851_v57 = vld [vmem:[#allocation3 + $0xc0] sm:$0xf]  ;;  %9660 = vmatpush.bf16.msra.mxu2 %v11552_v58 }
 0x3ee   : > { %v6803_v53 = vrot.slane %v15610_v52, 4  ;;  %15611 = vst [vmem:[#allocation17_spill] sm:$0xff] %v14540_v20  ;;  %v4146_v56 = vpop.f32.mrf.mxu0  ;;  %v11532_v15 = vld [vmem:[%s15541_s3 + $0x198] sm:$0xff]  ;;  %v6814_v14 = vshrl.u32 %v6711_v33, 16  ;;  %v6820_v32 = vshll.u32 %v6712_v21, 16  ;;  %v6812_v43 = vrot.slane %v6810_v16, 5 }
 0x3ef   : > { %v14545_v47 = vrot.slane %v4647_v46, 7  ;;  %v4147_v49 = vadd.f32 %v14267_v40, %v4146_v56  ;;  %v6646_v44 = vld [vmem:[#allocation3 + $0x3c] sm:$0xf]  ;;  %v6647_v52 = vld [vmem:[#allocation3 + $0x40] sm:$0xf]  ;;  %v15613_v46 = vrot.slane %v14460_v2, 9 }
 0x3f0   : > { %v6807_v17 = vor.u32 %v6806_v1, %v6803_v53  ;;  %v11472_v36 = vld [vmem:[#allocation4 + $0x43c] sm:$0xf]  ;;  %v10454_v12 = vld [vmem:[#allocation4 + $0x8] sm:$0xf]  ;;  %v11342_v20 = vld [vmem:[#allocation4 + $0x28] sm:$0xf0]  ;;  %9486 = vmatpush.bf16.msra.mxu0 %v11532_v15 }
 0x3f1   : > { %v11542_v63 = vld [vmem:[%s15541_s3 + $0x1e8] sm:$0xff]  ;;  %v6816_v9 = vrot.slane %v6814_v14, 4  ;;  %6678 = vst [vmem:[#allocation4 + $0xf0] sm:$0xf] %v6646_v44  ;;  %v4652_v21 = vor.u32 %v4650_v54, %v14545_v47  ;;  %v4187_v58 = vmax.f32 %v4147_v49, 0.0  ;;  %v15612_v53 = vrot.slane %v14449_v8, 5 }
 0x3f2   : > { %6679 = vst [vmem:[#allocation4 + $0x114] sm:$0xf] %v6647_v52  ;;  %v5884_v40 = vld [vmem:[#allocation3 + $0x40] sm:$0xf]  ;;  %v6808_v56 = vrot.slane %v6807_v17, 4  ;;  %v6822_v44 = vrot.slane %v6820_v32, 5  ;;  %9573 = vmatpush.bf16.msra.mxu1 %v11542_v63  ;;  %v10455_v48 = vor.u32 %v11342_v20, %v10454_v12  ;;  %v14572_v12 = vpop.f32.mrf.mxu2 }
 0x3f3   : > { %v6466_v35 = vsel %vm11795_vm2, %v15613_v46, %v15612_v53  ;;  %v10988_v1 = vld [vmem:[#allocation4 + $0x45c] sm:$0xf0]  ;;  %v11531_v16 = vld [vmem:[%s15541_s3 + $0x190] sm:$0xff]  ;;  %v6817_v14 = vor.u32 %v6816_v9, %v6812_v43  ;;  %v6018_v54 = vrot.slane %v6016_v34, 4  ;;  %v4852_v49 = vsel %vm13042_vm3, %v4652_v21, %v4851_v57  ;;  %v10628_v15 = vld [vmem:[#allocation4 + $0x18c] sm:$0xf0] }
 0x3f4   : > { %v4368_v52 = vpack.c.bf16 %v4187_v58, %v4187_v58  ;;  %v10991_v8 = vor.u32 %v11472_v36, %v10988_v1  ;;  %v5885_v33 = vld [vmem:[#allocation3 + $0x44] sm:$0x1]  ;;  %v6021_v2 = vrot.slane %v6019_v38, 5  ;;  %v4653_v5 = vrot.slane %v14545_v47, 4  ;;  %4853 = vst [vmem:[#allocation3 + $0xc0] sm:$0xf] %v4852_v49  ;;  %9487 = vmatpush.bf16.msra.mxu0 %v11531_v16  ;;  %v14570_v49 = vpop.f32.mrf.mxu1 }
 0x3f5   : > { %v11382_v53 = vld [vmem:[#allocation4 + $0x16c] sm:$0xf]  ;;  %v6813_v46 = vsel %vm11812_vm5, %v6808_v56, %v6812_v43  ;;  %v6818_v17 = vrot.slane %v6817_v14, 4  ;;  %v6025_v9 = vshll.u32 %v5884_v40, 16  ;;  %v5549_v36 = vld [vmem:[#allocation3 + $0x3c] sm:$0xe] }
 0x3f6   : > { %v4655_v32 = vshrl.u32 %v4368_v52, 16  ;;  %v4658_v34 = vshll.u32 %v4368_v52, 16  ;;  %9120 = vmatmul.bf16.gmra.mxu2 %v10991_v8  ;;  %7172 = vst [vmem:[#allocation4 + $0xac] sm:$0xf] %v6813_v46  ;;  %v6022_v57 = vor.u32 %v6021_v2, %v6018_v54  ;;  %v6029_v21 = vshrl.u32 %v5884_v40, 16  ;;  %v9002_v2 = vpop.f32.mrf.mxu3  ;;  %v11530_v46 = vld [vmem:[%s15541_s3 + $0x188] sm:$0xff] }
 0x3f7   : > { %v6823_v38 = vsel %vm11812_vm5, %v6818_v17, %v6822_v44  ;;  %v6027_v47 = vrot.slane %v6025_v9, 5  ;;  %v6035_v58 = vshll.u32 %v5885_v33, 16  ;;  %v5550_v63 = vld [vmem:[#allocation3 + $0x40] sm:$0xf]  ;;  %v5551_v56 = vld [vmem:[#allocation3 + $0x44] sm:$0x1]  ;;  %v10631_v33 = vor.u32 %v11382_v53, %v10628_v15 }
 0x3f8   : > { %v4657_v1 = vrot.slane %v4655_v32, 7  ;;  %7173 = vst [vmem:[#allocation4 + $0xd0] sm:$0xf] %v6823_v38  ;;  %v6023_v43 = vrot.slane %v6022_v57, 4  ;;  %v6043_v14 = vshll.u32 %v14527_v28, 16  ;;  %v6031_v54 = vrot.slane %v6029_v21, 4  ;;  %9488 = vmatpush.bf16.msra.mxu0 %v11530_v46 }
 0x3f9   : > { %15614 = vst [vmem:[#allocation18_spill] sm:$0xff] %v14570_v49  ;;  %v4855_v20 = vld [vmem:[#allocation3 + $0xc8] sm:$0x1]  ;;  %v6037_v16 = vrot.slane %v6035_v58, 5  ;;  %v10401_v52 = vrot.slane %v5549_v36, 9  ;;  %v11541_v17 = vld [vmem:[%s15541_s3 + $0x1e0] sm:$0xff] }
 0x3fa   : > { %15615 = vst [vmem:[#allocation19_spill] sm:$0xff] %v14572_v12  ;;  %v14574_v8 = vld [vmem:[#allocation3 + $0x14] sm:$0x1]  ;;  %v4660_v44 = vor.u32 %v4658_v34, %v4657_v1  ;;  %v4662_v40 = vrot.slane %v4657_v1, 4  ;;  %9134 = vmatmul.bf16.vlgmr.msrb.gmra.mxu3 %v10455_v48  ;;  %v6028_v32 = vsel %vm11812_vm5, %v6023_v43, %v6027_v47  ;;  %v11540_v48 = vld [vmem:[%s15541_s3 + $0x1d8] sm:$0xff]  ;;  %v6032_v53 = vor.u32 %v6031_v54, %v6027_v47 }
 0x3fb   : > { %v11529_v9 = vld [vmem:[%s15541_s3 + $0x180] sm:$0xff]  ;;  %6607 = vst [vmem:[#allocation4 + $0x14] sm:$0xf] %v6466_v35  ;;  %v5667_v15 = vrot.slane %v5550_v63, 5  ;;  %v5670_v34 = vrot.slane %v5551_v56, 5  ;;  %v15616_v57 = vshrl.u32 %v14512_v26, 16  ;;  %9574 = vmatpush.bf16.msra.mxu1 %v11541_v17  ;;  %9070 = vmatmul.bf16.gmra.mxu0 %v10631_v33  ;;  %v9003_v63 = vadd.f32 %v14365_v6, %v9002_v2 }
 0x3fc   : > { %6343 = vst [vmem:[#allocation4 + $0x130] sm:$0xf] %v6028_v32  ;;  %v4913_v38 = vld [vmem:[#allocation3 + $0xc0] sm:$0x1]  ;;  %v4661_v21 = vsel %vm13086_vm1, %v4653_v5, %v4660_v44  ;;  %v4856_v58 = vsel %vm13099_vm13, %v4662_v40, %v4855_v20  ;;  %v6715_v1 = vld [vmem:[#allocation3 + $0x44] sm:$0x1]  ;;  %9489 = vmatpush.bf16.msra.mxu0 %v11529_v9 }
 0x3fd   : > { %v6827_v36 = vrot.slane %v15616_v57, 4  ;;  %v6714_v35 = vld [vmem:[#allocation3 + $0x40] sm:$0xf]  ;;  %v4914_v47 = vsel %vm13099_vm13, 0, %v4913_v38  ;;  %4854 = vst [vmem:[#allocation3 + $0xc4] sm:$0xf] %v4661_v21  ;;  %v5668_v56 = vsel %vm11795_vm2, %v10401_v52, %v5667_v15 }
 0x3fe   : > { %v6033_v43 = vrot.slane %v6032_v53, 4  ;;  %4915 = vst [vmem:[#allocation3 + $0xc0] sm:$0x1] %v4914_v47  ;;  %v5669_v5 = vrot.slane %v5667_v15, 4  ;;  %v15617_v20 = vshll.u32 %v14512_v26, 16  ;;  %v6834_v44 = vshll.u32 %v6714_v35, 16  ;;  %v9091_v15 = vpop.f32.mrf.mxu2  ;;  %v14624_v47 = vpop.f32.mrf.mxu1 }
 0x3ff   : > { %v6838_v40 = vshrl.u32 %v6714_v35, 16  ;;  %4857 = vst [vmem:[#allocation3 + $0xc8] sm:$0x1] %v4856_v58  ;;  %v10462_v17 = vld [vmem:[#allocation4 + $0x10] sm:$0xf]  ;;  %v6844_v2 = vshll.u32 %v6715_v1, 16  ;;  %9575 = vmatpush.bf16.msra.mxu1 %v11540_v48  ;;  %v14618_v48 = vadd.f32 %v9091_v15, %v9003_v63 }
 0x400   : > { %v6830_v54 = vrot.slane %v15617_v20, 5  ;;  %v11343_v33 = vld [vmem:[#allocation4 + $0x30] sm:$0xf0]  ;;  %v6038_v6 = vsel %vm11812_vm5, %v6033_v43, %v6037_v16  ;;  %v5671_v52 = vsel %vm11795_vm2, %v5669_v5, %v5670_v34  ;;  %v6648_v26 = vld [vmem:[#allocation3 + $0x48] sm:$0xf]  ;;  %v6836_v57 = vrot.slane %v6834_v44, 5  ;;  %v14627_v5 = vpop.f32.mrf.mxu3 }
 0x401   : > { %6344 = vst [vmem:[#allocation4 + $0x154] sm:$0xf] %v6038_v6  ;;  %v6649_v53 = vld [vmem:[#allocation3 + $0x4c] sm:$0xf]  ;;  %v6840_v38 = vrot.slane %v6838_v40, 4  ;;  %v15618_v21 = vshrl.u32 %v14527_v28, 16  ;;  %v10463_v20 = vor.u32 %v11343_v33, %v10462_v17 }
 0x402   : > { %v6831_v32 = vor.u32 %v6830_v54, %v6827_v36  ;;  %5784 = vst [vmem:[#allocation4 + $0x170] sm:$0xf] %v5668_v56  ;;  %v6045_v35 = vrot.slane %v6043_v14, 5  ;;  %v15619_v16 = vrot.slane %v14464_v60, 5  ;;  %v14616_v9 = vld [vmem:[#allocation3 + $0x54] sm:$0xf] }
 0x403   : > { %v6042_v58 = vrot.slane %v15618_v21, 4  ;;  %15620 = vst [vmem:[#allocation20_spill] sm:$0xff] %v14618_v48  ;;  %v11539_v34 = vld [vmem:[%s15541_s3 + $0x1d0] sm:$0xff]  ;;  %v6849_v36 = vshrl.u32 %v14601_v3, 16  ;;  %v10490_v28 = vld [vmem:[#allocation4 + $0x50] sm:$0xf]  ;;  %v6841_v14 = vor.u32 %v6840_v38, %v6836_v57 }
 0x404   : > { %v14614_v1 = vrot.slane %v15619_v16, 4  ;;  %5785 = vst [vmem:[#allocation4 + $0x194] sm:$0xf] %v5671_v52  ;;  %v6832_v43 = vrot.slane %v6831_v32, 4  ;;  %v6852_v56 = vshll.u32 %v14601_v3, 16  ;;  %9576 = vmatpush.bf16.msra.mxu1 %v11539_v34  ;;  %v11538_v54 = vld [vmem:[%s15541_s3 + $0x1c8] sm:$0xff] }
 0x405   : > { %15621 = vst [vmem:[#allocation21_spill] sm:$0xff] %v14624_v47  ;;  %v11351_v63 = vld [vmem:[#allocation4 + $0x70] sm:$0xf0]  ;;  %v14633_v40 = vld [vmem:[#allocation3 + $0x54] sm:$0xf]  ;;  %v6846_v52 = vrot.slane %v6844_v2, 5 }
 0x406   : > { %6680 = vst [vmem:[#allocation4 + $0x138] sm:$0xf] %v6648_v26  ;;  %v5837_v6 = vld [vmem:[#allocation3 + $0xc0] sm:$0xf]  ;;  %v5887_v32 = vld [vmem:[#allocation3 + $0x4c] sm:$0xf]  ;;  %v6046_v26 = vor.u32 %v6045_v35, %v6042_v58  ;;  %9312 = vmatmul.bf16.vlgmr.msrb.gmra.mxu2 %v10463_v20  ;;  %v10491_v2 = vor.u32 %v11351_v63, %v10490_v28 }
 0x407   : > { %15622 = vst [vmem:[#allocation22_spill] sm:$0xff] %v14627_v5  ;;  %v4968_v15 = vld [vmem:[#allocation3 + $0xc8] sm:$0x1]  ;;  %v5838_v3 = vld [vmem:[#allocation3 + $0xc4] sm:$0xf]  ;;  %v6842_v21 = vrot.slane %v6841_v14, 4 }
 0x408   : > { %6681 = vst [vmem:[#allocation4 + $0x15c] sm:$0xf] %v6649_v53  ;;  %v5888_v38 = vld [vmem:[#allocation3 + $0x50] sm:$0x1]  ;;  %v4969_v17 = vsel %vm13213_vm4, 0, %v4968_v15  ;;  %v6837_v53 = vsel %vm11812_vm5, %v6832_v43, %v6836_v57  ;;  %9577 = vmatpush.bf16.msra.mxu1 %v11538_v54  ;;  %v6049_v58 = vshll.u32 %v5887_v32, 16 }
 0x409   : > { %v11391_v33 = vld [vmem:[#allocation4 + $0x1b4] sm:$0xf]  ;;  %5869 = vst [vmem:[#allocation4 + $0x444] sm:$0xf] %v5837_v6  ;;  %v10664_v34 = vld [vmem:[#allocation4 + $0x1d4] sm:$0xf0]  ;;  %v6847_v35 = vsel %vm11812_vm5, %v6842_v21, %v6846_v52 }
 0x40a   : > { %4970 = vst [vmem:[#allocation3 + $0xc8] sm:$0x1] %v4969_v17  ;;  %v6047_v20 = vrot.slane %v6046_v26, 4  ;;  %v6053_v46 = vshrl.u32 %v5887_v32, 16  ;;  %v6059_v15 = vshll.u32 %v5888_v38, 16  ;;  %9139 = vmatmul.bf16.gmra.mxu3 %v10491_v2  ;;  %v11537_v57 = vld [vmem:[%s15541_s3 + $0x1c0] sm:$0xff]  ;;  %v10667_v63 = vor.u32 %v11391_v33, %v10664_v34  ;;  %v14650_v17 = vpop.f32.mrf.mxu1  ;;  %v9007_v34 = vpop.f32.mrf.mxu3 }
 0x40b   : > { %5870 = vst [vmem:[#allocation4 + $0x468] sm:$0xf] %v5838_v3  ;;  %v11527_v28 = vld [vmem:[%s15541_s3 + $0x170] sm:$0xff]  ;;  %v6851_v43 = vrot.slane %v6849_v36, 4  ;;  %v6051_v54 = vrot.slane %v6049_v58, 5  ;;  %v6854_v38 = vrot.slane %v6852_v56, 5  ;;  %v14656_v56 = vpop.f32.mrf.mxu2 }
 0x40c   : > { %7174 = vst [vmem:[#allocation4 + $0xf4] sm:$0xf] %v6837_v53  ;;  %v6055_v52 = vrot.slane %v6053_v46, 4  ;;  %9578 = vmatpush.bf16.msra.mxu1 %v11537_v57  ;;  %9394 = vmatpush.bf16.msra.mxu3 %v11527_v28  ;;  %v6061_v32 = vrot.slane %v6059_v15, 5  ;;  %v5552_v26 = vld [vmem:[#allocation3 + $0x48] sm:$0xe] }
 0x40d   : > { %7175 = vst [vmem:[#allocation4 + $0x118] sm:$0xf] %v6847_v35  ;;  %v5553_v3 = vld [vmem:[#allocation3 + $0x4c] sm:$0xf]  ;;  %9075 = vmatmul.bf16.gmra.mxu0 %v10667_v63  ;;  %v6052_v21 = vsel %vm11812_vm5, %v6047_v20, %v6051_v54  ;;  %v5554_v36 = vld [vmem:[#allocation3 + $0x50] sm:$0x1]  ;;  %v6855_v35 = vor.u32 %v6854_v38, %v6851_v43 }
 0x40e   : > { %15623 = vst [vmem:[#allocation23_spill] sm:$0xff] %v14650_v17  ;;  %v6056_v53 = vor.u32 %v6055_v52, %v6051_v54  ;;  %v10402_v2 = vrot.slane %v5552_v26, 9  ;;  %v5674_v14 = vrot.slane %v5553_v3, 5  ;;  %v6717_v33 = vld [vmem:[#allocation3 + $0x4c] sm:$0xf]  ;;  %v5677_v46 = vrot.slane %v5554_v36, 5 }
 0x40f   : > { %6345 = vst [vmem:[#allocation4 + $0x178] sm:$0xf] %v6052_v21  ;;  %v6858_v15 = vshll.u32 %v6717_v33, 16  ;;  %v14654_v57 = vld [vmem:[#allocation3 + $0x60] sm:$0xf]  ;;  %v6856_v3 = vrot.slane %v6855_v35, 4  ;;  %v4149_v16 = vpop.f32.mrf.mxu0 }
 0x410   : > { %v11473_v58 = vld [vmem:[#allocation4 + $0x444] sm:$0xf]  ;;  %15624 = vst [vmem:[#allocation24_spill] sm:$0xff] %v14656_v56  ;;  %v10498_v28 = vld [vmem:[#allocation4 + $0x58] sm:$0xf]  ;;  %v6057_v63 = vrot.slane %v6056_v53, 4  ;;  %v5675_v20 = vsel %vm11795_vm2, %v10402_v2, %v5674_v14 }
 0x411   : > { %v5676_v54 = vrot.slane %v5674_v14, 4  ;;  %v6718_v52 = vld [vmem:[#allocation3 + $0x50] sm:$0x1]  ;;  %5786 = vst [vmem:[#allocation4 + $0x1b8] sm:$0xf] %v5675_v20  ;;  %v6860_v6 = vrot.slane %v6858_v15, 5 }
 0x412   : > { %v10996_v26 = vld [vmem:[#allocation4 + $0x464] sm:$0xf0]  ;;  %v11352_v36 = vld [vmem:[#allocation4 + $0x78] sm:$0xf0]  ;;  %v6062_v43 = vsel %vm11812_vm5, %v6057_v63, %v6061_v32  ;;  %v6862_v44 = vshrl.u32 %v6717_v33, 16  ;;  %v6868_v2 = vshll.u32 %v6718_v52, 16 }
 0x413   : > { %v10999_v21 = vor.u32 %v11473_v58, %v10996_v26  ;;  %v5678_v38 = vsel %vm11795_vm2, %v5676_v54, %v5677_v46  ;;  %v6650_v53 = vld [vmem:[#allocation3 + $0x54] sm:$0xf]  ;;  %v11551_v14 = vld [vmem:[%s15541_s3 + $0x230] sm:$0xff]  ;;  %6346 = vst [vmem:[#allocation4 + $0x19c] sm:$0xf] %v6062_v43  ;;  %v6861_v16 = vsel %vm11812_vm5, %v6856_v3, %v6860_v6  ;;  %v15625_v33 = vshrl.u32 %v14616_v9, 16  ;;  %v9096_v12 = vpop.f32.mrf.mxu2 }
 0x414   : > { %v6651_v58 = vld [vmem:[#allocation3 + $0x58] sm:$0xf]  ;;  %v10526_v35 = vld [vmem:[#allocation4 + $0x98] sm:$0xf]  ;;  %v11360_v32 = vld [vmem:[#allocation4 + $0xb8] sm:$0xf0]  ;;  %v10499_v54 = vor.u32 %v11352_v36, %v10498_v28  ;;  %9661 = vmatpush.bf16.msra.mxu2 %v11551_v14  ;;  %v14683_v36 = vpop.f32.mrf.mxu3 }
 0x415   : > { %9298 = vmatmul.bf16.gmra.mxu1 %v10999_v21  ;;  %5787 = vst [vmem:[#allocation4 + $0x1dc] sm:$0xf] %v5678_v38  ;;  %v6864_v15 = vrot.slane %v6862_v44, 4  ;;  %v5890_v46 = vld [vmem:[#allocation3 + $0x58] sm:$0xf]  ;;  %v6066_v63 = vrot.slane %v15625_v33, 4  ;;  %v10527_v44 = vor.u32 %v11360_v32, %v10526_v35 }
 0x416   : > { %7176 = vst [vmem:[#allocation4 + $0x13c] sm:$0xf] %v6861_v16  ;;  %v5891_v26 = vld [vmem:[#allocation3 + $0x5c] sm:$0x1]  ;;  %v15626_v43 = vshll.u32 %v14616_v9, 16  ;;  %v6870_v21 = vrot.slane %v6868_v2, 5  ;;  %9317 = vmatmul.bf16.gmra.mxu2 %v10499_v54  ;;  %v14686_v16 = vpop.f32.mrf.mxu1 }
 0x417   : > { %v10470_v52 = vld [vmem:[#allocation4 + $0x18] sm:$0xf]  ;;  %v6865_v19 = vor.u32 %v6864_v15, %v6860_v6  ;;  %6682 = vst [vmem:[#allocation4 + $0x180] sm:$0xf] %v6650_v53  ;;  %v6073_v56 = vshll.u32 %v5890_v46, 16  ;;  %v6077_v38 = vshrl.u32 %v5890_v46, 16 }
 0x418   : > { %v6069_v3 = vrot.slane %v15626_v43, 5  ;;  %v14680_v33 = vld [vmem:[%s15542_s4] ss:$0 sm:$0xff]  ;;  %15627 = vst [vmem:[#allocation25_spill] sm:$0xff] %v14683_v36  ;;  %v6083_v14 = vshll.u32 %v5891_v26, 16  ;;  %v4151_v36 = vpop.f32.mrf.mxu0 }
 0x419   : > { %v9008_v28 = vadd.f32 %v14680_v33, %v9007_v34  ;;  %6683 = vst [vmem:[#allocation4 + $0x1a4] sm:$0xf] %v6651_v58  ;;  %v5555_v6 = vld [vmem:[#allocation3 + $0x54] sm:$0xe]  ;;  %v6866_v15 = vrot.slane %v6865_v19, 4  ;;  %v6075_v46 = vrot.slane %v6073_v56, 5 }
 0x41a   : > { %v6070_v9 = vor.u32 %v6069_v3, %v6066_v63  ;;  %15628 = vst [vmem:[#allocation26_spill] sm:$0xff] %v14686_v16  ;;  %v11344_v2 = vld [vmem:[#allocation4 + $0x38] sm:$0xf0]  ;;  %v6079_v43 = vrot.slane %v6077_v38, 4  ;;  %v6085_v5 = vrot.slane %v6083_v14, 5  ;;  %v10403_v54 = vrot.slane %v5555_v6, 9  ;;  %9144 = vmatmul.bf16.gmra.mxu3 %v10527_v44 }
 0x41b   : > { %v5556_v48 = vld [vmem:[#allocation3 + $0x58] sm:$0xf]  ;;  %v5557_v34 = vld [vmem:[#allocation3 + $0x5c] sm:$0x1]  ;;  %v6871_v58 = vsel %vm11812_vm5, %v6866_v15, %v6870_v21  ;;  %v14690_v3 = vadd.f32 %v9096_v12, %v9008_v28  ;;  %v10471_v53 = vor.u32 %v11344_v2, %v10470_v52  ;;  %v15630_v21 = vshrl.u32 %v14633_v40, 16 }
 0x41c   : > { %v6071_v20 = vrot.slane %v6070_v9, 4  ;;  %v6080_v63 = vor.u32 %v6079_v43, %v6075_v46  ;;  %v5681_v26 = vrot.slane %v5556_v48, 5  ;;  %7177 = vst [vmem:[#allocation4 + $0x160] sm:$0xf] %v6871_v58  ;;  %v5684_v56 = vrot.slane %v5557_v34, 5  ;;  %v9012_v15 = vpop.f32.mrf.mxu3 }
 0x41d   : > { %15629 = vst [vmem:[#allocation27_spill] sm:$0xff] %v14690_v3  ;;  %v6720_v35 = vld [vmem:[#allocation3 + $0x58] sm:$0xf]  ;;  %v6875_v9 = vrot.slane %v15630_v21, 4  ;;  %v11340_v48 = vld [vmem:[#allocation4 + $0x1c] sm:$0xf]  ;;  %9490 = vmatmul.bf16.vlgmr.msra.gmra.mxu0 %v10471_v53 }
 0x41e   : > { %v6076_v19 = vsel %vm11812_vm5, %v6071_v20, %v6075_v46  ;;  %v6081_v32 = vrot.slane %v6080_v63, 4  ;;  %v5682_v38 = vsel %vm11795_vm2, %v10403_v54, %v5681_v26  ;;  %v5683_v36 = vrot.slane %v5681_v26, 4  ;;  %v6721_v12 = vld [vmem:[#allocation3 + $0x5c] sm:$0x1]  ;;  %v10472_v52 = vld [vmem:[#allocation4 + $0x3c] sm:$0xf0] }
 0x41f   : > { %6347 = vst [vmem:[#allocation4 + $0x1c0] sm:$0xf] %v6076_v19  ;;  %v15631_v28 = vshll.u32 %v14633_v40, 16  ;;  %v6882_v6 = vshll.u32 %v6720_v35, 16  ;;  %v6652_v2 = vld [vmem:[#allocation3 + $0x60] sm:$0xf] }
 0x420   : > { %5788 = vst [vmem:[#allocation4 + $0x200] sm:$0xf] %v5682_v38  ;;  %v6086_v44 = vsel %vm11812_vm5, %v6081_v32, %v6085_v5  ;;  %v5685_v20 = vsel %vm11795_vm2, %v5683_v36, %v5684_v56  ;;  %v6886_v46 = vshrl.u32 %v6720_v35, 16  ;;  %v6892_v43 = vshll.u32 %v6721_v12, 16  ;;  %v6653_v34 = vld [vmem:[#allocation3 + $0x64] sm:$0xf]  ;;  %v14707_v32 = vpop.f32.mrf.mxu1  ;;  %v14709_v38 = vpop.f32.mrf.mxu2 }
 0x421   : > { %v6878_v14 = vrot.slane %v15631_v28, 5  ;;  %6348 = vst [vmem:[#allocation4 + $0x1e4] sm:$0xf] %v6086_v44  ;;  %v10534_v58 = vld [vmem:[#allocation4 + $0xa0] sm:$0xf]  ;;  %v6884_v63 = vrot.slane %v6882_v6, 5  ;;  %v10475_v35 = vor.u32 %v11340_v48, %v10472_v52 }
 0x422   : > { %5789 = vst [vmem:[#allocation4 + $0x224] sm:$0xf] %v5685_v20  ;;  %v5893_v54 = vld [vmem:[#allocation3 + $0x64] sm:$0xf]  ;;  %v15632_v5 = vshrl.u32 %v14654_v57, 16  ;;  %v6900_v19 = vshll.u32 %v14664_v18, 16 }
 0x423   : > { %v6879_v53 = vor.u32 %v6878_v14, %v6875_v9  ;;  %v6888_v56 = vrot.slane %v6886_v46, 4  ;;  %6684 = vst [vmem:[#allocation4 + $0x1c8] sm:$0xf] %v6652_v2  ;;  %v5894_v40 = vld [vmem:[#allocation3 + $0x68] sm:$0x1]  ;;  %v15635_v9 = vshll.u32 %v14654_v57, 16 }
 0x424   : > { %v6090_v26 = vrot.slane %v15632_v5, 4  ;;  %15633 = vst [vmem:[#allocation28_spill] sm:$0xff] %v14707_v32  ;;  %v11361_v36 = vld [vmem:[#allocation4 + $0xc0] sm:$0xf0]  ;;  %v14713_v44 = vld [vmem:[#allocation3 + $0x6c] sm:$0xf] }
 0x425   : > { %15634 = vst [vmem:[#allocation29_spill] sm:$0xff] %v14709_v38  ;;  %v6880_v21 = vrot.slane %v6879_v53, 4  ;;  %v6093_v12 = vrot.slane %v15635_v9, 5  ;;  %v6889_v20 = vor.u32 %v6888_v56, %v6884_v63  ;;  %v6894_v28 = vrot.slane %v6892_v43, 5  ;;  %v5558_v6 = vld [vmem:[#allocation3 + $0x60] sm:$0xe]  ;;  %9579 = vmatmul.bf16.vlgmr.msra.gmra.mxu1 %v10475_v35 }
 0x426   : > { %6685 = vst [vmem:[#allocation4 + $0x1ec] sm:$0xf] %v6653_v34  ;;  %v6097_v14 = vshll.u32 %v5893_v54, 16  ;;  %v10562_v2 = vld [vmem:[#allocation4 + $0xe0] sm:$0xf]  ;;  %v6101_v38 = vshrl.u32 %v5893_v54, 16  ;;  %v8958_v34 = vadd.f32 %v14680_v33, %v13805_v31  ;;  %v10535_v53 = vor.u32 %v11361_v36, %v10534_v58  ;;  %v14721_v54 = vpop.f32.mrf.mxu3 }
 0x427   : > { %v6885_v46 = vsel %vm11812_vm5, %v6880_v21, %v6884_v63  ;;  %v6094_v5 = vor.u32 %v6093_v12, %v6090_v26  ;;  %v6107_v48 = vshll.u32 %v5894_v40, 16  ;;  %v5559_v52 = vld [vmem:[#allocation3 + $0x64] sm:$0xf]  ;;  %v10506_v57 = vld [vmem:[#allocation4 + $0x60] sm:$0xf]  ;;  %v6890_v9 = vrot.slane %v6889_v20, 4 }
 0x428   : > { %7178 = vst [vmem:[#allocation4 + $0x184] sm:$0xf] %v6885_v46  ;;  %v6099_v56 = vrot.slane %v6097_v14, 5  ;;  %v5560_v43 = vld [vmem:[#allocation3 + $0x68] sm:$0x1]  ;;  %v6112_v3 = vshrl.u32 %v14713_v44, 16  ;;  %v9013_v63 = vadd.f32 %v14680_v33, %v9012_v15  ;;  %9322 = vmatmul.bf16.gmra.mxu2 %v10535_v53  ;;  %v9101_v53 = vpop.f32.mrf.mxu2 }
 0x429   : > { %v11369_v35 = vld [vmem:[#allocation4 + $0x100] sm:$0xf0]  ;;  %v6095_v32 = vrot.slane %v6094_v5, 4  ;;  %v6103_v16 = vrot.slane %v6101_v38, 4  ;;  %v10404_v17 = vrot.slane %v5558_v6, 9  ;;  %15636 = vst [vmem:[#allocation30_spill] sm:$0xff] %v14721_v54  ;;  %v6895_v31 = vsel %vm11812_vm5, %v6890_v9, %v6894_v28 }
 0x42a   : > { %v11353_v26 = vld [vmem:[#allocation4 + $0x80] sm:$0xf0]  ;;  %v5688_v58 = vrot.slane %v5559_v52, 5  ;;  %v5691_v40 = vrot.slane %v5560_v43, 5  ;;  %v6723_v36 = vld [vmem:[#allocation3 + $0x64] sm:$0xf]  ;;  %v10563_v6 = vor.u32 %v11369_v35, %v10562_v2 }
 0x42b   : > { %v6115_v21 = vshll.u32 %v14713_v44, 16  ;;  %7179 = vst [vmem:[#allocation4 + $0x1a8] sm:$0xf] %v6895_v31  ;;  %v6100_v12 = vsel %vm11812_vm5, %v6095_v32, %v6099_v56  ;;  %v6104_v38 = vor.u32 %v6103_v16, %v6099_v56  ;;  %v6109_v20 = vrot.slane %v6107_v48, 5  ;;  %v6724_v14 = vld [vmem:[#allocation3 + $0x68] sm:$0x1]  ;;  %v9046_v48 = vpop.f32.mrf.mxu0 }
 0x42c   : > { %v14728_v15 = vld [vmem:[#allocation3 + $0x20] sm:$0x1]  ;;  %6349 = vst [vmem:[#allocation4 + $0x208] sm:$0xf] %v6100_v12  ;;  %v5689_v46 = vsel %vm11795_vm2, %v10404_v17, %v5688_v58  ;;  %v5690_v28 = vrot.slane %v5688_v58, 4  ;;  %v15637_v5 = vshrl.u32 %v14664_v18, 16  ;;  %v10507_v44 = vor.u32 %v11353_v26, %v10506_v57  ;;  %9149 = vmatmul.bf16.gmra.mxu3 %v10563_v6  ;;  %v14743_v57 = vpop.f32.mrf.mxu1 }
 0x42d   : > { %v6105_v9 = vrot.slane %v6104_v38, 4  ;;  %5790 = vst [vmem:[#allocation4 + $0x248] sm:$0xf] %v5689_v46  ;;  %v6902_v43 = vrot.slane %v6900_v19, 5  ;;  %v6906_v32 = vshll.u32 %v6723_v36, 16  ;;  %v14734_v16 = vadd.f32 %v9101_v53, %v9013_v63  ;;  %v11526_v2 = vld [vmem:[%s15541_s3 + $0x168] sm:$0xff] }
 0x42e   : > { %v6899_v52 = vrot.slane %v15637_v5, 4  ;;  %v5692_v17 = vsel %vm11795_vm2, %v5690_v28, %v5691_v40  ;;  %v6910_v56 = vshrl.u32 %v6723_v36, 16  ;;  %v6916_v18 = vshll.u32 %v6724_v14, 16  ;;  %v6654_v35 = vld [vmem:[#allocation3 + $0x6c] sm:$0xf]  ;;  %15639 = vst [vmem:[#allocation32_spill] sm:$0xff] %v14743_v57  ;;  %9395 = vmatpush.bf16.msra.mxu3 %v11526_v2  ;;  %9495 = vmatmul.bf16.gmra.mxu0 %v10507_v44 }
 0x42f   : > { %15638 = vst [vmem:[#allocation31_spill] sm:$0xff] %v14734_v16  ;;  %v14741_v31 = vld [vmem:[#allocation3 + $0x6c] sm:$0xf]  ;;  %v14745_v19 = vadd.f32 %v9046_v48, %v8958_v34  ;;  %v6110_v63 = vsel %vm11812_vm5, %v6105_v9, %v6109_v20  ;;  %v6908_v58 = vrot.slane %v6906_v32, 5  ;;  %v11349_v38 = vld [vmem:[#allocation4 + $0x64] sm:$0xf] }
 0x430   : > { %5791 = vst [vmem:[#allocation4 + $0x26c] sm:$0xf] %v5692_v17  ;;  %v6903_v26 = vor.u32 %v6902_v43, %v6899_v52  ;;  %v10508_v6 = vld [vmem:[#allocation4 + $0x84] sm:$0xf0]  ;;  %v6912_v40 = vrot.slane %v6910_v56, 4  ;;  %v6114_v28 = vrot.slane %v6112_v3, 4  ;;  %v9017_v52 = vpop.f32.mrf.mxu3 }
 0x431   : > { %6350 = vst [vmem:[#allocation4 + $0x22c] sm:$0xf] %v6110_v63  ;;  %v6655_v36 = vld [vmem:[#allocation3 + $0x70] sm:$0xf]  ;;  %v14750_v14 = vld [vmem:[#allocation3 + $0x78] sm:$0xf]  ;;  %v14758_v63 = vpop.f32.mrf.mxu2 }
 0x432   : > { %v6904_v46 = vrot.slane %v6903_v26, 4  ;;  %6686 = vst [vmem:[#allocation4 + $0x210] sm:$0xf] %v6654_v35  ;;  %v5896_v34 = vld [vmem:[#allocation3 + $0x70] sm:$0xf]  ;;  %v6921_v20 = vshrl.u32 %v14741_v31, 16  ;;  %v6913_v53 = vor.u32 %v6912_v40, %v6908_v58  ;;  %v10511_v26 = vor.u32 %v11349_v38, %v10508_v6 }
 0x433   : > { %v14753_v5 = vld [vmem:[#allocation3 + $0x78] sm:$0xf]  ;;  %v6918_v9 = vrot.slane %v6916_v18, 5  ;;  %6687 = vst [vmem:[#allocation4 + $0x234] sm:$0xf] %v6655_v36  ;;  %v6924_v32 = vshll.u32 %v14741_v31, 16  ;;  %v14761_v16 = vpop.f32.mrf.mxu0 }
 0x434   : > { %v5897_v43 = vld [vmem:[#allocation3 + $0x74] sm:$0x1]  ;;  %v10570_v48 = vld [vmem:[#allocation4 + $0xe8] sm:$0xf]  ;;  %v6909_v2 = vsel %vm11812_vm5, %v6904_v46, %v6908_v58  ;;  %v6117_v44 = vrot.slane %v6115_v21, 5  ;;  %v6914_v35 = vrot.slane %v6913_v53, 4  ;;  %v14771_v47 = vpop.f32.mrf.mxu1 }
 0x435   : > { %v5561_v17 = vld [vmem:[#allocation3 + $0x6c] sm:$0xe]  ;;  %v11370_v56 = vld [vmem:[#allocation4 + $0x108] sm:$0xf0]  ;;  %7180 = vst [vmem:[#allocation4 + $0x1cc] sm:$0xf] %v6909_v2  ;;  %9584 = vmatmul.bf16.gmra.mxu1 %v10511_v26 }
 0x436   : > { %v6121_v3 = vshll.u32 %v5896_v34, 16  ;;  %15640 = vst [vmem:[#allocation33_spill] sm:$0xff] %v14758_v63  ;;  %v6118_v12 = vor.u32 %v6117_v44, %v6114_v28  ;;  %v6125_v40 = vshrl.u32 %v5896_v34, 16  ;;  %v6131_v18 = vshll.u32 %v5897_v43, 16  ;;  %v5562_v36 = vld [vmem:[#allocation3 + $0x70] sm:$0xf] }
 0x437   : > { %v5563_v54 = vld [vmem:[#allocation3 + $0x74] sm:$0x1]  ;;  %v11550_v21 = vld [vmem:[%s15541_s3 + $0x228] sm:$0xff]  ;;  %v6919_v58 = vsel %vm11812_vm5, %v6914_v35, %v6918_v9  ;;  %v10405_v53 = vrot.slane %v5561_v17, 9  ;;  %v6139_v38 = vshll.u32 %v14750_v14, 16  ;;  %v10571_v43 = vor.u32 %v11370_v56, %v10570_v48  ;;  %15641 = vst [vmem:[#allocation34_spill] sm:$0xff] %v14771_v47 }
 0x438   : > { %v6123_v46 = vrot.slane %v6121_v3, 5  ;;  %7181 = vst [vmem:[#allocation4 + $0x1f0] sm:$0xf] %v6919_v58  ;;  %v6119_v34 = vrot.slane %v6118_v12, 4  ;;  %v6127_v28 = vrot.slane %v6125_v40, 4  ;;  %9662 = vmatpush.bf16.msra.mxu2 %v11550_v21  ;;  %v5695_v31 = vrot.slane %v5562_v36, 5  ;;  %v14778_v36 = vpop.f32.mrf.mxu3 }
 0x439   : > { %v10598_v2 = vld [vmem:[#allocation4 + $0x128] sm:$0xf]  ;;  %v11378_v44 = vld [vmem:[#allocation4 + $0x148] sm:$0xf0]  ;;  %v5698_v63 = vrot.slane %v5563_v54, 5  ;;  %v6133_v35 = vrot.slane %v6131_v18, 5  ;;  %v9018_v12 = vadd.f32 %v14680_v33, %v9017_v52  ;;  %9327 = vmatmul.bf16.gmra.mxu2 %v10571_v43 }
 0x43a   : > { %v6124_v9 = vsel %vm11812_vm5, %v6119_v34, %v6123_v46  ;;  %v6128_v17 = vor.u32 %v6127_v28, %v6123_v46  ;;  %v6726_v3 = vld [vmem:[#allocation3 + $0x70] sm:$0xf]  ;;  %v6727_v26 = vld [vmem:[#allocation3 + $0x74] sm:$0x1]  ;;  %v10542_v40 = vld [vmem:[#allocation4 + $0xa8] sm:$0xf]  ;;  %v5696_v48 = vsel %vm11795_vm2, %v10405_v53, %v5695_v31  ;;  %v10599_v58 = vor.u32 %v11378_v44, %v10598_v2  ;;  %v9106_v53 = vpop.f32.mrf.mxu2 }
 0x43b   : > { %6351 = vst [vmem:[#allocation4 + $0x250] sm:$0xf] %v6124_v9  ;;  %v5697_v54 = vrot.slane %v5695_v31, 4  ;;  %v6923_v56 = vrot.slane %v6921_v20, 4  ;;  %v11362_v21 = vld [vmem:[#allocation4 + $0xc8] sm:$0xf0]  ;;  %v8963_v9 = vadd.f32 %v14680_v33, %v13860_v39 }
 0x43c   : > { %15642 = vst [vmem:[#allocation35_spill] sm:$0xff] %v14778_v36  ;;  %v6129_v57 = vrot.slane %v6128_v17, 4  ;;  %v6926_v46 = vrot.slane %v6924_v32, 5  ;;  %v6930_v34 = vshll.u32 %v6726_v3, 16  ;;  %v6934_v52 = vshrl.u32 %v6726_v3, 16  ;;  %v9051_v32 = vpop.f32.mrf.mxu0  ;;  %9154 = vmatmul.bf16.gmra.mxu3 %v10599_v58 }
 0x43d   : > { %5792 = vst [vmem:[#allocation4 + $0x290] sm:$0xf] %v5696_v48  ;;  %v5699_v18 = vsel %vm11795_vm2, %v5697_v54, %v5698_v63  ;;  %v6940_v28 = vshll.u32 %v6727_v26, 16  ;;  %v6656_v43 = vld [vmem:[#allocation3 + $0x78] sm:$0xf]  ;;  %v14786_v17 = vadd.f32 %v9106_v53, %v9018_v12  ;;  %v14790_v54 = vadd.f32 %v9051_v32, %v8963_v9 }
 0x43e   : > { %v6134_v20 = vsel %vm11812_vm5, %v6129_v57, %v6133_v35  ;;  %5793 = vst [vmem:[#allocation4 + $0x2b4] sm:$0xf] %v5699_v18  ;;  %v6927_v31 = vor.u32 %v6926_v46, %v6923_v56  ;;  %v6657_v2 = vld [vmem:[#allocation3 + $0x7c] sm:$0xf]  ;;  %v6932_v63 = vrot.slane %v6930_v34, 5  ;;  %v6936_v3 = vrot.slane %v6934_v52, 4 }
 0x43f   : > { %v5899_v44 = vld [vmem:[#allocation3 + $0x7c] sm:$0xf]  ;;  %15643 = vst [vmem:[#allocation36_spill] sm:$0xff] %v14786_v17  ;;  %v5900_v26 = vld [vmem:[#allocation3 + $0x80] sm:$0x1]  ;;  %v10543_v39 = vor.u32 %v11362_v21, %v10542_v40  ;;  %v6942_v36 = vrot.slane %v6940_v28, 5 }
 0x440   : > { %6352 = vst [vmem:[#allocation4 + $0x274] sm:$0xf] %v6134_v20  ;;  %v14788_v48 = vld [vmem:[#allocation3 + $0x84] sm:$0xf]  ;;  %v6928_v6 = vrot.slane %v6927_v31, 4  ;;  %v6937_v35 = vor.u32 %v6936_v3, %v6932_v63  ;;  %v15644_v12 = vshrl.u32 %v14750_v14, 16  ;;  %v14798_v31 = vpop.f32.mrf.mxu1 }
 0x441   : > { %6688 = vst [vmem:[#allocation4 + $0x258] sm:$0xf] %v6656_v43  ;;  %v5564_v57 = vld [vmem:[#allocation3 + $0x78] sm:$0xe]  ;;  %v6141_v46 = vrot.slane %v6139_v38, 5  ;;  %v6145_v58 = vshll.u32 %v5899_v44, 16  ;;  %9500 = vmatmul.bf16.gmra.mxu0 %v10543_v39 }
 0x442   : > { %6689 = vst [vmem:[#allocation4 + $0x27c] sm:$0xf] %v6657_v2  ;;  %v6138_v56 = vrot.slane %v15644_v12, 4  ;;  %v11358_v18 = vld [vmem:[#allocation4 + $0xac] sm:$0xf]  ;;  %v6933_v34 = vsel %vm11812_vm5, %v6928_v6, %v6932_v63  ;;  %v6149_v52 = vshrl.u32 %v5899_v44, 16  ;;  %v14804_v39 = vpop.f32.mrf.mxu2 }
 0x443   : > { %v6155_v9 = vshll.u32 %v5900_v26, 16  ;;  %v5565_v53 = vld [vmem:[#allocation3 + $0x7c] sm:$0xf]  ;;  %v10544_v40 = vld [vmem:[#allocation4 + $0xcc] sm:$0xf0]  ;;  %v6938_v21 = vrot.slane %v6937_v35, 4  ;;  %v9022_v35 = vpop.f32.mrf.mxu3 }
 0x444   : > { %7182 = vst [vmem:[#allocation4 + $0x214] sm:$0xf] %v6933_v34  ;;  %v6142_v28 = vor.u32 %v6141_v46, %v6138_v56  ;;  %v6147_v43 = vrot.slane %v6145_v58, 5  ;;  %v14796_v20 = vld [vmem:[#allocation3 + $0x84] sm:$0xf]  ;;  %v6151_v14 = vrot.slane %v6149_v52, 4  ;;  %v10547_v12 = vor.u32 %v11358_v18, %v10544_v40  ;;  %v14809_v52 = vpop.f32.mrf.mxu0 }
 0x445   : > { %15645 = vst [vmem:[#allocation37_spill] sm:$0xff] %v14798_v31  ;;  %v5566_v38 = vld [vmem:[#allocation3 + $0x80] sm:$0x1]  ;;  %v10406_v2 = vrot.slane %v5564_v57, 9  ;;  %v6160_v32 = vshrl.u32 %v14788_v48, 16  ;;  %v6943_v6 = vsel %vm11812_vm5, %v6938_v21, %v6942_v36  ;;  %v5702_v63 = vrot.slane %v5565_v53, 5 }
 0x446   : > { %v10606_v3 = vld [vmem:[#allocation4 + $0x130] sm:$0xf]  ;;  %v6143_v44 = vrot.slane %v6142_v28, 4  ;;  %v6163_v26 = vshll.u32 %v14788_v48, 16  ;;  %15646 = vst [vmem:[#allocation38_spill] sm:$0xff] %v14804_v39  ;;  %v6152_v46 = vor.u32 %v6151_v14, %v6147_v43  ;;  %v6157_v58 = vrot.slane %v6155_v9, 5  ;;  %9589 = vmatmul.bf16.gmra.mxu1 %v10547_v12 }
 0x447   : > { %v11379_v56 = vld [vmem:[#allocation4 + $0x150] sm:$0xf0]  ;;  %7183 = vst [vmem:[#allocation4 + $0x238] sm:$0xf] %v6943_v6  ;;  %v14807_v34 = vld [vmem:[#allocation3 + $0x90] sm:$0xf]  ;;  %v5703_v48 = vsel %vm11795_vm2, %v10406_v2, %v5702_v63  ;;  %v8968_v18 = vadd.f32 %v14680_v33, %v13926_v41 }
 0x448   : > { %v6148_v36 = vsel %vm11812_vm5, %v6143_v44, %v6147_v43  ;;  %v5705_v53 = vrot.slane %v5566_v38, 5  ;;  %v6729_v21 = vld [vmem:[#allocation3 + $0x7c] sm:$0xf]  ;;  %v6730_v28 = vld [vmem:[#allocation3 + $0x80] sm:$0x1]  ;;  %v11525_v14 = vld [vmem:[%s15541_s3 + $0x160] sm:$0xff]  ;;  %v10607_v44 = vor.u32 %v11379_v56, %v10606_v3 }
 0x449   : > { %v10634_v9 = vld [vmem:[#allocation4 + $0x170] sm:$0xf]  ;;  %v11387_v40 = vld [vmem:[#allocation4 + $0x190] sm:$0xf0]  ;;  %v6153_v6 = vrot.slane %v6152_v46, 4  ;;  %v5704_v39 = vrot.slane %v5702_v63, 4  ;;  %9396 = vmatpush.bf16.msra.mxu3 %v11525_v14 }
 0x44a   : > { %6353 = vst [vmem:[#allocation4 + $0x298] sm:$0xf] %v6148_v36  ;;  %v10578_v57 = vld [vmem:[#allocation4 + $0xf0] sm:$0xf]  ;;  %v11371_v43 = vld [vmem:[#allocation4 + $0x110] sm:$0xf0]  ;;  %v9023_v36 = vadd.f32 %v14680_v33, %v9022_v35  ;;  %9332 = vmatmul.bf16.gmra.mxu2 %v10607_v44  ;;  %v14831_v44 = vpop.f32.mrf.mxu1 }
 0x44b   : > { %5794 = vst [vmem:[#allocation4 + $0x2d8] sm:$0xf] %v5703_v48  ;;  %v15647_v38 = vshrl.u32 %v14753_v5, 16  ;;  %v15648_v17 = vshll.u32 %v14753_v5, 16  ;;  %v6158_v12 = vsel %vm11812_vm5, %v6153_v6, %v6157_v58  ;;  %v6954_v31 = vshll.u32 %v6729_v21, 16 }
 0x44c   : > { %v6958_v47 = vshrl.u32 %v6729_v21, 16  ;;  %v6964_v49 = vshll.u32 %v6730_v28, 16  ;;  %v5902_v46 = vld [vmem:[#allocation3 + $0x88] sm:$0xf]  ;;  %6354 = vst [vmem:[#allocation4 + $0x2bc] sm:$0xf] %v6158_v12  ;;  %v5706_v3 = vsel %vm11795_vm2, %v5704_v39, %v5705_v53  ;;  %v10635_v21 = vor.u32 %v11387_v40, %v10634_v9  ;;  %v14839_v40 = vpop.f32.mrf.mxu3 }
 0x44d   : > { %v6947_v2 = vrot.slane %v15647_v38, 4  ;;  %v6950_v41 = vrot.slane %v15648_v17, 5  ;;  %v6658_v56 = vld [vmem:[#allocation3 + $0x84] sm:$0xf]  ;;  %v6659_v48 = vld [vmem:[#allocation3 + $0x88] sm:$0xf]  ;;  %v9111_v38 = vpop.f32.mrf.mxu2  ;;  %v10579_v12 = vor.u32 %v11371_v43, %v10578_v57  ;;  %v9056_v17 = vpop.f32.mrf.mxu0 }
 0x44e   : > { %v6972_v5 = vshll.u32 %v14796_v20, 16  ;;  %5795 = vst [vmem:[#allocation4 + $0x2fc] sm:$0xf] %v5706_v3  ;;  %v6956_v58 = vrot.slane %v6954_v31, 5  ;;  %v6960_v14 = vrot.slane %v6958_v47, 4  ;;  %v6966_v6 = vrot.slane %v6964_v49, 5  ;;  %9159 = vmatmul.bf16.gmra.mxu3 %v10635_v21 }
 0x44f   : > { %v6951_v63 = vor.u32 %v6950_v41, %v6947_v2  ;;  %6690 = vst [vmem:[#allocation4 + $0x2a0] sm:$0xf] %v6658_v56  ;;  %v6162_v35 = vrot.slane %v6160_v32, 4  ;;  %v5903_v53 = vld [vmem:[#allocation3 + $0x8c] sm:$0x1]  ;;  %v6165_v2 = vrot.slane %v6163_v26, 5  ;;  %v14833_v27 = vadd.f32 %v9111_v38, %v9023_v36 }
 0x450   : > { %v6961_v39 = vor.u32 %v6960_v14, %v6956_v58  ;;  %6691 = vst [vmem:[#allocation4 + $0x2c4] sm:$0xf] %v6659_v48  ;;  %v6169_v41 = vshll.u32 %v5902_v46, 16  ;;  %v6173_v31 = vshrl.u32 %v5902_v46, 16  ;;  %v6179_v49 = vshll.u32 %v5903_v53, 16  ;;  %v11549_v46 = vld [vmem:[%s15541_s3 + $0x220] sm:$0xff] }
 0x451   : > { %v6952_v28 = vrot.slane %v6951_v63, 4  ;;  %15649 = vst [vmem:[#allocation39_spill] sm:$0xff] %v14833_v27  ;;  %v5567_v9 = vld [vmem:[#allocation3 + $0x84] sm:$0xe]  ;;  %v14837_v32 = vld [vmem:[#allocation3 + $0x90] sm:$0xf]  ;;  %v14841_v57 = vadd.f32 %v9056_v17, %v8968_v18  ;;  %v6166_v26 = vor.u32 %v6165_v2, %v6162_v35  ;;  %9505 = vmatmul.bf16.gmra.mxu0 %v10579_v12  ;;  %9663 = vmatpush.bf16.msra.mxu2 %v11549_v46 }
 0x452   : > { %15650 = vst [vmem:[#allocation40_spill] sm:$0xff] %v14839_v40  ;;  %v6962_v43 = vrot.slane %v6961_v39, 4  ;;  %v6171_v3 = vrot.slane %v6169_v41, 5  ;;  %v6187_v36 = vshll.u32 %v14807_v34, 16  ;;  %v6175_v63 = vrot.slane %v6173_v31, 4 }
 0x453   : > { %v6957_v47 = vsel %vm11812_vm5, %v6952_v28, %v6956_v58  ;;  %v5568_v56 = vld [vmem:[#allocation3 + $0x88] sm:$0xf]  ;;  %v5569_v48 = vld [vmem:[#allocation3 + $0x8c] sm:$0x1]  ;;  %v6167_v18 = vrot.slane %v6166_v26, 4  ;;  %v10407_v17 = vrot.slane %v5567_v9, 9 }
 0x454   : > { %7184 = vst [vmem:[#allocation4 + $0x25c] sm:$0xf] %v6957_v47  ;;  %v11367_v58 = vld [vmem:[#allocation4 + $0xf4] sm:$0xf]  ;;  %v6967_v14 = vsel %vm11812_vm5, %v6962_v43, %v6966_v6  ;;  %v5709_v21 = vrot.slane %v5568_v56, 5  ;;  %v6176_v35 = vor.u32 %v6175_v63, %v6171_v3  ;;  %v6181_v38 = vrot.slane %v6179_v49, 5 }
 0x455   : > { %v10580_v28 = vld [vmem:[#allocation4 + $0x114] sm:$0xf0]  ;;  %7185 = vst [vmem:[#allocation4 + $0x280] sm:$0xf] %v6967_v14  ;;  %v5712_v39 = vrot.slane %v5569_v48, 5  ;;  %v6172_v12 = vsel %vm11812_vm5, %v6167_v18, %v6171_v3  ;;  %v15651_v31 = vshrl.u32 %v14796_v20, 16  ;;  %v14856_v63 = vpop.f32.mrf.mxu2  ;;  %v14859_v18 = vpop.f32.mrf.mxu0 }
 0x456   : > { %v10642_v2 = vld [vmem:[#allocation4 + $0x178] sm:$0xf]  ;;  %v5710_v41 = vsel %vm11795_vm2, %v10407_v17, %v5709_v21  ;;  %v6732_v47 = vld [vmem:[#allocation3 + $0x88] sm:$0xf]  ;;  %v6733_v6 = vld [vmem:[#allocation3 + $0x8c] sm:$0x1]  ;;  %v10583_v56 = vor.u32 %v11367_v58, %v10580_v28 }
 0x457   : > { %v6971_v9 = vrot.slane %v15651_v31, 4  ;;  %v11388_v43 = vld [vmem:[#allocation4 + $0x198] sm:$0xf0]  ;;  %v6177_v26 = vrot.slane %v6176_v35, 4  ;;  %6355 = vst [vmem:[#allocation4 + $0x2e0] sm:$0xf] %v6172_v12 }
 0x458   : > { %v5711_v49 = vrot.slane %v5709_v21, 4  ;;  %15652 = vst [vmem:[#allocation41_spill] sm:$0xff] %v14856_v63  ;;  %v6974_v48 = vrot.slane %v6972_v5, 5  ;;  %v6978_v46 = vshll.u32 %v6732_v47, 16  ;;  %v6982_v14 = vshrl.u32 %v6732_v47, 16  ;;  %v14865_v21 = vpop.f32.mrf.mxu1  ;;  %9594 = vmatmul.bf16.gmra.mxu1 %v10583_v56 }
 0x459   : > { %5796 = vst [vmem:[#allocation4 + $0x320] sm:$0xf] %v5710_v41  ;;  %v6182_v17 = vsel %vm11812_vm5, %v6177_v26, %v6181_v38  ;;  %v6988_v35 = vshll.u32 %v6733_v6, 16  ;;  %v5905_v12 = vld [vmem:[#allocation3 + $0x94] sm:$0xf]  ;;  %v10643_v31 = vor.u32 %v11388_v43, %v10642_v2  ;;  %v15654_v3 = vshrl.u32 %v14807_v34, 16 }
 0x45a   : > { %v5713_v20 = vsel %vm11795_vm2, %v5711_v49, %v5712_v39  ;;  %15653 = vst [vmem:[#allocation42_spill] sm:$0xff] %v14865_v21  ;;  %v10670_v58 = vld [vmem:[#allocation4 + $0x1b8] sm:$0xf]  ;;  %v11396_v28 = vld [vmem:[#allocation4 + $0x1d8] sm:$0xf0]  ;;  %v6975_v5 = vor.u32 %v6974_v48, %v6971_v9  ;;  %v6980_v41 = vrot.slane %v6978_v46, 5  ;;  %v9027_v39 = vpop.f32.mrf.mxu3 }
 0x45b   : > { %6356 = vst [vmem:[#allocation4 + $0x304] sm:$0xf] %v6182_v17  ;;  %v6984_v47 = vrot.slane %v6982_v14, 4  ;;  %v6186_v53 = vrot.slane %v15654_v3, 4  ;;  %v6189_v38 = vrot.slane %v6187_v36, 5  ;;  %v6193_v26 = vshll.u32 %v5905_v12, 16  ;;  %9337 = vmatmul.bf16.gmra.mxu2 %v10643_v31 }
 0x45c   : > { %5797 = vst [vmem:[#allocation4 + $0x344] sm:$0xf] %v5713_v20  ;;  %v5571_v63 = vld [vmem:[#allocation3 + $0x94] sm:$0xf]  ;;  %v6976_v6 = vrot.slane %v6975_v5, 4  ;;  %v6990_v40 = vrot.slane %v6988_v35, 5  ;;  %v9028_v21 = vadd.f32 %v14680_v33, %v9027_v39  ;;  %v8973_v14 = vadd.f32 %v14680_v33, %v13982_v45 }
 0x45d   : > { %v6985_v49 = vor.u32 %v6984_v47, %v6980_v41  ;;  %v6660_v27 = vld [vmem:[#allocation3 + $0x90] sm:$0xf]  ;;  %v6197_v56 = vshrl.u32 %v5905_v12, 16  ;;  %v6661_v9 = vld [vmem:[#allocation3 + $0x94] sm:$0xf]  ;;  %v6190_v2 = vor.u32 %v6189_v38, %v6186_v53  ;;  %v6195_v46 = vrot.slane %v6193_v26, 5  ;;  %v9116_v12 = vpop.f32.mrf.mxu2 }
 0x45e   : > { %6692 = vst [vmem:[#allocation4 + $0x2e8] sm:$0xf] %v6660_v27  ;;  %v5906_v48 = vld [vmem:[#allocation3 + $0x98] sm:$0x1]  ;;  %v10614_v43 = vld [vmem:[#allocation4 + $0x138] sm:$0xf]  ;;  %v6981_v34 = vsel %vm11812_vm5, %v6976_v6, %v6980_v41  ;;  %v10671_v17 = vor.u32 %v11396_v28, %v10670_v58  ;;  %v14881_v45 = vadd.f32 %v9116_v12, %v9028_v21  ;;  %v9061_v58 = vpop.f32.mrf.mxu0 }
 0x45f   : > { %v6986_v36 = vrot.slane %v6985_v49, 4  ;;  %6693 = vst [vmem:[#allocation4 + $0x30c] sm:$0xf] %v6661_v9  ;;  %v11380_v3 = vld [vmem:[#allocation4 + $0x158] sm:$0xf0]  ;;  %v6191_v20 = vrot.slane %v6190_v2, 4  ;;  %v14887_v6 = vadd.f32 %v9061_v58, %v8973_v14 }
 0x460   : > { %7186 = vst [vmem:[#allocation4 + $0x2a4] sm:$0xf] %v6981_v34  ;;  %v6199_v35 = vrot.slane %v6197_v56, 4  ;;  %v6203_v53 = vshll.u32 %v5906_v48, 16  ;;  %v5570_v5 = vld [vmem:[#allocation3 + $0x90] sm:$0xe]  ;;  %9164 = vmatmul.bf16.gmra.mxu3 %v10671_v17  ;;  %v14893_v34 = vpop.f32.mrf.mxu1 }
 0x461   : > { %v6991_v27 = vsel %vm11812_vm5, %v6986_v36, %v6990_v40  ;;  %v5572_v47 = vld [vmem:[#allocation3 + $0x98] sm:$0x1]  ;;  %v5716_v31 = vrot.slane %v5571_v63, 5  ;;  %v15655_v41 = vrot.slane %v14574_v8, 5  ;;  %v6196_v28 = vsel %vm11812_vm5, %v6191_v20, %v6195_v46  ;;  %v14885_v39 = vld [vmem:[#allocation3 + $0x9c] sm:$0xf] }
 0x462   : > { %7187 = vst [vmem:[#allocation4 + $0x2c8] sm:$0xf] %v6991_v27  ;;  %v6200_v26 = vor.u32 %v6199_v35, %v6195_v46  ;;  %v10408_v40 = vrot.slane %v5570_v5, 9  ;;  %v10615_v63 = vor.u32 %v11380_v3, %v10614_v43  ;;  %v6205_v8 = vrot.slane %v6203_v53, 5  ;;  %v14889_v56 = vld [vmem:[#allocation3 + $0x9c] sm:$0xf] }
 0x463   : > { %v6469_v38 = vsel %vm11795_vm2, %v14485_v29, %v15655_v41  ;;  %6357 = vst [vmem:[#allocation4 + $0x328] sm:$0xf] %v6196_v28  ;;  %v5718_v49 = vrot.slane %v5716_v31, 4  ;;  %v5719_v9 = vrot.slane %v5572_v47, 5  ;;  %v6735_v48 = vld [vmem:[#allocation3 + $0x94] sm:$0xf]  ;;  %v8975_v28 = vadd.f32 %v14680_v33, %v14004_v10 }
 0x464   : > { %v6201_v29 = vrot.slane %v6200_v26, 4  ;;  %v5717_v21 = vsel %vm11795_vm2, %v10408_v40, %v5716_v31  ;;  %v6736_v2 = vld [vmem:[#allocation3 + $0x98] sm:$0x1]  ;;  %9510 = vmatmul.bf16.gmra.mxu0 %v10615_v63  ;;  %v11376_v36 = vld [vmem:[#allocation4 + $0x13c] sm:$0xf]  ;;  %v15656_v46 = vshrl.u32 %v14837_v32, 16 }
 0x465   : > { %5798 = vst [vmem:[#allocation4 + $0x368] sm:$0xf] %v5717_v21  ;;  %v15657_v14 = vshll.u32 %v14837_v32, 16  ;;  %v10616_v17 = vld [vmem:[#allocation4 + $0x15c] sm:$0xf0]  ;;  %v5720_v35 = vsel %vm11795_vm2, %v5718_v49, %v5719_v9  ;;  %v7002_v12 = vshll.u32 %v6735_v48, 16 }
 0x466   : > { %v6995_v43 = vrot.slane %v15656_v46, 4  ;;  %v6206_v20 = vsel %vm11812_vm5, %v6201_v29, %v6205_v8  ;;  %v7006_v27 = vshrl.u32 %v6735_v48, 16  ;;  %6608 = vst [vmem:[#allocation4 + $0x38] sm:$0xf] %v6469_v38  ;;  %v6208_v53 = vshrl.u32 %v14885_v39, 16  ;;  %v9063_v29 = vpop.f32.mrf.mxu0  ;;  %v11524_v10 = vld [vmem:[%s15541_s3 + $0x158] sm:$0xff] }
 0x467   : > { %v6998_v3 = vrot.slane %v15657_v14, 5  ;;  %v6211_v5 = vshll.u32 %v14885_v39, 16  ;;  %6358 = vst [vmem:[#allocation4 + $0x34c] sm:$0xf] %v6206_v20  ;;  %v7012_v31 = vshll.u32 %v6736_v2, 16  ;;  %v7004_v32 = vrot.slane %v7002_v12, 5  ;;  %v14916_v12 = vpop.f32.mrf.mxu3  ;;  %9397 = vmatpush.bf16.msra.mxu3 %v11524_v10 }
 0x468   : > { %v10678_v41 = vld [vmem:[#allocation4 + $0x1c0] sm:$0xf]  ;;  %5799 = vst [vmem:[#allocation4 + $0x38c] sm:$0xf] %v5720_v35  ;;  %v7008_v58 = vrot.slane %v7006_v27, 4  ;;  %v7017_v26 = vshrl.u32 %v14889_v56, 16  ;;  %v10619_v40 = vor.u32 %v11376_v36, %v10616_v17  ;;  %v14909_v48 = vadd.f32 %v9063_v29, %v8975_v28 }
 0x469   : > { %v6999_v47 = vor.u32 %v6998_v3, %v6995_v43  ;;  %v11397_v63 = vld [vmem:[#allocation4 + $0x1e0] sm:$0xf0]  ;;  %v5908_v38 = vld [vmem:[#allocation3 + $0xa0] sm:$0xf]  ;;  %v7020_v49 = vshll.u32 %v14889_v56, 16  ;;  %v7014_v21 = vrot.slane %v7012_v31, 5 }
 0x46a   : > { %v7009_v39 = vor.u32 %v7008_v58, %v7004_v32  ;;  %v6217_v9 = vshll.u32 %v5908_v38, 16  ;;  %9599 = vmatmul.bf16.gmra.mxu1 %v10619_v40  ;;  %v10650_v2 = vld [vmem:[#allocation4 + $0x180] sm:$0xf]  ;;  %v11389_v46 = vld [vmem:[#allocation4 + $0x1a0] sm:$0xf0]  ;;  %v6221_v3 = vshrl.u32 %v5908_v38, 16  ;;  %v10679_v56 = vor.u32 %v11397_v63, %v10678_v41  ;;  %v14922_v63 = vpop.f32.mrf.mxu1 }
 0x46b   : > { %v7000_v8 = vrot.slane %v6999_v47, 4  ;;  %v10706_v43 = vld [vmem:[#allocation4 + $0x200] sm:$0xf]  ;;  %v11405_v14 = vld [vmem:[#allocation4 + $0x220] sm:$0xf0]  ;;  %v6210_v20 = vrot.slane %v6208_v53, 4  ;;  %v8978_v41 = vadd.f32 %v14680_v33, %v14035_v7  ;;  %v10651_v29 = vor.u32 %v11389_v46, %v10650_v2 }
 0x46c   : > { %v7010_v17 = vrot.slane %v7009_v39, 4  ;;  %v6738_v35 = vld [vmem:[#allocation3 + $0xa0] sm:$0xf]  ;;  %v6662_v27 = vld [vmem:[#allocation3 + $0x9c] sm:$0xf]  ;;  %9342 = vmatmul.bf16.gmra.mxu2 %v10679_v56  ;;  %v6213_v28 = vrot.slane %v6211_v5, 5  ;;  %v10707_v39 = vor.u32 %v11405_v14, %v10706_v43 }
 0x46d   : > { %v7005_v36 = vsel %vm11812_vm5, %v7000_v8, %v7004_v32  ;;  %v6663_v47 = vld [vmem:[#allocation3 + $0xa0] sm:$0xf]  ;;  %v5909_v31 = vld [vmem:[#allocation3 + $0xa4] sm:$0x1]  ;;  %6694 = vst [vmem:[#allocation4 + $0x330] sm:$0xf] %v6662_v27 }
 0x46e   : > { %7188 = vst [vmem:[#allocation4 + $0x2ec] sm:$0xf] %v7005_v36  ;;  %v7015_v58 = vsel %vm11812_vm5, %v7010_v17, %v7014_v21  ;;  %v6219_v40 = vrot.slane %v6217_v9, 5  ;;  %v5574_v32 = vld [vmem:[#allocation3 + $0xa0] sm:$0xf]  ;;  %v6223_v53 = vrot.slane %v6221_v3, 4  ;;  %v6214_v10 = vor.u32 %v6213_v28, %v6210_v20  ;;  %v9066_v3 = vpop.f32.mrf.mxu0 }
 0x46f   : > { %7189 = vst [vmem:[#allocation4 + $0x310] sm:$0xf] %v7015_v58  ;;  %v6227_v8 = vshll.u32 %v5909_v31, 16  ;;  %v7026_v38 = vshll.u32 %v6738_v35, 16  ;;  %v5573_v36 = vld [vmem:[#allocation3 + $0x9c] sm:$0xe]  ;;  %v14930_v20 = vadd.f32 %v9066_v3, %v8978_v41 }
 0x470   : > { %6695 = vst [vmem:[#allocation4 + $0x354] sm:$0xf] %v6663_v47  ;;  %v5575_v56 = vld [vmem:[#allocation3 + $0xa4] sm:$0x1]  ;;  %v15658_v21 = vrot.slane %v14464_v60, 5  ;;  %v15659_v5 = vrot.slane %v14462_v62, 9  ;;  %v6224_v7 = vor.u32 %v6223_v53, %v6219_v40  ;;  %9169 = vmatmul.bf16.gmra.mxu3 %v10707_v39  ;;  %v14936_v39 = vpop.f32.mrf.mxu3 }
 0x471   : > { %v6229_v33 = vrot.slane %v6227_v8, 5  ;;  %v10409_v17 = vrot.slane %v5573_v36, 9  ;;  %v5723_v27 = vrot.slane %v5574_v32, 5  ;;  %v6215_v31 = vrot.slane %v6214_v10, 4  ;;  %v6739_v46 = vld [vmem:[#allocation3 + $0xa4] sm:$0x1] }
 0x472   : > { %v7299_v9 = vsel %vm11795_vm2, %v15659_v5, %v15658_v21  ;;  %v5726_v2 = vrot.slane %v5575_v56, 5  ;;  %v7019_v43 = vrot.slane %v7017_v26, 4  ;;  %v7022_v14 = vrot.slane %v7020_v49, 5  ;;  %v5910_v58 = vld [vmem:[#allocation3 + $0xa8] sm:$0xf] }
 0x473   : > { %v6225_v47 = vrot.slane %v6224_v7, 4  ;;  %v5724_v62 = vsel %vm11795_vm2, %v10409_v17, %v5723_v27  ;;  %v5725_v60 = vrot.slane %v5723_v27, 4  ;;  %7440 = vst [vmem:[#allocation4 + $0x20] sm:$0xf] %v7299_v9  ;;  %v6220_v28 = vsel %vm11812_vm5, %v6215_v31, %v6219_v40  ;;  %v11385_v26 = vld [vmem:[#allocation4 + $0x184] sm:$0xf]  ;;  %v14961_v31 = vpop.f32.mrf.mxu1 }
 0x474   : > { %5800 = vst [vmem:[#allocation4 + $0x3b0] sm:$0xf] %v5724_v62  ;;  %v7023_v32 = vor.u32 %v7022_v14, %v7019_v43  ;;  %v7028_v53 = vrot.slane %v7026_v38, 5  ;;  %v7030_v8 = vshrl.u32 %v6738_v35, 16  ;;  %9515 = vmatmul.bf16.gmra.mxu0 %v10651_v29  ;;  %v11548_v49 = vld [vmem:[%s15541_s3 + $0x218] sm:$0xff]  ;;  %v7036_v40 = vshll.u32 %v6739_v46, 16 }
 0x475   : > { %v6230_v41 = vsel %vm11812_vm5, %v6225_v47, %v6229_v33  ;;  %6359 = vst [vmem:[#allocation4 + $0x370] sm:$0xf] %v6220_v28  ;;  %v5727_v10 = vsel %vm11795_vm2, %v5725_v60, %v5726_v2  ;;  %v15660_v36 = vrot.slane %v14728_v15, 5  ;;  %v10652_v38 = vld [vmem:[#allocation4 + $0x1a4] sm:$0xf0]  ;;  %v6232_v21 = vshrl.u32 %v5910_v58, 16  ;;  %9664 = vmatpush.bf16.msra.mxu2 %v11548_v49  ;;  %v14963_v2 = vpop.f32.mrf.mxu2 }
 0x476   : > { %6360 = vst [vmem:[#allocation4 + $0x394] sm:$0xf] %v6230_v41  ;;  %v7024_v29 = vrot.slane %v7023_v32, 4  ;;  %v7032_v56 = vrot.slane %v7030_v8, 4  ;;  %v10714_v5 = vld [vmem:[#allocation4 + $0x208] sm:$0xf]  ;;  %v10655_v46 = vor.u32 %v11385_v26, %v10652_v38  ;;  %v9068_v62 = vpop.f32.mrf.mxu0 }
 0x477   : > { %v7302_v35 = vsel %vm11795_vm2, %v14614_v1, %v15660_v36  ;;  %5801 = vst [vmem:[#allocation4 + $0x3d4] sm:$0xf] %v5727_v10  ;;  %v6235_v9 = vshll.u32 %v5910_v58, 16  ;;  %v7038_v17 = vrot.slane %v7036_v40, 5  ;;  %v6370_v15 = vld [vmem:[#allocation3 + $0x18] sm:$0xe] }
 0x478   : > { %v7029_v7 = vsel %vm11812_vm5, %v7024_v29, %v7028_v53  ;;  %v7033_v33 = vor.u32 %v7032_v56, %v7028_v53  ;;  %7441 = vst [vmem:[#allocation4 + $0x44] sm:$0xf] %v7302_v35  ;;  %v14955_v1 = vld [vmem:[%s15542_s4] ss:$0 sm:$0xff]  ;;  %v14959_v3 = vld [vmem:[#allocation3 + $0xa8] sm:$0xf]  ;;  %v14977_v56 = vpop.f32.mrf.mxu3 }
 0x479   : > { %v8980_v27 = vadd.f32 %v14955_v1, %v14064_v13  ;;  %v14965_v43 = vld [vmem:[#allocation4 + $0x1c8] sm:$0xf]  ;;  %v11406_v14 = vld [vmem:[#allocation4 + $0x228] sm:$0xf0]  ;;  %7190 = vst [vmem:[#allocation4 + $0x334] sm:$0xf] %v7029_v7  ;;  %v8983_v29 = vadd.f32 %v14955_v1, %v14080_v55 }
 0x47a   : > { %v5911_v47 = vld [vmem:[#allocation3 + $0xac] sm:$0xf]  ;;  %v14967_v60 = vld [vmem:[#allocation4 + $0x1e8] sm:$0xf0]  ;;  %v7034_v58 = vrot.slane %v7033_v33, 4  ;;  %9604 = vmatmul.bf16.gmra.mxu1 %v10655_v46  ;;  %v10413_v41 = vrot.slane %v6370_v15, 9  ;;  %v10715_v26 = vor.u32 %v11406_v14, %v10714_v5 }
 0x47b   : > { %v6241_v28 = vshll.u32 %v5911_v47, 16  ;;  %v14969_v32 = vld [vmem:[#allocation3 + $0x1c] sm:$0xf]  ;;  %v14971_v13 = vadd.f32 %v9068_v62, %v8980_v27  ;;  %v10742_v53 = vld [vmem:[#allocation4 + $0x248] sm:$0xf]  ;;  %v6245_v49 = vshrl.u32 %v5911_v47, 16 }
 0x47c   : > { %v11414_v8 = vld [vmem:[#allocation4 + $0x268] sm:$0xf0]  ;;  %v7039_v10 = vsel %vm11812_vm5, %v7034_v58, %v7038_v17  ;;  %v6234_v40 = vrot.slane %v6232_v21, 4  ;;  %v6237_v36 = vrot.slane %v6235_v9, 5  ;;  %v5577_v35 = vld [vmem:[#allocation3 + $0xac] sm:$0xf]  ;;  %v10687_v21 = vor.u32 %v14967_v60, %v14965_v43  ;;  %9347 = vmatmul.bf16.gmra.mxu2 %v10715_v26 }
 0x47d   : > { %v6741_v38 = vld [vmem:[#allocation3 + $0xac] sm:$0xf]  ;;  %7191 = vst [vmem:[#allocation4 + $0x358] sm:$0xf] %v7039_v10  ;;  %v6664_v7 = vld [vmem:[#allocation3 + $0xa8] sm:$0xf]  ;;  %v10743_v46 = vor.u32 %v11414_v8, %v10742_v53  ;;  %v9033_v58 = vadd.f32 %v14955_v1, %v14936_v39  ;;  %v9121_v43 = vpop.f32.mrf.mxu2 }
 0x47e   : > { %v6243_v33 = vrot.slane %v6241_v28, 5  ;;  %v6472_v27 = vrot.slane %v14969_v32, 5  ;;  %v7041_v15 = vshrl.u32 %v14959_v3, 16  ;;  %v7044_v5 = vshll.u32 %v14959_v3, 16  ;;  %v6665_v9 = vld [vmem:[#allocation3 + $0xac] sm:$0xf]  ;;  %v9071_v8 = vpop.f32.mrf.mxu0 }
 0x47f   : > { %6696 = vst [vmem:[#allocation4 + $0x378] sm:$0xf] %v6664_v7  ;;  %v6238_v17 = vor.u32 %v6237_v36, %v6234_v40  ;;  %v5912_v55 = vld [vmem:[#allocation3 + $0xb0] sm:$0x1]  ;;  %v6247_v14 = vrot.slane %v6245_v49, 4  ;;  %v5730_v47 = vrot.slane %v5577_v35, 5  ;;  %v14988_v36 = vadd.f32 %v9121_v43, %v9033_v58 }
 0x480   : > { %6697 = vst [vmem:[#allocation4 + $0x39c] sm:$0xf] %v6665_v9  ;;  %v6473_v62 = vsel %vm11795_vm2, %v10413_v41, %v6472_v27  ;;  %v6251_v3 = vshll.u32 %v5912_v55, 16  ;;  %v5576_v32 = vld [vmem:[#allocation3 + $0xa8] sm:$0xe]  ;;  %v7050_v10 = vshll.u32 %v6741_v38, 16  ;;  %9174 = vmatmul.bf16.gmra.mxu3 %v10743_v46  ;;  %v14992_v9 = vpop.f32.mrf.mxu1 }
 0x481   : > { %v6239_v28 = vrot.slane %v6238_v17, 4  ;;  %v6248_v60 = vor.u32 %v6247_v14, %v6243_v33  ;;  %v5578_v26 = vld [vmem:[#allocation3 + $0xb0] sm:$0x1]  ;;  %v10410_v7 = vrot.slane %v5576_v32, 9  ;;  %v5732_v40 = vrot.slane %v5730_v47, 4 }
 0x482   : > { %v7054_v53 = vshrl.u32 %v6741_v38, 16  ;;  %v6253_v41 = vrot.slane %v6251_v3, 5  ;;  %v5733_v35 = vrot.slane %v5578_v26, 5  ;;  %v6742_v39 = vld [vmem:[#allocation3 + $0xb0] sm:$0x1]  ;;  %v14994_v17 = vadd.f32 %v9071_v8, %v8983_v29 }
 0x483   : > { %v6244_v49 = vsel %vm11812_vm5, %v6239_v28, %v6243_v33  ;;  %6609 = vst [vmem:[#allocation4 + $0x5c] sm:$0xf] %v6473_v62  ;;  %v6249_v55 = vrot.slane %v6248_v60, 4  ;;  %v5731_v38 = vsel %vm11795_vm2, %v10410_v7, %v5730_v47  ;;  %v7043_v14 = vrot.slane %v7041_v15, 4  ;;  %v6372_v58 = vld [vmem:[#allocation3 + $0x20] sm:$0x1]  ;;  %v9135_v62 = vpop.f32.mrf.mxu3 }
 0x484   : > { %6361 = vst [vmem:[#allocation4 + $0x3b8] sm:$0xf] %v6244_v49  ;;  %v5734_v46 = vsel %vm11795_vm2, %v5732_v40, %v5733_v35  ;;  %v7046_v33 = vrot.slane %v7044_v5, 5  ;;  %v7052_v28 = vrot.slane %v7050_v10, 5  ;;  %v7203_v3 = vld [vmem:[#allocation3 + $0x24] sm:$0xe]  ;;  %9520 = vmatmul.bf16.gmra.mxu0 %v10687_v21  ;;  %v15003_v47 = vadd.f32 %v9135_v62, %v14745_v19 }
 0x485   : > { %5802 = vst [vmem:[#allocation4 + $0x3f8] sm:$0xf] %v5731_v38  ;;  %v11394_v32 = vld [vmem:[#allocation4 + $0x1cc] sm:$0xf]  ;;  %v6254_v29 = vsel %vm11812_vm5, %v6249_v55, %v6253_v41  ;;  %v7056_v43 = vrot.slane %v7054_v53, 4  ;;  %v7060_v60 = vshll.u32 %v6742_v39, 16  ;;  %v8960_v5 = vadd.f32 %v14955_v1, %v13832_v30  ;;  %v9123_v30 = vpop.f32.mrf.mxu2 }
 0x486   : > { %5803 = vst [vmem:[#allocation4 + $0x41c] sm:$0xf] %v5734_v46  ;;  %v10688_v15 = vld [vmem:[#allocation4 + $0x1ec] sm:$0xf0]  ;;  %v7047_v26 = vor.u32 %v7046_v33, %v7043_v14  ;;  %v6474_v7 = vrot.slane %v6472_v27, 4  ;;  %v6475_v40 = vrot.slane %v6372_v58, 5  ;;  %v9035_v53 = vadd.f32 %v14955_v1, %v14977_v56 }
 0x487   : > { %6362 = vst [vmem:[#allocation4 + $0x3dc] sm:$0xf] %v6254_v29  ;;  %v10750_v21 = vld [vmem:[#allocation4 + $0x250] sm:$0xf]  ;;  %v7057_v10 = vor.u32 %v7056_v43, %v7052_v28  ;;  %v7062_v8 = vrot.slane %v7060_v60, 5  ;;  %v10429_v41 = vrot.slane %v7203_v3, 9  ;;  %v8985_v14 = vadd.f32 %v14955_v1, %v14092_v42  ;;  %v9073_v3 = vpop.f32.mrf.mxu0 }
 0x488   : > { %v7204_v49 = vld [vmem:[#allocation3 + $0x28] sm:$0xf]  ;;  %v7205_v35 = vld [vmem:[#allocation3 + $0x2c] sm:$0x1]  ;;  %v7048_v39 = vrot.slane %v7047_v26, 4  ;;  %v6476_v19 = vsel %vm11795_vm2, %v6474_v7, %v6475_v40  ;;  %v10691_v58 = vor.u32 %v11394_v32, %v10688_v15  ;;  %v15013_v29 = vadd.f32 %v9123_v30, %v9035_v53  ;;  %v11523_v56 = vld [vmem:[%s15541_s3 + $0x150] sm:$0xff] }
 0x489   : > { %v7305_v55 = vrot.slane %v7204_v49, 5  ;;  %v6373_v38 = vld [vmem:[#allocation3 + $0x24] sm:$0xe]  ;;  %v6374_v27 = vld [vmem:[#allocation3 + $0x28] sm:$0xf]  ;;  %v7058_v33 = vrot.slane %v7057_v10, 4  ;;  %v15024_v15 = vadd.f32 %v9073_v3, %v8985_v14  ;;  %v9049_v49 = vadd.f32 %v14761_v16, %v8960_v5  ;;  %9398 = vmatpush.bf16.msra.mxu3 %v11523_v56 }
 0x48a   : > { %v11415_v46 = vld [vmem:[#allocation4 + $0x270] sm:$0xf0]  ;;  %6610 = vst [vmem:[#allocation4 + $0x80] sm:$0xf] %v6476_v19  ;;  %v7308_v62 = vrot.slane %v7205_v35, 5  ;;  %v7053_v43 = vsel %vm11812_vm5, %v7048_v39, %v7052_v28  ;;  %9609 = vmatmul.bf16.gmra.mxu1 %v10691_v58  ;;  %v10414_v40 = vrot.slane %v6373_v38, 9  ;;  %v15031_v39 = vpop.f32.mrf.mxu1  ;;  %v9225_v3 = vadd.f32 %v14256_v61, %v15003_v47 }
 0x48b   : > { %15661 = vst [vmem:[#allocation43_spill] sm:$0xff] %v15013_v29  ;;  %v7306_v60 = vsel %vm11795_vm2, %v10429_v41, %v7305_v55  ;;  %v7307_v42 = vrot.slane %v7305_v55, 4  ;;  %v6375_v26 = vld [vmem:[#allocation3 + $0x2c] sm:$0x1]  ;;  %v15022_v32 = vld [vmem:[#allocation3 + $0xb4] sm:$0xf]  ;;  %v7063_v7 = vsel %vm11812_vm5, %v7058_v33, %v7062_v8  ;;  %v10751_v35 = vor.u32 %v11415_v46, %v10750_v21  ;;  %v9137_v19 = vpop.f32.mrf.mxu3 }
 0x48c   : > { %7192 = vst [vmem:[#allocation4 + $0x37c] sm:$0xf] %v7053_v43  ;;  %v6479_v10 = vrot.slane %v6374_v27, 5  ;;  %v10778_v28 = vld [vmem:[#allocation4 + $0x290] sm:$0xf]  ;;  %v6482_v53 = vrot.slane %v6375_v26, 5  ;;  %v9138_v27 = vadd.f32 %v9137_v19, %v9049_v49  ;;  %v8988_v43 = vadd.f32 %v14955_v1, %v14108_v50 }
 0x48d   : > { %7193 = vst [vmem:[#allocation4 + $0x3a0] sm:$0xf] %v7063_v7  ;;  %v7309_v41 = vsel %vm11795_vm2, %v7307_v42, %v7308_v62  ;;  %v11423_v55 = vld [vmem:[#allocation4 + $0x2b0] sm:$0xf0]  ;;  %9352 = vmatmul.bf16.gmra.mxu2 %v10751_v35  ;;  %v7206_v16 = vld [vmem:[#allocation3 + $0x30] sm:$0xe] }
 0x48e   : > { %7442 = vst [vmem:[#allocation4 + $0x68] sm:$0xf] %v7306_v60  ;;  %v6480_v8 = vsel %vm11795_vm2, %v10414_v40, %v6479_v10  ;;  %v6481_v38 = vrot.slane %v6479_v10, 4  ;;  %v7207_v5 = vld [vmem:[#allocation3 + $0x34] sm:$0xf]  ;;  %v10779_v62 = vor.u32 %v11423_v55, %v10778_v28  ;;  %v10430_v56 = vrot.slane %v7206_v16, 9  ;;  %v9313_v60 = vpop.f32.mrf.mxu2 }
 0x48f   : > { %7443 = vst [vmem:[#allocation4 + $0x8c] sm:$0xf] %v7309_v41  ;;  %v10722_v21 = vld [vmem:[#allocation4 + $0x210] sm:$0xf]  ;;  %v7208_v30 = vld [vmem:[#allocation3 + $0x38] sm:$0x1]  ;;  %v9076_v49 = vpop.f32.mrf.mxu0  ;;  %v15045_v35 = vadd.f32 %v9313_v60, %v9225_v3 }
 0x490   : > { %v6483_v14 = vsel %vm11795_vm2, %v6481_v38, %v6482_v53  ;;  %6611 = vst [vmem:[#allocation4 + $0xa4] sm:$0xf] %v6480_v8  ;;  %v15038_v46 = vld [vmem:[#allocation3 + $0xb4] sm:$0xf]  ;;  %v11407_v33 = vld [vmem:[#allocation4 + $0x230] sm:$0xf0]  ;;  %9179 = vmatmul.bf16.gmra.mxu3 %v10779_v62  ;;  %v15047_v61 = vadd.f32 %v9076_v49, %v8988_v43 }
 0x491   : > { %6612 = vst [vmem:[#allocation4 + $0xc8] sm:$0xf] %v6483_v14  ;;  %v7312_v42 = vrot.slane %v7207_v5, 5  ;;  %v7315_v26 = vrot.slane %v7208_v30, 5  ;;  %v6376_v7 = vld [vmem:[#allocation3 + $0x30] sm:$0xe]  ;;  %v10723_v47 = vor.u32 %v11407_v33, %v10722_v21 }
 0x492   : > { %v6377_v40 = vld [vmem:[#allocation3 + $0x34] sm:$0xf]  ;;  %v6259_v10 = vshll.u32 %v15022_v32, 16  ;;  %15662 = vst [vmem:[#allocation44_spill] sm:$0xff] %v15045_v35  ;;  %v6378_v28 = vld [vmem:[#allocation3 + $0x38] sm:$0x1] }
 0x493   : > { %v10415_v41 = vrot.slane %v6376_v7, 9  ;;  %v6486_v53 = vrot.slane %v6377_v40, 5  ;;  %v5579_v19 = vld [vmem:[#allocation3 + $0xb4] sm:$0xe]  ;;  %v7313_v50 = vsel %vm11795_vm2, %v10430_v56, %v7312_v42  ;;  %v7314_v55 = vrot.slane %v7312_v42, 4  ;;  %v9140_v30 = vpop.f32.mrf.mxu3  ;;  %v11547_v21 = vld [vmem:[%s15541_s3 + $0x210] sm:$0xff]  ;;  %v15065_v40 = vpop.f32.mrf.mxu1 }
 0x494   : > { %v11403_v8 = vld [vmem:[#allocation4 + $0x214] sm:$0xf]  ;;  %7444 = vst [vmem:[#allocation4 + $0xb0] sm:$0xf] %v7313_v50  ;;  %v6489_v5 = vrot.slane %v6378_v28, 5  ;;  %v7065_v14 = vshrl.u32 %v15038_v46, 16  ;;  %9525 = vmatmul.bf16.gmra.mxu0 %v10723_v47  ;;  %v9141_v56 = vadd.f32 %v9140_v30, %v14790_v54  ;;  %v8965_v42 = vadd.f32 %v14955_v1, %v13894_v23  ;;  %9665 = vmatpush.bf16.msra.mxu2 %v11547_v21 }
 0x495   : > { %v6487_v38 = vsel %vm11795_vm2, %v10415_v41, %v6486_v53  ;;  %v6488_v16 = vrot.slane %v6486_v53, 4  ;;  %v10724_v62 = vld [vmem:[#allocation4 + $0x234] sm:$0xf0]  ;;  %v7316_v33 = vsel %vm11795_vm2, %v7314_v55, %v7315_v26  ;;  %v7068_v3 = vshll.u32 %v15038_v46, 16  ;;  %v7209_v60 = vld [vmem:[#allocation3 + $0x3c] sm:$0xe] }
 0x496   : > { %6613 = vst [vmem:[#allocation4 + $0xec] sm:$0xf] %v6487_v38  ;;  %v10411_v43 = vrot.slane %v5579_v19, 9  ;;  %v8990_v7 = vadd.f32 %v14955_v1, %v14126_v24  ;;  %v10786_v49 = vld [vmem:[#allocation4 + $0x298] sm:$0xf]  ;;  %v9227_v54 = vadd.f32 %v14290_v22, %v9138_v27  ;;  %v9054_v24 = vadd.f32 %v14809_v52, %v8965_v42  ;;  %v9315_v55 = vpop.f32.mrf.mxu2 }
 0x497   : > { %7445 = vst [vmem:[#allocation4 + $0xd4] sm:$0xf] %v7316_v33  ;;  %v11424_v28 = vld [vmem:[#allocation4 + $0x2b8] sm:$0xf0]  ;;  %v6667_v26 = vld [vmem:[#allocation3 + $0xb8] sm:$0xf]  ;;  %v6490_v23 = vsel %vm11795_vm2, %v6488_v16, %v6489_v5  ;;  %v10727_v38 = vor.u32 %v11403_v8, %v10724_v62  ;;  %v9078_v58 = vpop.f32.mrf.mxu0 }
 0x498   : > { %v5914_v41 = vld [vmem:[#allocation3 + $0xb8] sm:$0xf]  ;;  %v7210_v46 = vld [vmem:[#allocation3 + $0x40] sm:$0xf]  ;;  %v6666_v47 = vld [vmem:[#allocation3 + $0xb4] sm:$0xf]  ;;  %v15071_v35 = vadd.f32 %v9315_v55, %v9227_v54  ;;  %v10787_v8 = vor.u32 %v11424_v28, %v10786_v49  ;;  %v9230_v28 = vadd.f32 %v14319_v37, %v9141_v56 }
 0x499   : > { %v5580_v53 = vld [vmem:[#allocation3 + $0xb8] sm:$0xf]  ;;  %6699 = vst [vmem:[#allocation4 + $0x3e4] sm:$0xf] %v6667_v26  ;;  %v6265_v19 = vshll.u32 %v5914_v41, 16  ;;  %v6269_v50 = vshrl.u32 %v5914_v41, 16  ;;  %v15073_v26 = vadd.f32 %v9078_v58, %v8990_v7 }
 0x49a   : > { %6698 = vst [vmem:[#allocation4 + $0x3c0] sm:$0xf] %v6666_v47  ;;  %v5737_v30 = vrot.slane %v5580_v53, 5  ;;  %v6744_v21 = vld [vmem:[#allocation3 + $0xb8] sm:$0xf]  ;;  %v10431_v33 = vrot.slane %v7209_v60, 9  ;;  %9614 = vmatmul.bf16.gmra.mxu1 %v10727_v38 }
 0x49b   : > { %v6267_v29 = vrot.slane %v6265_v19, 5  ;;  %v6271_v22 = vrot.slane %v6269_v50, 4  ;;  %v7074_v27 = vshll.u32 %v6744_v21, 16  ;;  %v15663_v41 = vshrl.u32 %v15022_v32, 16  ;;  %6614 = vst [vmem:[#allocation4 + $0x110] sm:$0xf] %v6490_v23  ;;  %v9142_v53 = vpop.f32.mrf.mxu3 }
 0x49c   : > { %v6261_v5 = vrot.slane %v6259_v10, 5  ;;  %v5738_v52 = vsel %vm11795_vm2, %v10411_v43, %v5737_v30  ;;  %v7067_v62 = vrot.slane %v7065_v14, 4  ;;  %v7070_v60 = vrot.slane %v7068_v3, 5  ;;  %v10814_v54 = vld [vmem:[#allocation4 + $0x2d8] sm:$0xf] }
 0x49d   : > { %v6258_v16 = vrot.slane %v15663_v41, 4  ;;  %5804 = vst [vmem:[#allocation4 + $0x440] sm:$0xf] %v5738_v52  ;;  %v7319_v42 = vrot.slane %v7210_v46, 5  ;;  %v11432_v47 = vld [vmem:[#allocation4 + $0x2f8] sm:$0xf0]  ;;  %v15079_v7 = vadd.f32 %v9142_v53, %v9054_v24  ;;  %9357 = vmatmul.bf16.gmra.mxu2 %v10787_v8  ;;  %v6272_v43 = vor.u32 %v6271_v22, %v6267_v29 }
 0x49e   : > { %v7078_v58 = vshrl.u32 %v6744_v21, 16  ;;  %v10758_v50 = vld [vmem:[#allocation4 + $0x258] sm:$0xf]  ;;  %v11416_v32 = vld [vmem:[#allocation4 + $0x278] sm:$0xf0]  ;;  %v7071_v10 = vor.u32 %v7070_v60, %v7067_v62  ;;  %v7076_v55 = vrot.slane %v7074_v27, 5  ;;  %v10815_v3 = vor.u32 %v11432_v47, %v10814_v54  ;;  %v9318_v52 = vpop.f32.mrf.mxu2 }
 0x49f   : > { %v6262_v19 = vor.u32 %v6261_v5, %v6258_v16  ;;  %v7211_v49 = vld [vmem:[#allocation3 + $0x44] sm:$0x1]  ;;  %v7320_v14 = vsel %vm11795_vm2, %v10431_v33, %v7319_v42  ;;  %v5915_v46 = vld [vmem:[#allocation3 + $0xbc] sm:$0x1]  ;;  %v5739_v21 = vrot.slane %v5737_v30, 4  ;;  %v7321_v24 = vrot.slane %v7319_v42, 4  ;;  %v15084_v16 = vpop.f32.mrf.mxu1 }
 0x4a0   : > { %v7080_v23 = vrot.slane %v7078_v58, 4  ;;  %v5581_v41 = vld [vmem:[#allocation3 + $0xbc] sm:$0x1]  ;;  %v10759_v5 = vor.u32 %v11416_v32, %v10758_v50  ;;  %v6275_v22 = vshll.u32 %v5915_v46, 16  ;;  %7446 = vst [vmem:[#allocation4 + $0xf8] sm:$0xf] %v7320_v14  ;;  %9184 = vmatmul.bf16.gmra.mxu3 %v10815_v3  ;;  %v15088_v33 = vadd.f32 %v9318_v52, %v9230_v28 }
 0x4a1   : > { %v6263_v38 = vrot.slane %v6262_v19, 4  ;;  %v5740_v8 = vrot.slane %v5581_v41, 5  ;;  %v6745_v62 = vld [vmem:[#allocation3 + $0xbc] sm:$0x1]  ;;  %v7072_v37 = vrot.slane %v7071_v10, 4  ;;  %v6273_v42 = vrot.slane %v6272_v43, 4 }
 0x4a2   : > { %v7081_v56 = vor.u32 %v7080_v23, %v7076_v55  ;;  %v7084_v60 = vshll.u32 %v6745_v62, 16  ;;  %v6379_v30 = vld [vmem:[#allocation3 + $0x3c] sm:$0xe]  ;;  %v6277_v53 = vrot.slane %v6275_v22, 5  ;;  %v7322_v47 = vrot.slane %v7211_v49, 5 }
 0x4a3   : > { %v6268_v27 = vsel %vm11812_vm5, %v6263_v38, %v6267_v29  ;;  %v5741_v54 = vsel %vm11795_vm2, %v5739_v21, %v5740_v8  ;;  %v6380_v19 = vld [vmem:[#allocation3 + $0x40] sm:$0xf]  ;;  %v11412_v29 = vld [vmem:[#allocation4 + $0x25c] sm:$0xf]  ;;  %v10760_v58 = vld [vmem:[#allocation4 + $0x27c] sm:$0xf0]  ;;  %v7077_v50 = vsel %vm11812_vm5, %v7072_v37, %v7076_v55  ;;  %v9145_v10 = vpop.f32.mrf.mxu3 }
 0x4a4   : > { %6363 = vst [vmem:[#allocation4 + $0x400] sm:$0xf] %v6268_v27  ;;  %v7082_v32 = vrot.slane %v7081_v56, 4  ;;  %v7086_v38 = vrot.slane %v7084_v60, 5  ;;  %v6381_v14 = vld [vmem:[#allocation3 + $0x44] sm:$0x1]  ;;  %9530 = vmatmul.bf16.gmra.mxu0 %v10759_v5  ;;  %v6278_v43 = vsel %vm11812_vm5, %v6273_v42, %v6277_v53  ;;  %v7323_v23 = vsel %vm11795_vm2, %v7321_v24, %v7322_v47 }
 0x4a5   : > { %5805 = vst [vmem:[#allocation4 + $0x464] sm:$0xf] %v5741_v54  ;;  %v10416_v49 = vrot.slane %v6379_v30, 9  ;;  %v6493_v3 = vrot.slane %v6380_v19, 5  ;;  %v7212_v28 = vld [vmem:[#allocation3 + $0x48] sm:$0xe]  ;;  %v9146_v46 = vadd.f32 %v9145_v10, %v14841_v57  ;;  %v9232_v24 = vadd.f32 %v14344_v11, %v15079_v7 }
 0x4a6   : > { %7194 = vst [vmem:[#allocation4 + $0x3c4] sm:$0xf] %v7077_v50  ;;  %v7087_v55 = vsel %vm11812_vm5, %v7082_v32, %v7086_v38  ;;  %v6496_v41 = vrot.slane %v6381_v14, 5  ;;  %v7213_v21 = vld [vmem:[#allocation3 + $0x4c] sm:$0xf]  ;;  %v10432_v5 = vrot.slane %v7212_v28, 9  ;;  %v9320_v37 = vpop.f32.mrf.mxu2  ;;  %v10763_v56 = vor.u32 %v11412_v29, %v10760_v58 }
 0x4a7   : > { %6364 = vst [vmem:[#allocation4 + $0x424] sm:$0xf] %v6278_v43  ;;  %v6494_v52 = vsel %vm11795_vm2, %v10416_v49, %v6493_v3  ;;  %v6495_v27 = vrot.slane %v6493_v3, 4  ;;  %v7214_v22 = vld [vmem:[#allocation3 + $0x50] sm:$0x1]  ;;  %v7326_v8 = vrot.slane %v7213_v21, 5  ;;  %v8970_v54 = vadd.f32 %v14955_v1, %v13958_v4  ;;  %v15116_v19 = vpop.f32.mrf.mxu1 }
 0x4a8   : > { %7195 = vst [vmem:[#allocation4 + $0x3e8] sm:$0xf] %v7087_v55  ;;  %v10822_v62 = vld [vmem:[#allocation4 + $0x2e0] sm:$0xf]  ;;  %v7329_v57 = vrot.slane %v7214_v22, 5  ;;  %v15111_v47 = vadd.f32 %v9320_v37, %v9232_v24 }
 0x4a9   : > { %7447 = vst [vmem:[#allocation4 + $0x11c] sm:$0xf] %v7323_v23  ;;  %v11433_v60 = vld [vmem:[#allocation4 + $0x300] sm:$0xf0]  ;;  %v6497_v30 = vsel %vm11795_vm2, %v6495_v27, %v6496_v41  ;;  %v7327_v42 = vsel %vm11795_vm2, %v10432_v5, %v7326_v8  ;;  %v7328_v53 = vrot.slane %v7326_v8, 4  ;;  %v9059_v50 = vadd.f32 %v14859_v18, %v8970_v54 }
 0x4aa   : > { %6615 = vst [vmem:[#allocation4 + $0x134] sm:$0xf] %v6494_v52  ;;  %v11522_v11 = vld [vmem:[%s15541_s3 + $0x148] sm:$0xff]  ;;  %v6382_v7 = vld [vmem:[#allocation3 + $0x48] sm:$0xe]  ;;  %9619 = vmatmul.bf16.gmra.mxu1 %v10763_v56  ;;  %v10823_v32 = vor.u32 %v11433_v60, %v10822_v62  ;;  %v9235_v18 = vadd.f32 %v14372_v59, %v9146_v46 }
 0x4ab   : > { %6616 = vst [vmem:[#allocation4 + $0x158] sm:$0xf] %v6497_v30  ;;  %v7330_v29 = vsel %vm11795_vm2, %v7328_v53, %v7329_v57  ;;  %v6383_v58 = vld [vmem:[#allocation3 + $0x4c] sm:$0xf]  ;;  %v10850_v4 = vld [vmem:[#allocation4 + $0x320] sm:$0xf]  ;;  %9399 = vmatpush.bf16.msra.mxu3 %v11522_v11  ;;  %v9147_v38 = vpop.f32.mrf.mxu3 }
 0x4ac   : > { %7448 = vst [vmem:[#allocation4 + $0x140] sm:$0xf] %v7327_v42  ;;  %v6384_v1 = vld [vmem:[#allocation3 + $0x50] sm:$0x1]  ;;  %v11441_v14 = vld [vmem:[#allocation4 + $0x340] sm:$0xf0]  ;;  %v9148_v49 = vadd.f32 %v9147_v38, %v9059_v50 }
 0x4ad   : > { %7449 = vst [vmem:[#allocation4 + $0x164] sm:$0xf] %v7330_v29  ;;  %v10417_v10 = vrot.slane %v6382_v7, 9  ;;  %v6500_v43 = vrot.slane %v6383_v58, 5  ;;  %v6503_v23 = vrot.slane %v6384_v1, 5  ;;  %9362 = vmatmul.bf16.gmra.mxu2 %v10823_v32  ;;  %v10851_v21 = vor.u32 %v11441_v14, %v10850_v4  ;;  %v11546_v46 = vld [vmem:[%s15541_s3 + $0x208] sm:$0xff] }
 0x4ae   : > { %v10794_v55 = vld [vmem:[#allocation4 + $0x2a0] sm:$0xf]  ;;  %v11425_v41 = vld [vmem:[#allocation4 + $0x2c0] sm:$0xf0]  ;;  %v9323_v5 = vpop.f32.mrf.mxu2  ;;  %v10796_v37 = vld [vmem:[#allocation4 + $0x2c4] sm:$0xf0]  ;;  %9666 = vmatpush.bf16.msra.mxu2 %v11546_v46  ;;  %v9237_v4 = vadd.f32 %v14407_v51, %v9148_v49 }
 0x4af   : > { %v6501_v3 = vsel %vm11795_vm2, %v10417_v10, %v6500_v43  ;;  %v6502_v28 = vrot.slane %v6500_v43, 4  ;;  %v15126_v27 = vadd.f32 %v9323_v5, %v9235_v18  ;;  %v15128_v22 = vpop.f32.mrf.mxu1  ;;  %v10795_v8 = vor.u32 %v11425_v41, %v10794_v55  ;;  %v7216_v24 = vld [vmem:[#allocation3 + $0x58] sm:$0xf]  ;;  %v11421_v57 = vld [vmem:[#allocation4 + $0x2a4] sm:$0xf] }
 0x4b0   : > { %6617 = vst [vmem:[#allocation4 + $0x17c] sm:$0xf] %v6501_v3  ;;  %9189 = vmatmul.bf16.gmra.mxu3 %v10851_v21  ;;  %v6386_v62 = vld [vmem:[#allocation3 + $0x58] sm:$0xf]  ;;  %v7333_v56 = vrot.slane %v7216_v24, 5  ;;  %v10799_v43 = vor.u32 %v11421_v57, %v10796_v37 }
 0x4b1   : > { %v6504_v52 = vsel %vm11795_vm2, %v6502_v28, %v6503_v23  ;;  %v6507_v60 = vrot.slane %v6386_v62, 5  ;;  %v7215_v30 = vld [vmem:[#allocation3 + $0x54] sm:$0xe]  ;;  %v7217_v42 = vld [vmem:[#allocation3 + $0x5c] sm:$0x1] }
 0x4b2   : > { %6618 = vst [vmem:[#allocation4 + $0x1a0] sm:$0xf] %v6504_v52  ;;  %v10433_v54 = vrot.slane %v7215_v30, 9  ;;  %v7335_v11 = vrot.slane %v7333_v56, 4  ;;  %v7336_v7 = vrot.slane %v7217_v42, 5  ;;  %v15664_v62 = vld [vmem:[#allocation13_spill] sm:$0xff] }
 0x4b3   : > { %v9150_v59 = vpop.f32.mrf.mxu3  ;;  %v6385_v29 = vld [vmem:[#allocation3 + $0x54] sm:$0xe]  ;;  %v6387_v58 = vld [vmem:[#allocation3 + $0x5c] sm:$0x1]  ;;  %v6509_v32 = vrot.slane %v6507_v60, 4 }
 0x4b4   : > { %9535 = vmatmul.bf16.gmra.mxu0 %v10795_v8  ;;  %v9151_v53 = vadd.f32 %v9150_v59, %v14887_v6  ;;  %v10418_v50 = vrot.slane %v6385_v29, 9  ;;  %v7334_v1 = vsel %vm11795_vm2, %v10433_v54, %v7333_v56  ;;  %v7337_v38 = vsel %vm11795_vm2, %v7335_v11, %v7336_v7  ;;  %v10858_v6 = vld [vmem:[#allocation4 + $0x328] sm:$0xf]  ;;  %v11442_v23 = vld [vmem:[#allocation4 + $0x348] sm:$0xf0] }
 0x4b5   : > { %v6510_v14 = vrot.slane %v6387_v58, 5  ;;  %7450 = vst [vmem:[#allocation4 + $0x188] sm:$0xf] %v7334_v1  ;;  %v10859_v49 = vor.u32 %v11442_v23, %v10858_v6  ;;  %v10886_v21 = vld [vmem:[#allocation4 + $0x368] sm:$0xf] }
 0x4b6   : > { %v9325_v10 = vpop.f32.mrf.mxu2  ;;  %v6508_v3 = vsel %vm11795_vm2, %v10418_v50, %v6507_v60  ;;  %7451 = vst [vmem:[#allocation4 + $0x1ac] sm:$0xf] %v7337_v38  ;;  %v11450_v18 = vld [vmem:[#allocation4 + $0x388] sm:$0xf0]  ;;  %v10830_v52 = vld [vmem:[#allocation4 + $0x2e8] sm:$0xf]  ;;  %v9240_v57 = vadd.f32 %v15664_v62, %v9151_v53 }
 0x4b7   : > { %v15141_v28 = vadd.f32 %v9325_v10, %v9237_v4  ;;  %v6511_v51 = vsel %vm11795_vm2, %v6509_v32, %v6510_v14  ;;  %6619 = vst [vmem:[#allocation4 + $0x1c4] sm:$0xf] %v6508_v3  ;;  %v15145_v55 = vpop.f32.mrf.mxu1  ;;  %v11434_v8 = vld [vmem:[#allocation4 + $0x308] sm:$0xf0]  ;;  %v10887_v24 = vor.u32 %v11450_v18, %v10886_v21  ;;  %v10832_v42 = vld [vmem:[#allocation4 + $0x30c] sm:$0xf0] }
 0x4b8   : > { %6620 = vst [vmem:[#allocation4 + $0x1e8] sm:$0xf] %v6511_v51  ;;  %v10831_v60 = vor.u32 %v11434_v8, %v10830_v52  ;;  %v7219_v59 = vld [vmem:[#allocation3 + $0x64] sm:$0xf]  ;;  %v7218_v29 = vld [vmem:[#allocation3 + $0x60] sm:$0xe] }
 0x4b9   : > { %v6389_v46 = vld [vmem:[#allocation3 + $0x64] sm:$0xf]  ;;  %v7340_v54 = vrot.slane %v7219_v59, 5  ;;  %v7220_v58 = vld [vmem:[#allocation3 + $0x68] sm:$0x1]  ;;  %v10434_v32 = vrot.slane %v7218_v29, 9 }
 0x4ba   : > { %9624 = vmatmul.bf16.gmra.mxu1 %v10799_v43  ;;  %v11430_v30 = vld [vmem:[#allocation4 + $0x2ec] sm:$0xf]  ;;  %v6514_v11 = vrot.slane %v6389_v46, 5  ;;  %v6388_v50 = vld [vmem:[#allocation3 + $0x60] sm:$0xe]  ;;  %v7343_v1 = vrot.slane %v7220_v58, 5  ;;  %v15174_v58 = vpop.f32.mrf.mxu0 }
 0x4bb   : > { %v9152_v41 = vpop.f32.mrf.mxu3  ;;  %v7342_v4 = vrot.slane %v7340_v54, 4  ;;  %v6390_v38 = vld [vmem:[#allocation3 + $0x68] sm:$0x1]  ;;  %v10419_v14 = vrot.slane %v6388_v50, 9  ;;  %v15665_v6 = vld [vmem:[#allocation14_spill] sm:$0xff]  ;;  %v7341_v3 = vsel %vm11795_vm2, %v10434_v32, %v7340_v54  ;;  %v15667_v54 = vld [vmem:[#allocation16_spill] sm:$0xff] }
 0x4bc   : > { %v9153_v5 = vadd.f32 %v9152_v41, %v14909_v48  ;;  %v6516_v10 = vrot.slane %v6514_v11, 4  ;;  %v6517_v43 = vrot.slane %v6390_v38, 5  ;;  %v10835_v41 = vor.u32 %v11430_v30, %v10832_v42  ;;  %v10894_v21 = vld [vmem:[#allocation4 + $0x370] sm:$0xf]  ;;  %v11451_v18 = vld [vmem:[#allocation4 + $0x390] sm:$0xf0] }
 0x4bd   : > { %9367 = vmatmul.bf16.gmra.mxu2 %v10859_v49  ;;  %v7344_v51 = vsel %vm11795_vm2, %v7342_v4, %v7343_v1  ;;  %7452 = vst [vmem:[#allocation4 + $0x1d0] sm:$0xf] %v7341_v3  ;;  %v10866_v46 = vld [vmem:[#allocation4 + $0x330] sm:$0xf]  ;;  %v11443_v30 = vld [vmem:[#allocation4 + $0x350] sm:$0xf0] }
 0x4be   : > { %v9328_v37 = vpop.f32.mrf.mxu2  ;;  %v9242_v23 = vadd.f32 %v15665_v6, %v9153_v5  ;;  %v6518_v52 = vsel %vm11795_vm2, %v6516_v10, %v6517_v43  ;;  %v11521_v5 = vld [vmem:[%s15541_s3 + $0x140] sm:$0xff]  ;;  %7453 = vst [vmem:[#allocation4 + $0x1f4] sm:$0xf] %v7344_v51  ;;  %v10867_v50 = vor.u32 %v11443_v30, %v10866_v46  ;;  %v11439_v1 = vld [vmem:[#allocation4 + $0x334] sm:$0xf] }
 0x4bf   : > { %v15149_v56 = vadd.f32 %v9328_v37, %v9240_v57  ;;  %v15151_v7 = vpop.f32.mrf.mxu1  ;;  %9400 = vmatpush.bf16.msra.mxu3 %v11521_v5  ;;  %6622 = vst [vmem:[#allocation4 + $0x230] sm:$0xf] %v6518_v52  ;;  %v10922_v57 = vld [vmem:[#allocation4 + $0x3b0] sm:$0xf]  ;;  %v11459_v37 = vld [vmem:[#allocation4 + $0x3d0] sm:$0xf0] }
 0x4c0   : > { %9194 = vmatmul.bf16.gmra.mxu3 %v10887_v24  ;;  %v10895_v24 = vor.u32 %v11451_v18, %v10894_v21  ;;  %v10923_v42 = vor.u32 %v11459_v37, %v10922_v57  ;;  %v7222_v32 = vld [vmem:[#allocation3 + $0x70] sm:$0xf]  ;;  %v7223_v6 = vld [vmem:[#allocation3 + $0x74] sm:$0x1]  ;;  %v15669_v52 = vld [vmem:[#allocation17_spill] sm:$0xff] }
 0x4c1   : > { %v6392_v4 = vld [vmem:[#allocation3 + $0x70] sm:$0xf]  ;;  %v6393_v21 = vld [vmem:[#allocation3 + $0x74] sm:$0x1] }
 0x4c2   : > { %v10868_v38 = vld [vmem:[#allocation4 + $0x354] sm:$0xf0]  ;;  %v6524_v57 = vrot.slane %v6393_v21, 5  ;;  %v6668_v21 = vld [vmem:[#allocation3 + $0xc0] sm:$0xf] }
 0x4c3   : > { %v9155_v48 = vpop.f32.mrf.mxu3  ;;  %v11545_v43 = vld [vmem:[%s15541_s3 + $0x200] sm:$0xff]  ;;  %v10871_v46 = vor.u32 %v11439_v1, %v10868_v38  ;;  %v5916_v38 = vld [vmem:[#allocation3 + $0xc0] sm:$0xf]  ;;  %6700 = vst [vmem:[#allocation4 + $0x408] sm:$0xf] %v6668_v21 }
 0x4c4   : > { %9540 = vmatmul.bf16.gmra.mxu0 %v10831_v60  ;;  %v9156_v53 = vadd.f32 %v9155_v48, %v14930_v20  ;;  %v6515_v20 = vsel %vm11795_vm2, %v10419_v14, %v6514_v11  ;;  %v6521_v14 = vrot.slane %v6392_v4, 5  ;;  %9667 = vmatpush.bf16.msra.mxu2 %v11545_v43  ;;  %v10930_v30 = vld [vmem:[#allocation4 + $0x3b8] sm:$0xf]  ;;  %v11468_v1 = vld [vmem:[#allocation4 + $0x418] sm:$0xf0] }
 0x4c5   : > { %6621 = vst [vmem:[#allocation4 + $0x20c] sm:$0xf] %v6515_v20  ;;  %v10958_v4 = vld [vmem:[#allocation4 + $0x3f8] sm:$0xf] }
 0x4c6   : > { %v9330_v49 = vpop.f32.mrf.mxu2  ;;  %v9245_v11 = vadd.f32 %v15667_v54, %v9156_v53  ;;  %v7221_v53 = vld [vmem:[#allocation3 + $0x6c] sm:$0xe]  ;;  %v6523_v20 = vrot.slane %v6521_v14, 4  ;;  %v10959_v43 = vor.u32 %v11468_v1, %v10958_v4  ;;  %v7224_v4 = vld [vmem:[#allocation3 + $0x78] sm:$0xe] }
 0x4c7   : > { %v15163_v8 = vadd.f32 %v9330_v49, %v9242_v23  ;;  %v15169_v59 = vpop.f32.mrf.mxu1  ;;  %v10435_v3 = vrot.slane %v7221_v53, 9  ;;  %v7350_v49 = vrot.slane %v7223_v6, 5  ;;  %v15671_v53 = vld [vmem:[#allocation18_spill] sm:$0xff] }
 0x4c9   : > { %15666 = vst [vmem:[#allocation13_spill] sm:$0xff] %v15163_v8 }
 0x4ca   : > { %9629 = vmatmul.bf16.gmra.mxu1 %v10835_v41  ;;  %v6391_v41 = vld [vmem:[#allocation3 + $0x6c] sm:$0xe] }
 0x4cb   : > { %v9157_v62 = vpop.f32.mrf.mxu3  ;;  %v10420_v18 = vrot.slane %v6391_v41, 9 }
 0x4cc   : > { %v9158_v60 = vadd.f32 %v9157_v62, %v14971_v13  ;;  %v7347_v13 = vrot.slane %v7222_v32, 5 }
 0x4cd   : > { %9372 = vmatmul.bf16.gmra.mxu2 %v10895_v24  ;;  %v6522_v54 = vsel %vm11795_vm2, %v10420_v18, %v6521_v14  ;;  %v10902_v14 = vld [vmem:[#allocation4 + $0x378] sm:$0xf]  ;;  %v6669_v18 = vld [vmem:[#allocation3 + $0xc4] sm:$0xf] }
 0x4ce   : > { %v9333_v48 = vpop.f32.mrf.mxu2  ;;  %v7349_v51 = vrot.slane %v7347_v13, 4  ;;  %v9247_v5 = vadd.f32 %v15669_v52, %v9158_v60  ;;  %v7348_v24 = vsel %vm11795_vm2, %v10435_v3, %v7347_v13  ;;  %v6525_v60 = vsel %vm11795_vm2, %v6523_v20, %v6524_v57  ;;  %6623 = vst [vmem:[#allocation4 + $0x254] sm:$0xf] %v6522_v54 }
 0x4cf   : > { %v15172_v29 = vadd.f32 %v9333_v48, %v9245_v11  ;;  %v15185_v37 = vpop.f32.mrf.mxu1  ;;  %7454 = vst [vmem:[#allocation4 + $0x218] sm:$0xf] %v7348_v24  ;;  %v6280_v3 = vshrl.u32 %v5916_v38, 16  ;;  %v10904_v24 = vld [vmem:[#allocation4 + $0x39c] sm:$0xf0] }
 0x4d0   : > { %9199 = vmatmul.bf16.gmra.mxu3 %v10923_v42  ;;  %v7351_v62 = vsel %vm11795_vm2, %v7349_v51, %v7350_v49  ;;  %v11460_v42 = vld [vmem:[#allocation4 + $0x3d8] sm:$0xf0]  ;;  %6624 = vst [vmem:[#allocation4 + $0x278] sm:$0xf] %v6525_v60  ;;  %v6283_v51 = vshll.u32 %v5916_v38, 16 }
 0x4d1   : > { %15668 = vst [vmem:[#allocation14_spill] sm:$0xff] %v15172_v29  ;;  %v10931_v48 = vor.u32 %v11460_v42, %v10930_v30  ;;  %v6395_v42 = vld [vmem:[#allocation3 + $0x7c] sm:$0xf] }
 0x4d2   : > { %7455 = vst [vmem:[#allocation4 + $0x23c] sm:$0xf] %v7351_v62  ;;  %v6285_v30 = vrot.slane %v6283_v51, 5 }
 0x4d3   : > { %v9160_v10 = vpop.f32.mrf.mxu3  ;;  %6701 = vst [vmem:[#allocation4 + $0x42c] sm:$0xf] %v6669_v18 }
 0x4d4   : > { %9545 = vmatmul.bf16.gmra.mxu0 %v10867_v50  ;;  %v9161_v23 = vadd.f32 %v9160_v10, %v14994_v17  ;;  %v15193_v50 = vpop.f32.mrf.mxu0  ;;  %v11452_v10 = vld [vmem:[#allocation4 + $0x398] sm:$0xf0] }
 0x4d5   : > { %v10903_v52 = vor.u32 %v11452_v10, %v10902_v14  ;;  %v7226_v10 = vld [vmem:[#allocation3 + $0x80] sm:$0x1] }
 0x4d6   : > { %v9335_v17 = vpop.f32.mrf.mxu2  ;;  %v9250_v6 = vadd.f32 %v15671_v53, %v9161_v23  ;;  %v5917_v23 = vld [vmem:[#allocation3 + $0xc4] sm:$0xf] }
 0x4d7   : > { %v15189_v11 = vadd.f32 %v9335_v17, %v9247_v5  ;;  %v15199_v20 = vpop.f32.mrf.mxu1  ;;  %v11448_v5 = vld [vmem:[#allocation4 + $0x37c] sm:$0xf]  ;;  %v5918_v17 = vld [vmem:[#allocation3 + $0xc8] sm:$0x1]  ;;  %v6289_v60 = vshll.u32 %v5917_v23, 16 }
 0x4d8   : > { %v10907_v38 = vor.u32 %v11448_v5, %v10904_v24  ;;  %v6746_v5 = vld [vmem:[#allocation3 + $0xc0] sm:$0xf] }
 0x4d9   : > { %15670 = vst [vmem:[#allocation16_spill] sm:$0xff] %v15189_v11  ;;  %v6291_v18 = vrot.slane %v6289_v60, 5 }
 0x4da   : > { %9634 = vmatmul.bf16.gmra.mxu1 %v10871_v46  ;;  %v6282_v46 = vrot.slane %v6280_v3, 4 }
 0x4db   : > { %v9162_v32 = vpop.f32.mrf.mxu3 }
 0x4dc   : > { %v9163_v13 = vadd.f32 %v9162_v32, %v15024_v15  ;;  %v7225_v15 = vld [vmem:[#allocation3 + $0x7c] sm:$0xf]  ;;  %v6299_v32 = vshll.u32 %v5918_v17, 16  ;;  %v15202_v1 = vpop.f32.mrf.mxu0  ;;  %v6286_v14 = vor.u32 %v6285_v30, %v6282_v46  ;;  %v7357_v17 = vrot.slane %v7226_v10, 5 }
 0x4dd   : > { %9377 = vmatmul.bf16.gmra.mxu2 %v10931_v48  ;;  %v7354_v62 = vrot.slane %v7225_v15, 5  ;;  %v6293_v48 = vshrl.u32 %v5917_v23, 16  ;;  %v6528_v30 = vrot.slane %v6395_v42, 5 }
 0x4de   : > { %v9338_v49 = vpop.f32.mrf.mxu2  ;;  %v6301_v51 = vrot.slane %v6299_v32, 5 }
 0x4df   : > { %v15197_v41 = vadd.f32 %v9338_v49, %v9250_v6  ;;  %v7356_v53 = vrot.slane %v7354_v62, 4  ;;  %v6394_v6 = vld [vmem:[#allocation3 + $0x78] sm:$0xe]  ;;  %v6295_v3 = vrot.slane %v6293_v48, 4  ;;  %v6530_v10 = vrot.slane %v6528_v30, 4 }
 0x4e0   : > { %9204 = vmatmul.bf16.gmra.mxu3 %v10959_v43  ;;  %v10436_v43 = vrot.slane %v7224_v4, 9  ;;  %v15673_v49 = vld [vmem:[#allocation21_spill] sm:$0xff] }
 0x4e1   : > { %15672 = vst [vmem:[#allocation17_spill] sm:$0xff] %v15197_v41  ;;  %v9252_v21 = vadd.f32 %v15673_v49, %v9163_v13  ;;  %v10421_v41 = vrot.slane %v6394_v6, 9  ;;  %v6296_v46 = vor.u32 %v6295_v3, %v6291_v18  ;;  %v10966_v13 = vld [vmem:[#allocation4 + $0x400] sm:$0xf]  ;;  %v7358_v48 = vsel %vm11795_vm2, %v7356_v53, %v7357_v17  ;;  %v15215_v6 = vpop.f32.mrf.mxu1  ;;  %v11477_v49 = vld [vmem:[#allocation4 + $0x460] sm:$0xf0] }
 0x4e2   : > { %v7355_v23 = vsel %vm11795_vm2, %v10436_v43, %v7354_v62  ;;  %v7089_v43 = vshrl.u32 %v6746_v5, 16  ;;  %7457 = vst [vmem:[#allocation4 + $0x284] sm:$0xf] %v7358_v48  ;;  %v10994_v3 = vld [vmem:[#allocation4 + $0x440] sm:$0xf] }
 0x4e3   : > { %v9165_v57 = vpop.f32.mrf.mxu3  ;;  %7456 = vst [vmem:[#allocation4 + $0x260] sm:$0xf] %v7355_v23  ;;  %v6529_v62 = vsel %vm11795_vm2, %v10421_v41, %v6528_v30  ;;  %v10938_v41 = vld [vmem:[#allocation4 + $0x3c0] sm:$0xf] }
 0x4e4   : > { %9550 = vmatmul.bf16.gmra.mxu0 %v10903_v52  ;;  %v9166_v54 = vadd.f32 %v9165_v57, %v15047_v61  ;;  %v6396_v52 = vld [vmem:[#allocation3 + $0x80] sm:$0x1]  ;;  %v11469_v61 = vld [vmem:[#allocation4 + $0x420] sm:$0xf0]  ;;  %v6287_v57 = vrot.slane %v6286_v14, 4  ;;  %v6297_v14 = vrot.slane %v6296_v46, 4  ;;  %v15223_v23 = vpop.f32.mrf.mxu0 }
 0x4e5   : > { %v6531_v4 = vrot.slane %v6396_v52, 5  ;;  %v10967_v32 = vor.u32 %v11469_v61, %v10966_v13  ;;  %6625 = vst [vmem:[#allocation4 + $0x29c] sm:$0xf] %v6529_v62  ;;  %v11461_v52 = vld [vmem:[#allocation4 + $0x3e0] sm:$0xf0]  ;;  %v15675_v61 = vld [vmem:[#allocation23_spill] sm:$0xff] }
 0x4e6   : > { %v9340_v15 = vpop.f32.mrf.mxu2  ;;  %v6292_v60 = vsel %vm11812_vm5, %v6287_v57, %v6291_v18  ;;  %v6302_v53 = vsel %vm11812_vm5, %v6297_v14, %v6301_v51  ;;  %v9255_v57 = vadd.f32 %v15675_v61, %v9166_v54  ;;  %v6748_v51 = vld [vmem:[#allocation3 + $0xc8] sm:$0x1]  ;;  %v7091_v46 = vrot.slane %v7089_v43, 4 }
 0x4e7   : > { %v15207_v24 = vadd.f32 %v9340_v15, %v9252_v21  ;;  %6365 = vst [vmem:[#allocation4 + $0x448] sm:$0xf] %v6292_v60  ;;  %v6532_v18 = vsel %vm11795_vm2, %v6530_v10, %v6531_v4  ;;  %v10995_v15 = vor.u32 %v11477_v49, %v10994_v3  ;;  %v10939_v4 = vor.u32 %v11461_v52, %v10938_v41  ;;  %v7228_v14 = vld [vmem:[#allocation3 + $0x88] sm:$0xf]  ;;  %v11457_v10 = vld [vmem:[#allocation4 + $0x3c4] sm:$0xf] }
 0x4e8   : > { %6366 = vst [vmem:[#allocation4 + $0x46c] sm:$0xf] %v6302_v53  ;;  %v7108_v48 = vshll.u32 %v6748_v51, 16  ;;  %v6398_v62 = vld [vmem:[#allocation3 + $0x88] sm:$0xf]  ;;  %v7361_v43 = vrot.slane %v7228_v14, 5 }
 0x4e9   : > { %15674 = vst [vmem:[#allocation18_spill] sm:$0xff] %v15207_v24  ;;  %v15678_v41 = vld [vmem:[#allocation9_spill] sm:$0xff] }
 0x4ea   : > { %9639 = vmatmul.bf16.gmra.mxu1 %v10907_v38  ;;  %v7092_v38 = vshll.u32 %v6746_v5, 16  ;;  %6626 = vst [vmem:[#allocation4 + $0x2c0] sm:$0xf] %v6532_v18  ;;  %v6747_v5 = vld [vmem:[#allocation3 + $0xc4] sm:$0xf]  ;;  %v15677_v18 = vld [vmem:[#allocation11_spill] sm:$0xff] }
 0x4eb   : > { %v9167_v42 = vpop.f32.mrf.mxu3  ;;  %v7098_v13 = vshll.u32 %v6747_v5, 16  ;;  %v7102_v60 = vshrl.u32 %v6747_v5, 16  ;;  %v7110_v61 = vrot.slane %v7108_v48, 5 }
 0x4ec   : > { %v9168_v21 = vadd.f32 %v9167_v42, %v15073_v26  ;;  %v7094_v30 = vrot.slane %v7092_v38, 5  ;;  %v10940_v42 = vld [vmem:[#allocation4 + $0x3e4] sm:$0xf0]  ;;  %v15231_v38 = vld [vmem:[%s15542_s4] ss:$0 sm:$0xff] }
 0x4ed   : > { %9382 = vmatmul.bf16.gmra.mxu2 %v10967_v32  ;;  %v7100_v49 = vrot.slane %v7098_v13, 5  ;;  %v7104_v53 = vrot.slane %v7102_v60, 4  ;;  %v8995_v52 = vadd.f32 %v15231_v38, %v15678_v41  ;;  %v6535_v13 = vrot.slane %v6398_v62, 5  ;;  %v15679_v60 = vld [vmem:[#allocation26_spill] sm:$0xff] }
 0x4ee   : > { %v7095_v32 = vor.u32 %v7094_v30, %v7091_v46  ;;  %v11002_v5 = vld [vmem:[#allocation4 + $0x448] sm:$0xf]  ;;  %v7229_v30 = vld [vmem:[#allocation3 + $0x8c] sm:$0x1]  ;;  %v9257_v48 = vadd.f32 %v15679_v60, %v9168_v21 }
 0x4ef   : > { %v9343_v17 = vpop.f32.mrf.mxu2  ;;  %v11478_v51 = vld [vmem:[#allocation4 + $0x468] sm:$0xf0]  ;;  %v7105_v46 = vor.u32 %v7104_v53, %v7100_v49  ;;  %v7364_v29 = vrot.slane %v7229_v30, 5  ;;  %v6537_v62 = vrot.slane %v6535_v13, 4  ;;  %v11339_v30 = vld [vmem:[#allocation4 + $0x14] sm:$0xf] }
 0x4f0   : > { %9209 = vmatmul.bf16.gmra.mxu3 %v10995_v15  ;;  %v15225_v26 = vadd.f32 %v9343_v17, %v9255_v57  ;;  %v7096_v15 = vrot.slane %v7095_v32, 4  ;;  %v7227_v57 = vld [vmem:[#allocation3 + $0x84] sm:$0xe]  ;;  %v15235_v17 = vpop.f32.mrf.mxu1  ;;  %v10943_v32 = vor.u32 %v11457_v10, %v10940_v42  ;;  %v15244_v10 = vpop.f32.mrf.mxu0 }
 0x4f1   : > { %v7106_v11 = vrot.slane %v7105_v46, 4  ;;  %v11003_v46 = vor.u32 %v11478_v51, %v11002_v5 }
 0x4f2   : > { %15676 = vst [vmem:[#allocation21_spill] sm:$0xff] %v15225_v26  ;;  %v7101_v14 = vsel %vm11812_vm5, %v7096_v15, %v7100_v49  ;;  %v6399_v26 = vld [vmem:[#allocation3 + $0x8c] sm:$0x1] }
 0x4f3   : > { %v9170_v54 = vpop.f32.mrf.mxu3  ;;  %7196 = vst [vmem:[#allocation4 + $0x40c] sm:$0xf] %v7101_v14  ;;  %v6538_v21 = vrot.slane %v6399_v26, 5  ;;  %v7111_v42 = vsel %vm11812_vm5, %v7106_v11, %v7110_v61  ;;  %v10974_v11 = vld [vmem:[#allocation4 + $0x408] sm:$0xf]  ;;  %v15681_v61 = vld [vmem:[#allocation28_spill] sm:$0xff] }
 0x4f4   : > { %9555 = vmatmul.bf16.gmra.mxu0 %v10939_v4  ;;  %v9171_v3 = vadd.f32 %v9170_v54, %v15677_v18  ;;  %v10437_v4 = vrot.slane %v7227_v57, 9  ;;  %v7363_v54 = vrot.slane %v7361_v43, 4  ;;  %v6397_v18 = vld [vmem:[#allocation3 + $0x84] sm:$0xe]  ;;  %v15680_v57 = vld [vmem:[#allocation12_spill] sm:$0xff] }
 0x4f5   : > { %v10422_v53 = vrot.slane %v6397_v18, 9  ;;  %7197 = vst [vmem:[#allocation4 + $0x430] sm:$0xf] %v7111_v42  ;;  %v7231_v14 = vld [vmem:[#allocation3 + $0x94] sm:$0xf] }
 0x4f6   : > { %v7362_v41 = vsel %vm11795_vm2, %v10437_v4, %v7361_v43  ;;  %v7365_v49 = vsel %vm11795_vm2, %v7363_v54, %v7364_v29  ;;  %v9084_v43 = vadd.f32 %v15680_v57, %v8995_v52  ;;  %v10464_v4 = vld [vmem:[#allocation4 + $0x34] sm:$0xf0]  ;;  %v11470_v29 = vld [vmem:[#allocation4 + $0x428] sm:$0xf0]  ;;  %v6401_v54 = vld [vmem:[#allocation3 + $0x94] sm:$0xf] }
 0x4f7   : > { %v9345_v24 = vpop.f32.mrf.mxu2  ;;  %7458 = vst [vmem:[#allocation4 + $0x2a8] sm:$0xf] %v7362_v41  ;;  %v6536_v15 = vsel %vm11795_vm2, %v10422_v53, %v6535_v13  ;;  %v10467_v13 = vor.u32 %v11339_v30, %v10464_v4  ;;  %v10975_v51 = vor.u32 %v11470_v29, %v10974_v11  ;;  %v7368_v18 = vrot.slane %v7231_v14, 5  ;;  %v7230_v42 = vld [vmem:[#allocation3 + $0x90] sm:$0xe] }
 0x4f8   : > { %v15242_v8 = vadd.f32 %v9345_v24, %v9257_v48  ;;  %v6539_v24 = vsel %vm11795_vm2, %v6537_v62, %v6538_v21  ;;  %7459 = vst [vmem:[#allocation4 + $0x2cc] sm:$0xf] %v7365_v49  ;;  %v9260_v48 = vadd.f32 %v15681_v61, %v9171_v3  ;;  %v6542_v41 = vrot.slane %v6401_v54, 5  ;;  %v15260_v53 = vpop.f32.mrf.mxu0  ;;  %v7232_v49 = vld [vmem:[#allocation3 + $0x98] sm:$0x1]  ;;  %v15682_v3 = vld [vmem:[#allocation15_spill] sm:$0xff] }
 0x4f9   : > { %6627 = vst [vmem:[#allocation4 + $0x2e4] sm:$0xf] %v6536_v15  ;;  %v6400_v4 = vld [vmem:[#allocation3 + $0x90] sm:$0xe]  ;;  %v6402_v11 = vld [vmem:[#allocation3 + $0x98] sm:$0x1] }
 0x4fa   : > { %9644 = vmatmul.bf16.gmra.mxu1 %v10943_v32  ;;  %6628 = vst [vmem:[#allocation4 + $0x308] sm:$0xf] %v6539_v24  ;;  %v15256_v32 = vpop.f32.mrf.mxu1  ;;  %v11466_v21 = vld [vmem:[#allocation4 + $0x40c] sm:$0xf]  ;;  %v7371_v24 = vrot.slane %v7232_v49, 5  ;;  %v6544_v29 = vrot.slane %v6542_v41, 4 }
 0x4fb   : > { %v9172_v26 = vpop.f32.mrf.mxu3  ;;  %v15684_v61 = vld [vmem:[#allocation32_spill] sm:$0xff]  ;;  %v10423_v14 = vrot.slane %v6400_v4, 9  ;;  %v6545_v49 = vrot.slane %v6402_v11, 5  ;;  %v10500_v4 = vld [vmem:[#allocation4 + $0x7c] sm:$0xf0] }
 0x4fc   : > { %v9173_v60 = vadd.f32 %v9172_v26, %v9084_v43  ;;  %v10976_v57 = vld [vmem:[#allocation4 + $0x42c] sm:$0xf0]  ;;  %v10438_v43 = vrot.slane %v7230_v42, 9  ;;  %v15683_v26 = vld [vmem:[#allocation10_spill] sm:$0xff]  ;;  %v11345_v42 = vld [vmem:[#allocation4 + $0x40] sm:$0xf0] }
 0x4fd   : > { %9387 = vmatmul.bf16.gmra.mxu2 %v11003_v46  ;;  %v7370_v46 = vrot.slane %v7368_v18, 4  ;;  %v9000_v30 = vadd.f32 %v15231_v38, %v15683_v26  ;;  %v6543_v26 = vsel %vm11795_vm2, %v10423_v14, %v6542_v41  ;;  %v7234_v14 = vld [vmem:[#allocation3 + $0xa0] sm:$0xf] }
 0x4fe   : > { %6629 = vst [vmem:[#allocation4 + $0x32c] sm:$0xf] %v6543_v26  ;;  %v15688_v26 = vld [vmem:[#allocation20_spill] sm:$0xff] }
 0x4ff   : > { %v9348_v52 = vpop.f32.mrf.mxu2 }
 0x500   : > { %v15258_v5 = vadd.f32 %v9348_v52, %v9260_v48  ;;  %9401 = vmatmul.bf16.vlgmr.msra.gmra.mxu3 %v10467_v13  ;;  %v9262_v48 = vadd.f32 %v15684_v61, %v9173_v60  ;;  %v10478_v13 = vld [vmem:[#allocation4 + $0x20] sm:$0xf]  ;;  %v7369_v52 = vsel %vm11795_vm2, %v10438_v43, %v7368_v18  ;;  %v6546_v18 = vsel %vm11795_vm2, %v6544_v29, %v6545_v49  ;;  %v15685_v43 = vld [vmem:[#allocation19_spill] sm:$0xff]  ;;  %v15686_v61 = vld [vmem:[#allocation34_spill] sm:$0xff] }
 0x501   : > { %7460 = vst [vmem:[#allocation4 + $0x2f0] sm:$0xf] %v7369_v52  ;;  %v7375_v29 = vrot.slane %v7234_v14, 5 }
 0x502   : > { %v15274_v60 = vpop.f32.mrf.mxu1  ;;  %6630 = vst [vmem:[#allocation4 + $0x350] sm:$0xf] %v6546_v18 }
 0x503   : > { %v9175_v62 = vpop.f32.mrf.mxu3 }
 0x504   : > { %9560 = vmatmul.bf16.gmra.mxu0 %v10975_v51  ;;  %v9176_v15 = vadd.f32 %v9175_v62, %v15682_v3  ;;  %v7372_v51 = vsel %vm11795_vm2, %v7370_v46, %v7371_v24  ;;  %v10979_v62 = vor.u32 %v11466_v21, %v10976_v57  ;;  %v9089_v46 = vadd.f32 %v15685_v43, %v9000_v30  ;;  %v11348_v57 = vld [vmem:[#allocation4 + $0x5c] sm:$0xf]  ;;  %v7233_v30 = vld [vmem:[#allocation3 + $0x9c] sm:$0xe] }
 0x505   : > { %7461 = vst [vmem:[#allocation4 + $0x314] sm:$0xf] %v7372_v51  ;;  %v10479_v24 = vor.u32 %v11345_v42, %v10478_v13  ;;  %v10503_v52 = vor.u32 %v11348_v57, %v10500_v4  ;;  %v7235_v13 = vld [vmem:[#allocation3 + $0xa4] sm:$0x1]  ;;  %v6403_v42 = vld [vmem:[#allocation3 + $0x9c] sm:$0xe] }
 0x506   : > { %v10439_v43 = vrot.slane %v7233_v30, 9 }
 0x507   : > { %v9350_v54 = vpop.f32.mrf.mxu2 }
 0x508   : > { %v15270_v3 = vadd.f32 %v9350_v54, %v9262_v48  ;;  %v9265_v48 = vadd.f32 %v15686_v61, %v9176_v15  ;;  %v6404_v54 = vld [vmem:[#allocation3 + $0xa0] sm:$0xf]  ;;  %v10424_v15 = vrot.slane %v6403_v42, 9  ;;  %v15689_v61 = vld [vmem:[#allocation37_spill] sm:$0xff] }
 0x509   : > { %v11357_v42 = vld [vmem:[#allocation4 + $0xa4] sm:$0xf] }
 0x50a   : > { %9649 = vmatmul.bf16.gmra.mxu1 %v10979_v62  ;;  %v6549_v62 = vrot.slane %v6404_v54, 5  ;;  %v10514_v54 = vld [vmem:[#allocation4 + $0x68] sm:$0xf] }
 0x50b   : > { %v9177_v21 = vpop.f32.mrf.mxu3 }
 0x50c   : > { %v9178_v11 = vadd.f32 %v9177_v21, %v9089_v46  ;;  %v7377_v46 = vrot.slane %v7375_v29, 4  ;;  %v6405_v21 = vld [vmem:[#allocation3 + $0xa4] sm:$0x1]  ;;  %v6551_v57 = vrot.slane %v6549_v62, 4 }
 0x50d   : > { %9668 = vmatmul.bf16.vlgmr.msra.gmra.mxu2 %v10479_v24  ;;  %v7378_v24 = vrot.slane %v7235_v13, 5  ;;  %v6552_v4 = vrot.slane %v6405_v21, 5 }
 0x50f   : > { %v6553_v30 = vsel %vm11795_vm2, %v6551_v57, %v6552_v4  ;;  %v7237_v4 = vld [vmem:[#allocation3 + $0xac] sm:$0xf] }
 0x510   : > { %v9353_v41 = vpop.f32.mrf.mxu2  ;;  %9406 = vmatmul.bf16.gmra.mxu3 %v10503_v52  ;;  %v7376_v52 = vsel %vm11795_vm2, %v10439_v43, %v7375_v29  ;;  %6632 = vst [vmem:[#allocation4 + $0x398] sm:$0xf] %v6553_v30  ;;  %v15691_v43 = vld [vmem:[#allocation22_spill] sm:$0xff]  ;;  %v6406_v30 = vld [vmem:[#allocation3 + $0xa8] sm:$0xe] }
 0x511   : > { %v15280_v51 = vadd.f32 %v9353_v41, %v9265_v48  ;;  %v9267_v48 = vadd.f32 %v15689_v61, %v9178_v11  ;;  %v7379_v41 = vsel %vm11795_vm2, %v7377_v46, %v7378_v24  ;;  %7462 = vst [vmem:[#allocation4 + $0x338] sm:$0xf] %v7376_v52  ;;  %v9005_v46 = vadd.f32 %v15231_v38, %v15691_v43  ;;  %v15693_v43 = vld [vmem:[#allocation27_spill] sm:$0xff] }
 0x512   : > { %7463 = vst [vmem:[#allocation4 + $0x35c] sm:$0xf] %v7379_v41  ;;  %v7382_v52 = vrot.slane %v7237_v4, 5  ;;  %v10550_v4 = vld [vmem:[#allocation4 + $0xb0] sm:$0xf] }
 0x513   : > { %15687 = vst [vmem:[#allocation23_spill] sm:$0xff] %v15280_v51  ;;  %v9180_v49 = vpop.f32.mrf.mxu3  ;;  %v11354_v51 = vld [vmem:[#allocation4 + $0x88] sm:$0xf0] }
 0x514   : > { %v9181_v18 = vadd.f32 %v9180_v49, %v15688_v26  ;;  %v6550_v49 = vsel %vm11795_vm2, %v10424_v15, %v6549_v62  ;;  %v10515_v11 = vor.u32 %v11354_v51, %v10514_v54  ;;  %v10536_v26 = vld [vmem:[#allocation4 + $0xc4] sm:$0xf0]  ;;  %v15692_v15 = vld [vmem:[#allocation24_spill] sm:$0xff]  ;;  %v7236_v54 = vld [vmem:[#allocation3 + $0xa8] sm:$0xe] }
 0x515   : > { %6631 = vst [vmem:[#allocation4 + $0x374] sm:$0xf] %v6550_v49  ;;  %v10539_v21 = vor.u32 %v11357_v42, %v10536_v26  ;;  %v9094_v61 = vadd.f32 %v15692_v15, %v9005_v46  ;;  %v7238_v49 = vld [vmem:[#allocation3 + $0xb0] sm:$0x1]  ;;  %v10425_v26 = vrot.slane %v6406_v30, 9 }
 0x516   : > { %v9270_v24 = vadd.f32 %v14831_v44, %v9181_v18  ;;  %v7384_v44 = vrot.slane %v7382_v52, 4  ;;  %v7385_v18 = vrot.slane %v7238_v49, 5  ;;  %v6408_v42 = vld [vmem:[#allocation3 + $0xb0] sm:$0x1]  ;;  %v10572_v30 = vld [vmem:[#allocation4 + $0x10c] sm:$0xf0] }
 0x518   : > { %v9355_v14 = vpop.f32.mrf.mxu2  ;;  %v7386_v15 = vsel %vm11795_vm2, %v7384_v44, %v7385_v18 }
 0x519   : > { %v15292_v13 = vadd.f32 %v9355_v14, %v9267_v48  ;;  %v6407_v48 = vld [vmem:[#allocation3 + $0xac] sm:$0xf]  ;;  %7465 = vst [vmem:[#allocation4 + $0x3a4] sm:$0xf] %v7386_v15 }
 0x51a   : > { %v6556_v41 = vrot.slane %v6407_v48, 5  ;;  %v11363_v48 = vld [vmem:[#allocation4 + $0xd0] sm:$0xf0] }
 0x51b   : > { %15690 = vst [vmem:[#allocation11_spill] sm:$0xff] %v15292_v13  ;;  %v9182_v29 = vpop.f32.mrf.mxu3  ;;  %v10440_v13 = vrot.slane %v7236_v54, 9 }
 0x51c   : > { %v9183_v51 = vadd.f32 %v9182_v29, %v9094_v61  ;;  %v6558_v46 = vrot.slane %v6556_v41, 4 }
 0x51d   : > { %9673 = vmatmul.bf16.gmra.mxu2 %v10515_v11  ;;  %v7383_v29 = vsel %vm11795_vm2, %v10440_v13, %v7382_v52  ;;  %v11366_v52 = vld [vmem:[#allocation4 + $0xec] sm:$0xf] }
 0x51e   : > { %7464 = vst [vmem:[#allocation4 + $0x380] sm:$0xf] %v7383_v29  ;;  %v15697_v29 = vld [vmem:[#allocation31_spill] sm:$0xff] }
 0x520   : > { %v9358_v62 = vpop.f32.mrf.mxu2  ;;  %9411 = vmatmul.bf16.gmra.mxu3 %v10539_v21 }
 0x521   : > { %v15298_v57 = vadd.f32 %v9358_v62, %v9270_v24  ;;  %v6559_v24 = vrot.slane %v6408_v42, 5  ;;  %v15694_v62 = vld [vmem:[#allocation42_spill] sm:$0xff]  ;;  %v10575_v42 = vor.u32 %v11366_v52, %v10572_v30  ;;  %v7239_v30 = vld [vmem:[#allocation3 + $0xb4] sm:$0xe] }
 0x522   : > { %v9272_v21 = vadd.f32 %v15694_v62, %v9183_v51  ;;  %v10551_v51 = vor.u32 %v11363_v48, %v10550_v4  ;;  %v10586_v48 = vld [vmem:[#allocation4 + $0xf8] sm:$0xf] }
 0x523   : > { %v9185_v14 = vpop.f32.mrf.mxu3  ;;  %v6560_v54 = vsel %vm11795_vm2, %v6558_v46, %v6559_v24 }
 0x524   : > { %v9186_v11 = vadd.f32 %v9185_v14, %v15693_v43  ;;  %v6557_v14 = vsel %vm11795_vm2, %v10425_v26, %v6556_v41  ;;  %6634 = vst [vmem:[#allocation4 + $0x3e0] sm:$0xf] %v6560_v54  ;;  %v15695_v43 = vld [vmem:[#allocation25_spill] sm:$0xff] }
 0x525   : > { %6633 = vst [vmem:[#allocation4 + $0x3bc] sm:$0xf] %v6557_v14  ;;  %v9010_v44 = vadd.f32 %v15231_v38, %v15695_v43  ;;  %v15696_v26 = vld [vmem:[#allocation29_spill] sm:$0xff]  ;;  %v11372_v14 = vld [vmem:[#allocation4 + $0x118] sm:$0xf0] }
 0x526   : > { %v9275_v18 = vadd.f32 %v14893_v34, %v9186_v11  ;;  %v11375_v34 = vld [vmem:[#allocation4 + $0x134] sm:$0xf]  ;;  %v10608_v11 = vld [vmem:[#allocation4 + $0x154] sm:$0xf0]  ;;  %v6409_v43 = vld [vmem:[#allocation3 + $0xb4] sm:$0xe] }
 0x527   : > { %v9099_v62 = vadd.f32 %v15696_v26, %v9010_v44  ;;  %v15698_v44 = vld [vmem:[#allocation30_spill] sm:$0xff]  ;;  %v10441_v26 = vrot.slane %v7239_v30, 9 }
 0x528   : > { %v9360_v61 = vpop.f32.mrf.mxu2 }
 0x529   : > { %v15310_v49 = vadd.f32 %v9360_v61, %v9272_v21 }
 0x52b   : > { %v9187_v13 = vpop.f32.mrf.mxu3 }
 0x52c   : > { %v9188_v24 = vadd.f32 %v9187_v13, %v9099_v62 }
 0x52d   : > { %9678 = vmatmul.bf16.gmra.mxu2 %v10551_v51  ;;  %v10587_v51 = vor.u32 %v11372_v14, %v10586_v48 }
 0x52e   : > { %v9277_v61 = vadd.f32 %v14922_v63, %v9188_v24  ;;  %v6410_v63 = vld [vmem:[#allocation3 + $0xb8] sm:$0xf]  ;;  %v10426_v24 = vrot.slane %v6409_v43, 9 }
 0x52f   : > { %v10622_v43 = vld [vmem:[#allocation4 + $0x140] sm:$0xf] }
 0x530   : > { %v9363_v41 = vpop.f32.mrf.mxu2  ;;  %9416 = vmatmul.bf16.gmra.mxu3 %v10575_v42  ;;  %v10611_v42 = vor.u32 %v11375_v34, %v10608_v11  ;;  %v15700_v34 = vld [vmem:[#allocation36_spill] sm:$0xff] }
 0x531   : > { %v15316_v46 = vadd.f32 %v9363_v41, %v9275_v18  ;;  %v9015_v18 = vadd.f32 %v15231_v38, %v15698_v44  ;;  %v7240_v41 = vld [vmem:[#allocation3 + $0xb8] sm:$0xf]  ;;  %v7241_v44 = vld [vmem:[#allocation3 + $0xbc] sm:$0x1] }
 0x532   : > { %v7389_v62 = vrot.slane %v7240_v41, 5  ;;  %v11381_v41 = vld [vmem:[#allocation4 + $0x160] sm:$0xf0] }
 0x533   : > { %v9190_v21 = vpop.f32.mrf.mxu3 }
 0x534   : > { %v9191_v15 = vadd.f32 %v9190_v21, %v15697_v29  ;;  %v6563_v21 = vrot.slane %v6410_v63, 5  ;;  %v7390_v14 = vsel %vm11795_vm2, %v10441_v26, %v7389_v62  ;;  %v7392_v63 = vrot.slane %v7241_v44, 5 }
 0x535   : > { %7466 = vst [vmem:[#allocation4 + $0x3c8] sm:$0xf] %v7390_v14  ;;  %v11384_v14 = vld [vmem:[#allocation4 + $0x17c] sm:$0xf] }
 0x536   : > { %v9280_v13 = vadd.f32 %v14961_v31, %v9191_v15 }
 0x538   : > { %v9365_v4 = vpop.f32.mrf.mxu2 }
 0x539   : > { %v15320_v54 = vadd.f32 %v9365_v4, %v9277_v61  ;;  %v15699_v61 = vld [vmem:[#allocation33_spill] sm:$0xff] }
 0x53a   : > { %v9104_v4 = vadd.f32 %v15699_v61, %v9015_v18  ;;  %v6411_v18 = vld [vmem:[#allocation3 + $0xbc] sm:$0x1] }
 0x53b   : > { %v9192_v52 = vpop.f32.mrf.mxu3  ;;  %v6566_v26 = vrot.slane %v6411_v18, 5 }
 0x53c   : > { %v9193_v31 = vadd.f32 %v9192_v52, %v9104_v4  ;;  %v10623_v4 = vor.u32 %v11381_v41, %v10622_v43  ;;  %v15703_v41 = vld [vmem:[#allocation39_spill] sm:$0xff] }
 0x53d   : > { %9683 = vmatmul.bf16.gmra.mxu2 %v10587_v51  ;;  %v6564_v51 = vsel %vm11795_vm2, %v10426_v24, %v6563_v21 }
 0x53e   : > { %6635 = vst [vmem:[#allocation4 + $0x404] sm:$0xf] %v6564_v51  ;;  %v9282_v30 = vadd.f32 %v14992_v9, %v9193_v31  ;;  %v10644_v51 = vld [vmem:[#allocation4 + $0x19c] sm:$0xf0]  ;;  %v15701_v31 = vld [vmem:[#allocation35_spill] sm:$0xff] }
 0x540   : > { %v9368_v29 = vpop.f32.mrf.mxu2  ;;  %9421 = vmatmul.bf16.gmra.mxu3 %v10611_v42  ;;  %v7391_v42 = vrot.slane %v7389_v62, 4  ;;  %v9020_v62 = vadd.f32 %v15231_v38, %v15701_v31 }
 0x541   : > { %v15326_v48 = vadd.f32 %v9368_v29, %v9280_v13  ;;  %v6565_v29 = vrot.slane %v6563_v21, 4 }
 0x542   : > { %v7393_v52 = vsel %vm11795_vm2, %v7391_v42, %v7392_v63 }
 0x543   : > { %v9195_v15 = vpop.f32.mrf.mxu3  ;;  %v6567_v24 = vsel %vm11795_vm2, %v6565_v29, %v6566_v26  ;;  %7467 = vst [vmem:[#allocation4 + $0x3ec] sm:$0xf] %v7393_v52  ;;  %v10658_v26 = vld [vmem:[#allocation4 + $0x188] sm:$0xf]  ;;  %v11390_v52 = vld [vmem:[#allocation4 + $0x1a8] sm:$0xf0] }
 0x544   : > { %v9196_v11 = vadd.f32 %v9195_v15, %v15700_v34  ;;  %6636 = vst [vmem:[#allocation4 + $0x428] sm:$0xf] %v6567_v24  ;;  %v10647_v15 = vor.u32 %v11384_v14, %v10644_v51  ;;  %v10680_v14 = vld [vmem:[#allocation4 + $0x1e4] sm:$0xf0]  ;;  %v15704_v51 = vld [vmem:[#allocation40_spill] sm:$0xff] }
 0x545   : > { %v9025_v31 = vadd.f32 %v15231_v38, %v15704_v51 }
 0x546   : > { %v9285_v21 = vadd.f32 %v15031_v39, %v9196_v11  ;;  %v11393_v11 = vld [vmem:[#allocation4 + $0x1c4] sm:$0xf] }
 0x548   : > { %v9370_v13 = vpop.f32.mrf.mxu2 }
 0x549   : > { %v15334_v61 = vadd.f32 %v9370_v13, %v9282_v30  ;;  %v15702_v30 = vld [vmem:[#allocation38_spill] sm:$0xff] }
 0x54a   : > { %v9109_v44 = vadd.f32 %v15702_v30, %v9020_v62  ;;  %v10683_v62 = vor.u32 %v11393_v11, %v10680_v14  ;;  %v9030_v11 = vadd.f32 %v15231_v38, %v14916_v12 }
 0x54b   : > { %v9197_v9 = vpop.f32.mrf.mxu3 }
 0x54c   : > { %v9198_v13 = vadd.f32 %v9197_v9, %v9109_v44 }
 0x54d   : > { %9688 = vmatmul.bf16.gmra.mxu2 %v10623_v4  ;;  %v10659_v4 = vor.u32 %v11390_v52, %v10658_v26 }
 0x54e   : > { %v9287_v63 = vadd.f32 %v15065_v40, %v9198_v13 }
 0x550   : > { %v9373_v34 = vpop.f32.mrf.mxu2  ;;  %9426 = vmatmul.bf16.gmra.mxu3 %v10647_v15  ;;  %v15705_v15 = vld [vmem:[#allocation41_spill] sm:$0xff] }
 0x551   : > { %v15344_v18 = vadd.f32 %v9373_v34, %v9285_v21  ;;  %v9114_v34 = vadd.f32 %v15705_v15, %v9025_v31 }
 0x553   : > { %v9200_v43 = vpop.f32.mrf.mxu3 }
 0x554   : > { %v9201_v42 = vadd.f32 %v9200_v43, %v15703_v41 }
 0x556   : > { %v9290_v9 = vadd.f32 %v15084_v16, %v9201_v42  ;;  %v11402_v42 = vld [vmem:[#allocation4 + $0x20c] sm:$0xf] }
 0x558   : > { %v9375_v29 = vpop.f32.mrf.mxu2 }
 0x559   : > { %v15348_v24 = vadd.f32 %v9375_v29, %v9287_v63  ;;  %v10694_v63 = vld [vmem:[#allocation4 + $0x1d0] sm:$0xf]  ;;  %v11399_v29 = vld [vmem:[#allocation4 + $0x1f0] sm:$0xf0] }
 0x55a   : > { %v10695_v52 = vor.u32 %v11399_v29, %v10694_v63 }
 0x55b   : > { %v9202_v39 = vpop.f32.mrf.mxu3 }
 0x55c   : > { %v9203_v30 = vadd.f32 %v9202_v39, %v9114_v34  ;;  %v10730_v34 = vld [vmem:[#allocation4 + $0x218] sm:$0xf] }
 0x55d   : > { %9693 = vmatmul.bf16.gmra.mxu2 %v10659_v4  ;;  %v10716_v4 = vld [vmem:[#allocation4 + $0x22c] sm:$0xf0] }
 0x55e   : > { %v9292_v43 = vadd.f32 %v15116_v19, %v9203_v30  ;;  %v10719_v14 = vor.u32 %v11402_v42, %v10716_v4  ;;  %v11408_v30 = vld [vmem:[#allocation4 + $0x238] sm:$0xf0]  ;;  %v10766_v4 = vld [vmem:[#allocation4 + $0x260] sm:$0xf] }
 0x55f   : > { %v10731_v38 = vor.u32 %v11408_v30, %v10730_v34 }
 0x560   : > { %v9378_v21 = vpop.f32.mrf.mxu2  ;;  %9431 = vmatmul.bf16.gmra.mxu3 %v10683_v62 }
 0x561   : > { %v15354_v40 = vadd.f32 %v9378_v21, %v9290_v9 }
 0x563   : > { %v9205_v44 = vpop.f32.mrf.mxu3 }
 0x564   : > { %v9206_v13 = vadd.f32 %v9205_v44, %v14881_v45  ;;  %v9119_v45 = vadd.f32 %v14963_v2, %v9030_v11  ;;  %v11411_v44 = vld [vmem:[#allocation4 + $0x254] sm:$0xf]  ;;  %v11417_v11 = vld [vmem:[#allocation4 + $0x280] sm:$0xf0] }
 0x566   : > { %v9295_v39 = vadd.f32 %v15128_v22, %v9206_v13  ;;  %v10752_v13 = vld [vmem:[#allocation4 + $0x274] sm:$0xf0] }
 0x567   : > { %v10755_v63 = vor.u32 %v11411_v44, %v10752_v13 }
 0x568   : > { %v9380_v41 = vpop.f32.mrf.mxu2 }
 0x569   : > { %v15358_v26 = vadd.f32 %v9380_v41, %v9292_v43  ;;  %v15706_v43 = vld [vmem:[#allocation43_spill] sm:$0xff] }
 0x56b   : > { %v9207_v16 = vpop.f32.mrf.mxu3 }
 0x56c   : > { %v9208_v31 = vadd.f32 %v9207_v16, %v9119_v45  ;;  %v15375_v16 = vpop.f32.mrf.mxu0 }
 0x56d   : > { %9698 = vmatmul.bf16.gmra.mxu2 %v10695_v52 }
 0x56e   : > { %v9297_v21 = vadd.f32 %v15145_v55, %v9208_v31  ;;  %v10788_v31 = vld [vmem:[#allocation4 + $0x2bc] sm:$0xf0] }
 0x570   : > { %v9383_v51 = vpop.f32.mrf.mxu2  ;;  %9436 = vmatmul.bf16.gmra.mxu3 %v10719_v14  ;;  %v10767_v14 = vor.u32 %v11417_v11, %v10766_v4  ;;  %v10824_v4 = vld [vmem:[#allocation4 + $0x304] sm:$0xf0] }
 0x571   : > { %v15364_v19 = vadd.f32 %v9383_v51, %v9295_v39  ;;  %v15379_v51 = vpop.f32.mrf.mxu1 }
 0x573   : > { %v9210_v9 = vpop.f32.mrf.mxu3 }
 0x574   : > { %v9211_v62 = vadd.f32 %v9210_v9, %v14988_v36  ;;  %v15707_v9 = vld [vmem:[#allocation44_spill] sm:$0xff]  ;;  %v15384_v30 = vpop.f32.mrf.mxu0 }
 0x576   : > { %v9300_v41 = vadd.f32 %v15151_v7, %v9211_v62  ;;  %v11420_v7 = vld [vmem:[#allocation4 + $0x29c] sm:$0xf] }
 0x578   : > { %v9385_v15 = vpop.f32.mrf.mxu2 }
 0x579   : > { %v15368_v12 = vadd.f32 %v9385_v15, %v9297_v21  ;;  %v15388_v13 = vpop.f32.mrf.mxu1 }
 0x57b   : > { %v9212_v22 = vpop.f32.mrf.mxu3 }
 0x57c   : > { %v9213_v2 = vadd.f32 %v9212_v22, %v15706_v43 }
 0x57d   : > { %9703 = vmatmul.bf16.gmra.mxu2 %v10731_v38 }
 0x57e   : > { %v9302_v55 = vadd.f32 %v15169_v59, %v9213_v2  ;;  %v10791_v59 = vor.u32 %v11420_v7, %v10788_v31 }
 0x580   : > { %v9388_v29 = vpop.f32.mrf.mxu2  ;;  %9441 = vmatmul.bf16.gmra.mxu3 %v10755_v63  ;;  %v10802_v63 = vld [vmem:[#allocation4 + $0x2a8] sm:$0xf] }
 0x581   : > { %v15372_v52 = vadd.f32 %v9388_v29, %v9300_v41  ;;  %v15402_v7 = vpop.f32.mrf.mxu1 }
 0x583   : > { %v9402_v36 = vpop.f32.mrf.mxu3 }
 0x584   : > { %v9403_v62 = vadd.f32 %v9402_v36, %v15707_v9 }
 0x586   : > { %v9492_v34 = vadd.f32 %v15174_v58, %v9403_v62 }
 0x588   : > { %v9390_v42 = vpop.f32.mrf.mxu2  ;;  %v9581_v44 = vadd.f32 %v15185_v37, %v9492_v34 }
 0x589   : > { %v15377_v39 = vadd.f32 %v9390_v42, %v9302_v55  ;;  %v15392_v42 = vpop.f32.mrf.mxu0 }
 0x58b   : > { %v9404_v45 = vpop.f32.mrf.mxu3 }
 0x58c   : > { %v9405_v21 = vadd.f32 %v9404_v45, %v15071_v35  ;;  %v11426_v35 = vld [vmem:[#allocation4 + $0x2c8] sm:$0xf0] }
 0x58d   : > { %9708 = vmatmul.bf16.gmra.mxu2 %v10767_v14  ;;  %v10803_v55 = vor.u32 %v11426_v35, %v10802_v63  ;;  %v10860_v35 = vld [vmem:[#allocation4 + $0x34c] sm:$0xf0] }
 0x58e   : > { %v9494_v38 = vadd.f32 %v15193_v50, %v9405_v21  ;;  %v11429_v50 = vld [vmem:[#allocation4 + $0x2e4] sm:$0xf] }
 0x58f   : > { %v10827_v45 = vor.u32 %v11429_v50, %v10824_v4 }
 0x590   : > { %v9669_v15 = vpop.f32.mrf.mxu2  ;;  %9446 = vmatmul.bf16.gmra.mxu3 %v10791_v59  ;;  %v9583_v2 = vadd.f32 %v15199_v20, %v9494_v38 }
 0x591   : > { %v9670_v43 = vadd.f32 %v9669_v15, %v9581_v44  ;;  %v15407_v15 = vpop.f32.mrf.mxu0 }
 0x593   : > { %v9407_v22 = vpop.f32.mrf.mxu3  ;;  %v9749_v36 = vmax.f32 %v9670_v43, 0.0  ;;  %v15410_v43 = vpop.f32.mrf.mxu1 }
 0x594   : > { %v9408_v20 = vadd.f32 %v9407_v22, %v15088_v33  ;;  %v11435_v22 = vld [vmem:[#allocation4 + $0x310] sm:$0xf0] }
 0x596   : > { %v9497_v9 = vadd.f32 %v15202_v1, %v9408_v20 }
 0x598   : > { %v9671_v41 = vpop.f32.mrf.mxu2  ;;  %v9586_v59 = vadd.f32 %v15215_v6, %v9497_v9 }
 0x599   : > { %v9672_v29 = vadd.f32 %v9671_v41, %v9583_v2 }
 0x59b   : > { %v9750_v58 = vmax.f32 %v9672_v29, 0.0  ;;  %v9409_v37 = vpop.f32.mrf.mxu3  ;;  %v15419_v4 = vpop.f32.mrf.mxu1 }
 0x59c   : > { %v9410_v14 = vadd.f32 %v9409_v37, %v15111_v47  ;;  %v10838_v47 = vld [vmem:[#allocation4 + $0x2f0] sm:$0xf] }
 0x59d   : > { %v11556_v11 = vpack.c.bf16 %v9750_v58, %v9749_v36  ;;  %9713 = vmatmul.bf16.gmra.mxu2 %v10803_v55  ;;  %v10839_v41 = vor.u32 %v11435_v22, %v10838_v47  ;;  %v15415_v58 = vpop.f32.mrf.mxu0 }
 0x59e   : > { %v9499_v62 = vadd.f32 %v15223_v23, %v9410_v14  ;;  %v11438_v23 = vld [vmem:[#allocation4 + $0x32c] sm:$0xf] }
 0x59f   : > { %11557 = vst [vmem:[%s15397_s27] sm:$0xff] %v11556_v11  }
 0x5a0   : > { %v9674_v31 = vpop.f32.mrf.mxu2  ;;  %9451 = vmatmul.bf16.gmra.mxu3 %v10827_v45  ;;  %v9588_v34 = vadd.f32 %v15235_v17, %v9499_v62  ;;  %v10863_v17 = vor.u32 %v11438_v23, %v10860_v35 }
 0x5a1   : > { %v9675_v33 = vadd.f32 %v9674_v31, %v9586_v59  ;;  %v11444_v31 = vld [vmem:[#allocation4 + $0x358] sm:$0xf0] }
 0x5a3   : > { %v9412_v21 = vpop.f32.mrf.mxu3  ;;  %v9751_v2 = vmax.f32 %v9675_v33, 0.0 }
 0x5a4   : > { %v9413_v6 = vadd.f32 %v9412_v21, %v15126_v27 }
 0x5a5   : > { %v15423_v62 = vpop.f32.mrf.mxu0 }
 0x5a6   : > { %v9502_v37 = vadd.f32 %v15244_v10, %v9413_v6 }
 0x5a8   : > { %v9676_v38 = vpop.f32.mrf.mxu2  ;;  %v9591_v11 = vadd.f32 %v15256_v32, %v9502_v37  ;;  %v15426_v32 = vpop.f32.mrf.mxu1 }
 0x5a9   : > { %v9677_v44 = vadd.f32 %v9676_v38, %v9588_v34  ;;  %v10896_v34 = vld [vmem:[#allocation4 + $0x394] sm:$0xf0] }
 0x5ab   : > { %v9752_v1 = vmax.f32 %v9677_v44, 0.0  ;;  %v9414_v63 = vpop.f32.mrf.mxu3 }
 0x5ac   : > { %v9415_v36 = vadd.f32 %v9414_v63, %v15141_v28  ;;  %v10874_v28 = vld [vmem:[#allocation4 + $0x338] sm:$0xf] }
 0x5ad   : > { %v11561_v29 = vpack.c.bf16 %v9752_v1, %v9751_v2  ;;  %9718 = vmatmul.bf16.gmra.mxu2 %v10839_v41  ;;  %v10875_v59 = vor.u32 %v11444_v31, %v10874_v28  ;;  %v15432_v63 = vpop.f32.mrf.mxu0 }
 0x5ae   : > { %v9504_v50 = vadd.f32 %v15260_v53, %v9415_v36  ;;  %v11447_v53 = vld [vmem:[#allocation4 + $0x374] sm:$0xf] }
 0x5af   : > { %11633 = vst [vmem:[%s15397_s27 + $0x8] sm:$0xff] %v11561_v29   ;;  %v10899_v44 = vor.u32 %v11447_v53, %v10896_v34 }
 0x5b0   : > { %v9679_v55 = vpop.f32.mrf.mxu2  ;;  %9456 = vmatmul.bf16.gmra.mxu3 %v10863_v17  ;;  %v9593_v14 = vadd.f32 %v15274_v60, %v9504_v50  ;;  %v15708_v60 = vld [vmem:[#allocation13_spill] sm:$0xff]  ;;  %v15436_v29 = vpop.f32.mrf.mxu1 }
 0x5b1   : > { %v9680_v27 = vadd.f32 %v9679_v55, %v9591_v11  ;;  %v10910_v17 = vld [vmem:[#allocation4 + $0x380] sm:$0xf]  ;;  %v11453_v55 = vld [vmem:[#allocation4 + $0x3a0] sm:$0xf0] }
 0x5b3   : > { %v9417_v20 = vpop.f32.mrf.mxu3  ;;  %v9753_v21 = vmax.f32 %v9680_v27, 0.0  ;;  %v10932_v27 = vld [vmem:[#allocation4 + $0x3dc] sm:$0xf0] }
 0x5b4   : > { %v9418_v38 = vadd.f32 %v9417_v20, %v15149_v56  ;;  %v10911_v20 = vor.u32 %v11453_v55, %v10910_v17 }
 0x5b6   : > { %v9507_v1 = vadd.f32 %v15375_v16, %v9418_v38  ;;  %v6412_v38 = vld [vmem:[#allocation3 + $0xc0] sm:$0xe] }
 0x5b8   : > { %v9681_v45 = vpop.f32.mrf.mxu2  ;;  %v9596_v35 = vadd.f32 %v15379_v51, %v9507_v1  ;;  %v15439_v51 = vpop.f32.mrf.mxu0 }
 0x5b9   : > { %v9682_v9 = vadd.f32 %v9681_v45, %v9593_v14  ;;  %v15709_v14 = vld [vmem:[#allocation14_spill] sm:$0xff]  ;;  %v15444_v1 = vpop.f32.mrf.mxu1 }
 0x5bb   : > { %v9754_v10 = vmax.f32 %v9682_v9, 0.0  ;;  %v9419_v33 = vpop.f32.mrf.mxu3 }
 0x5bc   : > { %v9420_v22 = vadd.f32 %v9419_v33, %v15708_v60  ;;  %v7244_v33 = vld [vmem:[#allocation3 + $0xc8] sm:$0x1] }
 0x5bd   : > { %v11566_v47 = vpack.c.bf16 %v9754_v10, %v9753_v21  ;;  %9723 = vmatmul.bf16.gmra.mxu2 %v10875_v59  ;;  %v7242_v21 = vld [vmem:[#allocation3 + $0xc0] sm:$0xe]  ;;  %v7243_v10 = vld [vmem:[#allocation3 + $0xc4] sm:$0xf]  ;;  %v7399_v60 = vrot.slane %v7244_v33, 5 }
 0x5be   : > { %v9509_v41 = vadd.f32 %v15384_v30, %v9420_v22  ;;  %v11456_v30 = vld [vmem:[#allocation4 + $0x3bc] sm:$0xf]  ;;  %v10442_v53 = vrot.slane %v7242_v21, 9  ;;  %v7396_v34 = vrot.slane %v7243_v10, 5  ;;  %v6413_v22 = vld [vmem:[#allocation3 + $0xc4] sm:$0xf] }
 0x5bf   : > { %11634 = vst [vmem:[%s15397_s27 + $0x10] sm:$0xff] %v11566_v47   ;;  %v10935_v9 = vor.u32 %v11456_v30, %v10932_v27  ;;  %v10968_v33 = vld [vmem:[#allocation4 + $0x424] sm:$0xf0] }
 0x5c0   : > { %v9684_v2 = vpop.f32.mrf.mxu2  ;;  %9461 = vmatmul.bf16.gmra.mxu3 %v10899_v44  ;;  %v9598_v6 = vadd.f32 %v15388_v13, %v9509_v41  ;;  %v15710_v13 = vld [vmem:[#allocation16_spill] sm:$0xff]  ;;  %v6414_v44 = vld [vmem:[#allocation3 + $0xc8] sm:$0x1]  ;;  %v7397_v41 = vsel %vm11795_vm2, %v10442_v53, %v7396_v34  ;;  %v15457_v30 = vpop.f32.mrf.mxu0  ;;  %v15713_v53 = vld [vmem:[#allocation17_spill] sm:$0xff] }
 0x5c1   : > { %v9685_v56 = vadd.f32 %v9684_v2, %v9596_v35  ;;  %v10427_v2 = vrot.slane %v6412_v38, 9  ;;  %v6570_v35 = vrot.slane %v6413_v22, 5  ;;  %7468 = vst [vmem:[#allocation4 + $0x410] sm:$0xf] %v7397_v41 }
 0x5c3   : > { %v9422_v23 = vpop.f32.mrf.mxu3  ;;  %v9755_v50 = vmax.f32 %v9685_v56, 0.0  ;;  %v6573_v56 = vrot.slane %v6414_v44, 5  ;;  %v6571_v17 = vsel %vm11795_vm2, %v10427_v2, %v6570_v35  ;;  %v6572_v55 = vrot.slane %v6570_v35, 4  ;;  %v4971_v2 = vld [vmem:[#allocation3 + $0xd4] sm:$0x1] }
 0x5c4   : > { %v9423_v45 = vadd.f32 %v9422_v23, %v15709_v14  ;;  %v7398_v23 = vrot.slane %v7396_v34, 4  ;;  %6637 = vst [vmem:[#allocation4 + $0x44c] sm:$0xf] %v6571_v17  ;;  %v11462_v14 = vld [vmem:[#allocation4 + $0x3e8] sm:$0xf0] }
 0x5c6   : > { %v9512_v47 = vadd.f32 %v15392_v42, %v9423_v45  ;;  %v7400_v42 = vsel %vm11795_vm2, %v7398_v23, %v7399_v60  ;;  %v15711_v45 = vld [vmem:[#allocation5_spill] sm:$0xff]  ;;  %v15714_v60 = vld [vmem:[#allocation18_spill] sm:$0xff] }
 0x5c7   : > { %7469 = vst [vmem:[#allocation4 + $0x434] sm:$0xf] %v7400_v42 }
 0x5c8   : > { %v9686_v36 = vpop.f32.mrf.mxu2 }
 0x5c9   : > { %v9687_v37 = vadd.f32 %v9686_v36, %v9598_v6 }
 0x5cb   : > { %v9756_v16 = vmax.f32 %v9687_v37, 0.0  ;;  %v9424_v11 = vpop.f32.mrf.mxu3  ;;  %v9601_v37 = vadd.f32 %v15402_v7, %v9512_v47  ;;  %v11465_v47 = vld [vmem:[#allocation4 + $0x404] sm:$0xf] }
 0x5cc   : > { %v9425_v31 = vadd.f32 %v9424_v11, %v15710_v13  ;;  %v6671_v11 = vld [vmem:[#allocation3 + $0xd0] sm:$0xf]  ;;  %v10971_v44 = vor.u32 %v11465_v47, %v10968_v33 }
 0x5cd   : > { %v11571_v28 = vpack.c.bf16 %v9756_v16, %v9755_v50  ;;  %9728 = vmatmul.bf16.gmra.mxu2 %v10911_v20  ;;  %v6574_v50 = vsel %vm11795_vm2, %v6572_v55, %v6573_v56  ;;  %6703 = vst [vmem:[#allocation4 + $0x474] sm:$0xf] %v6671_v11  ;;  %v4972_v56 = vsel %vm13213_vm4, 0, %v4971_v2 }
 0x5ce   : > { %v9514_v6 = vadd.f32 %v15407_v15, %v9425_v31  ;;  %6638 = vst [vmem:[#allocation4 + $0x470] sm:$0xf] %v6574_v50  ;;  %v4858_v15 = vld [vmem:[#allocation3 + $0xcc] sm:$0xf]  ;;  %v10946_v31 = vld [vmem:[#allocation4 + $0x3c8] sm:$0xf]  ;;  %v15472_v50 = vpop.f32.mrf.mxu0 }
 0x5cf   : > { %11635 = vst [vmem:[%s15397_s27 + $0x18] sm:$0xff] %v11571_v28   ;;  %v4859_v7 = vsel %vm13042_vm3, %v15711_v45, %v4858_v15  ;;  %v10947_v10 = vor.u32 %v11462_v14, %v10946_v31 }
 0x5d0   : > { %v9689_v59 = vpop.f32.mrf.mxu2  ;;  %9466 = vmatmul.bf16.gmra.mxu3 %v10935_v9  ;;  %v9603_v20 = vadd.f32 %v15410_v43, %v9514_v6  ;;  %4860 = vst [vmem:[#allocation3 + $0xcc] sm:$0xf] %v4859_v7  ;;  %v15462_v43 = vpop.f32.mrf.mxu1  ;;  %v6750_v6 = vld [vmem:[#allocation3 + $0xd0] sm:$0xf] }
 0x5d1   : > { %v9690_v16 = vadd.f32 %v9689_v59, %v9601_v37  ;;  %4973 = vst [vmem:[#allocation3 + $0xd4] sm:$0x1] %v4972_v56  ;;  %v7122_v55 = vshll.u32 %v6750_v6, 16 }
 0x5d3   : > { %v9427_v36 = vpop.f32.mrf.mxu3  ;;  %v9757_v9 = vmax.f32 %v9690_v16, 0.0  ;;  %v7126_v16 = vshrl.u32 %v6750_v6, 16 }
 0x5d4   : > { %v9428_v34 = vadd.f32 %v9427_v36, %v15713_v53 }
 0x5d5   : > { %v7128_v28 = vrot.slane %v7126_v16, 4 }
 0x5d6   : > { %v9517_v42 = vadd.f32 %v15415_v58, %v9428_v34  ;;  %v15483_v17 = vpop.f32.mrf.mxu0 }
 0x5d7   : > { %v4916_v23 = vld [vmem:[#allocation3 + $0xcc] sm:$0x1]  ;;  %v7245_v37 = vld [vmem:[#allocation3 + $0xcc] sm:$0xe] }
 0x5d8   : > { %v9691_v27 = vpop.f32.mrf.mxu2  ;;  %v4917_v36 = vsel %vm13099_vm13, 0, %v4916_v23  ;;  %v10443_v15 = vrot.slane %v7245_v37, 9  ;;  %v9606_v58 = vadd.f32 %v15419_v4, %v9517_v42  ;;  %v6751_v53 = vld [vmem:[#allocation3 + $0xd4] sm:$0x1] }
 0x5d9   : > { %v9692_v13 = vadd.f32 %v9691_v27, %v9603_v20  ;;  %4918 = vst [vmem:[#allocation3 + $0xcc] sm:$0x1] %v4917_v36  ;;  %v7246_v20 = vld [vmem:[#allocation3 + $0xd0] sm:$0xf]  ;;  %v7124_v27 = vrot.slane %v7122_v55, 5 }
 0x5da   : > { %v7403_v14 = vrot.slane %v7246_v20, 5  ;;  %v11004_v55 = vld [vmem:[#allocation4 + $0x46c] sm:$0xf0]  ;;  %v15717_v20 = vld [vmem:[#allocation21_spill] sm:$0xff] }
 0x5db   : > { %v9758_v21 = vmax.f32 %v9692_v13, 0.0  ;;  %v9429_v59 = vpop.f32.mrf.mxu3  ;;  %v15478_v13 = vpop.f32.mrf.mxu1  ;;  %v7129_v31 = vor.u32 %v7128_v28, %v7124_v27 }
 0x5dc   : > { %v9430_v22 = vadd.f32 %v9429_v59, %v15714_v60  ;;  %v7404_v7 = vsel %vm11795_vm2, %v10443_v15, %v7403_v14  ;;  %v11471_v59 = vld [vmem:[#allocation4 + $0x430] sm:$0xf0]  ;;  %v7405_v33 = vrot.slane %v7403_v14, 4 }
 0x5dd   : > { %v11576_v38 = vpack.c.bf16 %v9758_v21, %v9757_v9  ;;  %9733 = vmatmul.bf16.gmra.mxu2 %v10947_v10  ;;  %7470 = vst [vmem:[#allocation4 + $0x458] sm:$0xf] %v7404_v7  ;;  %v10982_v10 = vld [vmem:[#allocation4 + $0x410] sm:$0xf]  ;;  %v7130_v34 = vrot.slane %v7129_v31, 4 }
 0x5de   : > { %v9519_v11 = vadd.f32 %v15423_v62, %v9430_v22  ;;  %v7132_v22 = vshll.u32 %v6751_v53, 16  ;;  %v10983_v2 = vor.u32 %v11471_v59, %v10982_v10  ;;  %v11479_v7 = vld [vmem:[#allocation4 + $0x470] sm:$0xf0] }
 0x5df   : > { %11636 = vst [vmem:[%s15397_s27 + $0x20] sm:$0xff] %v11576_v38   ;;  %v7247_v38 = vld [vmem:[#allocation3 + $0xd4] sm:$0x1] }
 0x5e0   : > { %v9694_v41 = vpop.f32.mrf.mxu2  ;;  %9471 = vmatmul.bf16.gmra.mxu3 %v10971_v44  ;;  %v9608_v21 = vadd.f32 %v15426_v32, %v9519_v11  ;;  %v6670_v60 = vld [vmem:[#allocation3 + $0xcc] sm:$0xf]  ;;  %v7406_v44 = vrot.slane %v7247_v38, 5  ;;  %v11474_v32 = vld [vmem:[#allocation4 + $0x44c] sm:$0xf]  ;;  %v7134_v6 = vrot.slane %v7132_v22, 5 }
 0x5e1   : > { %v9695_v9 = vadd.f32 %v9694_v41, %v9606_v58  ;;  %v6749_v4 = vld [vmem:[#allocation3 + $0xcc] sm:$0xf]  ;;  %6702 = vst [vmem:[#allocation4 + $0x450] sm:$0xf] %v6670_v60  ;;  %v11007_v58 = vor.u32 %v11474_v32, %v11004_v55 }
 0x5e2   : > { %v7113_v23 = vshrl.u32 %v6749_v4, 16  ;;  %v7116_v35 = vshll.u32 %v6749_v4, 16  ;;  %v7407_v42 = vsel %vm11795_vm2, %v7405_v33, %v7406_v44  ;;  %v7135_v14 = vsel %vm11812_vm5, %v7130_v34, %v7134_v6  ;;  %v9533_v34 = vpop.f32.mrf.mxu0 }
 0x5e3   : > { %v9432_v45 = vpop.f32.mrf.mxu3  ;;  %v9759_v56 = vmax.f32 %v9695_v9, 0.0  ;;  %7471 = vst [vmem:[#allocation4 + $0x47c] sm:$0xf] %v7407_v42  ;;  %v9620_v31 = vpop.f32.mrf.mxu1 }
 0x5e4   : > { %v7115_v37 = vrot.slane %v7113_v23, 4  ;;  %v7118_v16 = vrot.slane %v7116_v35, 5  ;;  %v9433_v15 = vadd.f32 %v9432_v45, %v15717_v20  ;;  %7199 = vst [vmem:[#allocation4 + $0x478] sm:$0xf] %v7135_v14  ;;  %v11018_v38 = vld [vmem:[#allocation4 + $0x458] sm:$0xf] }
 0x5e6   : > { %v7119_v28 = vor.u32 %v7118_v16, %v7115_v37  ;;  %v9522_v10 = vadd.f32 %v15432_v63, %v9433_v15 }
 0x5e8   : > { %v9696_v62 = vpop.f32.mrf.mxu2  ;;  %v11010_v59 = vld [vmem:[#allocation4 + $0x450] sm:$0xf] }
 0x5e9   : > { %v9697_v47 = vadd.f32 %v9696_v62, %v9608_v21  ;;  %v7120_v21 = vrot.slane %v7119_v28, 4  ;;  %v11011_v45 = vor.u32 %v11479_v7, %v11010_v59 }
 0x5ea   : > { %v9536_v6 = vpop.f32.mrf.mxu0 }
 0x5eb   : > { %v9760_v41 = vmax.f32 %v9697_v47, 0.0  ;;  %v9434_v36 = vpop.f32.mrf.mxu3  ;;  %v7125_v33 = vsel %vm11812_vm5, %v7120_v21, %v7124_v27  ;;  %9565 = vmatmul.bf16.gmra.mxu0 %v11011_v45  ;;  %v11480_v47 = vld [vmem:[#allocation4 + $0x478] sm:$0xf0]  ;;  %v11012_v22 = vld [vmem:[#allocation4 + $0x474] sm:$0xf0]  ;;  %v9622_v25 = vpop.f32.mrf.mxu1  ;;  %v15719_v21 = vld [vmem:[#allocation11_spill] sm:$0xff] }
 0x5ec   : > { %v9435_v0 = vadd.f32 %v9434_v36, %v15242_v8  ;;  %7198 = vst [vmem:[#allocation4 + $0x454] sm:$0xf] %v7125_v33  ;;  %v9611_v8 = vadd.f32 %v15436_v29, %v9522_v10 }
 0x5ed   : > { %v11581_v11 = vpack.c.bf16 %v9760_v41, %v9759_v56  ;;  %9738 = vmatmul.bf16.gmra.mxu2 %v10983_v2  ;;  %v11019_v2 = vor.u32 %v11480_v47, %v11018_v38 }
 0x5ee   : > { %v9524_v62 = vadd.f32 %v15439_v51, %v9435_v0 }
 0x5ef   : > { %11637 = vst [vmem:[%s15397_s27 + $0x28] sm:$0xff] %v11581_v11  }
 0x5f0   : > { %v9699_v9 = vpop.f32.mrf.mxu2  ;;  %9476 = vmatmul.bf16.gmra.mxu3 %v11007_v58  ;;  %v9613_v63 = vadd.f32 %v15444_v1, %v9524_v62  ;;  %v15718_v58 = vld [vmem:[#allocation23_spill] sm:$0xff] }
 0x5f1   : > { %v9700_v60 = vadd.f32 %v9699_v9, %v9611_v8 }
 0x5f2   : > { %v9538_v14 = vpop.f32.mrf.mxu0 }
 0x5f3   : > { %v9437_v53 = vpop.f32.mrf.mxu3  ;;  %v11475_v27 = vld [vmem:[#allocation4 + $0x454] sm:$0xf]  ;;  %v9761_v23 = vmax.f32 %v9700_v60, 0.0  ;;  %v9625_v55 = vpop.f32.mrf.mxu1 }
 0x5f4   : > { %v11015_v35 = vor.u32 %v11475_v27, %v11012_v22  ;;  %v9438_v41 = vadd.f32 %v9437_v53, %v15258_v5 }
 0x5f6   : > { %9654 = vmatmul.bf16.gmra.mxu1 %v11015_v35  ;;  %v9527_v42 = vadd.f32 %v15457_v30, %v9438_v41 }
 0x5f8   : > { %v9701_v4 = vpop.f32.mrf.mxu2  ;;  %v9616_v16 = vadd.f32 %v15462_v43, %v9527_v42 }
 0x5f9   : > { %v9702_v44 = vadd.f32 %v9701_v4, %v9613_v63 }
 0x5fa   : > { %v9541_v45 = vpop.f32.mrf.mxu0 }
 0x5fb   : > { %v9762_v51 = vmax.f32 %v9702_v44, 0.0  ;;  %v9439_v56 = vpop.f32.mrf.mxu3  ;;  %v9627_v30 = vpop.f32.mrf.mxu1 }
 0x5fc   : > { %v9440_v32 = vadd.f32 %v9439_v56, %v15270_v3 }
 0x5fd   : > { %v11586_v29 = vpack.c.bf16 %v9762_v51, %v9761_v23  ;;  %9743 = vmatmul.bf16.gmra.mxu2 %v11019_v2 }
 0x5fe   : > { %v9529_v36 = vadd.f32 %v15472_v50, %v9440_v32 }
 0x5ff   : > { %11638 = vst [vmem:[%s15397_s27 + $0x30] sm:$0xff] %v11586_v29  }
 0x600   : > { %v9704_v1 = vpop.f32.mrf.mxu2  ;;  %v9618_v5 = vadd.f32 %v15478_v13, %v9529_v36 }
 0x601   : > { %v9705_v20 = vadd.f32 %v9704_v1, %v9616_v16 }
 0x602   : > { %v9543_v2 = vpop.f32.mrf.mxu0 }
 0x603   : > { %v9442_v37 = vpop.f32.mrf.mxu3  ;;  %v9763_v28 = vmax.f32 %v9705_v20, 0.0  ;;  %v9630_v8 = vpop.f32.mrf.mxu1 }
 0x604   : > { %v9443_v7 = vadd.f32 %v9442_v37, %v15718_v58 }
 0x606   : > { %v9532_v59 = vadd.f32 %v15483_v17, %v9443_v7 }
 0x608   : > { %v9706_v15 = vpop.f32.mrf.mxu2  ;;  %v9621_v33 = vadd.f32 %v9620_v31, %v9532_v59 }
 0x609   : > { %v9707_v11 = vadd.f32 %v9706_v15, %v9618_v5 }
 0x60a   : > { %v9546_v41 = vpop.f32.mrf.mxu0 }
 0x60b   : > { %v9764_v0 = vmax.f32 %v9707_v11, 0.0  ;;  %v9444_v3 = vpop.f32.mrf.mxu3  ;;  %v9632_v23 = vpop.f32.mrf.mxu1 }
 0x60c   : > { %v9445_v50 = vadd.f32 %v9444_v3, %v15719_v21 }
 0x60d   : > { %v11591_v9 = vpack.c.bf16 %v9764_v0, %v9763_v28 }
 0x60e   : > { %v9534_v43 = vadd.f32 %v9533_v34, %v9445_v50 }
 0x60f   : > { %11639 = vst [vmem:[%s15397_s27 + $0x38] sm:$0xff] %v11591_v9  }
 0x610   : > { %v9709_v10 = vpop.f32.mrf.mxu2  ;;  %v9623_v53 = vadd.f32 %v9622_v25, %v9534_v43 }
 0x611   : > { %v9710_v62 = vadd.f32 %v9709_v10, %v9621_v33 }
 0x612   : > { %v9548_v5 = vpop.f32.mrf.mxu0 }
 0x613   : > { %v9447_v13 = vpop.f32.mrf.mxu3  ;;  %v9765_v60 = vmax.f32 %v9710_v62, 0.0 }
 0x614   : > { %v9448_v22 = vadd.f32 %v9447_v13, %v15298_v57  ;;  %v9635_v57 = vpop.f32.mrf.mxu1 }
 0x616   : > { %v9537_v34 = vadd.f32 %v9536_v6, %v9448_v22 }
 0x618   : > { %v9711_v38 = vpop.f32.mrf.mxu2  ;;  %v9626_v25 = vadd.f32 %v9625_v55, %v9537_v34 }
 0x619   : > { %v9712_v47 = vadd.f32 %v9711_v38, %v9623_v53 }
 0x61b   : > { %v9766_v63 = vmax.f32 %v9712_v47, 0.0  ;;  %v9449_v4 = vpop.f32.mrf.mxu3 }
 0x61c   : > { %v9450_v17 = vadd.f32 %v9449_v4, %v15310_v49 }
 0x61d   : > { %v11596_v44 = vpack.c.bf16 %v9766_v63, %v9765_v60 }
 0x61e   : > { %v9539_v31 = vadd.f32 %v9538_v14, %v9450_v17  ;;  %v9637_v14 = vpop.f32.mrf.mxu1 }
 0x61f   : > { %11640 = vst [vmem:[%s15397_s27 + $0x40] sm:$0xff] %v11596_v44  }
 0x620   : > { %v9714_v27 = vpop.f32.mrf.mxu2  ;;  %v9628_v56 = vadd.f32 %v9627_v30, %v9539_v31  ;;  %v9551_v30 = vpop.f32.mrf.mxu0 }
 0x621   : > { %v9715_v35 = vadd.f32 %v9714_v27, %v9626_v25 }
 0x623   : > { %v9452_v51 = vpop.f32.mrf.mxu3  ;;  %v9767_v1 = vmax.f32 %v9715_v35, 0.0 }
 0x624   : > { %v9453_v37 = vadd.f32 %v9452_v51, %v15316_v46 }
 0x626   : > { %v9542_v20 = vadd.f32 %v9541_v45, %v9453_v37  ;;  %v9640_v10 = vpop.f32.mrf.mxu1 }
 0x628   : > { %v9716_v29 = vpop.f32.mrf.mxu2  ;;  %v9631_v11 = vadd.f32 %v9630_v8, %v9542_v20  ;;  %v9553_v62 = vpop.f32.mrf.mxu0 }
 0x629   : > { %v9717_v32 = vadd.f32 %v9716_v29, %v9628_v56 }
 0x62b   : > { %v9768_v42 = vmax.f32 %v9717_v32, 0.0  ;;  %v9454_v36 = vpop.f32.mrf.mxu3 }
 0x62c   : > { %v9455_v49 = vadd.f32 %v9454_v36, %v15320_v54 }
 0x62d   : > { %v11601_v16 = vpack.c.bf16 %v9768_v42, %v9767_v1 }
 0x62e   : > { %v9544_v55 = vadd.f32 %v9543_v2, %v9455_v49  ;;  %v9642_v60 = vpop.f32.mrf.mxu1 }
 0x62f   : > { %11641 = vst [vmem:[%s15397_s27 + $0x48] sm:$0xff] %v11601_v16  }
 0x630   : > { %v9719_v6 = vpop.f32.mrf.mxu2  ;;  %v9633_v0 = vadd.f32 %v9632_v23, %v9544_v55  ;;  %v9556_v2 = vpop.f32.mrf.mxu0 }
 0x631   : > { %v9720_v28 = vadd.f32 %v9719_v6, %v9631_v11 }
 0x633   : > { %v9457_v15 = vpop.f32.mrf.mxu3  ;;  %v9769_v7 = vmax.f32 %v9720_v28, 0.0 }
 0x634   : > { %v9458_v21 = vadd.f32 %v9457_v15, %v15326_v48 }
 0x636   : > { %v9547_v43 = vadd.f32 %v9546_v41, %v9458_v21  ;;  %v9645_v23 = vpop.f32.mrf.mxu1 }
 0x638   : > { %v9721_v3 = vpop.f32.mrf.mxu2  ;;  %v9636_v33 = vadd.f32 %v9635_v57, %v9547_v43  ;;  %v9558_v29 = vpop.f32.mrf.mxu0 }
 0x639   : > { %v9722_v58 = vadd.f32 %v9721_v3, %v9633_v0 }
 0x63b   : > { %v9770_v9 = vmax.f32 %v9722_v58, 0.0  ;;  %v9459_v46 = vpop.f32.mrf.mxu3 }
 0x63c   : > { %v9460_v54 = vadd.f32 %v9459_v46, %v15334_v61 }
 0x63d   : > { %v11606_v50 = vpack.c.bf16 %v9770_v9, %v9769_v7 }
 0x63e   : > { %v9549_v45 = vadd.f32 %v9548_v5, %v9460_v54 }
 0x63f   : > { %11642 = vst [vmem:[%s15397_s27 + $0x50] sm:$0xff] %v11606_v50  }
 0x640   : > { %v9724_v59 = vpop.f32.mrf.mxu2  ;;  %v9638_v8 = vadd.f32 %v9637_v14, %v9549_v45  ;;  %v9561_v6 = vpop.f32.mrf.mxu0 }
 0x641   : > { %v9725_v53 = vadd.f32 %v9724_v59, %v9636_v33 }
 0x643   : > { %v9462_v13 = vpop.f32.mrf.mxu3  ;;  %v9771_v63 = vmax.f32 %v9725_v53, 0.0 }
 0x644   : > { %v9463_v22 = vadd.f32 %v9462_v13, %v15344_v18 }
 0x646   : > { %v9552_v27 = vadd.f32 %v9551_v30, %v9463_v22 }
 0x648   : > { %v9726_v38 = vpop.f32.mrf.mxu2  ;;  %v9641_v51 = vadd.f32 %v9640_v10, %v9552_v27  ;;  %v9563_v9 = vpop.f32.mrf.mxu0 }
 0x649   : > { %v9727_v47 = vadd.f32 %v9726_v38, %v9638_v8 }
 0x64b   : > { %v9772_v4 = vmax.f32 %v9727_v47, 0.0  ;;  %v9464_v48 = vpop.f32.mrf.mxu3 }
 0x64c   : > { %v9465_v61 = vadd.f32 %v9464_v48, %v15348_v24  ;;  %v9647_v24 = vpop.f32.mrf.mxu1 }
 0x64d   : > { %v11611_v44 = vpack.c.bf16 %v9772_v4, %v9771_v63 }
 0x64e   : > { %v9554_v34 = vadd.f32 %v9553_v62, %v9465_v61 }
 0x64f   : > { %11643 = vst [vmem:[%s15397_s27 + $0x58] sm:$0xff] %v11611_v44  }
 0x650   : > { %v9729_v17 = vpop.f32.mrf.mxu2  ;;  %v9643_v35 = vadd.f32 %v9642_v60, %v9554_v34 }
 0x651   : > { %v9730_v25 = vadd.f32 %v9729_v17, %v9641_v51 }
 0x653   : > { %v9467_v31 = vpop.f32.mrf.mxu3  ;;  %v9773_v32 = vmax.f32 %v9730_v25, 0.0 }
 0x654   : > { %v9468_v42 = vadd.f32 %v9467_v31, %v15354_v40  ;;  %v9650_v11 = vpop.f32.mrf.mxu1 }
 0x656   : > { %v9557_v16 = vadd.f32 %v9556_v2, %v9468_v42 }
 0x658   : > { %v9731_v56 = vpop.f32.mrf.mxu2  ;;  %v9646_v5 = vadd.f32 %v9645_v23, %v9557_v16 }
 0x659   : > { %v9732_v41 = vadd.f32 %v9731_v56, %v9643_v35 }
 0x65b   : > { %v9774_v1 = vmax.f32 %v9732_v41, 0.0  ;;  %v9469_v18 = vpop.f32.mrf.mxu3 }
 0x65c   : > { %v9470_v36 = vadd.f32 %v9469_v18, %v15358_v26  ;;  %v9652_v21 = vpop.f32.mrf.mxu1 }
 0x65d   : > { %v11616_v57 = vpack.c.bf16 %v9774_v1, %v9773_v32 }
 0x65e   : > { %v9559_v49 = vadd.f32 %v9558_v29, %v9470_v36 }
 0x65f   : > { %11644 = vst [vmem:[%s15397_s27 + $0x60] sm:$0xff] %v11616_v57  }
 0x660   : > { %v9734_v37 = vpop.f32.mrf.mxu2  ;;  %v9648_v15 = vadd.f32 %v9647_v24, %v9559_v49 }
 0x661   : > { %v9735_v55 = vadd.f32 %v9734_v37, %v9646_v5 }
 0x663   : > { %v9472_v20 = vpop.f32.mrf.mxu3  ;;  %v9775_v0 = vmax.f32 %v9735_v55, 0.0 }
 0x664   : > { %v9473_v58 = vadd.f32 %v9472_v20, %v15364_v19 }
 0x666   : > { %v9562_v46 = vadd.f32 %v9561_v6, %v9473_v58 }
 0x668   : > { %v9736_v14 = vpop.f32.mrf.mxu2  ;;  %v9651_v10 = vadd.f32 %v9650_v11, %v9562_v46  ;;  %v9566_v59 = vpop.f32.mrf.mxu0 }
 0x669   : > { %v9737_v28 = vadd.f32 %v9736_v14, %v9648_v15 }
 0x66b   : > { %v9776_v3 = vmax.f32 %v9737_v28, 0.0  ;;  %v9474_v40 = vpop.f32.mrf.mxu3 }
 0x66c   : > { %v9475_v26 = vadd.f32 %v9474_v40, %v15368_v12 }
 0x66d   : > { %v11621_v7 = vpack.c.bf16 %v9776_v3, %v9775_v0 }
 0x66e   : > { %v9564_v50 = vadd.f32 %v9563_v9, %v9475_v26 }
 0x66f   : > { %11645 = vst [vmem:[%s15397_s27 + $0x68] sm:$0xff] %v11621_v7  }
 0x670   : > { %v9739_v30 = vpop.f32.mrf.mxu2  ;;  %v9653_v45 = vadd.f32 %v9652_v21, %v9564_v50  ;;  %v9568_v60 = vpop.f32.mrf.mxu0 }
 0x671   : > { %v9740_v43 = vadd.f32 %v9739_v30, %v9651_v10 }
 0x673   : > { %v9477_v54 = vpop.f32.mrf.mxu3  ;;  %v9655_v62 = vpop.f32.mrf.mxu1  ;;  %v9777_v53 = vmax.f32 %v9740_v43, 0.0 }
 0x674   : > { %v9478_v38 = vadd.f32 %v9477_v54, %v15372_v52 }
 0x676   : > { %v9567_v4 = vadd.f32 %v9566_v59, %v9478_v38 }
 0x678   : > { %v9741_v13 = vpop.f32.mrf.mxu2  ;;  %v9656_v44 = vadd.f32 %v9655_v62, %v9567_v4 }
 0x679   : > { %v9742_v33 = vadd.f32 %v9741_v13, %v9653_v45 }
 0x67b   : > { %v9778_v19 = vmax.f32 %v9742_v33, 0.0  ;;  %v9479_v8 = vpop.f32.mrf.mxu3  ;;  %v9657_v22 = vpop.f32.mrf.mxu1 }
 0x67c   : > { %v9480_v12 = vadd.f32 %v9479_v8, %v15377_v39 }
 0x67d   : > { %v11626_v47 = vpack.c.bf16 %v9778_v19, %v9777_v53 }
 0x67e   : > { %v9569_v48 = vadd.f32 %v9568_v60, %v9480_v12 }
 0x67f   : > { %11646 = vst [vmem:[%s15397_s27 + $0x70] sm:$0xff] %v11626_v47  }
 0x680   : > { %v9744_v63 = vpop.f32.mrf.mxu2  ;;  %v9658_v61 = vadd.f32 %v9657_v22, %v9569_v48 }
 0x681   : > { %v9745_v2 = vadd.f32 %v9744_v63, %v9656_v44 }
 0x683   : > { %v9779_v34 = vmax.f32 %v9745_v2, 0.0 }
 0x688   : > { %v9746_v17 = vpop.f32.mrf.mxu2 }
 0x689   : > { %v9747_v27 = vadd.f32 %v9746_v17, %v9658_v61 }
 0x68b   : > { %v9780_v23 = vmax.f32 %v9747_v27, 0.0 }
 0x68d   : > { %v11631_v31 = vpack.c.bf16 %v9780_v23, %v9779_v34 }
 0x68f   : > { %11647 = vst [vmem:[%s15397_s27 + $0x78] sm:$0xff] %v11631_v31  }
 0x690 PF: > { %s15_s20 = sadd.s32 1, %s11728_s20   ;;  %s15720_s18 = smov %s11724_s19 }
 0x691   : > { %p12_p5 = scmp.ge.s32.totalorder %s15_s20, 4   ;;  %s15721_s19 = smov %s15723_s21 }
 0x693   :  { %14 = sbr.rel (!%p12_p5) target bundleno = 2 (0x2), region = 75 }

</bundles_post_ra>
